<compile_context>
chip_gen: v7x
topology: tpu7x:2x2x1
jax: 0.10.0
libtpu: 0.0.40
codegen_flags: <defaults>
</compile_context>

<pallas_src>
import functools

import jax
import jax.numpy as jnp
from jax import lax
from jax.experimental import pallas as pl
from jax.experimental.pallas import tpu as pltpu


# ----------------------------------------------------------------------------
# pltpu.roll direction / support probe (set once in __main__ before tracing)
# ----------------------------------------------------------------------------
_ROLL_MODE = "jnp"   # "jnp": pltpu.roll == jnp.roll; "neg": opposite sign; "off": use concat


def _probe_roll_mode():
    """Detect pltpu.roll support & shift direction with a tiny kernel."""
    global _ROLL_MODE

    def k(x_ref, o_ref):
        o_ref[...] = pltpu.roll(x_ref[...], 1, 0)

    x = jnp.arange(8 * 128, dtype=jnp.float32).reshape(8, 128)
    try:
        y = pl.pallas_call(k, out_shape=jax.ShapeDtypeStruct((8, 128), jnp.float32))(x)
        y = jax.block_until_ready(y)
        if bool(jnp.array_equal(y, jnp.roll(x, 1, 0))):
            _ROLL_MODE = "jnp"
        elif bool(jnp.array_equal(y, jnp.roll(x, -1, 0))):
            _ROLL_MODE = "neg"
        else:
            _ROLL_MODE = "off"
    except Exception:   # roll unsupported here -> fall back to concat halo
        _ROLL_MODE = "off"


# ----------------------------------------------------------------------------
# In-kernel helpers
# ----------------------------------------------------------------------------
def _shift_up(x3, edge):
    """y[b, t] = x3[b, t-1] for t > 0; y[b, 0] = edge[b, 0].  XLU roll + select."""
    B, T, C = x3.shape
    if _ROLL_MODE == "off":
        return jnp.concatenate([edge, x3[:, :T - 1, :]], axis=1)
    sh = 1 if _ROLL_MODE == "jnp" else B * T - 1
    r = pltpu.roll(x3.reshape(B * T, C), sh, 0).reshape(B, T, C)
    row = lax.broadcasted_iota(jnp.int32, (1, T, 1), 1)
    return jnp.where(row == 0, edge, r)


def _shift_down(x3, edge):
    """y[b, t] = x3[b, t+1] for t < T-1; y[b, T-1] = edge[b, 0]."""
    B, T, C = x3.shape
    if _ROLL_MODE == "off":
        return jnp.concatenate([x3[:, 1:, :], edge], axis=1)
    sh = B * T - 1 if _ROLL_MODE == "jnp" else 1
    r = pltpu.roll(x3.reshape(B * T, C), sh, 0).reshape(B, T, C)
    row = lax.broadcasted_iota(jnp.int32, (1, T, 1), 1)
    return jnp.where(row == T - 1, edge, r)


def _conv3(prev, cur, nxt, w_ref):
    """K=3 conv as MXU matmul(s).

    prev/cur/nxt : (B, T, C) float32 taps (tap k = x[t + k - 1])
    w_ref        : Ref (Krows, Cout) bf16; rows [kC:(k+1)C] = tap k (zero-padded
                   past 3C for the 64-channel stage).
    returns (B*T, Cout) float32
    """
    B, T, C = cur.shape
    M = B * T
    if C >= 256:
        # Accumulated K=C dots: contraction already fills the MXU, 1/3 the tap
        # VMEM, and no lane-dim concat relayout (v7x MRB accumulates in place).
        acc = jnp.dot(prev.astype(jnp.bfloat16).reshape(M, C), w_ref[0:C, :],
                      preferred_element_type=jnp.float32)
        acc = acc + jnp.dot(cur.astype(jnp.bfloat16).reshape(M, C), w_ref[C:2 * C, :],
                            preferred_element_type=jnp.float32)
        acc = acc + jnp.dot(nxt.astype(jnp.bfloat16).reshape(M, C), w_ref[2 * C:3 * C, :],
                            preferred_element_type=jnp.float32)
        return acc
    # C in {64, 128}: fold K into one contraction; 192 is zero-padded to 256
    # (weight rows already padded) so one full MXU push replaces 3 quarter ones.
    kdim = w_ref.shape[0]
    parts = [prev.astype(jnp.bfloat16), cur.astype(jnp.bfloat16), nxt.astype(jnp.bfloat16)]
    if kdim > 3 * C:
        parts.append(jnp.zeros((B, T, kdim - 3 * C), jnp.bfloat16))
    taps = jnp.concatenate(parts, axis=-1).reshape(M, kdim)
    return jnp.dot(taps, w_ref[...], preferred_element_type=jnp.float32)


# ----------------------------------------------------------------------------
# Pallas kernels
# ----------------------------------------------------------------------------
def _stem_kernel(taps_ref, w_ref, scale_ref, shift_ref, o_ref):
    """Fused stem: conv1d(K=7, s=2; im2col'd in wrapper) + BN + ReLU + maxpool(3,2,1).

    taps_ref : (2, 1, Lp, K*Cin) bf16 ([0] = conv positions 2l, [1] = 2l+1)
    o_ref    : (1, Lp, 64) bf16 (Lp = pooled length); grid is over batch.
    """
    _, _, Lp, KC = taps_ref.shape
    Cout = w_ref.shape[1]
    t = taps_ref[...].reshape(2 * Lp, KC)
    y = jnp.dot(t, w_ref[...], preferred_element_type=jnp.float32)
    y = jnp.maximum(y * scale_ref[...] + shift_ref[...], 0.0)
    y = y.reshape(2, Lp, Cout)
    y_even, y_odd = y[0], y[1]                 # conv output at 2l / 2l+1
    # Pool window for output l is conv positions {2l-1, 2l, 2l+1}.  Post-ReLU
    # outputs are >= 0, so a 0 stand-in for the missing position -1 is exact.
    zero_edge = jnp.zeros((1, 1, Cout), jnp.float32)
    prev_odd = _shift_up(y_odd[None], zero_edge)[0]
    pooled = jnp.maximum(jnp.maximum(y_even, y_odd), prev_odd)
    o_ref[...] = pooled.reshape(1, Lp, Cout).astype(o_ref.dtype)


def _block_kernel(x_ref, halo_ref, w1_ref, s1_ref, b1_ref, w2_ref, s2_ref, b2_ref,
                  *rest, has_ds):
    """Fused BasicBlock on one L-tile:
    [1x1 downsample] + conv1+BN1+ReLU + conv2+BN2 + residual + ReLU."""
    if has_ds:
        wd_ref, sd_ref, bd_ref, o_ref = rest
    else:
        (o_ref,) = rest

    B, TL, Cin = x_ref.shape
    Cout = w1_ref.shape[1]
    li = pl.program_id(0)
    nL = pl.num_programs(0)

    xb = x_ref[...]                                   # (B, TL, Cin) bf16
    xf = xb.astype(jnp.float32)
    hal = halo_ref[0].astype(jnp.float32)             # (4, B, Cin): x[-2], x[-1], x[TL], x[TL+1]
    xm2, xm1 = hal[0][:, None, :], hal[1][:, None, :]
    xp0, xp1 = hal[2][:, None, :], hal[3][:, None, :]

    # ---- conv1 + BN1 + ReLU on this tile's TL rows (taps via XLU shift) -----
    prev = _shift_up(xf, xm1)
    nxt = _shift_down(xf, xp0)
    h = _conv3(prev, xf, nxt, w1_ref)                  # (B*TL, Cout) f32
    h = jnp.maximum(h * s1_ref[...] + b1_ref[...], 0.0)
    h3 = h.reshape(B, TL, Cout)

    # ---- conv1 at tile-boundary positions -1 / TL (conv2's halo rows) -------
    # At the true sequence edges these are conv2's zero padding instead.
    hl = _conv3(xm2, xm1, xf[:, 0:1, :], w1_ref)
    hl = jnp.maximum(hl * s1_ref[...] + b1_ref[...], 0.0).reshape(B, 1, Cout)
    hl = jnp.where(li == 0, 0.0, hl)
    hr = _conv3(xf[:, TL - 1:TL, :], xp0, xp1, w1_ref)
    hr = jnp.maximum(hr * s1_ref[...] + b1_ref[...], 0.0).reshape(B, 1, Cout)
    hr = jnp.where(li == nL - 1, 0.0, hr)

    # ---- identity path (1x1 stride-1 conv + BN when in_dim != out_dim) ------
    if has_ds:
        idn = jnp.dot(xb.reshape(B * TL, Cin), wd_ref[...],
                      preferred_element_type=jnp.float32)
        idn = idn * sd_ref[...] + bd_ref[...]
    else:
        idn = xf.reshape(B * TL, Cin)                  # Cin == Cout

    # ---- conv2 + BN2 + residual + ReLU; h never leaves VMEM -----------------
    hprev = _shift_up(h3, hl)
    hnext = _shift_down(h3, hr)
    out = _conv3(hprev, h3, hnext, w2_ref)
    out = jnp.maximum(out * s2_ref[...] + b2_ref[...] + idn, 0.0)
    o_ref[...] = out.reshape(B, TL, Cout).astype(o_ref.dtype)


def _mean_kernel(x_ref, o_ref):
    """AdaptiveAvgPool1d(1): mean over the sequence dim (f32 accumulation)."""
    o_ref[...] = jnp.mean(x_ref[...].astype(jnp.float32), axis=1)


# ----------------------------------------------------------------------------
# Wrapper-side helpers
# ----------------------------------------------------------------------------
def _fold_bn(conv_bias, bn, eps=1e-5):
    s = bn["gamma"] / jnp.sqrt(bn["var"] + eps)
    shift = (conv_bias - bn["mean"]) * s + bn["beta"]
    return s.astype(jnp.float32), shift.astype(jnp.float32)


def _pack_conv3(w):
    """(3, Cin, Cout) -> (Krows, Cout) bf16.  3*Cin is zero-padded to 256 when
    Cin == 64 so the folded dot fills the MXU contraction depth."""
    K, Cin, Cout = w.shape
    w2 = w.reshape(K * Cin, Cout)
    if Cin < 128:
        w2 = jnp.pad(w2, ((0, 256 - K * Cin), (0, 0)))
    return w2.astype(jnp.bfloat16)


def _pick_l_tile(L, B, cin, cout, l_tile=None):
    """Largest multiple-of-8 divisor of L below a per-tile VMEM budget."""
    if L <= 8:
        return L
    if l_tile is None:
        per_row = B * (8 * cin + 4 * cout + 4 * (3 * max(cin, cout) + 4 * cout))
        budget = 24 * 1024 * 1024          # keep per-tile set well under v7x VMEM
        l_tile = max(8, budget // max(per_row, 1))
    tl = min(int(l_tile), 512, L)
    if tl >= L:
        return L
    tl = max(8, (tl // 8) * 8)
    while L % tl:
        tl -= 8
        if tl < 8:
            return L
    return tl


def _build_halo(x, TL, nL):
    """Per-tile boundary rows (nL, 4, B, C): x[start-2], x[start-1], x[end], x[end+1]
    (zeros outside [0, L)).  Tiny: 4 rows per tile, avoids any im2col in HBM."""
    B, L, C = x.shape
    xp = jnp.pad(x, ((0, 0), (2, 2), (0, 0)))
    starts = jnp.arange(nL) * TL
    idx = starts[:, None] + jnp.array([0, 1, TL + 2, TL + 3])[None, :]   # padded coords
    halo = xp[:, idx, :]                                                 # (B, nL, 4, C)
    return jnp.transpose(halo, (1, 2, 0, 3))                             # (nL, 4, B, C)


def _vmem_limit(est_bytes):
    # Cover the double-buffered working set; stay within v7x's 64 MiB physical
    # VMEM (v5e/v6e have 128 MiB and 16/32 MiB scoped defaults).
    return int(min(max(2 * est_bytes, 32 * 1024 * 1024), 64 * 1024 * 1024))


# ----------------------------------------------------------------------------
# Forward wrappers (pallas_call sites)
# ----------------------------------------------------------------------------
def stem_forward(x, conv_w, bn, *, stride=2, pad=3):
    """x: (B, L, Cin) f32, conv_w: (K, Cin, 64) -> (B, Lpool, 64) bf16."""
    B, L, Cin = x.shape
    K, _, Cout = conv_w.shape
    Lc = (L + 2 * pad - K) // stride + 1
    assert Lc % 2 == 0, "fused stem maxpool assumes an even conv-output length"
    Lp = Lc // 2
    xp = jnp.pad(x, ((0, 0), (pad, pad), (0, 0)))
    idx = stride * jnp.arange(Lc)[:, None] + jnp.arange(K)[None, :]
    cols = xp[:, idx, :].reshape(B, Lc, K * Cin)        # tiny im2col (Cin = n_channels)
    taps = jnp.stack([cols[:, 0::2, :], cols[:, 1::2, :]], axis=0).astype(jnp.bfloat16)
    scale, shift = _fold_bn(jnp.zeros((Cout,), jnp.float32), bn)
    KC = K * Cin
    return pl.pallas_call(
        _stem_kernel,
        grid=(B,),
        in_specs=[pl.BlockSpec((2, 1, Lp, KC), lambda b: (0, b, 0, 0)),
                  pl.BlockSpec((KC, Cout), lambda b: (0, 0)),
                  pl.BlockSpec((1, Cout), lambda b: (0, 0)),
                  pl.BlockSpec((1, Cout), lambda b: (0, 0))],
        out_specs=pl.BlockSpec((1, Lp, Cout), lambda b: (b, 0, 0)),
        out_shape=jax.ShapeDtypeStruct((B, Lp, Cout), jnp.bfloat16),
        compiler_params=pltpu.CompilerParams(
            dimension_semantics=("parallel",),
            vmem_limit_bytes=32 * 1024 * 1024),
        cost_estimate=pl.CostEstimate(
            flops=2 * B * Lc * KC * Cout, transcendentals=0,
            bytes_accessed=int(taps.size) * 2 + KC * Cout * 2 + B * Lp * Cout * 2),
    )(taps, conv_w.reshape(KC, Cout).astype(jnp.bfloat16),
      scale.reshape(1, Cout), shift.reshape(1, Cout))


def basic_block_forward(x, p, *, l_tile=None):
    """x: (B, L, Cin) bf16 -> (B, L, Cout) bf16; one fused, L-tiled pallas_call."""
    B, L, Cin = x.shape
    Cout = p["conv1"]["w"].shape[2]
    TL = _pick_l_tile(L, B, Cin, Cout, l_tile=l_tile)
    nL = L // TL

    w1 = _pack_conv3(p["conv1"]["w"])
    s1, b1 = _fold_bn(p["conv1"]["b"], p["bn1"])
    w2 = _pack_conv3(p["conv2"]["w"])
    s2, b2 = _fold_bn(jnp.zeros((Cout,), jnp.float32), p["bn2"])
    halo = _build_halo(x, TL, nL)

    args = [x, halo, w1, s1.reshape(1, Cout), b1.reshape(1, Cout),
            w2, s2.reshape(1, Cout), b2.reshape(1, Cout)]
    in_specs = [
        pl.BlockSpec((B, TL, Cin), lambda li: (0, li, 0)),
        pl.BlockSpec((1, 4, B, Cin), lambda li: (li, 0, 0, 0)),
        pl.BlockSpec(w1.shape, lambda li: (0, 0)),
        pl.BlockSpec((1, Cout), lambda li: (0, 0)),
        pl.BlockSpec((1, Cout), lambda li: (0, 0)),
        pl.BlockSpec(w2.shape, lambda li: (0, 0)),
        pl.BlockSpec((1, Cout), lambda li: (0, 0)),
        pl.BlockSpec((1, Cout), lambda li: (0, 0)),
    ]
    has_ds = p["downsample"] is not None
    wd_bytes = 0
    if has_ds:
        ds = p["downsample"]
        wd = ds["conv"]["w"].reshape(Cin, Cout).astype(jnp.bfloat16)
        sd, bd = _fold_bn(jnp.zeros((Cout,), jnp.float32), ds["bn"])
        args += [wd, sd.reshape(1, Cout), bd.reshape(1, Cout)]
        in_specs += [pl.BlockSpec((Cin, Cout), lambda li: (0, 0)),
                     pl.BlockSpec((1, Cout), lambda li: (0, 0)),
                     pl.BlockSpec((1, Cout), lambda li: (0, 0))]
        wd_bytes = Cin * Cout * 2

    w_bytes = int(w1.size + w2.size) * 2 + wd_bytes + 6 * Cout * 4
    est = (2 * (B * TL * Cin * 2 + B * TL * Cout * 2) + w_bytes
           + B * TL * (3 * max(Cin, Cout) + 4 * Cout + Cin) * 4 + 8 * B * Cin)
    flops = 2 * B * L * (3 * Cin) * Cout + 2 * B * L * (3 * Cout) * Cout
    if has_ds:
        flops += 2 * B * L * Cin * Cout
    bytes_accessed = 2 * B * L * (Cin + Cout) + 2 * nL * 4 * B * Cin + w_bytes

    return pl.pallas_call(
        functools.partial(_block_kernel, has_ds=has_ds),
        grid=(nL,),
        in_specs=in_specs,
        out_specs=pl.BlockSpec((B, TL, Cout), lambda li: (0, li, 0)),
        out_shape=jax.ShapeDtypeStruct((B, L, Cout), jnp.bfloat16),
        compiler_params=pltpu.CompilerParams(
            dimension_semantics=("parallel",),
            vmem_limit_bytes=_vmem_limit(est)),
        cost_estimate=pl.CostEstimate(flops=flops, transcendentals=0,
                                      bytes_accessed=bytes_accessed),
    )(*args)


def avgpool_fc(x, w, b):
    """AdaptiveAvgPool1d(1) in Pallas; the tiny 32-lane FC stays in XLA
    (avoids a fully-masked-store, ~1%-utilized MXU Pallas pass)."""
    mean = pl.pallas_call(
        _mean_kernel,
        out_shape=jax.ShapeDtypeStruct((x.shape[0], x.shape[2]), jnp.float32),
    )(x)
    return jnp.dot(mean, w.astype(jnp.float32)) + b.astype(jnp.float32)


# ----------------------------------------------------------------------------
# Parameters (deterministic synthetic init)
# ----------------------------------------------------------------------------
def _init_conv(key, K, cin, cout, bias):
    kw, kb = jax.random.split(key)
    w = jax.random.normal(kw, (K, cin, cout), jnp.float32) / jnp.sqrt(K * cin)
    b = (0.01 * jax.random.normal(kb, (cout,), jnp.float32)
         if bias else jnp.zeros((cout,), jnp.float32))
    return {"w": w, "b": b}


def _init_bn(key, c):
    k1, k2, k3, k4 = jax.random.split(key, 4)
    return {"gamma": 1.0 + 0.1 * jax.random.normal(k1, (c,), jnp.float32),
            "beta": 0.1 * jax.random.normal(k2, (c,), jnp.float32),
            "mean": 0.1 * jax.random.normal(k3, (c,), jnp.float32),
            "var": 0.5 + jax.random.uniform(k4, (c,), jnp.float32)}


def _init_block(key, in_dim, out_dim):
    k = jax.random.split(key, 6)
    p = {"conv1": _init_conv(k[0], 3, in_dim, out_dim, bias=True),
         "bn1": _init_bn(k[1], out_dim),
         "conv2": _init_conv(k[2], 3, out_dim, out_dim, bias=False),
         "bn2": _init_bn(k[3], out_dim),
         "downsample": None}
    if in_dim != out_dim:  # BasicBlock builds its own 1x1 (stride-1) downsample
        p["downsample"] = {"conv": _init_conv(k[4], 1, in_dim, out_dim, bias=False),
                           "bn": _init_bn(k[5], out_dim)}
    return p


def init_resnet34(key, layers, n_channels, out_dim):
    keys = jax.random.split(key, 4 + sum(layers))
    params = {"conv1": _init_conv(keys[0], 7, n_channels, 64, bias=False),
              "bn1": _init_bn(keys[1], 64),
              "stages": []}
    in_planes, ki = 64, 2
    for planes, n_blocks in zip((64, 128, 256, 512), layers):
        stage = []
        for _ in range(n_blocks):
            stage.append(_init_block(keys[ki], in_planes, planes))
            in_planes = planes
            ki += 1
        params["stages"].append(stage)
    kfw, kfb = jax.random.split(keys[ki])
    params["fc_w"] = jax.random.normal(kfw, (512, out_dim), jnp.float32) / jnp.sqrt(512.0)
    params["fc_b"] = 0.01 * jax.random.normal(kfb, (out_dim,), jnp.float32)
    return params


# ----------------------------------------------------------------------------
# Forward pass (Pallas) and pure-JAX reference
# ----------------------------------------------------------------------------
def resnet34_forward(params, x_ncl, *, l_tile=None):
    """x_ncl: (B, n_channels, L) as in PyTorch.  Returns (B, out_dim) float32."""
    x = jnp.transpose(x_ncl, (0, 2, 1))                 # -> (B, L, C) channels-last
    x = stem_forward(x, params["conv1"]["w"], params["bn1"])
    for stage in params["stages"]:
        for blk in stage:
            x = basic_block_forward(x, blk, l_tile=l_tile)
    return avgpool_fc(x, params["fc_w"], params["fc_b"])


def _ref_conv3_same(x, w):
    B, L, C = x.shape
    Cout = w.shape[2]
    xp = jnp.pad(x, ((0, 0), (1, 1), (0, 0)))
    taps = jnp.concatenate([xp[:, k:k + L, :] for k in range(3)], axis=-1)
    y = jnp.dot(taps.reshape(B * L, 3 * C).astype(jnp.bfloat16),
                w.reshape(3 * C, Cout).astype(jnp.bfloat16),
                preferred_element_type=jnp.float32)
    return y.reshape(B, L, Cout)


def _ref_block(x, p):
    B, L, Cin = x.shape
    Cout = p["conv1"]["w"].shape[2]
    s1, b1 = _fold_bn(p["conv1"]["b"], p["bn1"])
    h = jnp.maximum(_ref_conv3_same(x, p["conv1"]["w"]) * s1 + b1, 0.0)
    if p["downsample"] is not None:
        ds = p["downsample"]
        wd = ds["conv"]["w"].reshape(Cin, Cout).astype(jnp.bfloat16)
        sd, bd = _fold_bn(jnp.zeros((Cout,), jnp.float32), ds["bn"])
        idn = jnp.dot(x.reshape(B * L, Cin).astype(jnp.bfloat16), wd,
                      preferred_element_type=jnp.float32).reshape(B, L, Cout) * sd + bd
    else:
        idn = x.astype(jnp.float32)
    s2, b2 = _fold_bn(jnp.zeros((Cout,), jnp.float32), p["bn2"])
    out = _ref_conv3_same(h.astype(jnp.bfloat16), p["conv2"]["w"]) * s2 + b2 + idn
    return jnp.maximum(out, 0.0).astype(jnp.bfloat16)


def _ref_stem(x, conv_w, bn, *, stride=2, pad=3):
    B, L, Cin = x.shape
    K, _, Cout = conv_w.shape
    Lc = (L + 2 * pad - K) // stride + 1
    xp = jnp.pad(x, ((0, 0), (pad, pad), (0, 0)))
    idx = stride * jnp.arange(Lc)[:, None] + jnp.arange(K)[None, :]
    cols = xp[:, idx, :].reshape(B, Lc, K * Cin).astype(jnp.bfloat16)
    s, b = _fold_bn(jnp.zeros((Cout,), jnp.float32), bn)
    y = jnp.dot(cols.reshape(B * Lc, K * Cin),
                conv_w.reshape(K * Cin, Cout).astype(jnp.bfloat16),
                preferred_element_type=jnp.float32).reshape(B, Lc, Cout)
    y = jnp.maximum(y * s + b, 0.0)
    Lp = Lc // 2
    yp = jnp.pad(y, ((0, 0), (1, 1), (0, 0)))
    li = jnp.arange(Lp)
    pooled = jnp.maximum(jnp.maximum(yp[:, 2 * li, :], yp[:, 2 * li + 1, :]),
                         yp[:, 2 * li + 2, :])
    return pooled.astype(jnp.bfloat16)


def resnet34_ref(params, x_ncl):
    x = jnp.transpose(x_ncl, (0, 2, 1))
    x = _ref_stem(x, params["conv1"]["w"], params["bn1"])
    for stage in params["stages"]:
        for blk in stage:
            x = _ref_block(x, blk)
    mean = jnp.mean(x.astype(jnp.float32), axis=1)
    return jnp.dot(mean, params["fc_w"].astype(jnp.float32)) + params["fc_b"]


# ----------------------------------------------------------------------------
# Demo
# ----------------------------------------------------------------------------
if __name__ == "__main__":
    key = jax.random.PRNGKey(0)
    kp, kx = jax.random.split(key)

    # Small config: one BasicBlock per stage, 4 input channels, seq length 64.
    layers = [1, 1, 1, 1]   # demo depth; set [3, 4, 6, 3] for true ResNet-34
    n_channels, out_dim = 4, 32
    B, L = 2, 64

    params = init_resnet34(kp, layers, n_channels, out_dim)
    x = jax.random.normal(kx, (B, n_channels, L), jnp.float32)   # PyTorch NCL layout

    _probe_roll_mode()   # pick the pltpu.roll halo path (or concat fallback)

    fwd = jax.jit(resnet34_forward)
    y = fwd(params, x)
    jax.block_until_ready(y)

    # Forced multi-tile grid (2 L-tiles per block) to exercise cross-tile halos.
    fwd_tiled = jax.jit(functools.partial(resnet34_forward, l_tile=8))
    y_tiled = fwd_tiled(params, x)
    jax.block_until_ready(y_tiled)

    y_ref = jax.jit(resnet34_ref)(params, x)
    jax.block_until_ready(y_ref)

    assert y.shape == (B, out_dim) and y.dtype == jnp.float32
    assert y_tiled.shape == (B, out_dim)
    tol = 2e-2 * max(1.0, float(jnp.max(jnp.abs(y_ref))))
    err = float(jnp.max(jnp.abs(y - y_ref)))
    err_tiled = float(jnp.max(jnp.abs(y_tiled - y_ref)))
    assert err <= tol and err_tiled <= tol, (err, err_tiled, tol)
    print("KERNEL_OK")
</pallas_src>

<mosaic_0001>
module attributes {stable_mosaic.version = 11 : i64} {
  func.func @k(%arg0: memref<8x128xf32, #tpu.memory_space<vmem>>, %arg1: memref<8x128xf32, #tpu.memory_space<vmem>>) attributes {dimension_semantics = [], scalar_prefetch = 0 : i64, scratch_operands = 0 : i64, tpu.core_type = #tpu.core_type<tc>} {
    %c0 = arith.constant 0 : index
    %c0_0 = arith.constant 0 : index
    %0 = vector.load %arg0[%c0, %c0_0] : memref<8x128xf32, #tpu.memory_space<vmem>>, vector<8x128xf32>
    %c1_i32 = arith.constant 1 : i32
    %1 = tpu.dynamic_rotate %0 by %c1_i32 dim 0 : vector<8x128xf32>, i32 -> vector<8x128xf32>
    %c0_1 = arith.constant 0 : index
    %c0_2 = arith.constant 0 : index
    %2 = vector.load %arg1[%c0_1, %c0_2] : memref<8x128xf32, #tpu.memory_space<vmem>>, vector<8x128xf32>
    tpu.vector_store %arg1[%c0_1, %c0_2], %1 {strides = array<i32>} : memref<8x128xf32, #tpu.memory_space<vmem>>, vector<8x128xf32>,
    return
  }
}

module attributes {stable_mosaic.version = 11 : i64} {
  func.func @_stem_kernel(%arg0: i32, %arg1: memref<2x1x16x28xbf16, #tpu.memory_space<vmem>>, %arg2: memref<28x64xbf16, #tpu.memory_space<vmem>>, %arg3: memref<1x64xf32, #tpu.memory_space<vmem>>, %arg4: memref<1x64xf32, #tpu.memory_space<vmem>>, %arg5: memref<1x16x64xbf16, #tpu.memory_space<vmem>>) attributes {dimension_semantics = [#tpu.dimension_semantics<parallel>], iteration_bounds = array<i64: 2>, scalar_prefetch = 0 : i64, scratch_operands = 0 : i64, tpu.core_type = #tpu.core_type<tc>, window_params = [{transform_indices = @transform_0, window_bounds = array<i64: 2, 1, 16, 28>}, {pipeline_mode = #tpu.pipeline_mode<synchronous>, transform_indices = @transform_1, window_bounds = array<i64: 28, 64>}, {pipeline_mode = #tpu.pipeline_mode<synchronous>, transform_indices = @transform_2, window_bounds = array<i64: 1, 64>}, {pipeline_mode = #tpu.pipeline_mode<synchronous>, transform_indices = @transform_3, window_bounds = array<i64: 1, 64>}, {transform_indices = @transform_4, window_bounds = array<i64: 1, 16, 64>}]} {
    %c0 = arith.constant 0 : index
    %c0_0 = arith.constant 0 : index
    %c0_1 = arith.constant 0 : index
    %c0_2 = arith.constant 0 : index
    %0 = vector.load %arg1[%c0, %c0_0, %c0_1, %c0_2] : memref<2x1x16x28xbf16, #tpu.memory_space<vmem>>, vector<2x1x16x28xbf16>
    %1 = vector.shape_cast %0 : vector<2x1x16x28xbf16> to vector<32x28xbf16>
    %c0_3 = arith.constant 0 : index
    %c0_4 = arith.constant 0 : index
    %2 = vector.load %arg2[%c0_3, %c0_4] : memref<28x64xbf16, #tpu.memory_space<vmem>>, vector<28x64xbf16>
    %cst = arith.constant dense<0.000000e+00> : vector<32x64xf32>
    %3 = tpu.matmul %1, %2, %cst {dimension_numbers = #tpu.dot_dimension_numbers<[1], [0], [0], [1], [0, 0, 1, 1], [], []>} : vector<32x28xbf16>, vector<28x64xbf16>, vector<32x64xf32> -> vector<32x64xf32>
    %c0_5 = arith.constant 0 : index
    %c0_6 = arith.constant 0 : index
    %4 = vector.load %arg3[%c0_5, %c0_6] : memref<1x64xf32, #tpu.memory_space<vmem>>, vector<1x64xf32>
    %5 = vector.broadcast %4 : vector<1x64xf32> to vector<32x64xf32>
    %6 = arith.mulf %3, %5 : vector<32x64xf32>
    %c0_7 = arith.constant 0 : index
    %c0_8 = arith.constant 0 : index
    %7 = vector.load %arg4[%c0_7, %c0_8] : memref<1x64xf32, #tpu.memory_space<vmem>>, vector<1x64xf32>
    %8 = vector.broadcast %7 : vector<1x64xf32> to vector<32x64xf32>
    %9 = arith.addf %6, %8 : vector<32x64xf32>
    %cst_9 = arith.constant 0.000000e+00 : f32
    %10 = vector.broadcast %cst_9 : f32 to vector<32x64xf32>
    %11 = arith.maximumf %9, %10 : vector<32x64xf32>
    %12 = vector.shape_cast %11 : vector<32x64xf32> to vector<2x16x64xf32>
    %13 = vector.extract_strided_slice %12 {offsets = [0, 0, 0], sizes = [1, 16, 64], strides = [1, 1, 1]} : vector<2x16x64xf32> to vector<1x16x64xf32>
    %14 = vector.shape_cast %13 : vector<1x16x64xf32> to vector<16x64xf32>
    %15 = vector.extract_strided_slice %12 {offsets = [1, 0, 0], sizes = [1, 16, 64], strides = [1, 1, 1]} : vector<2x16x64xf32> to vector<1x16x64xf32>
    %16 = vector.shape_cast %15 : vector<1x16x64xf32> to vector<16x64xf32>
    %cst_10 = arith.constant 0.000000e+00 : f32
    %17 = vector.broadcast %cst_10 : f32 to vector<1x1x64xf32>
    %18 = vector.shape_cast %16 : vector<16x64xf32> to vector<1x16x64xf32>
    %19 = vector.extract_strided_slice %18 {offsets = [0, 0, 0], sizes = [1, 15, 64], strides = [1, 1, 1]} : vector<1x16x64xf32> to vector<1x15x64xf32>
    %20 = tpu.concatenate %17, %19 in 1 : vector<1x1x64xf32>, vector<1x15x64xf32> -> vector<1x16x64xf32>
    %21 = vector.shape_cast %20 : vector<1x16x64xf32> to vector<16x64xf32>
    %22 = arith.maximumf %14, %16 : vector<16x64xf32>
    %23 = arith.maximumf %22, %21 : vector<16x64xf32>
    %24 = vector.shape_cast %23 : vector<16x64xf32> to vector<1x16x64xf32>
    %25 = arith.truncf %24 : vector<1x16x64xf32> to vector<1x16x64xbf16>
    %c0_11 = arith.constant 0 : index
    %c0_12 = arith.constant 0 : index
    %c0_13 = arith.constant 0 : index
    %26 = vector.load %arg5[%c0_11, %c0_12, %c0_13] : memref<1x16x64xbf16, #tpu.memory_space<vmem>>, vector<1x16x64xbf16>
    tpu.vector_store %arg5[%c0_11, %c0_12, %c0_13], %25 {strides = array<i32>} : memref<1x16x64xbf16, #tpu.memory_space<vmem>>, vector<1x16x64xbf16>,
    return
  }
  func.func @transform_0(%arg0: i32) -> (i32, i32, i32, i32) {
    %c0_i32 = arith.constant 0 : i32
    %c0_i32_0 = arith.constant 0 : i32
    %c0_i32_1 = arith.constant 0 : i32
    %c0_i32_2 = arith.constant 0 : i32
    return %c0_i32, %arg0, %c0_i32_0, %c0_i32_1 : i32, i32, i32, i32
  }
  func.func @transform_1(%arg0: i32) -> (i32, i32) {
    %c0_i32 = arith.constant 0 : i32
    %c0_i32_0 = arith.constant 0 : i32
    %c0_i32_1 = arith.constant 0 : i32
    return %c0_i32, %c0_i32_0 : i32, i32
  }
  func.func @transform_2(%arg0: i32) -> (i32, i32) {
    %c0_i32 = arith.constant 0 : i32
    %c0_i32_0 = arith.constant 0 : i32
    %c0_i32_1 = arith.constant 0 : i32
    return %c0_i32, %c0_i32_0 : i32, i32
  }
  func.func @transform_3(%arg0: i32) -> (i32, i32) {
    %c0_i32 = arith.constant 0 : i32
    %c0_i32_0 = arith.constant 0 : i32
    %c0_i32_1 = arith.constant 0 : i32
    return %c0_i32, %c0_i32_0 : i32, i32
  }
  func.func @transform_4(%arg0: i32) -> (i32, i32, i32) {
    %c0_i32 = arith.constant 0 : i32
    %c0_i32_0 = arith.constant 0 : i32
    %c0_i32_1 = arith.constant 0 : i32
    return %arg0, %c0_i32, %c0_i32_0 : i32, i32, i32
  }
}

module attributes {stable_mosaic.version = 11 : i64} {
  func.func @_block_kernel(%arg0: i32, %arg1: memref<2x16x64xbf16, #tpu.memory_space<vmem>>, %arg2: memref<1x4x2x64xbf16, #tpu.memory_space<vmem>>, %arg3: memref<256x64xbf16, #tpu.memory_space<vmem>>, %arg4: memref<1x64xf32, #tpu.memory_space<vmem>>, %arg5: memref<1x64xf32, #tpu.memory_space<vmem>>, %arg6: memref<256x64xbf16, #tpu.memory_space<vmem>>, %arg7: memref<1x64xf32, #tpu.memory_space<vmem>>, %arg8: memref<1x64xf32, #tpu.memory_space<vmem>>, %arg9: memref<2x16x64xbf16, #tpu.memory_space<vmem>>) attributes {dimension_semantics = [#tpu.dimension_semantics<parallel>], iteration_bounds = array<i64: 1>, scalar_prefetch = 0 : i64, scratch_operands = 0 : i64, tpu.core_type = #tpu.core_type<tc>, window_params = [{transform_indices = @transform_0, window_bounds = array<i64: 2, 16, 64>}, {transform_indices = @transform_1, window_bounds = array<i64: 1, 4, 2, 64>}, {pipeline_mode = #tpu.pipeline_mode<synchronous>, transform_indices = @transform_2, window_bounds = array<i64: 256, 64>}, {pipeline_mode = #tpu.pipeline_mode<synchronous>, transform_indices = @transform_3, window_bounds = array<i64: 1, 64>}, {pipeline_mode = #tpu.pipeline_mode<synchronous>, transform_indices = @transform_4, window_bounds = array<i64: 1, 64>}, {pipeline_mode = #tpu.pipeline_mode<synchronous>, transform_indices = @transform_5, window_bounds = array<i64: 256, 64>}, {pipeline_mode = #tpu.pipeline_mode<synchronous>, transform_indices = @transform_6, window_bounds = array<i64: 1, 64>}, {pipeline_mode = #tpu.pipeline_mode<synchronous>, transform_indices = @transform_7, window_bounds = array<i64: 1, 64>}, {transform_indices = @transform_8, window_bounds = array<i64: 2, 16, 64>}]} {
    %c0 = arith.constant 0 : index
    %c0_0 = arith.constant 0 : index
    %c0_1 = arith.constant 0 : index
    %0 = vector.load %arg1[%c0, %c0_0, %c0_1] : memref<2x16x64xbf16, #tpu.memory_space<vmem>>, vector<2x16x64xbf16>
    %1 = arith.extf %0 : vector<2x16x64xbf16> to vector<2x16x64xf32>
    %c0_2 = arith.constant 0 : index
    %c0_3 = arith.constant 0 : index
    %c0_4 = arith.constant 0 : index
    %c0_5 = arith.constant 0 : index
    %2 = vector.load %arg2[%c0_2, %c0_3, %c0_4, %c0_5] : memref<1x4x2x64xbf16, #tpu.memory_space<vmem>>, vector<1x4x2x64xbf16>
    %3 = vector.shape_cast %2 : vector<1x4x2x64xbf16> to vector<4x2x64xbf16>
    %4 = arith.extf %3 : vector<4x2x64xbf16> to vector<4x2x64xf32>
    %5 = vector.extract_strided_slice %4 {offsets = [0, 0, 0], sizes = [1, 2, 64], strides = [1, 1, 1]} : vector<4x2x64xf32> to vector<1x2x64xf32>
    %6 = vector.shape_cast %5 : vector<1x2x64xf32> to vector<2x64xf32>
    %7 = vector.shape_cast %6 : vector<2x64xf32> to vector<2x1x64xf32>
    %8 = vector.extract_strided_slice %4 {offsets = [1, 0, 0], sizes = [1, 2, 64], strides = [1, 1, 1]} : vector<4x2x64xf32> to vector<1x2x64xf32>
    %9 = vector.shape_cast %8 : vector<1x2x64xf32> to vector<2x64xf32>
    %10 = vector.shape_cast %9 : vector<2x64xf32> to vector<2x1x64xf32>
    %11 = vector.extract_strided_slice %4 {offsets = [2, 0, 0], sizes = [1, 2, 64], strides = [1, 1, 1]} : vector<4x2x64xf32> to vector<1x2x64xf32>
    %12 = vector.shape_cast %11 : vector<1x2x64xf32> to vector<2x64xf32>
    %13 = vector.shape_cast %12 : vector<2x64xf32> to vector<2x1x64xf32>
    %14 = vector.extract_strided_slice %4 {offsets = [3, 0, 0], sizes = [1, 2, 64], strides = [1, 1, 1]} : vector<4x2x64xf32> to vector<1x2x64xf32>
    %15 = vector.shape_cast %14 : vector<1x2x64xf32> to vector<2x64xf32>
    %16 = vector.shape_cast %15 : vector<2x64xf32> to vector<2x1x64xf32>
    %17 = vector.extract_strided_slice %1 {offsets = [0, 0, 0], sizes = [2, 15, 64], strides = [1, 1, 1]} : vector<2x16x64xf32> to vector<2x15x64xf32>
    %18 = tpu.concatenate %10, %17 in 1 : vector<2x1x64xf32>, vector<2x15x64xf32> -> vector<2x16x64xf32>
    %19 = vector.extract_strided_slice %1 {offsets = [0, 1, 0], sizes = [2, 15, 64], strides = [1, 1, 1]} : vector<2x16x64xf32> to vector<2x15x64xf32>
    %20 = tpu.concatenate %19, %13 in 1 : vector<2x15x64xf32>, vector<2x1x64xf32> -> vector<2x16x64xf32>
    %21 = arith.truncf %18 : vector<2x16x64xf32> to vector<2x16x64xbf16>
    %22 = arith.truncf %1 : vector<2x16x64xf32> to vector<2x16x64xbf16>
    %23 = arith.truncf %20 : vector<2x16x64xf32> to vector<2x16x64xbf16>
    %cst = arith.constant 0.000000e+00 : bf16
    %24 = vector.broadcast %cst : bf16 to vector<2x16x64xbf16>
    %25 = tpu.concatenate %21, %22, %23, %24 in 2 : vector<2x16x64xbf16>, vector<2x16x64xbf16>, vector<2x16x64xbf16>, vector<2x16x64xbf16> -> vector<2x16x256xbf16>
    %26 = vector.shape_cast %25 : vector<2x16x256xbf16> to vector<32x256xbf16>
    %c0_6 = arith.constant 0 : index
    %c0_7 = arith.constant 0 : index
    %27 = vector.load %arg3[%c0_6, %c0_7] : memref<256x64xbf16, #tpu.memory_space<vmem>>, vector<256x64xbf16>
    %cst_8 = arith.constant dense<0.000000e+00> : vector<32x64xf32>
    %28 = tpu.matmul %26, %27, %cst_8 {dimension_numbers = #tpu.dot_dimension_numbers<[1], [0], [0], [1], [0, 0, 1, 1], [], []>} : vector<32x256xbf16>, vector<256x64xbf16>, vector<32x64xf32> -> vector<32x64xf32>
    %c0_9 = arith.constant 0 : index
    %c0_10 = arith.constant 0 : index
    %29 = vector.load %arg4[%c0_9, %c0_10] : memref<1x64xf32, #tpu.memory_space<vmem>>, vector<1x64xf32>
    %30 = vector.broadcast %29 : vector<1x64xf32> to vector<32x64xf32>
    %31 = arith.mulf %28, %30 : vector<32x64xf32>
    %c0_11 = arith.constant 0 : index
    %c0_12 = arith.constant 0 : index
    %32 = vector.load %arg5[%c0_11, %c0_12] : memref<1x64xf32, #tpu.memory_space<vmem>>, vector<1x64xf32>
    %33 = vector.broadcast %32 : vector<1x64xf32> to vector<32x64xf32>
    %34 = arith.addf %31, %33 : vector<32x64xf32>
    %cst_13 = arith.constant 0.000000e+00 : f32
    %35 = vector.broadcast %cst_13 : f32 to vector<32x64xf32>
    %36 = arith.maximumf %34, %35 : vector<32x64xf32>
    %37 = vector.shape_cast %36 : vector<32x64xf32> to vector<2x16x64xf32>
    %38 = vector.extract_strided_slice %1 {offsets = [0, 0, 0], sizes = [2, 1, 64], strides = [1, 1, 1]} : vector<2x16x64xf32> to vector<2x1x64xf32>
    %39 = arith.truncf %7 : vector<2x1x64xf32> to vector<2x1x64xbf16>
    %40 = arith.truncf %10 : vector<2x1x64xf32> to vector<2x1x64xbf16>
    %41 = arith.truncf %38 : vector<2x1x64xf32> to vector<2x1x64xbf16>
    %cst_14 = arith.constant 0.000000e+00 : bf16
    %42 = vector.broadcast %cst_14 : bf16 to vector<2x1x64xbf16>
    %43 = tpu.concatenate %39, %40, %41, %42 in 2 : vector<2x1x64xbf16>, vector<2x1x64xbf16>, vector<2x1x64xbf16>, vector<2x1x64xbf16> -> vector<2x1x256xbf16>
    %44 = vector.shape_cast %43 : vector<2x1x256xbf16> to vector<2x256xbf16>
    %c0_15 = arith.constant 0 : index
    %c0_16 = arith.constant 0 : index
    %45 = vector.load %arg3[%c0_15, %c0_16] : memref<256x64xbf16, #tpu.memory_space<vmem>>, vector<256x64xbf16>
    %cst_17 = arith.constant dense<0.000000e+00> : vector<2x64xf32>
    %46 = tpu.matmul %44, %45, %cst_17 {dimension_numbers = #tpu.dot_dimension_numbers<[1], [0], [0], [1], [0, 0, 1, 1], [], []>} : vector<2x256xbf16>, vector<256x64xbf16>, vector<2x64xf32> -> vector<2x64xf32>
    %c0_18 = arith.constant 0 : index
    %c0_19 = arith.constant 0 : index
    %47 = vector.load %arg4[%c0_18, %c0_19] : memref<1x64xf32, #tpu.memory_space<vmem>>, vector<1x64xf32>
    %48 = vector.broadcast %47 : vector<1x64xf32> to vector<2x64xf32>
    %49 = arith.mulf %46, %48 : vector<2x64xf32>
    %c0_20 = arith.constant 0 : index
    %c0_21 = arith.constant 0 : index
    %50 = vector.load %arg5[%c0_20, %c0_21] : memref<1x64xf32, #tpu.memory_space<vmem>>, vector<1x64xf32>
    %51 = vector.broadcast %50 : vector<1x64xf32> to vector<2x64xf32>
    %52 = arith.addf %49, %51 : vector<2x64xf32>
    %cst_22 = arith.constant 0.000000e+00 : f32
    %53 = vector.broadcast %cst_22 : f32 to vector<2x64xf32>
    %54 = arith.maximumf %52, %53 : vector<2x64xf32>
    %55 = vector.shape_cast %54 : vector<2x64xf32> to vector<2x1x64xf32>
    %c0_i32 = arith.constant 0 : i32
    %56 = arith.cmpi eq, %arg0, %c0_i32 : i32
    %cst_23 = arith.constant 0.000000e+00 : f32
    %57 = vector.broadcast %cst_23 : f32 to vector<2x1x64xf32>
    %58 = arith.select %56, %57, %55 : vector<2x1x64xf32>
    %59 = vector.extract_strided_slice %1 {offsets = [0, 15, 0], sizes = [2, 1, 64], strides = [1, 1, 1]} : vector<2x16x64xf32> to vector<2x1x64xf32>
    %60 = arith.truncf %59 : vector<2x1x64xf32> to vector<2x1x64xbf16>
    %61 = arith.truncf %13 : vector<2x1x64xf32> to vector<2x1x64xbf16>
    %62 = arith.truncf %16 : vector<2x1x64xf32> to vector<2x1x64xbf16>
    %cst_24 = arith.constant 0.000000e+00 : bf16
    %63 = vector.broadcast %cst_24 : bf16 to vector<2x1x64xbf16>
    %64 = tpu.concatenate %60, %61, %62, %63 in 2 : vector<2x1x64xbf16>, vector<2x1x64xbf16>, vector<2x1x64xbf16>, vector<2x1x64xbf16> -> vector<2x1x256xbf16>
    %65 = vector.shape_cast %64 : vector<2x1x256xbf16> to vector<2x256xbf16>
    %c0_25 = arith.constant 0 : index
    %c0_26 = arith.constant 0 : index
    %66 = vector.load %arg3[%c0_25, %c0_26] : memref<256x64xbf16, #tpu.memory_space<vmem>>, vector<256x64xbf16>
    %cst_27 = arith.constant dense<0.000000e+00> : vector<2x64xf32>
    %67 = tpu.matmul %65, %66, %cst_27 {dimension_numbers = #tpu.dot_dimension_numbers<[1], [0], [0], [1], [0, 0, 1, 1], [], []>} : vector<2x256xbf16>, vector<256x64xbf16>, vector<2x64xf32> -> vector<2x64xf32>
    %c0_28 = arith.constant 0 : index
    %c0_29 = arith.constant 0 : index
    %68 = vector.load %arg4[%c0_28, %c0_29] : memref<1x64xf32, #tpu.memory_space<vmem>>, vector<1x64xf32>
    %69 = vector.broadcast %68 : vector<1x64xf32> to vector<2x64xf32>
    %70 = arith.mulf %67, %69 : vector<2x64xf32>
    %c0_30 = arith.constant 0 : index
    %c0_31 = arith.constant 0 : index
    %71 = vector.load %arg5[%c0_30, %c0_31] : memref<1x64xf32, #tpu.memory_space<vmem>>, vector<1x64xf32>
    %72 = vector.broadcast %71 : vector<1x64xf32> to vector<2x64xf32>
    %73 = arith.addf %70, %72 : vector<2x64xf32>
    %cst_32 = arith.constant 0.000000e+00 : f32
    %74 = vector.broadcast %cst_32 : f32 to vector<2x64xf32>
    %75 = arith.maximumf %73, %74 : vector<2x64xf32>
    %76 = vector.shape_cast %75 : vector<2x64xf32> to vector<2x1x64xf32>
    %c0_i32_33 = arith.constant 0 : i32
    %77 = arith.cmpi eq, %arg0, %c0_i32_33 : i32
    %cst_34 = arith.constant 0.000000e+00 : f32
    %78 = vector.broadcast %cst_34 : f32 to vector<2x1x64xf32>
    %79 = arith.select %77, %78, %76 : vector<2x1x64xf32>
    %80 = vector.shape_cast %1 : vector<2x16x64xf32> to vector<32x64xf32>
    %81 = vector.extract_strided_slice %37 {offsets = [0, 0, 0], sizes = [2, 15, 64], strides = [1, 1, 1]} : vector<2x16x64xf32> to vector<2x15x64xf32>
    %82 = tpu.concatenate %58, %81 in 1 : vector<2x1x64xf32>, vector<2x15x64xf32> -> vector<2x16x64xf32>
    %83 = vector.extract_strided_slice %37 {offsets = [0, 1, 0], sizes = [2, 15, 64], strides = [1, 1, 1]} : vector<2x16x64xf32> to vector<2x15x64xf32>
    %84 = tpu.concatenate %83, %79 in 1 : vector<2x15x64xf32>, vector<2x1x64xf32> -> vector<2x16x64xf32>
    %85 = arith.truncf %82 : vector<2x16x64xf32> to vector<2x16x64xbf16>
    %86 = arith.truncf %37 : vector<2x16x64xf32> to vector<2x16x64xbf16>
    %87 = arith.truncf %84 : vector<2x16x64xf32> to vector<2x16x64xbf16>
    %cst_35 = arith.constant 0.000000e+00 : bf16
    %88 = vector.broadcast %cst_35 : bf16 to vector<2x16x64xbf16>
    %89 = tpu.concatenate %85, %86, %87, %88 in 2 : vector<2x16x64xbf16>, vector<2x16x64xbf16>, vector<2x16x64xbf16>, vector<2x16x64xbf16> -> vector<2x16x256xbf16>
    %90 = vector.shape_cast %89 : vector<2x16x256xbf16> to vector<32x256xbf16>
    %c0_36 = arith.constant 0 : index
    %c0_37 = arith.constant 0 : index
    %91 = vector.load %arg6[%c0_36, %c0_37] : memref<256x64xbf16, #tpu.memory_space<vmem>>, vector<256x64xbf16>
    %cst_38 = arith.constant dense<0.000000e+00> : vector<32x64xf32>
    %92 = tpu.matmul %90, %91, %cst_38 {dimension_numbers = #tpu.dot_dimension_numbers<[1], [0], [0], [1], [0, 0, 1, 1], [], []>} : vector<32x256xbf16>, vector<256x64xbf16>, vector<32x64xf32> -> vector<32x64xf32>
    %c0_39 = arith.constant 0 : index
    %c0_40 = arith.constant 0 : index
    %93 = vector.load %arg7[%c0_39, %c0_40] : memref<1x64xf32, #tpu.memory_space<vmem>>, vector<1x64xf32>
    %94 = vector.broadcast %93 : vector<1x64xf32> to vector<32x64xf32>
    %95 = arith.mulf %92, %94 : vector<32x64xf32>
    %c0_41 = arith.constant 0 : index
    %c0_42 = arith.constant 0 : index
    %96 = vector.load %arg8[%c0_41, %c0_42] : memref<1x64xf32, #tpu.memory_space<vmem>>, vector<1x64xf32>
    %97 = vector.broadcast %96 : vector<1x64xf32> to vector<32x64xf32>
    %98 = arith.addf %95, %97 : vector<32x64xf32>
    %99 = arith.addf %98, %80 : vector<32x64xf32>
    %cst_43 = arith.constant 0.000000e+00 : f32
    %100 = vector.broadcast %cst_43 : f32 to vector<32x64xf32>
    %101 = arith.maximumf %99, %100 : vector<32x64xf32>
    %102 = vector.shape_cast %101 : vector<32x64xf32> to vector<2x16x64xf32>
    %103 = arith.truncf %102 : vector<2x16x64xf32> to vector<2x16x64xbf16>
    %c0_44 = arith.constant 0 : index
    %c0_45 = arith.constant 0 : index
    %c0_46 = arith.constant 0 : index
    %104 = vector.load %arg9[%c0_44, %c0_45, %c0_46] : memref<2x16x64xbf16, #tpu.memory_space<vmem>>, vector<2x16x64xbf16>
    tpu.vector_store %arg9[%c0_44, %c0_45, %c0_46], %103 {strides = array<i32>} : memref<2x16x64xbf16, #tpu.memory_space<vmem>>, vector<2x16x64xbf16>,
    return
  }
  func.func @transform_0(%arg0: i32) -> (i32, i32, i32) {
    %c0_i32 = arith.constant 0 : i32
    %c0_i32_0 = arith.constant 0 : i32
    %c0_i32_1 = arith.constant 0 : i32
    return %c0_i32, %arg0, %c0_i32_0 : i32, i32, i32
  }
  func.func @transform_1(%arg0: i32) -> (i32, i32, i32, i32) {
    %c0_i32 = arith.constant 0 : i32
    %c0_i32_0 = arith.constant 0 : i32
    %c0_i32_1 = arith.constant 0 : i32
    %c0_i32_2 = arith.constant 0 : i32
    return %arg0, %c0_i32, %c0_i32_0, %c0_i32_1 : i32, i32, i32, i32
  }
  func.func @transform_2(%arg0: i32) -> (i32, i32) {
    %c0_i32 = arith.constant 0 : i32
    %c0_i32_0 = arith.constant 0 : i32
    %c0_i32_1 = arith.constant 0 : i32
    return %c0_i32, %c0_i32_0 : i32, i32
  }
  func.func @transform_3(%arg0: i32) -> (i32, i32) {
    %c0_i32 = arith.constant 0 : i32
    %c0_i32_0 = arith.constant 0 : i32
    %c0_i32_1 = arith.constant 0 : i32
    return %c0_i32, %c0_i32_0 : i32, i32
  }
  func.func @transform_4(%arg0: i32) -> (i32, i32) {
    %c0_i32 = arith.constant 0 : i32
    %c0_i32_0 = arith.constant 0 : i32
    %c0_i32_1 = arith.constant 0 : i32
    return %c0_i32, %c0_i32_0 : i32, i32
  }
  func.func @transform_5(%arg0: i32) -> (i32, i32) {
    %c0_i32 = arith.constant 0 : i32
    %c0_i32_0 = arith.constant 0 : i32
    %c0_i32_1 = arith.constant 0 : i32
    return %c0_i32, %c0_i32_0 : i32, i32
  }
  func.func @transform_6(%arg0: i32) -> (i32, i32) {
    %c0_i32 = arith.constant 0 : i32
    %c0_i32_0 = arith.constant 0 : i32
    %c0_i32_1 = arith.constant 0 : i32
    return %c0_i32, %c0_i32_0 : i32, i32
  }
  func.func @transform_7(%arg0: i32) -> (i32, i32) {
    %c0_i32 = arith.constant 0 : i32
    %c0_i32_0 = arith.constant 0 : i32
    %c0_i32_1 = arith.constant 0 : i32
    return %c0_i32, %c0_i32_0 : i32, i32
  }
  func.func @transform_8(%arg0: i32) -> (i32, i32, i32) {
    %c0_i32 = arith.constant 0 : i32
    %c0_i32_0 = arith.constant 0 : i32
    %c0_i32_1 = arith.constant 0 : i32
    return %c0_i32, %arg0, %c0_i32_0 : i32, i32, i32
  }
}

module attributes {stable_mosaic.version = 11 : i64} {
  func.func @_block_kernel(%arg0: i32, %arg1: memref<2x16x64xbf16, #tpu.memory_space<vmem>>, %arg2: memref<1x4x2x64xbf16, #tpu.memory_space<vmem>>, %arg3: memref<256x128xbf16, #tpu.memory_space<vmem>>, %arg4: memref<1x128xf32, #tpu.memory_space<vmem>>, %arg5: memref<1x128xf32, #tpu.memory_space<vmem>>, %arg6: memref<384x128xbf16, #tpu.memory_space<vmem>>, %arg7: memref<1x128xf32, #tpu.memory_space<vmem>>, %arg8: memref<1x128xf32, #tpu.memory_space<vmem>>, %arg9: memref<64x128xbf16, #tpu.memory_space<vmem>>, %arg10: memref<1x128xf32, #tpu.memory_space<vmem>>, %arg11: memref<1x128xf32, #tpu.memory_space<vmem>>, %arg12: memref<2x16x128xbf16, #tpu.memory_space<vmem>>) attributes {dimension_semantics = [#tpu.dimension_semantics<parallel>], iteration_bounds = array<i64: 1>, scalar_prefetch = 0 : i64, scratch_operands = 0 : i64, tpu.core_type = #tpu.core_type<tc>, window_params = [{transform_indices = @transform_0, window_bounds = array<i64: 2, 16, 64>}, {transform_indices = @transform_1, window_bounds = array<i64: 1, 4, 2, 64>}, {pipeline_mode = #tpu.pipeline_mode<synchronous>, transform_indices = @transform_2, window_bounds = array<i64: 256, 128>}, {pipeline_mode = #tpu.pipeline_mode<synchronous>, transform_indices = @transform_3, window_bounds = array<i64: 1, 128>}, {pipeline_mode = #tpu.pipeline_mode<synchronous>, transform_indices = @transform_4, window_bounds = array<i64: 1, 128>}, {pipeline_mode = #tpu.pipeline_mode<synchronous>, transform_indices = @transform_5, window_bounds = array<i64: 384, 128>}, {pipeline_mode = #tpu.pipeline_mode<synchronous>, transform_indices = @transform_6, window_bounds = array<i64: 1, 128>}, {pipeline_mode = #tpu.pipeline_mode<synchronous>, transform_indices = @transform_7, window_bounds = array<i64: 1, 128>}, {pipeline_mode = #tpu.pipeline_mode<synchronous>, transform_indices = @transform_8, window_bounds = array<i64: 64, 128>}, {pipeline_mode = #tpu.pipeline_mode<synchronous>, transform_indices = @transform_9, window_bounds = array<i64: 1, 128>}, {pipeline_mode = #tpu.pipeline_mode<synchronous>, transform_indices = @transform_10, window_bounds = array<i64: 1, 128>}, {transform_indices = @transform_11, window_bounds = array<i64: 2, 16, 128>}]} {
    %c0 = arith.constant 0 : index
    %c0_0 = arith.constant 0 : index
    %c0_1 = arith.constant 0 : index
    %0 = vector.load %arg1[%c0, %c0_0, %c0_1] : memref<2x16x64xbf16, #tpu.memory_space<vmem>>, vector<2x16x64xbf16>
    %1 = arith.extf %0 : vector<2x16x64xbf16> to vector<2x16x64xf32>
    %c0_2 = arith.constant 0 : index
    %c0_3 = arith.constant 0 : index
    %c0_4 = arith.constant 0 : index
    %c0_5 = arith.constant 0 : index
    %2 = vector.load %arg2[%c0_2, %c0_3, %c0_4, %c0_5] : memref<1x4x2x64xbf16, #tpu.memory_space<vmem>>, vector<1x4x2x64xbf16>
    %3 = vector.shape_cast %2 : vector<1x4x2x64xbf16> to vector<4x2x64xbf16>
    %4 = arith.extf %3 : vector<4x2x64xbf16> to vector<4x2x64xf32>
    %5 = vector.extract_strided_slice %4 {offsets = [0, 0, 0], sizes = [1, 2, 64], strides = [1, 1, 1]} : vector<4x2x64xf32> to vector<1x2x64xf32>
    %6 = vector.shape_cast %5 : vector<1x2x64xf32> to vector<2x64xf32>
    %7 = vector.shape_cast %6 : vector<2x64xf32> to vector<2x1x64xf32>
    %8 = vector.extract_strided_slice %4 {offsets = [1, 0, 0], sizes = [1, 2, 64], strides = [1, 1, 1]} : vector<4x2x64xf32> to vector<1x2x64xf32>
    %9 = vector.shape_cast %8 : vector<1x2x64xf32> to vector<2x64xf32>
    %10 = vector.shape_cast %9 : vector<2x64xf32> to vector<2x1x64xf32>
    %11 = vector.extract_strided_slice %4 {offsets = [2, 0, 0], sizes = [1, 2, 64], strides = [1, 1, 1]} : vector<4x2x64xf32> to vector<1x2x64xf32>
    %12 = vector.shape_cast %11 : vector<1x2x64xf32> to vector<2x64xf32>
    %13 = vector.shape_cast %12 : vector<2x64xf32> to vector<2x1x64xf32>
    %14 = vector.extract_strided_slice %4 {offsets = [3, 0, 0], sizes = [1, 2, 64], strides = [1, 1, 1]} : vector<4x2x64xf32> to vector<1x2x64xf32>
    %15 = vector.shape_cast %14 : vector<1x2x64xf32> to vector<2x64xf32>
    %16 = vector.shape_cast %15 : vector<2x64xf32> to vector<2x1x64xf32>
    %17 = vector.extract_strided_slice %1 {offsets = [0, 0, 0], sizes = [2, 15, 64], strides = [1, 1, 1]} : vector<2x16x64xf32> to vector<2x15x64xf32>
    %18 = tpu.concatenate %10, %17 in 1 : vector<2x1x64xf32>, vector<2x15x64xf32> -> vector<2x16x64xf32>
    %19 = vector.extract_strided_slice %1 {offsets = [0, 1, 0], sizes = [2, 15, 64], strides = [1, 1, 1]} : vector<2x16x64xf32> to vector<2x15x64xf32>
    %20 = tpu.concatenate %19, %13 in 1 : vector<2x15x64xf32>, vector<2x1x64xf32> -> vector<2x16x64xf32>
    %21 = arith.truncf %18 : vector<2x16x64xf32> to vector<2x16x64xbf16>
    %22 = arith.truncf %1 : vector<2x16x64xf32> to vector<2x16x64xbf16>
    %23 = arith.truncf %20 : vector<2x16x64xf32> to vector<2x16x64xbf16>
    %cst = arith.constant 0.000000e+00 : bf16
    %24 = vector.broadcast %cst : bf16 to vector<2x16x64xbf16>
    %25 = tpu.concatenate %21, %22, %23, %24 in 2 : vector<2x16x64xbf16>, vector<2x16x64xbf16>, vector<2x16x64xbf16>, vector<2x16x64xbf16> -> vector<2x16x256xbf16>
    %26 = vector.shape_cast %25 : vector<2x16x256xbf16> to vector<32x256xbf16>
    %c0_6 = arith.constant 0 : index
    %c0_7 = arith.constant 0 : index
    %27 = vector.load %arg3[%c0_6, %c0_7] : memref<256x128xbf16, #tpu.memory_space<vmem>>, vector<256x128xbf16>
    %cst_8 = arith.constant dense<0.000000e+00> : vector<32x128xf32>
    %28 = tpu.matmul %26, %27, %cst_8 {dimension_numbers = #tpu.dot_dimension_numbers<[1], [0], [0], [1], [0, 0, 1, 1], [], []>} : vector<32x256xbf16>, vector<256x128xbf16>, vector<32x128xf32> -> vector<32x128xf32>
    %c0_9 = arith.constant 0 : index
    %c0_10 = arith.constant 0 : index
    %29 = vector.load %arg4[%c0_9, %c0_10] : memref<1x128xf32, #tpu.memory_space<vmem>>, vector<1x128xf32>
    %30 = vector.broadcast %29 : vector<1x128xf32> to vector<32x128xf32>
    %31 = arith.mulf %28, %30 : vector<32x128xf32>
    %c0_11 = arith.constant 0 : index
    %c0_12 = arith.constant 0 : index
    %32 = vector.load %arg5[%c0_11, %c0_12] : memref<1x128xf32, #tpu.memory_space<vmem>>, vector<1x128xf32>
    %33 = vector.broadcast %32 : vector<1x128xf32> to vector<32x128xf32>
    %34 = arith.addf %31, %33 : vector<32x128xf32>
    %cst_13 = arith.constant 0.000000e+00 : f32
    %35 = vector.broadcast %cst_13 : f32 to vector<32x128xf32>
    %36 = arith.maximumf %34, %35 : vector<32x128xf32>
    %37 = vector.shape_cast %36 : vector<32x128xf32> to vector<2x16x128xf32>
    %38 = vector.extract_strided_slice %1 {offsets = [0, 0, 0], sizes = [2, 1, 64], strides = [1, 1, 1]} : vector<2x16x64xf32> to vector<2x1x64xf32>
    %39 = arith.truncf %7 : vector<2x1x64xf32> to vector<2x1x64xbf16>
    %40 = arith.truncf %10 : vector<2x1x64xf32> to vector<2x1x64xbf16>
    %41 = arith.truncf %38 : vector<2x1x64xf32> to vector<2x1x64xbf16>
    %cst_14 = arith.constant 0.000000e+00 : bf16
    %42 = vector.broadcast %cst_14 : bf16 to vector<2x1x64xbf16>
    %43 = tpu.concatenate %39, %40, %41, %42 in 2 : vector<2x1x64xbf16>, vector<2x1x64xbf16>, vector<2x1x64xbf16>, vector<2x1x64xbf16> -> vector<2x1x256xbf16>
    %44 = vector.shape_cast %43 : vector<2x1x256xbf16> to vector<2x256xbf16>
    %c0_15 = arith.constant 0 : index
    %c0_16 = arith.constant 0 : index
    %45 = vector.load %arg3[%c0_15, %c0_16] : memref<256x128xbf16, #tpu.memory_space<vmem>>, vector<256x128xbf16>
    %cst_17 = arith.constant dense<0.000000e+00> : vector<2x128xf32>
    %46 = tpu.matmul %44, %45, %cst_17 {dimension_numbers = #tpu.dot_dimension_numbers<[1], [0], [0], [1], [0, 0, 1, 1], [], []>} : vector<2x256xbf16>, vector<256x128xbf16>, vector<2x128xf32> -> vector<2x128xf32>
    %c0_18 = arith.constant 0 : index
    %c0_19 = arith.constant 0 : index
    %47 = vector.load %arg4[%c0_18, %c0_19] : memref<1x128xf32, #tpu.memory_space<vmem>>, vector<1x128xf32>
    %48 = vector.broadcast %47 : vector<1x128xf32> to vector<2x128xf32>
    %49 = arith.mulf %46, %48 : vector<2x128xf32>
    %c0_20 = arith.constant 0 : index
    %c0_21 = arith.constant 0 : index
    %50 = vector.load %arg5[%c0_20, %c0_21] : memref<1x128xf32, #tpu.memory_space<vmem>>, vector<1x128xf32>
    %51 = vector.broadcast %50 : vector<1x128xf32> to vector<2x128xf32>
    %52 = arith.addf %49, %51 : vector<2x128xf32>
    %cst_22 = arith.constant 0.000000e+00 : f32
    %53 = vector.broadcast %cst_22 : f32 to vector<2x128xf32>
    %54 = arith.maximumf %52, %53 : vector<2x128xf32>
    %55 = vector.shape_cast %54 : vector<2x128xf32> to vector<2x1x128xf32>
    %c0_i32 = arith.constant 0 : i32
    %56 = arith.cmpi eq, %arg0, %c0_i32 : i32
    %cst_23 = arith.constant 0.000000e+00 : f32
    %57 = vector.broadcast %cst_23 : f32 to vector<2x1x128xf32>
    %58 = arith.select %56, %57, %55 : vector<2x1x128xf32>
    %59 = vector.extract_strided_slice %1 {offsets = [0, 15, 0], sizes = [2, 1, 64], strides = [1, 1, 1]} : vector<2x16x64xf32> to vector<2x1x64xf32>
    %60 = arith.truncf %59 : vector<2x1x64xf32> to vector<2x1x64xbf16>
    %61 = arith.truncf %13 : vector<2x1x64xf32> to vector<2x1x64xbf16>
    %62 = arith.truncf %16 : vector<2x1x64xf32> to vector<2x1x64xbf16>
    %cst_24 = arith.constant 0.000000e+00 : bf16
    %63 = vector.broadcast %cst_24 : bf16 to vector<2x1x64xbf16>
    %64 = tpu.concatenate %60, %61, %62, %63 in 2 : vector<2x1x64xbf16>, vector<2x1x64xbf16>, vector<2x1x64xbf16>, vector<2x1x64xbf16> -> vector<2x1x256xbf16>
    %65 = vector.shape_cast %64 : vector<2x1x256xbf16> to vector<2x256xbf16>
    %c0_25 = arith.constant 0 : index
    %c0_26 = arith.constant 0 : index
    %66 = vector.load %arg3[%c0_25, %c0_26] : memref<256x128xbf16, #tpu.memory_space<vmem>>, vector<256x128xbf16>
    %cst_27 = arith.constant dense<0.000000e+00> : vector<2x128xf32>
    %67 = tpu.matmul %65, %66, %cst_27 {dimension_numbers = #tpu.dot_dimension_numbers<[1], [0], [0], [1], [0, 0, 1, 1], [], []>} : vector<2x256xbf16>, vector<256x128xbf16>, vector<2x128xf32> -> vector<2x128xf32>
    %c0_28 = arith.constant 0 : index
    %c0_29 = arith.constant 0 : index
    %68 = vector.load %arg4[%c0_28, %c0_29] : memref<1x128xf32, #tpu.memory_space<vmem>>, vector<1x128xf32>
    %69 = vector.broadcast %68 : vector<1x128xf32> to vector<2x128xf32>
    %70 = arith.mulf %67, %69 : vector<2x128xf32>
    %c0_30 = arith.constant 0 : index
    %c0_31 = arith.constant 0 : index
    %71 = vector.load %arg5[%c0_30, %c0_31] : memref<1x128xf32, #tpu.memory_space<vmem>>, vector<1x128xf32>
    %72 = vector.broadcast %71 : vector<1x128xf32> to vector<2x128xf32>
    %73 = arith.addf %70, %72 : vector<2x128xf32>
    %cst_32 = arith.constant 0.000000e+00 : f32
    %74 = vector.broadcast %cst_32 : f32 to vector<2x128xf32>
    %75 = arith.maximumf %73, %74 : vector<2x128xf32>
    %76 = vector.shape_cast %75 : vector<2x128xf32> to vector<2x1x128xf32>
    %c0_i32_33 = arith.constant 0 : i32
    %77 = arith.cmpi eq, %arg0, %c0_i32_33 : i32
    %cst_34 = arith.constant 0.000000e+00 : f32
    %78 = vector.broadcast %cst_34 : f32 to vector<2x1x128xf32>
    %79 = arith.select %77, %78, %76 : vector<2x1x128xf32>
    %80 = vector.shape_cast %0 : vector<2x16x64xbf16> to vector<32x64xbf16>
    %c0_35 = arith.constant 0 : index
    %c0_36 = arith.constant 0 : index
    %81 = vector.load %arg9[%c0_35, %c0_36] : memref<64x128xbf16, #tpu.memory_space<vmem>>, vector<64x128xbf16>
    %cst_37 = arith.constant dense<0.000000e+00> : vector<32x128xf32>
    %82 = tpu.matmul %80, %81, %cst_37 {dimension_numbers = #tpu.dot_dimension_numbers<[1], [0], [0], [1], [0, 0, 1, 1], [], []>} : vector<32x64xbf16>, vector<64x128xbf16>, vector<32x128xf32> -> vector<32x128xf32>
    %c0_38 = arith.constant 0 : index
    %c0_39 = arith.constant 0 : index
    %83 = vector.load %arg10[%c0_38, %c0_39] : memref<1x128xf32, #tpu.memory_space<vmem>>, vector<1x128xf32>
    %84 = vector.broadcast %83 : vector<1x128xf32> to vector<32x128xf32>
    %85 = arith.mulf %82, %84 : vector<32x128xf32>
    %c0_40 = arith.constant 0 : index
    %c0_41 = arith.constant 0 : index
    %86 = vector.load %arg11[%c0_40, %c0_41] : memref<1x128xf32, #tpu.memory_space<vmem>>, vector<1x128xf32>
    %87 = vector.broadcast %86 : vector<1x128xf32> to vector<32x128xf32>
    %88 = arith.addf %85, %87 : vector<32x128xf32>
    %89 = vector.extract_strided_slice %37 {offsets = [0, 0, 0], sizes = [2, 15, 128], strides = [1, 1, 1]} : vector<2x16x128xf32> to vector<2x15x128xf32>
    %90 = tpu.concatenate %58, %89 in 1 : vector<2x1x128xf32>, vector<2x15x128xf32> -> vector<2x16x128xf32>
    %91 = vector.extract_strided_slice %37 {offsets = [0, 1, 0], sizes = [2, 15, 128], strides = [1, 1, 1]} : vector<2x16x128xf32> to vector<2x15x128xf32>
    %92 = tpu.concatenate %91, %79 in 1 : vector<2x15x128xf32>, vector<2x1x128xf32> -> vector<2x16x128xf32>
    %93 = arith.truncf %90 : vector<2x16x128xf32> to vector<2x16x128xbf16>
    %94 = arith.truncf %37 : vector<2x16x128xf32> to vector<2x16x128xbf16>
    %95 = arith.truncf %92 : vector<2x16x128xf32> to vector<2x16x128xbf16>
    %96 = tpu.concatenate %93, %94, %95 in 2 : vector<2x16x128xbf16>, vector<2x16x128xbf16>, vector<2x16x128xbf16> -> vector<2x16x384xbf16>
    %97 = vector.shape_cast %96 : vector<2x16x384xbf16> to vector<32x384xbf16>
    %c0_42 = arith.constant 0 : index
    %c0_43 = arith.constant 0 : index
    %98 = vector.load %arg6[%c0_42, %c0_43] : memref<384x128xbf16, #tpu.memory_space<vmem>>, vector<384x128xbf16>
    %cst_44 = arith.constant dense<0.000000e+00> : vector<32x128xf32>
    %99 = tpu.matmul %97, %98, %cst_44 {dimension_numbers = #tpu.dot_dimension_numbers<[1], [0], [0], [1], [0, 0, 1, 1], [], []>} : vector<32x384xbf16>, vector<384x128xbf16>, vector<32x128xf32> -> vector<32x128xf32>
    %c0_45 = arith.constant 0 : index
    %c0_46 = arith.constant 0 : index
    %100 = vector.load %arg7[%c0_45, %c0_46] : memref<1x128xf32, #tpu.memory_space<vmem>>, vector<1x128xf32>
    %101 = vector.broadcast %100 : vector<1x128xf32> to vector<32x128xf32>
    %102 = arith.mulf %99, %101 : vector<32x128xf32>
    %c0_47 = arith.constant 0 : index
    %c0_48 = arith.constant 0 : index
    %103 = vector.load %arg8[%c0_47, %c0_48] : memref<1x128xf32, #tpu.memory_space<vmem>>, vector<1x128xf32>
    %104 = vector.broadcast %103 : vector<1x128xf32> to vector<32x128xf32>
    %105 = arith.addf %102, %104 : vector<32x128xf32>
    %106 = arith.addf %105, %88 : vector<32x128xf32>
    %cst_49 = arith.constant 0.000000e+00 : f32
    %107 = vector.broadcast %cst_49 : f32 to vector<32x128xf32>
    %108 = arith.maximumf %106, %107 : vector<32x128xf32>
    %109 = vector.shape_cast %108 : vector<32x128xf32> to vector<2x16x128xf32>
    %110 = arith.truncf %109 : vector<2x16x128xf32> to vector<2x16x128xbf16>
    %c0_50 = arith.constant 0 : index
    %c0_51 = arith.constant 0 : index
    %c0_52 = arith.constant 0 : index
    %111 = vector.load %arg12[%c0_50, %c0_51, %c0_52] : memref<2x16x128xbf16, #tpu.memory_space<vmem>>, vector<2x16x128xbf16>
    tpu.vector_store %arg12[%c0_50, %c0_51, %c0_52], %110 {strides = array<i32>} : memref<2x16x128xbf16, #tpu.memory_space<vmem>>, vector<2x16x128xbf16>,
    return
  }
  func.func @transform_0(%arg0: i32) -> (i32, i32, i32) {
    %c0_i32 = arith.constant 0 : i32
    %c0_i32_0 = arith.constant 0 : i32
    %c0_i32_1 = arith.constant 0 : i32
    return %c0_i32, %arg0, %c0_i32_0 : i32, i32, i32
  }
  func.func @transform_1(%arg0: i32) -> (i32, i32, i32, i32) {
    %c0_i32 = arith.constant 0 : i32
    %c0_i32_0 = arith.constant 0 : i32
    %c0_i32_1 = arith.constant 0 : i32
    %c0_i32_2 = arith.constant 0 : i32
    return %arg0, %c0_i32, %c0_i32_0, %c0_i32_1 : i32, i32, i32, i32
  }
  func.func @transform_2(%arg0: i32) -> (i32, i32) {
    %c0_i32 = arith.constant 0 : i32
    %c0_i32_0 = arith.constant 0 : i32
    %c0_i32_1 = arith.constant 0 : i32
    return %c0_i32, %c0_i32_0 : i32, i32
  }
  func.func @transform_3(%arg0: i32) -> (i32, i32) {
    %c0_i32 = arith.constant 0 : i32
    %c0_i32_0 = arith.constant 0 : i32
    %c0_i32_1 = arith.constant 0 : i32
    return %c0_i32, %c0_i32_0 : i32, i32
  }
  func.func @transform_4(%arg0: i32) -> (i32, i32) {
    %c0_i32 = arith.constant 0 : i32
    %c0_i32_0 = arith.constant 0 : i32
    %c0_i32_1 = arith.constant 0 : i32
    return %c0_i32, %c0_i32_0 : i32, i32
  }
  func.func @transform_5(%arg0: i32) -> (i32, i32) {
    %c0_i32 = arith.constant 0 : i32
    %c0_i32_0 = arith.constant 0 : i32
    %c0_i32_1 = arith.constant 0 : i32
    return %c0_i32, %c0_i32_0 : i32, i32
  }
  func.func @transform_6(%arg0: i32) -> (i32, i32) {
    %c0_i32 = arith.constant 0 : i32
    %c0_i32_0 = arith.constant 0 : i32
    %c0_i32_1 = arith.constant 0 : i32
    return %c0_i32, %c0_i32_0 : i32, i32
  }
  func.func @transform_7(%arg0: i32) -> (i32, i32) {
    %c0_i32 = arith.constant 0 : i32
    %c0_i32_0 = arith.constant 0 : i32
    %c0_i32_1 = arith.constant 0 : i32
    return %c0_i32, %c0_i32_0 : i32, i32
  }
  func.func @transform_8(%arg0: i32) -> (i32, i32) {
    %c0_i32 = arith.constant 0 : i32
    %c0_i32_0 = arith.constant 0 : i32
    %c0_i32_1 = arith.constant 0 : i32
    return %c0_i32, %c0_i32_0 : i32, i32
  }
  func.func @transform_9(%arg0: i32) -> (i32, i32) {
    %c0_i32 = arith.constant 0 : i32
    %c0_i32_0 = arith.constant 0 : i32
    %c0_i32_1 = arith.constant 0 : i32
    return %c0_i32, %c0_i32_0 : i32, i32
  }
  func.func @transform_10(%arg0: i32) -> (i32, i32) {
    %c0_i32 = arith.constant 0 : i32
    %c0_i32_0 = arith.constant 0 : i32
    %c0_i32_1 = arith.constant 0 : i32
    return %c0_i32, %c0_i32_0 : i32, i32
  }
  func.func @transform_11(%arg0: i32) -> (i32, i32, i32) {
    %c0_i32 = arith.constant 0 : i32
    %c0_i32_0 = arith.constant 0 : i32
    %c0_i32_1 = arith.constant 0 : i32
    return %c0_i32, %arg0, %c0_i32_0 : i32, i32, i32
  }
}

module attributes {stable_mosaic.version = 11 : i64} {
  func.func @_block_kernel(%arg0: i32, %arg1: memref<2x16x128xbf16, #tpu.memory_space<vmem>>, %arg2: memref<1x4x2x128xbf16, #tpu.memory_space<vmem>>, %arg3: memref<384x256xbf16, #tpu.memory_space<vmem>>, %arg4: memref<1x256xf32, #tpu.memory_space<vmem>>, %arg5: memref<1x256xf32, #tpu.memory_space<vmem>>, %arg6: memref<768x256xbf16, #tpu.memory_space<vmem>>, %arg7: memref<1x256xf32, #tpu.memory_space<vmem>>, %arg8: memref<1x256xf32, #tpu.memory_space<vmem>>, %arg9: memref<128x256xbf16, #tpu.memory_space<vmem>>, %arg10: memref<1x256xf32, #tpu.memory_space<vmem>>, %arg11: memref<1x256xf32, #tpu.memory_space<vmem>>, %arg12: memref<2x16x256xbf16, #tpu.memory_space<vmem>>) attributes {dimension_semantics = [#tpu.dimension_semantics<parallel>], iteration_bounds = array<i64: 1>, scalar_prefetch = 0 : i64, scratch_operands = 0 : i64, tpu.core_type = #tpu.core_type<tc>, window_params = [{transform_indices = @transform_0, window_bounds = array<i64: 2, 16, 128>}, {transform_indices = @transform_1, window_bounds = array<i64: 1, 4, 2, 128>}, {pipeline_mode = #tpu.pipeline_mode<synchronous>, transform_indices = @transform_2, window_bounds = array<i64: 384, 256>}, {pipeline_mode = #tpu.pipeline_mode<synchronous>, transform_indices = @transform_3, window_bounds = array<i64: 1, 256>}, {pipeline_mode = #tpu.pipeline_mode<synchronous>, transform_indices = @transform_4, window_bounds = array<i64: 1, 256>}, {pipeline_mode = #tpu.pipeline_mode<synchronous>, transform_indices = @transform_5, window_bounds = array<i64: 768, 256>}, {pipeline_mode = #tpu.pipeline_mode<synchronous>, transform_indices = @transform_6, window_bounds = array<i64: 1, 256>}, {pipeline_mode = #tpu.pipeline_mode<synchronous>, transform_indices = @transform_7, window_bounds = array<i64: 1, 256>}, {pipeline_mode = #tpu.pipeline_mode<synchronous>, transform_indices = @transform_8, window_bounds = array<i64: 128, 256>}, {pipeline_mode = #tpu.pipeline_mode<synchronous>, transform_indices = @transform_9, window_bounds = array<i64: 1, 256>}, {pipeline_mode = #tpu.pipeline_mode<synchronous>, transform_indices = @transform_10, window_bounds = array<i64: 1, 256>}, {transform_indices = @transform_11, window_bounds = array<i64: 2, 16, 256>}]} {
    %c0 = arith.constant 0 : index
    %c0_0 = arith.constant 0 : index
    %c0_1 = arith.constant 0 : index
    %0 = vector.load %arg1[%c0, %c0_0, %c0_1] : memref<2x16x128xbf16, #tpu.memory_space<vmem>>, vector<2x16x128xbf16>
    %1 = arith.extf %0 : vector<2x16x128xbf16> to vector<2x16x128xf32>
    %c0_2 = arith.constant 0 : index
    %c0_3 = arith.constant 0 : index
    %c0_4 = arith.constant 0 : index
    %c0_5 = arith.constant 0 : index
    %2 = vector.load %arg2[%c0_2, %c0_3, %c0_4, %c0_5] : memref<1x4x2x128xbf16, #tpu.memory_space<vmem>>, vector<1x4x2x128xbf16>
    %3 = vector.shape_cast %2 : vector<1x4x2x128xbf16> to vector<4x2x128xbf16>
    %4 = arith.extf %3 : vector<4x2x128xbf16> to vector<4x2x128xf32>
    %5 = vector.extract_strided_slice %4 {offsets = [0, 0, 0], sizes = [1, 2, 128], strides = [1, 1, 1]} : vector<4x2x128xf32> to vector<1x2x128xf32>
    %6 = vector.shape_cast %5 : vector<1x2x128xf32> to vector<2x128xf32>
    %7 = vector.shape_cast %6 : vector<2x128xf32> to vector<2x1x128xf32>
    %8 = vector.extract_strided_slice %4 {offsets = [1, 0, 0], sizes = [1, 2, 128], strides = [1, 1, 1]} : vector<4x2x128xf32> to vector<1x2x128xf32>
    %9 = vector.shape_cast %8 : vector<1x2x128xf32> to vector<2x128xf32>
    %10 = vector.shape_cast %9 : vector<2x128xf32> to vector<2x1x128xf32>
    %11 = vector.extract_strided_slice %4 {offsets = [2, 0, 0], sizes = [1, 2, 128], strides = [1, 1, 1]} : vector<4x2x128xf32> to vector<1x2x128xf32>
    %12 = vector.shape_cast %11 : vector<1x2x128xf32> to vector<2x128xf32>
    %13 = vector.shape_cast %12 : vector<2x128xf32> to vector<2x1x128xf32>
    %14 = vector.extract_strided_slice %4 {offsets = [3, 0, 0], sizes = [1, 2, 128], strides = [1, 1, 1]} : vector<4x2x128xf32> to vector<1x2x128xf32>
    %15 = vector.shape_cast %14 : vector<1x2x128xf32> to vector<2x128xf32>
    %16 = vector.shape_cast %15 : vector<2x128xf32> to vector<2x1x128xf32>
    %17 = vector.extract_strided_slice %1 {offsets = [0, 0, 0], sizes = [2, 15, 128], strides = [1, 1, 1]} : vector<2x16x128xf32> to vector<2x15x128xf32>
    %18 = tpu.concatenate %10, %17 in 1 : vector<2x1x128xf32>, vector<2x15x128xf32> -> vector<2x16x128xf32>
    %19 = vector.extract_strided_slice %1 {offsets = [0, 1, 0], sizes = [2, 15, 128], strides = [1, 1, 1]} : vector<2x16x128xf32> to vector<2x15x128xf32>
    %20 = tpu.concatenate %19, %13 in 1 : vector<2x15x128xf32>, vector<2x1x128xf32> -> vector<2x16x128xf32>
    %21 = arith.truncf %18 : vector<2x16x128xf32> to vector<2x16x128xbf16>
    %22 = arith.truncf %1 : vector<2x16x128xf32> to vector<2x16x128xbf16>
    %23 = arith.truncf %20 : vector<2x16x128xf32> to vector<2x16x128xbf16>
    %24 = tpu.concatenate %21, %22, %23 in 2 : vector<2x16x128xbf16>, vector<2x16x128xbf16>, vector<2x16x128xbf16> -> vector<2x16x384xbf16>
    %25 = vector.shape_cast %24 : vector<2x16x384xbf16> to vector<32x384xbf16>
    %c0_6 = arith.constant 0 : index
    %c0_7 = arith.constant 0 : index
    %26 = vector.load %arg3[%c0_6, %c0_7] : memref<384x256xbf16, #tpu.memory_space<vmem>>, vector<384x256xbf16>
    %cst = arith.constant dense<0.000000e+00> : vector<32x256xf32>
    %27 = tpu.matmul %25, %26, %cst {dimension_numbers = #tpu.dot_dimension_numbers<[1], [0], [0], [1], [0, 0, 1, 1], [], []>} : vector<32x384xbf16>, vector<384x256xbf16>, vector<32x256xf32> -> vector<32x256xf32>
    %c0_8 = arith.constant 0 : index
    %c0_9 = arith.constant 0 : index
    %28 = vector.load %arg4[%c0_8, %c0_9] : memref<1x256xf32, #tpu.memory_space<vmem>>, vector<1x256xf32>
    %29 = vector.broadcast %28 : vector<1x256xf32> to vector<32x256xf32>
    %30 = arith.mulf %27, %29 : vector<32x256xf32>
    %c0_10 = arith.constant 0 : index
    %c0_11 = arith.constant 0 : index
    %31 = vector.load %arg5[%c0_10, %c0_11] : memref<1x256xf32, #tpu.memory_space<vmem>>, vector<1x256xf32>
    %32 = vector.broadcast %31 : vector<1x256xf32> to vector<32x256xf32>
    %33 = arith.addf %30, %32 : vector<32x256xf32>
    %cst_12 = arith.constant 0.000000e+00 : f32
    %34 = vector.broadcast %cst_12 : f32 to vector<32x256xf32>
    %35 = arith.maximumf %33, %34 : vector<32x256xf32>
    %36 = vector.shape_cast %35 : vector<32x256xf32> to vector<2x16x256xf32>
    %37 = vector.extract_strided_slice %1 {offsets = [0, 0, 0], sizes = [2, 1, 128], strides = [1, 1, 1]} : vector<2x16x128xf32> to vector<2x1x128xf32>
    %38 = arith.truncf %7 : vector<2x1x128xf32> to vector<2x1x128xbf16>
    %39 = arith.truncf %10 : vector<2x1x128xf32> to vector<2x1x128xbf16>
    %40 = arith.truncf %37 : vector<2x1x128xf32> to vector<2x1x128xbf16>
    %41 = tpu.concatenate %38, %39, %40 in 2 : vector<2x1x128xbf16>, vector<2x1x128xbf16>, vector<2x1x128xbf16> -> vector<2x1x384xbf16>
    %42 = vector.shape_cast %41 : vector<2x1x384xbf16> to vector<2x384xbf16>
    %c0_13 = arith.constant 0 : index
    %c0_14 = arith.constant 0 : index
    %43 = vector.load %arg3[%c0_13, %c0_14] : memref<384x256xbf16, #tpu.memory_space<vmem>>, vector<384x256xbf16>
    %cst_15 = arith.constant dense<0.000000e+00> : vector<2x256xf32>
    %44 = tpu.matmul %42, %43, %cst_15 {dimension_numbers = #tpu.dot_dimension_numbers<[1], [0], [0], [1], [0, 0, 1, 1], [], []>} : vector<2x384xbf16>, vector<384x256xbf16>, vector<2x256xf32> -> vector<2x256xf32>
    %c0_16 = arith.constant 0 : index
    %c0_17 = arith.constant 0 : index
    %45 = vector.load %arg4[%c0_16, %c0_17] : memref<1x256xf32, #tpu.memory_space<vmem>>, vector<1x256xf32>
    %46 = vector.broadcast %45 : vector<1x256xf32> to vector<2x256xf32>
    %47 = arith.mulf %44, %46 : vector<2x256xf32>
    %c0_18 = arith.constant 0 : index
    %c0_19 = arith.constant 0 : index
    %48 = vector.load %arg5[%c0_18, %c0_19] : memref<1x256xf32, #tpu.memory_space<vmem>>, vector<1x256xf32>
    %49 = vector.broadcast %48 : vector<1x256xf32> to vector<2x256xf32>
    %50 = arith.addf %47, %49 : vector<2x256xf32>
    %cst_20 = arith.constant 0.000000e+00 : f32
    %51 = vector.broadcast %cst_20 : f32 to vector<2x256xf32>
    %52 = arith.maximumf %50, %51 : vector<2x256xf32>
    %53 = vector.shape_cast %52 : vector<2x256xf32> to vector<2x1x256xf32>
    %c0_i32 = arith.constant 0 : i32
    %54 = arith.cmpi eq, %arg0, %c0_i32 : i32
    %cst_21 = arith.constant 0.000000e+00 : f32
    %55 = vector.broadcast %cst_21 : f32 to vector<2x1x256xf32>
    %56 = arith.select %54, %55, %53 : vector<2x1x256xf32>
    %57 = vector.extract_strided_slice %1 {offsets = [0, 15, 0], sizes = [2, 1, 128], strides = [1, 1, 1]} : vector<2x16x128xf32> to vector<2x1x128xf32>
    %58 = arith.truncf %57 : vector<2x1x128xf32> to vector<2x1x128xbf16>
    %59 = arith.truncf %13 : vector<2x1x128xf32> to vector<2x1x128xbf16>
    %60 = arith.truncf %16 : vector<2x1x128xf32> to vector<2x1x128xbf16>
    %61 = tpu.concatenate %58, %59, %60 in 2 : vector<2x1x128xbf16>, vector<2x1x128xbf16>, vector<2x1x128xbf16> -> vector<2x1x384xbf16>
    %62 = vector.shape_cast %61 : vector<2x1x384xbf16> to vector<2x384xbf16>
    %c0_22 = arith.constant 0 : index
    %c0_23 = arith.constant 0 : index
    %63 = vector.load %arg3[%c0_22, %c0_23] : memref<384x256xbf16, #tpu.memory_space<vmem>>, vector<384x256xbf16>
    %cst_24 = arith.constant dense<0.000000e+00> : vector<2x256xf32>
    %64 = tpu.matmul %62, %63, %cst_24 {dimension_numbers = #tpu.dot_dimension_numbers<[1], [0], [0], [1], [0, 0, 1, 1], [], []>} : vector<2x384xbf16>, vector<384x256xbf16>, vector<2x256xf32> -> vector<2x256xf32>
    %c0_25 = arith.constant 0 : index
    %c0_26 = arith.constant 0 : index
    %65 = vector.load %arg4[%c0_25, %c0_26] : memref<1x256xf32, #tpu.memory_space<vmem>>, vector<1x256xf32>
    %66 = vector.broadcast %65 : vector<1x256xf32> to vector<2x256xf32>
    %67 = arith.mulf %64, %66 : vector<2x256xf32>
    %c0_27 = arith.constant 0 : index
    %c0_28 = arith.constant 0 : index
    %68 = vector.load %arg5[%c0_27, %c0_28] : memref<1x256xf32, #tpu.memory_space<vmem>>, vector<1x256xf32>
    %69 = vector.broadcast %68 : vector<1x256xf32> to vector<2x256xf32>
    %70 = arith.addf %67, %69 : vector<2x256xf32>
    %cst_29 = arith.constant 0.000000e+00 : f32
    %71 = vector.broadcast %cst_29 : f32 to vector<2x256xf32>
    %72 = arith.maximumf %70, %71 : vector<2x256xf32>
    %73 = vector.shape_cast %72 : vector<2x256xf32> to vector<2x1x256xf32>
    %c0_i32_30 = arith.constant 0 : i32
    %74 = arith.cmpi eq, %arg0, %c0_i32_30 : i32
    %cst_31 = arith.constant 0.000000e+00 : f32
    %75 = vector.broadcast %cst_31 : f32 to vector<2x1x256xf32>
    %76 = arith.select %74, %75, %73 : vector<2x1x256xf32>
    %77 = vector.shape_cast %0 : vector<2x16x128xbf16> to vector<32x128xbf16>
    %c0_32 = arith.constant 0 : index
    %c0_33 = arith.constant 0 : index
    %78 = vector.load %arg9[%c0_32, %c0_33] : memref<128x256xbf16, #tpu.memory_space<vmem>>, vector<128x256xbf16>
    %cst_34 = arith.constant dense<0.000000e+00> : vector<32x256xf32>
    %79 = tpu.matmul %77, %78, %cst_34 {dimension_numbers = #tpu.dot_dimension_numbers<[1], [0], [0], [1], [0, 0, 1, 1], [], []>} : vector<32x128xbf16>, vector<128x256xbf16>, vector<32x256xf32> -> vector<32x256xf32>
    %c0_35 = arith.constant 0 : index
    %c0_36 = arith.constant 0 : index
    %80 = vector.load %arg10[%c0_35, %c0_36] : memref<1x256xf32, #tpu.memory_space<vmem>>, vector<1x256xf32>
    %81 = vector.broadcast %80 : vector<1x256xf32> to vector<32x256xf32>
    %82 = arith.mulf %79, %81 : vector<32x256xf32>
    %c0_37 = arith.constant 0 : index
    %c0_38 = arith.constant 0 : index
    %83 = vector.load %arg11[%c0_37, %c0_38] : memref<1x256xf32, #tpu.memory_space<vmem>>, vector<1x256xf32>
    %84 = vector.broadcast %83 : vector<1x256xf32> to vector<32x256xf32>
    %85 = arith.addf %82, %84 : vector<32x256xf32>
    %86 = vector.extract_strided_slice %36 {offsets = [0, 0, 0], sizes = [2, 15, 256], strides = [1, 1, 1]} : vector<2x16x256xf32> to vector<2x15x256xf32>
    %87 = tpu.concatenate %56, %86 in 1 : vector<2x1x256xf32>, vector<2x15x256xf32> -> vector<2x16x256xf32>
    %88 = vector.extract_strided_slice %36 {offsets = [0, 1, 0], sizes = [2, 15, 256], strides = [1, 1, 1]} : vector<2x16x256xf32> to vector<2x15x256xf32>
    %89 = tpu.concatenate %88, %76 in 1 : vector<2x15x256xf32>, vector<2x1x256xf32> -> vector<2x16x256xf32>
    %90 = arith.truncf %87 : vector<2x16x256xf32> to vector<2x16x256xbf16>
    %91 = vector.shape_cast %90 : vector<2x16x256xbf16> to vector<32x256xbf16>
    %c0_39 = arith.constant 0 : index
    %c0_40 = arith.constant 0 : index
    %92 = vector.load %arg6[%c0_39, %c0_40] : memref<768x256xbf16, #tpu.memory_space<vmem>>, vector<256x256xbf16>
    %cst_41 = arith.constant dense<0.000000e+00> : vector<32x256xf32>
    %93 = tpu.matmul %91, %92, %cst_41 {dimension_numbers = #tpu.dot_dimension_numbers<[1], [0], [0], [1], [0, 0, 1, 1], [], []>} : vector<32x256xbf16>, vector<256x256xbf16>, vector<32x256xf32> -> vector<32x256xf32>
    %94 = arith.truncf %36 : vector<2x16x256xf32> to vector<2x16x256xbf16>
    %95 = vector.shape_cast %94 : vector<2x16x256xbf16> to vector<32x256xbf16>
    %c256 = arith.constant 256 : index
    %c0_42 = arith.constant 0 : index
    %96 = vector.load %arg6[%c256, %c0_42] : memref<768x256xbf16, #tpu.memory_space<vmem>>, vector<256x256xbf16>
    %cst_43 = arith.constant dense<0.000000e+00> : vector<32x256xf32>
    %97 = tpu.matmul %95, %96, %cst_43 {dimension_numbers = #tpu.dot_dimension_numbers<[1], [0], [0], [1], [0, 0, 1, 1], [], []>} : vector<32x256xbf16>, vector<256x256xbf16>, vector<32x256xf32> -> vector<32x256xf32>
    %98 = arith.addf %93, %97 : vector<32x256xf32>
    %99 = arith.truncf %89 : vector<2x16x256xf32> to vector<2x16x256xbf16>
    %100 = vector.shape_cast %99 : vector<2x16x256xbf16> to vector<32x256xbf16>
    %c512 = arith.constant 512 : index
    %c0_44 = arith.constant 0 : index
    %101 = vector.load %arg6[%c512, %c0_44] : memref<768x256xbf16, #tpu.memory_space<vmem>>, vector<256x256xbf16>
    %cst_45 = arith.constant dense<0.000000e+00> : vector<32x256xf32>
    %102 = tpu.matmul %100, %101, %cst_45 {dimension_numbers = #tpu.dot_dimension_numbers<[1], [0], [0], [1], [0, 0, 1, 1], [], []>} : vector<32x256xbf16>, vector<256x256xbf16>, vector<32x256xf32> -> vector<32x256xf32>
    %103 = arith.addf %98, %102 : vector<32x256xf32>
    %c0_46 = arith.constant 0 : index
    %c0_47 = arith.constant 0 : index
    %104 = vector.load %arg7[%c0_46, %c0_47] : memref<1x256xf32, #tpu.memory_space<vmem>>, vector<1x256xf32>
    %105 = vector.broadcast %104 : vector<1x256xf32> to vector<32x256xf32>
    %106 = arith.mulf %103, %105 : vector<32x256xf32>
    %c0_48 = arith.constant 0 : index
    %c0_49 = arith.constant 0 : index
    %107 = vector.load %arg8[%c0_48, %c0_49] : memref<1x256xf32, #tpu.memory_space<vmem>>, vector<1x256xf32>
    %108 = vector.broadcast %107 : vector<1x256xf32> to vector<32x256xf32>
    %109 = arith.addf %106, %108 : vector<32x256xf32>
    %110 = arith.addf %109, %85 : vector<32x256xf32>
    %cst_50 = arith.constant 0.000000e+00 : f32
    %111 = vector.broadcast %cst_50 : f32 to vector<32x256xf32>
    %112 = arith.maximumf %110, %111 : vector<32x256xf32>
    %113 = vector.shape_cast %112 : vector<32x256xf32> to vector<2x16x256xf32>
    %114 = arith.truncf %113 : vector<2x16x256xf32> to vector<2x16x256xbf16>
    %c0_51 = arith.constant 0 : index
    %c0_52 = arith.constant 0 : index
    %c0_53 = arith.constant 0 : index
    %115 = vector.load %arg12[%c0_51, %c0_52, %c0_53] : memref<2x16x256xbf16, #tpu.memory_space<vmem>>, vector<2x16x256xbf16>
    tpu.vector_store %arg12[%c0_51, %c0_52, %c0_53], %114 {strides = array<i32>} : memref<2x16x256xbf16, #tpu.memory_space<vmem>>, vector<2x16x256xbf16>,
    return
  }
  func.func @transform_0(%arg0: i32) -> (i32, i32, i32) {
    %c0_i32 = arith.constant 0 : i32
    %c0_i32_0 = arith.constant 0 : i32
    %c0_i32_1 = arith.constant 0 : i32
    return %c0_i32, %arg0, %c0_i32_0 : i32, i32, i32
  }
  func.func @transform_1(%arg0: i32) -> (i32, i32, i32, i32) {
    %c0_i32 = arith.constant 0 : i32
    %c0_i32_0 = arith.constant 0 : i32
    %c0_i32_1 = arith.constant 0 : i32
    %c0_i32_2 = arith.constant 0 : i32
    return %arg0, %c0_i32, %c0_i32_0, %c0_i32_1 : i32, i32, i32, i32
  }
  func.func @transform_2(%arg0: i32) -> (i32, i32) {
    %c0_i32 = arith.constant 0 : i32
    %c0_i32_0 = arith.constant 0 : i32
    %c0_i32_1 = arith.constant 0 : i32
    return %c0_i32, %c0_i32_0 : i32, i32
  }
  func.func @transform_3(%arg0: i32) -> (i32, i32) {
    %c0_i32 = arith.constant 0 : i32
    %c0_i32_0 = arith.constant 0 : i32
    %c0_i32_1 = arith.constant 0 : i32
    return %c0_i32, %c0_i32_0 : i32, i32
  }
  func.func @transform_4(%arg0: i32) -> (i32, i32) {
    %c0_i32 = arith.constant 0 : i32
    %c0_i32_0 = arith.constant 0 : i32
    %c0_i32_1 = arith.constant 0 : i32
    return %c0_i32, %c0_i32_0 : i32, i32
  }
  func.func @transform_5(%arg0: i32) -> (i32, i32) {
    %c0_i32 = arith.constant 0 : i32
    %c0_i32_0 = arith.constant 0 : i32
    %c0_i32_1 = arith.constant 0 : i32
    return %c0_i32, %c0_i32_0 : i32, i32
  }
  func.func @transform_6(%arg0: i32) -> (i32, i32) {
    %c0_i32 = arith.constant 0 : i32
    %c0_i32_0 = arith.constant 0 : i32
    %c0_i32_1 = arith.constant 0 : i32
    return %c0_i32, %c0_i32_0 : i32, i32
  }
  func.func @transform_7(%arg0: i32) -> (i32, i32) {
    %c0_i32 = arith.constant 0 : i32
    %c0_i32_0 = arith.constant 0 : i32
    %c0_i32_1 = arith.constant 0 : i32
    return %c0_i32, %c0_i32_0 : i32, i32
  }
  func.func @transform_8(%arg0: i32) -> (i32, i32) {
    %c0_i32 = arith.constant 0 : i32
    %c0_i32_0 = arith.constant 0 : i32
    %c0_i32_1 = arith.constant 0 : i32
    return %c0_i32, %c0_i32_0 : i32, i32
  }
  func.func @transform_9(%arg0: i32) -> (i32, i32) {
    %c0_i32 = arith.constant 0 : i32
    %c0_i32_0 = arith.constant 0 : i32
    %c0_i32_1 = arith.constant 0 : i32
    return %c0_i32, %c0_i32_0 : i32, i32
  }
  func.func @transform_10(%arg0: i32) -> (i32, i32) {
    %c0_i32 = arith.constant 0 : i32
    %c0_i32_0 = arith.constant 0 : i32
    %c0_i32_1 = arith.constant 0 : i32
    return %c0_i32, %c0_i32_0 : i32, i32
  }
  func.func @transform_11(%arg0: i32) -> (i32, i32, i32) {
    %c0_i32 = arith.constant 0 : i32
    %c0_i32_0 = arith.constant 0 : i32
    %c0_i32_1 = arith.constant 0 : i32
    return %c0_i32, %arg0, %c0_i32_0 : i32, i32, i32
  }
}

module attributes {stable_mosaic.version = 11 : i64} {
  func.func @_block_kernel(%arg0: i32, %arg1: memref<2x16x256xbf16, #tpu.memory_space<vmem>>, %arg2: memref<1x4x2x256xbf16, #tpu.memory_space<vmem>>, %arg3: memref<768x512xbf16, #tpu.memory_space<vmem>>, %arg4: memref<1x512xf32, #tpu.memory_space<vmem>>, %arg5: memref<1x512xf32, #tpu.memory_space<vmem>>, %arg6: memref<1536x512xbf16, #tpu.memory_space<vmem>>, %arg7: memref<1x512xf32, #tpu.memory_space<vmem>>, %arg8: memref<1x512xf32, #tpu.memory_space<vmem>>, %arg9: memref<256x512xbf16, #tpu.memory_space<vmem>>, %arg10: memref<1x512xf32, #tpu.memory_space<vmem>>, %arg11: memref<1x512xf32, #tpu.memory_space<vmem>>, %arg12: memref<2x16x512xbf16, #tpu.memory_space<vmem>>) attributes {dimension_semantics = [#tpu.dimension_semantics<parallel>], iteration_bounds = array<i64: 1>, scalar_prefetch = 0 : i64, scratch_operands = 0 : i64, tpu.core_type = #tpu.core_type<tc>, window_params = [{transform_indices = @transform_0, window_bounds = array<i64: 2, 16, 256>}, {transform_indices = @transform_1, window_bounds = array<i64: 1, 4, 2, 256>}, {pipeline_mode = #tpu.pipeline_mode<synchronous>, transform_indices = @transform_2, window_bounds = array<i64: 768, 512>}, {pipeline_mode = #tpu.pipeline_mode<synchronous>, transform_indices = @transform_3, window_bounds = array<i64: 1, 512>}, {pipeline_mode = #tpu.pipeline_mode<synchronous>, transform_indices = @transform_4, window_bounds = array<i64: 1, 512>}, {pipeline_mode = #tpu.pipeline_mode<synchronous>, transform_indices = @transform_5, window_bounds = array<i64: 1536, 512>}, {pipeline_mode = #tpu.pipeline_mode<synchronous>, transform_indices = @transform_6, window_bounds = array<i64: 1, 512>}, {pipeline_mode = #tpu.pipeline_mode<synchronous>, transform_indices = @transform_7, window_bounds = array<i64: 1, 512>}, {pipeline_mode = #tpu.pipeline_mode<synchronous>, transform_indices = @transform_8, window_bounds = array<i64: 256, 512>}, {pipeline_mode = #tpu.pipeline_mode<synchronous>, transform_indices = @transform_9, window_bounds = array<i64: 1, 512>}, {pipeline_mode = #tpu.pipeline_mode<synchronous>, transform_indices = @transform_10, window_bounds = array<i64: 1, 512>}, {transform_indices = @transform_11, window_bounds = array<i64: 2, 16, 512>}]} {
    %c0 = arith.constant 0 : index
    %c0_0 = arith.constant 0 : index
    %c0_1 = arith.constant 0 : index
    %0 = vector.load %arg1[%c0, %c0_0, %c0_1] : memref<2x16x256xbf16, #tpu.memory_space<vmem>>, vector<2x16x256xbf16>
    %1 = arith.extf %0 : vector<2x16x256xbf16> to vector<2x16x256xf32>
    %c0_2 = arith.constant 0 : index
    %c0_3 = arith.constant 0 : index
    %c0_4 = arith.constant 0 : index
    %c0_5 = arith.constant 0 : index
    %2 = vector.load %arg2[%c0_2, %c0_3, %c0_4, %c0_5] : memref<1x4x2x256xbf16, #tpu.memory_space<vmem>>, vector<1x4x2x256xbf16>
    %3 = vector.shape_cast %2 : vector<1x4x2x256xbf16> to vector<4x2x256xbf16>
    %4 = arith.extf %3 : vector<4x2x256xbf16> to vector<4x2x256xf32>
    %5 = vector.extract_strided_slice %4 {offsets = [0, 0, 0], sizes = [1, 2, 256], strides = [1, 1, 1]} : vector<4x2x256xf32> to vector<1x2x256xf32>
    %6 = vector.shape_cast %5 : vector<1x2x256xf32> to vector<2x256xf32>
    %7 = vector.shape_cast %6 : vector<2x256xf32> to vector<2x1x256xf32>
    %8 = vector.extract_strided_slice %4 {offsets = [1, 0, 0], sizes = [1, 2, 256], strides = [1, 1, 1]} : vector<4x2x256xf32> to vector<1x2x256xf32>
    %9 = vector.shape_cast %8 : vector<1x2x256xf32> to vector<2x256xf32>
    %10 = vector.shape_cast %9 : vector<2x256xf32> to vector<2x1x256xf32>
    %11 = vector.extract_strided_slice %4 {offsets = [2, 0, 0], sizes = [1, 2, 256], strides = [1, 1, 1]} : vector<4x2x256xf32> to vector<1x2x256xf32>
    %12 = vector.shape_cast %11 : vector<1x2x256xf32> to vector<2x256xf32>
    %13 = vector.shape_cast %12 : vector<2x256xf32> to vector<2x1x256xf32>
    %14 = vector.extract_strided_slice %4 {offsets = [3, 0, 0], sizes = [1, 2, 256], strides = [1, 1, 1]} : vector<4x2x256xf32> to vector<1x2x256xf32>
    %15 = vector.shape_cast %14 : vector<1x2x256xf32> to vector<2x256xf32>
    %16 = vector.shape_cast %15 : vector<2x256xf32> to vector<2x1x256xf32>
    %17 = vector.extract_strided_slice %1 {offsets = [0, 0, 0], sizes = [2, 15, 256], strides = [1, 1, 1]} : vector<2x16x256xf32> to vector<2x15x256xf32>
    %18 = tpu.concatenate %10, %17 in 1 : vector<2x1x256xf32>, vector<2x15x256xf32> -> vector<2x16x256xf32>
    %19 = vector.extract_strided_slice %1 {offsets = [0, 1, 0], sizes = [2, 15, 256], strides = [1, 1, 1]} : vector<2x16x256xf32> to vector<2x15x256xf32>
    %20 = tpu.concatenate %19, %13 in 1 : vector<2x15x256xf32>, vector<2x1x256xf32> -> vector<2x16x256xf32>
    %21 = arith.truncf %18 : vector<2x16x256xf32> to vector<2x16x256xbf16>
    %22 = vector.shape_cast %21 : vector<2x16x256xbf16> to vector<32x256xbf16>
    %c0_6 = arith.constant 0 : index
    %c0_7 = arith.constant 0 : index
    %23 = vector.load %arg3[%c0_6, %c0_7] : memref<768x512xbf16, #tpu.memory_space<vmem>>, vector<256x512xbf16>
    %cst = arith.constant dense<0.000000e+00> : vector<32x512xf32>
    %24 = tpu.matmul %22, %23, %cst {dimension_numbers = #tpu.dot_dimension_numbers<[1], [0], [0], [1], [0, 0, 1, 1], [], []>} : vector<32x256xbf16>, vector<256x512xbf16>, vector<32x512xf32> -> vector<32x512xf32>
    %25 = arith.truncf %1 : vector<2x16x256xf32> to vector<2x16x256xbf16>
    %26 = vector.shape_cast %25 : vector<2x16x256xbf16> to vector<32x256xbf16>
    %c256 = arith.constant 256 : index
    %c0_8 = arith.constant 0 : index
    %27 = vector.load %arg3[%c256, %c0_8] : memref<768x512xbf16, #tpu.memory_space<vmem>>, vector<256x512xbf16>
    %cst_9 = arith.constant dense<0.000000e+00> : vector<32x512xf32>
    %28 = tpu.matmul %26, %27, %cst_9 {dimension_numbers = #tpu.dot_dimension_numbers<[1], [0], [0], [1], [0, 0, 1, 1], [], []>} : vector<32x256xbf16>, vector<256x512xbf16>, vector<32x512xf32> -> vector<32x512xf32>
    %29 = arith.addf %24, %28 : vector<32x512xf32>
    %30 = arith.truncf %20 : vector<2x16x256xf32> to vector<2x16x256xbf16>
    %31 = vector.shape_cast %30 : vector<2x16x256xbf16> to vector<32x256xbf16>
    %c512 = arith.constant 512 : index
    %c0_10 = arith.constant 0 : index
    %32 = vector.load %arg3[%c512, %c0_10] : memref<768x512xbf16, #tpu.memory_space<vmem>>, vector<256x512xbf16>
    %cst_11 = arith.constant dense<0.000000e+00> : vector<32x512xf32>
    %33 = tpu.matmul %31, %32, %cst_11 {dimension_numbers = #tpu.dot_dimension_numbers<[1], [0], [0], [1], [0, 0, 1, 1], [], []>} : vector<32x256xbf16>, vector<256x512xbf16>, vector<32x512xf32> -> vector<32x512xf32>
    %34 = arith.addf %29, %33 : vector<32x512xf32>
    %c0_12 = arith.constant 0 : index
    %c0_13 = arith.constant 0 : index
    %35 = vector.load %arg4[%c0_12, %c0_13] : memref<1x512xf32, #tpu.memory_space<vmem>>, vector<1x512xf32>
    %36 = vector.broadcast %35 : vector<1x512xf32> to vector<32x512xf32>
    %37 = arith.mulf %34, %36 : vector<32x512xf32>
    %c0_14 = arith.constant 0 : index
    %c0_15 = arith.constant 0 : index
    %38 = vector.load %arg5[%c0_14, %c0_15] : memref<1x512xf32, #tpu.memory_space<vmem>>, vector<1x512xf32>
    %39 = vector.broadcast %38 : vector<1x512xf32> to vector<32x512xf32>
    %40 = arith.addf %37, %39 : vector<32x512xf32>
    %cst_16 = arith.constant 0.000000e+00 : f32
    %41 = vector.broadcast %cst_16 : f32 to vector<32x512xf32>
    %42 = arith.maximumf %40, %41 : vector<32x512xf32>
    %43 = vector.shape_cast %42 : vector<32x512xf32> to vector<2x16x512xf32>
    %44 = vector.extract_strided_slice %1 {offsets = [0, 0, 0], sizes = [2, 1, 256], strides = [1, 1, 1]} : vector<2x16x256xf32> to vector<2x1x256xf32>
    %45 = arith.truncf %7 : vector<2x1x256xf32> to vector<2x1x256xbf16>
    %46 = vector.shape_cast %45 : vector<2x1x256xbf16> to vector<2x256xbf16>
    %c0_17 = arith.constant 0 : index
    %c0_18 = arith.constant 0 : index
    %47 = vector.load %arg3[%c0_17, %c0_18] : memref<768x512xbf16, #tpu.memory_space<vmem>>, vector<256x512xbf16>
    %cst_19 = arith.constant dense<0.000000e+00> : vector<2x512xf32>
    %48 = tpu.matmul %46, %47, %cst_19 {dimension_numbers = #tpu.dot_dimension_numbers<[1], [0], [0], [1], [0, 0, 1, 1], [], []>} : vector<2x256xbf16>, vector<256x512xbf16>, vector<2x512xf32> -> vector<2x512xf32>
    %49 = arith.truncf %10 : vector<2x1x256xf32> to vector<2x1x256xbf16>
    %50 = vector.shape_cast %49 : vector<2x1x256xbf16> to vector<2x256xbf16>
    %c256_20 = arith.constant 256 : index
    %c0_21 = arith.constant 0 : index
    %51 = vector.load %arg3[%c256_20, %c0_21] : memref<768x512xbf16, #tpu.memory_space<vmem>>, vector<256x512xbf16>
    %cst_22 = arith.constant dense<0.000000e+00> : vector<2x512xf32>
    %52 = tpu.matmul %50, %51, %cst_22 {dimension_numbers = #tpu.dot_dimension_numbers<[1], [0], [0], [1], [0, 0, 1, 1], [], []>} : vector<2x256xbf16>, vector<256x512xbf16>, vector<2x512xf32> -> vector<2x512xf32>
    %53 = arith.addf %48, %52 : vector<2x512xf32>
    %54 = arith.truncf %44 : vector<2x1x256xf32> to vector<2x1x256xbf16>
    %55 = vector.shape_cast %54 : vector<2x1x256xbf16> to vector<2x256xbf16>
    %c512_23 = arith.constant 512 : index
    %c0_24 = arith.constant 0 : index
    %56 = vector.load %arg3[%c512_23, %c0_24] : memref<768x512xbf16, #tpu.memory_space<vmem>>, vector<256x512xbf16>
    %cst_25 = arith.constant dense<0.000000e+00> : vector<2x512xf32>
    %57 = tpu.matmul %55, %56, %cst_25 {dimension_numbers = #tpu.dot_dimension_numbers<[1], [0], [0], [1], [0, 0, 1, 1], [], []>} : vector<2x256xbf16>, vector<256x512xbf16>, vector<2x512xf32> -> vector<2x512xf32>
    %58 = arith.addf %53, %57 : vector<2x512xf32>
    %c0_26 = arith.constant 0 : index
    %c0_27 = arith.constant 0 : index
    %59 = vector.load %arg4[%c0_26, %c0_27] : memref<1x512xf32, #tpu.memory_space<vmem>>, vector<1x512xf32>
    %60 = vector.broadcast %59 : vector<1x512xf32> to vector<2x512xf32>
    %61 = arith.mulf %58, %60 : vector<2x512xf32>
    %c0_28 = arith.constant 0 : index
    %c0_29 = arith.constant 0 : index
    %62 = vector.load %arg5[%c0_28, %c0_29] : memref<1x512xf32, #tpu.memory_space<vmem>>, vector<1x512xf32>
    %63 = vector.broadcast %62 : vector<1x512xf32> to vector<2x512xf32>
    %64 = arith.addf %61, %63 : vector<2x512xf32>
    %cst_30 = arith.constant 0.000000e+00 : f32
    %65 = vector.broadcast %cst_30 : f32 to vector<2x512xf32>
    %66 = arith.maximumf %64, %65 : vector<2x512xf32>
    %67 = vector.shape_cast %66 : vector<2x512xf32> to vector<2x1x512xf32>
    %c0_i32 = arith.constant 0 : i32
    %68 = arith.cmpi eq, %arg0, %c0_i32 : i32
    %cst_31 = arith.constant 0.000000e+00 : f32
    %69 = vector.broadcast %cst_31 : f32 to vector<2x1x512xf32>
    %70 = arith.select %68, %69, %67 : vector<2x1x512xf32>
    %71 = vector.extract_strided_slice %1 {offsets = [0, 15, 0], sizes = [2, 1, 256], strides = [1, 1, 1]} : vector<2x16x256xf32> to vector<2x1x256xf32>
    %72 = arith.truncf %71 : vector<2x1x256xf32> to vector<2x1x256xbf16>
    %73 = vector.shape_cast %72 : vector<2x1x256xbf16> to vector<2x256xbf16>
    %c0_32 = arith.constant 0 : index
    %c0_33 = arith.constant 0 : index
    %74 = vector.load %arg3[%c0_32, %c0_33] : memref<768x512xbf16, #tpu.memory_space<vmem>>, vector<256x512xbf16>
    %cst_34 = arith.constant dense<0.000000e+00> : vector<2x512xf32>
    %75 = tpu.matmul %73, %74, %cst_34 {dimension_numbers = #tpu.dot_dimension_numbers<[1], [0], [0], [1], [0, 0, 1, 1], [], []>} : vector<2x256xbf16>, vector<256x512xbf16>, vector<2x512xf32> -> vector<2x512xf32>
    %76 = arith.truncf %13 : vector<2x1x256xf32> to vector<2x1x256xbf16>
    %77 = vector.shape_cast %76 : vector<2x1x256xbf16> to vector<2x256xbf16>
    %c256_35 = arith.constant 256 : index
    %c0_36 = arith.constant 0 : index
    %78 = vector.load %arg3[%c256_35, %c0_36] : memref<768x512xbf16, #tpu.memory_space<vmem>>, vector<256x512xbf16>
    %cst_37 = arith.constant dense<0.000000e+00> : vector<2x512xf32>
    %79 = tpu.matmul %77, %78, %cst_37 {dimension_numbers = #tpu.dot_dimension_numbers<[1], [0], [0], [1], [0, 0, 1, 1], [], []>} : vector<2x256xbf16>, vector<256x512xbf16>, vector<2x512xf32> -> vector<2x512xf32>
    %80 = arith.addf %75, %79 : vector<2x512xf32>
    %81 = arith.truncf %16 : vector<2x1x256xf32> to vector<2x1x256xbf16>
    %82 = vector.shape_cast %81 : vector<2x1x256xbf16> to vector<2x256xbf16>
    %c512_38 = arith.constant 512 : index
    %c0_39 = arith.constant 0 : index
    %83 = vector.load %arg3[%c512_38, %c0_39] : memref<768x512xbf16, #tpu.memory_space<vmem>>, vector<256x512xbf16>
    %cst_40 = arith.constant dense<0.000000e+00> : vector<2x512xf32>
    %84 = tpu.matmul %82, %83, %cst_40 {dimension_numbers = #tpu.dot_dimension_numbers<[1], [0], [0], [1], [0, 0, 1, 1], [], []>} : vector<2x256xbf16>, vector<256x512xbf16>, vector<2x512xf32> -> vector<2x512xf32>
    %85 = arith.addf %80, %84 : vector<2x512xf32>
    %c0_41 = arith.constant 0 : index
    %c0_42 = arith.constant 0 : index
    %86 = vector.load %arg4[%c0_41, %c0_42] : memref<1x512xf32, #tpu.memory_space<vmem>>, vector<1x512xf32>
    %87 = vector.broadcast %86 : vector<1x512xf32> to vector<2x512xf32>
    %88 = arith.mulf %85, %87 : vector<2x512xf32>
    %c0_43 = arith.constant 0 : index
    %c0_44 = arith.constant 0 : index
    %89 = vector.load %arg5[%c0_43, %c0_44] : memref<1x512xf32, #tpu.memory_space<vmem>>, vector<1x512xf32>
    %90 = vector.broadcast %89 : vector<1x512xf32> to vector<2x512xf32>
    %91 = arith.addf %88, %90 : vector<2x512xf32>
    %cst_45 = arith.constant 0.000000e+00 : f32
    %92 = vector.broadcast %cst_45 : f32 to vector<2x512xf32>
    %93 = arith.maximumf %91, %92 : vector<2x512xf32>
    %94 = vector.shape_cast %93 : vector<2x512xf32> to vector<2x1x512xf32>
    %c0_i32_46 = arith.constant 0 : i32
    %95 = arith.cmpi eq, %arg0, %c0_i32_46 : i32
    %cst_47 = arith.constant 0.000000e+00 : f32
    %96 = vector.broadcast %cst_47 : f32 to vector<2x1x512xf32>
    %97 = arith.select %95, %96, %94 : vector<2x1x512xf32>
    %98 = vector.shape_cast %0 : vector<2x16x256xbf16> to vector<32x256xbf16>
    %c0_48 = arith.constant 0 : index
    %c0_49 = arith.constant 0 : index
    %99 = vector.load %arg9[%c0_48, %c0_49] : memref<256x512xbf16, #tpu.memory_space<vmem>>, vector<256x512xbf16>
    %cst_50 = arith.constant dense<0.000000e+00> : vector<32x512xf32>
    %100 = tpu.matmul %98, %99, %cst_50 {dimension_numbers = #tpu.dot_dimension_numbers<[1], [0], [0], [1], [0, 0, 1, 1], [], []>} : vector<32x256xbf16>, vector<256x512xbf16>, vector<32x512xf32> -> vector<32x512xf32>
    %c0_51 = arith.constant 0 : index
    %c0_52 = arith.constant 0 : index
    %101 = vector.load %arg10[%c0_51, %c0_52] : memref<1x512xf32, #tpu.memory_space<vmem>>, vector<1x512xf32>
    %102 = vector.broadcast %101 : vector<1x512xf32> to vector<32x512xf32>
    %103 = arith.mulf %100, %102 : vector<32x512xf32>
    %c0_53 = arith.constant 0 : index
    %c0_54 = arith.constant 0 : index
    %104 = vector.load %arg11[%c0_53, %c0_54] : memref<1x512xf32, #tpu.memory_space<vmem>>, vector<1x512xf32>
    %105 = vector.broadcast %104 : vector<1x512xf32> to vector<32x512xf32>
    %106 = arith.addf %103, %105 : vector<32x512xf32>
    %107 = vector.extract_strided_slice %43 {offsets = [0, 0, 0], sizes = [2, 15, 512], strides = [1, 1, 1]} : vector<2x16x512xf32> to vector<2x15x512xf32>
    %108 = tpu.concatenate %70, %107 in 1 : vector<2x1x512xf32>, vector<2x15x512xf32> -> vector<2x16x512xf32>
    %109 = vector.extract_strided_slice %43 {offsets = [0, 1, 0], sizes = [2, 15, 512], strides = [1, 1, 1]} : vector<2x16x512xf32> to vector<2x15x512xf32>
    %110 = tpu.concatenate %109, %97 in 1 : vector<2x15x512xf32>, vector<2x1x512xf32> -> vector<2x16x512xf32>
    %111 = arith.truncf %108 : vector<2x16x512xf32> to vector<2x16x512xbf16>
    %112 = vector.shape_cast %111 : vector<2x16x512xbf16> to vector<32x512xbf16>
    %c0_55 = arith.constant 0 : index
    %c0_56 = arith.constant 0 : index
    %113 = vector.load %arg6[%c0_55, %c0_56] : memref<1536x512xbf16, #tpu.memory_space<vmem>>, vector<512x512xbf16>
    %cst_57 = arith.constant dense<0.000000e+00> : vector<32x512xf32>
    %114 = tpu.matmul %112, %113, %cst_57 {dimension_numbers = #tpu.dot_dimension_numbers<[1], [0], [0], [1], [0, 0, 1, 1], [], []>} : vector<32x512xbf16>, vector<512x512xbf16>, vector<32x512xf32> -> vector<32x512xf32>
    %115 = arith.truncf %43 : vector<2x16x512xf32> to vector<2x16x512xbf16>
    %116 = vector.shape_cast %115 : vector<2x16x512xbf16> to vector<32x512xbf16>
    %c512_58 = arith.constant 512 : index
    %c0_59 = arith.constant 0 : index
    %117 = vector.load %arg6[%c512_58, %c0_59] : memref<1536x512xbf16, #tpu.memory_space<vmem>>, vector<512x512xbf16>
    %cst_60 = arith.constant dense<0.000000e+00> : vector<32x512xf32>
    %118 = tpu.matmul %116, %117, %cst_60 {dimension_numbers = #tpu.dot_dimension_numbers<[1], [0], [0], [1], [0, 0, 1, 1], [], []>} : vector<32x512xbf16>, vector<512x512xbf16>, vector<32x512xf32> -> vector<32x512xf32>
    %119 = arith.addf %114, %118 : vector<32x512xf32>
    %120 = arith.truncf %110 : vector<2x16x512xf32> to vector<2x16x512xbf16>
    %121 = vector.shape_cast %120 : vector<2x16x512xbf16> to vector<32x512xbf16>
    %c1024 = arith.constant 1024 : index
    %c0_61 = arith.constant 0 : index
    %122 = vector.load %arg6[%c1024, %c0_61] : memref<1536x512xbf16, #tpu.memory_space<vmem>>, vector<512x512xbf16>
    %cst_62 = arith.constant dense<0.000000e+00> : vector<32x512xf32>
    %123 = tpu.matmul %121, %122, %cst_62 {dimension_numbers = #tpu.dot_dimension_numbers<[1], [0], [0], [1], [0, 0, 1, 1], [], []>} : vector<32x512xbf16>, vector<512x512xbf16>, vector<32x512xf32> -> vector<32x512xf32>
    %124 = arith.addf %119, %123 : vector<32x512xf32>
    %c0_63 = arith.constant 0 : index
    %c0_64 = arith.constant 0 : index
    %125 = vector.load %arg7[%c0_63, %c0_64] : memref<1x512xf32, #tpu.memory_space<vmem>>, vector<1x512xf32>
    %126 = vector.broadcast %125 : vector<1x512xf32> to vector<32x512xf32>
    %127 = arith.mulf %124, %126 : vector<32x512xf32>
    %c0_65 = arith.constant 0 : index
    %c0_66 = arith.constant 0 : index
    %128 = vector.load %arg8[%c0_65, %c0_66] : memref<1x512xf32, #tpu.memory_space<vmem>>, vector<1x512xf32>
    %129 = vector.broadcast %128 : vector<1x512xf32> to vector<32x512xf32>
    %130 = arith.addf %127, %129 : vector<32x512xf32>
    %131 = arith.addf %130, %106 : vector<32x512xf32>
    %cst_67 = arith.constant 0.000000e+00 : f32
    %132 = vector.broadcast %cst_67 : f32 to vector<32x512xf32>
    %133 = arith.maximumf %131, %132 : vector<32x512xf32>
    %134 = vector.shape_cast %133 : vector<32x512xf32> to vector<2x16x512xf32>
    %135 = arith.truncf %134 : vector<2x16x512xf32> to vector<2x16x512xbf16>
    %c0_68 = arith.constant 0 : index
    %c0_69 = arith.constant 0 : index
    %c0_70 = arith.constant 0 : index
    %136 = vector.load %arg12[%c0_68, %c0_69, %c0_70] : memref<2x16x512xbf16, #tpu.memory_space<vmem>>, vector<2x16x512xbf16>
    tpu.vector_store %arg12[%c0_68, %c0_69, %c0_70], %135 {strides = array<i32>} : memref<2x16x512xbf16, #tpu.memory_space<vmem>>, vector<2x16x512xbf16>,
    return
  }
  func.func @transform_0(%arg0: i32) -> (i32, i32, i32) {
    %c0_i32 = arith.constant 0 : i32
    %c0_i32_0 = arith.constant 0 : i32
    %c0_i32_1 = arith.constant 0 : i32
    return %c0_i32, %arg0, %c0_i32_0 : i32, i32, i32
  }
  func.func @transform_1(%arg0: i32) -> (i32, i32, i32, i32) {
    %c0_i32 = arith.constant 0 : i32
    %c0_i32_0 = arith.constant 0 : i32
    %c0_i32_1 = arith.constant 0 : i32
    %c0_i32_2 = arith.constant 0 : i32
    return %arg0, %c0_i32, %c0_i32_0, %c0_i32_1 : i32, i32, i32, i32
  }
  func.func @transform_2(%arg0: i32) -> (i32, i32) {
    %c0_i32 = arith.constant 0 : i32
    %c0_i32_0 = arith.constant 0 : i32
    %c0_i32_1 = arith.constant 0 : i32
    return %c0_i32, %c0_i32_0 : i32, i32
  }
  func.func @transform_3(%arg0: i32) -> (i32, i32) {
    %c0_i32 = arith.constant 0 : i32
    %c0_i32_0 = arith.constant 0 : i32
    %c0_i32_1 = arith.constant 0 : i32
    return %c0_i32, %c0_i32_0 : i32, i32
  }
  func.func @transform_4(%arg0: i32) -> (i32, i32) {
    %c0_i32 = arith.constant 0 : i32
    %c0_i32_0 = arith.constant 0 : i32
    %c0_i32_1 = arith.constant 0 : i32
    return %c0_i32, %c0_i32_0 : i32, i32
  }
  func.func @transform_5(%arg0: i32) -> (i32, i32) {
    %c0_i32 = arith.constant 0 : i32
    %c0_i32_0 = arith.constant 0 : i32
    %c0_i32_1 = arith.constant 0 : i32
    return %c0_i32, %c0_i32_0 : i32, i32
  }
  func.func @transform_6(%arg0: i32) -> (i32, i32) {
    %c0_i32 = arith.constant 0 : i32
    %c0_i32_0 = arith.constant 0 : i32
    %c0_i32_1 = arith.constant 0 : i32
    return %c0_i32, %c0_i32_0 : i32, i32
  }
  func.func @transform_7(%arg0: i32) -> (i32, i32) {
    %c0_i32 = arith.constant 0 : i32
    %c0_i32_0 = arith.constant 0 : i32
    %c0_i32_1 = arith.constant 0 : i32
    return %c0_i32, %c0_i32_0 : i32, i32
  }
  func.func @transform_8(%arg0: i32) -> (i32, i32) {
    %c0_i32 = arith.constant 0 : i32
    %c0_i32_0 = arith.constant 0 : i32
    %c0_i32_1 = arith.constant 0 : i32
    return %c0_i32, %c0_i32_0 : i32, i32
  }
  func.func @transform_9(%arg0: i32) -> (i32, i32) {
    %c0_i32 = arith.constant 0 : i32
    %c0_i32_0 = arith.constant 0 : i32
    %c0_i32_1 = arith.constant 0 : i32
    return %c0_i32, %c0_i32_0 : i32, i32
  }
  func.func @transform_10(%arg0: i32) -> (i32, i32) {
    %c0_i32 = arith.constant 0 : i32
    %c0_i32_0 = arith.constant 0 : i32
    %c0_i32_1 = arith.constant 0 : i32
    return %c0_i32, %c0_i32_0 : i32, i32
  }
  func.func @transform_11(%arg0: i32) -> (i32, i32, i32) {
    %c0_i32 = arith.constant 0 : i32
    %c0_i32_0 = arith.constant 0 : i32
    %c0_i32_1 = arith.constant 0 : i32
    return %c0_i32, %arg0, %c0_i32_0 : i32, i32, i32
  }
}

module attributes {stable_mosaic.version = 11 : i64} {
  func.func @_mean_kernel(%arg0: memref<2x16x512xbf16, #tpu.memory_space<vmem>>, %arg1: memref<2x512xf32, #tpu.memory_space<vmem>>) attributes {dimension_semantics = [], scalar_prefetch = 0 : i64, scratch_operands = 0 : i64, tpu.core_type = #tpu.core_type<tc>} {
    %c0 = arith.constant 0 : index
    %c0_0 = arith.constant 0 : index
    %c0_1 = arith.constant 0 : index
    %0 = vector.load %arg0[%c0, %c0_0, %c0_1] : memref<2x16x512xbf16, #tpu.memory_space<vmem>>, vector<2x16x512xbf16>
    %1 = arith.extf %0 : vector<2x16x512xbf16> to vector<2x16x512xf32>
    %cst = arith.constant dense<0.000000e+00> : vector<2x512xf32>
    %2 = vector.multi_reduction <add>, %1, %cst [1] : vector<2x16x512xf32> to vector<2x512xf32>
    %cst_2 = arith.constant 1.600000e+01 : f32
    %3 = vector.broadcast %cst_2 : f32 to vector<2x512xf32>
    %4 = arith.divf %2, %3 : vector<2x512xf32>
    %c0_3 = arith.constant 0 : index
    %c0_4 = arith.constant 0 : index
    %5 = vector.load %arg1[%c0_3, %c0_4] : memref<2x512xf32, #tpu.memory_space<vmem>>, vector<2x512xf32>
    tpu.vector_store %arg1[%c0_3, %c0_4], %4 {strides = array<i32>} : memref<2x512xf32, #tpu.memory_space<vmem>>, vector<2x512xf32>,
    return
  }
}

</mosaic_0001>

<bundles_post_ra>
// kernel: tpu_custom_call.1
= control target key start
LH: loop header
LB: loop body
LE: loop exit
PB: predicated region body
PF: predicated region fallthrough
CT: control target
= control target key end

     0   :  { %6 = vsyncpa [#allocation3], 0  ;;  %s125_s0 = inlined_call_operand.hbm [shape: f32[8,128], index: 0, kind: input, shape index: {}]   ;;  %s126_s1 = inlined_call_operand.hbm [shape: f32[8,128], index: 1, kind: output, shape index: {}]  }
   0x1   :  { %7 = vsyncpa [#allocation4], 0  ;;  %s89_s6 = smov [#allocation2]   ;;  %s41_s10 = scalar_lea.hbm %s125_s0, 128 }
   0x2   :  { %s14_s7 = sshll.u32 %s89_s6, 4  ;;  %p42_p0 = scmp.ne.s32.totalorder %s125_s0, %s41_s10  ;;  %s15_s7 = int_to_ptr.vmem [resolvable:$true] %s14_s7 }
   0x3   :  { %p45_p1 = scmp.lt.u32.totalorder %s41_s10, %s125_s0 }
   0x5   :  { %p47_p2 = pnand %p45_p1, %p42_p0 }
   0x7   :  { %50 = shalt.err (!%p47_p2)
}
   0x8   :  { %s51_s15 = scalar_lea.vmem %s15_s7, 128  ;;  %p56_p4 = scmp.lt.s32.totalorder %s15_s7, %s15_s7 }
   0x9   :  { %p52_p3 = scmp.ne.s32.totalorder %s15_s7, %s51_s15  ;;  %p57_p5 = scmp.lt.s32.totalorder %s51_s15, %s51_s15 }
   0xb   :  { %p58_p6 = por %p57_p5, %p56_p4 }
   0xd   :  { %p59_p7 = pnand %p58_p6, %p52_p3 }
   0xf   :  { %62 = shalt.err (!%p59_p7)
}
  0x10   :  { %17 = dma.hbm_to_vmem [thread:$0]  %s125_s0, 128, %s15_s7, [#allocation3]  }
  0x11   :  { %85 = dma.done.wait [#allocation3], 128  }
  0x12   :  { %86 = vsyncadd [#allocation3], 4294967168  ;;  %s90_s18 = smov [#allocation5]   ;;  %v21_v0 = vld [vmem:[#allocation2] sm:$0xff] }
  0x13   :  { %s30_s19 = sshll.u32 %s90_s18, 4  ;;  %v22_v1 = vrot.slane %v21_v0, 7  ;;  %s31_s19 = int_to_ptr.vmem [resolvable:$true] %s30_s19 }
  0x14   :  { %s63_s20 = scalar_lea.vmem %s31_s19, 128  ;;  %p68_p9 = scmp.lt.s32.totalorder %s31_s19, %s31_s19 }
  0x15   :  { %23 = vst [vmem:[#allocation5] sm:$0xff] %v22_v1  ;;  %p64_p8 = scmp.ne.s32.totalorder %s31_s19, %s63_s20  ;;  %p69_p10 = scmp.lt.s32.totalorder %s63_s20, %s63_s20 }
  0x17   :  { %p70_p11 = por %p69_p10, %p68_p9 }
  0x19   :  { %p71_p12 = pnand %p70_p11, %p64_p8 }
  0x1b   :  { %74 = shalt.err (!%p71_p12)
}
  0x1c   :  { %s75_s23 = scalar_lea.hbm %s126_s1, 128 }
  0x1d   :  { %p76_p13 = scmp.ne.s32.totalorder %s126_s1, %s75_s23  ;;  %p79_p0 = scmp.lt.u32.totalorder %s75_s23, %s126_s1 }
  0x1f   :  { %p81_p1 = pnand %p79_p0, %p76_p13 }
  0x21   :  { %84 = shalt.err (!%p81_p1)
}
  0x22   :  { %33 = dma.vmem_to_hbm [thread:$0]  %s31_s19, 128, %s126_s1, [#allocation4]  }
  0x23   :  { %87 = dma.done.wait [#allocation4], 128  }
  0x24   :  { %88 = vsyncadd [#allocation4], 4294967168 }
  0x25   :  { %37 = vsyncpa [#allocation3], 1 }
  0x26   :  { %38 = vsyncpa [#allocation4], 1 }

// kernel: resnet34_forward.6
= control target key start
LH: loop header
LB: loop body
LE: loop exit
PB: predicated region body
PF: predicated region fallthrough
CT: control target
= control target key end

     0   :  { %s570_s15 = smov 0   ;;  %s572_s16 = smov 0   ;;  %s636_s0 = inlined_call_operand.vmem [shape: bf16[2,2,16,28], index: 0, kind: input, shape index: {}]   ;;  %s637_s1 = inlined_call_operand.vmem [shape: bf16[28,64], index: 1, kind: input, shape index: {}]   ;;  %s638_s2 = inlined_call_operand.vmem [shape: f32[1,64], index: 2, kind: input, shape index: {}]   ;;  %s639_s3 = inlined_call_operand.vmem [shape: f32[1,64], index: 3, kind: input, shape index: {}]   ;;  %s640_s4 = inlined_call_operand.vmem [shape: bf16[2,16,64], index: 4, kind: output, shape index: {}]  }
   0x1   :  { %s574_s17 = smov 0  }
   0x2 LB: > { %s453_s18 = sadd.s32 4294967295, %s543_s17   ;;  %s587_s19 = sadd.s32 1, %s543_s17   ;;  %s543_s17 = sphi %s574_s17, %s643_s17   ;;  %s539_s16 = sphi %s572_s16, %s642_s16   ;;  %s535_s15 = sphi %s570_s15, %s641_s15  }
   0x3   : > { %s18_s20 = ssub.s32 %s543_s17, %s587_s19  ;;  %s21_s21 = sadd.s32 1, %s539_s16 }
   0x4   : > { %p19_p0 = scmp.eq.s32.totalorder %s18_s20, 0  ;;  %p28_p1 = scmp.ne.s32.totalorder %s539_s16, %s535_s15 }
   0x5   : > { %p29_p2 = scmp.eq.s32.totalorder %s543_s17, 0  ;;  %p456_p4 = scmp.ge.s32.totalorder %s543_s17, 2 }
   0x6   : > { %s596_s22 = scalar_select %p19_p0, %s539_s16, %s21_s21  }
   0x7   : > { %p30_p3 = por %p29_p2, %p28_p1  ;;  %152 = sbr.rel (%p456_p4) target bundleno = 21 (0x15), region = 28 }
   0xe   : > { %155 = sbr.rel (!%p30_p3) target bundleno = 21 (0x15), region = 32  ;;  %s157_s23 = sand.u32 (%p30_p3), 1, %s539_s16  }
   0xf   : > { %s476_s24 = sshll.u32 (%p30_p3), %s543_s17, 3  ;;  %s457_s25 = sshll.u32 (%p30_p3), %s157_s23, 4 }
  0x10   : > { %s162_s28 = scalar_lea.vmem (%p30_p3), %s636_s0, %s476_s24  ;;  %s159_s29 = scalar_lea.vmem (%p30_p3), [#allocation2], %s457_s25 }
  0x11   : > { %v178_v0 = vld [vmem:[%s162_s28] sm:$0xff] (%p30_p3)   ;;  %v182_v1 = vld [vmem:[%s162_s28 + $0x10] sm:$0xff] (%p30_p3)  }
  0x12   : > { %179 = vst [vmem:[%s159_s29] sm:$0xff] (%p30_p3), %v178_v0   ;;  %183 = vst [vmem:[%s159_s29 + $0x8] sm:$0xff] (%p30_p3), %v182_v1  }
  0x15 PF: > { %p460_p5 = scmp.ge.s32.totalorder %s543_s17, 1  ;;  %p215_p6 = scmp.lt.s32.totalorder %s543_s17, 3 }
  0x17   : > { %p216_p7 = pnand %p460_p5, %p215_p6 }
  0x18   : > { %v517_v2 = vld [vmem:[%s637_s1] sm:$0xff] (!%p216_p7)   ;;  %vm289_vm0 = vcmask (!%p216_p7), 1045504   ;;  %v518_v3 = vld [vmem:[%s637_s1 + $0x8] sm:$0x3f] (!%p216_p7)   ;;  %s222_s8 = sand.u32 (!%p216_p7), 1, %s535_s15   ;;  %vm282_vm1 = vcmask (!%p216_p7), 228352  }
  0x19   : > { %219 = sbr.rel (%p216_p7) target bundleno = 261 (0x105), region = 73  ;;  %484 = vmatprep.subr.bf16.mxu0 (!%p216_p7), %v517_v2  ;;  %s461_s9 = sshll.u32 (!%p216_p7), %s222_s8, 4  ;;  %v291_v4 = vsel (!%p216_p7), %vm289_vm0, %v518_v3, 0  ;;  %v470_v7 = vld [vmem:[%s638_s2] ss:$0 sm:$0xff] (!%p216_p7)  ;;  %vm370_vm2 = vcmask (!%p216_p7), 1040384  }
  0x1a   : > { %485 = vmatpush3.bf16.msra.mxu0 (!%p216_p7), %v517_v2  ;;  %s224_s10 = scalar_lea.vmem (!%p216_p7), [#allocation2], %s461_s9  ;;  %v471_v9 = vld [vmem:[%s639_s3] ss:$0 sm:$0xff] (!%p216_p7)  ;;  %p247_p8 = scmp.lt.s32.totalorder (!%p216_p7), %s453_s18, 1  ;;  %vm389_vm3 = vcmask (!%p216_p7), 519168  }
  0x1b   : > { %492 = vmatprep.subr.msk.bf16.mxu0 (!%p216_p7), %vm289_vm0, %v518_v3  ;;  %v519_v5 = vld [vmem:[%s224_s10] sm:$0xff] (!%p216_p7)   ;;  %v520_v6 = vld [vmem:[%s224_s10 + $0x8] sm:$0xff] (!%p216_p7)  }
  0x1c   : > { %488 = vmatprep.mubr.msk.bf16.mxu0 (!%p216_p7), %vm282_vm1, %v519_v5 }
  0x1e   : > { %487 = vmatpush3.bf16.msra.mxu0 (!%p216_p7), %v291_v4 }
  0x20   : > { %s645_s18 = smov (!%p247_p8, %s453_s18), 1 }
  0x21   : > { %489 = vmatmul.mubr.msk.bf16.vlgmr.msra.gmra.mrb[0].mxu0 %vm282_vm1, %v520_v6  ;;  %s477_s15 = sshll.u32 %s645_s18, 3 }
  0x22   : > { %s251_s17 = scalar_lea.vmem %s640_s4, %s477_s15 }
  0xf4   : > { %v490_v8 = vpop.f32.mrb[0].mxu0 }
  0xf5   : > { %v351_v10 = vmul.f32 %v490_v8, %v470_v7  ;;  %v327_v11 = vpop.f32.mrb[1].mxu0 }
  0xf6   : > { %v349_v12 = vmul.f32 %v470_v7, %v327_v11  ;;  %v491_v13 = vpop.f32.mrb[2].mxu0 }
  0xf7   : > { %v362_v14 = vadd.f32 %v471_v9, %v351_v10  ;;  %v352_v15 = vmul.f32 %v491_v13, %v470_v7  ;;  %v330_v16 = vpop.f32.mrb[3].mxu0 }
  0xf8   : > { %v360_v17 = vadd.f32 %v471_v9, %v349_v12  ;;  %v350_v18 = vmul.f32 %v470_v7, %v330_v16 }
  0xf9   : > { %v366_v19 = vmax.f32 %v362_v14, 0.0  ;;  %v363_v20 = vadd.f32 %v471_v9, %v352_v15 }
  0xfa   : > { %v364_v21 = vmax.f32 %v360_v17, 0.0  ;;  %v361_v22 = vadd.f32 %v471_v9, %v350_v18 }
  0xfb   : > { %v371_v23 = vrot.slane %v366_v19, 7  ;;  %v367_v24 = vmax.f32 %v363_v20, 0.0 }
  0xfc   : > { %v377_v25 = vmax.f32 %v364_v21, %v366_v19  ;;  %v365_v26 = vmax.f32 %v361_v22, 0.0 }
  0xfd   : > { %v376_v27 = vsel %vm370_vm2, 0.0, %v371_v23  ;;  %v372_v28 = vrot.slane %v367_v24, 7 }
  0xfe   : > { %v379_v29 = vmax.f32 %v377_v25, %v376_v27  ;;  %v378_v30 = vmax.f32 %v365_v26, %v367_v24 }
  0xff   : > { %v373_v31 = vsel %vm370_vm2, %v371_v23, %v372_v28 }
 0x100   : > { %v478_v32 = vpack.c.bf16 %v379_v29, %v379_v29  ;;  %v380_v33 = vmax.f32 %v378_v30, %v373_v31 }
 0x102   : > { %390 = vst.msk [vmem:[%s251_s17] sm:$0xf] %vm389_vm3, %v478_v32  ;;  %v479_v34 = vpack.c.bf16 %v380_v33, %v380_v33 }
 0x104   : > { %391 = vst.msk [vmem:[%s251_s17 + $0x4] sm:$0xf] %vm389_vm3, %v479_v34 }
 0x105 PF: > { %p11_p9 = scmp.ge.s32.totalorder %s587_s19, 4   ;;  %s641_s15 = smov %s539_s16 }
 0x106   : > { %s642_s16 = smov %s596_s22  ;;  %s643_s17 = smov %s587_s19 }
 0x107   :  { %13 = sbr.rel (!%p11_p9) target bundleno = 2 (0x2), region = 112 }

// kernel: resnet34_forward.7
= control target key start
LH: loop header
LB: loop body
LE: loop exit
PB: predicated region body
PF: predicated region fallthrough
CT: control target
= control target key end

     0   :  { %s1102_s15 = smov 64   ;;  %v1103_v11 = vmov 1966171168   ;;  %v50_v13 = vlaneseq  ;;  %vm107_vm0 = vcmask 1046528   ;;  %vm148_vm1 = vcmask 523264   ;;  %s1473_s0 = inlined_call_operand.vmem [shape: bf16[2,16,64], index: 0, kind: input, shape index: {}]   ;;  %s1474_s2 = inlined_call_operand.vmem [shape: bf16[256,64], index: 2, kind: input, shape index: {}]   ;;  %s1475_s1 = inlined_call_operand.vmem [shape: bf16[1,4,2,64], index: 1, kind: input, shape index: {}]   ;;  %s1476_s5 = inlined_call_operand.vmem [shape: bf16[256,64], index: 5, kind: input, shape index: {}]   ;;  %s1477_s3 = inlined_call_operand.vmem [shape: f32[1,64], index: 3, kind: input, shape index: {}]   ;;  %s1478_s4 = inlined_call_operand.vmem [shape: f32[1,64], index: 4, kind: input, shape index: {}]   ;;  %s1479_s6 = inlined_call_operand.vmem [shape: f32[1,64], index: 6, kind: input, shape index: {}]   ;;  %s1480_s7 = inlined_call_operand.vmem [shape: f32[1,64], index: 7, kind: input, shape index: {}]   ;;  %s1481_s8 = inlined_call_operand.vmem [shape: bf16[2,16,64], index: 8, kind: output, shape index: {}]  }
   0x1   :  { %v1153_v0 = vld [vmem:[%s1473_s0] sm:$0xf]  ;;  %v1158_v1 = vld [vmem:[%s1473_s0 + $0x4] sm:$0xf]  ;;  %v1163_v2 = vld [vmem:[%s1473_s0 + $0x8] sm:$0xf]  ;;  %v48_v12 = vunpack.c.l.s4 %v1103_v11 }
   0x2   :  { %v902_v3 = vcombine.low %v1153_v0, %v1158_v1  ;;  %v1170_v4 = vld [vmem:[%s1473_s0 + $0xc] sm:$0xf]  ;;  %v1175_v5 = vld [vmem:[%s1474_s2 + $0x40] sm:$0xff]   ;;  %v1203_v10 = vld [vmem:[%s1474_s2 + $0x50] sm:$0xff]   ;;  %v51_v17 = vshrl.u32 %v50_v13, 7  ;;  %v1222_v18 = vunpack.c.l.bf16 %v1153_v0  ;;  %v1232_v20 = vunpack.c.l.bf16 %v1158_v1 }
   0x3   :  { %v903_v6 = vcombine.low %v1163_v2, %v1170_v4  ;;  %v1183_v7 = vld [vmem:[%s1474_s2] sm:$0xff]   ;;  %956 = vmatprep.subr.bf16.mxu0 %v1175_v5  ;;  %v1189_v8 = vld [vmem:[%s1474_s2 + $0x48] sm:$0xff]   ;;  %984 = vmatprep.subr.bf16.mxu1 %v1175_v5  ;;  %v1211_v14 = vld [vmem:[%s1474_s2 + $0x10] sm:$0xff]   ;;  %v49_v16 = vunpack.c.0.s8 %v48_v12  ;;  %v1307_v46 = vunpack.c.l.bf16 %v1163_v2  ;;  %v1310_v47 = vunpack.c.l.bf16 %v1170_v4 }
   0x4   :  { %144 = vrot.lane.b32.xlu0 %v902_v3, %s1102_s15  ;;  %957 = vmatpush3.bf16.msra.mxu0 %v1183_v7  ;;  %v1196_v9 = vld [vmem:[%s1474_s2 + $0x8] sm:$0xff]   ;;  %v1218_v15 = vld [vmem:[%s1474_s2 + $0x58] sm:$0xff]   ;;  %v1238_v21 = vld [vmem:[%s1474_s2 + $0x60] sm:$0xff]   ;;  %v108_v25 = vrot.slane %v1222_v18, 1  ;;  %v109_v29 = vrot.slane %v1232_v20, 1  ;;  %v1264_v30 = vsub.s32 0, %v51_v17 }
   0x5   :  { %985 = vmatpush3.bf16.msra.mxu1 %v1183_v7  ;;  %958 = vmatprep.subr.bf16.mxu0 %v1189_v8  ;;  %v1228_v19 = vld [vmem:[%s1474_s2 + $0x18] sm:$0xff]   ;;  %v1241_v22 = vsub.s32 %v49_v16, %v51_v17  ;;  %v1247_v23 = vld [vmem:[%s1474_s2 + $0x20] sm:$0xff]   ;;  %v1261_v27 = vld [vmem:[%s1474_s2 + $0x68] sm:$0xff]   ;;  %v96_v49 = vrot.slane %v1232_v20, 7  ;;  %v95_v50 = vrot.slane %v1222_v18, 7  ;;  %vm94_vm2 = vcmask 1040384  }
   0x6   :  { %986 = vmatprep.subr.bf16.mxu1 %v1189_v8  ;;  %v40_v24 = vld [vmem:[%s1475_s1 + $0x2] sm:$0x1]  ;;  %v39_v26 = vld [vmem:[%s1475_s1 + $0x1] sm:$0x1]  ;;  %v1275_v34 = vld [vmem:[%s1474_s2 + $0x28] sm:$0xff]   ;;  %v110_v36 = vsel %vm107_vm0, %v108_v25, %v109_v29  ;;  %v111_v51 = vrot.slane %v1307_v46, 1  ;;  %v925_v16 = vcombine.low %v1163_v2, %v1163_v2 }
   0x7   :  { %v44_v28 = vunpack.c.l.bf16 %v40_v24  ;;  %v43_v31 = vunpack.c.l.bf16 %v39_v26  ;;  %v1282_v35 = vld [vmem:[%s1474_s2 + $0x70] sm:$0xff]   ;;  %v1083_v43 = vld [vmem:[%s1474_s2 + $0x78] sm:$0xff]   ;;  %v112_v52 = vrot.slane %v1310_v47, 1  ;;  %v97_v54 = vsel %vm94_vm2, %v95_v50, %v96_v49  ;;  %v1096_v49 = vld [vmem:[%s1476_s5 + $0x68] sm:$0xff]  }
   0x8   :  { %146 = vrot.lane.b32.xlu0 %v903_v6, %s1102_s15  ;;  %959 = vmatpush3.bf16.msra.mxu0 %v1196_v9  ;;  %v1082_v41 = vld [vmem:[%s1474_s2 + $0x30] sm:$0xff]   ;;  %v1084_v45 = vld [vmem:[%s1474_s2 + $0x38] sm:$0xff]   ;;  %v98_v58 = vrot.slane %v1307_v46, 7  ;;  %v99_v59 = vrot.slane %v1310_v47, 7  ;;  %vm398_vm3 = vcmask 1041409   ;;  %vm893_vm4 = vcmask 519168  }
   0x9   :  { %987 = vmatpush3.bf16.msra.mxu1 %v1196_v9  ;;  %960 = vmatprep.subr.bf16.mxu0 %v1203_v10  ;;  %v1268_v32 = vrot.slane %v44_v28, %v1241_v22  ;;  %v64_v33 = vrot.slane %v43_v31, %v1241_v22  ;;  %v113_v56 = vsel %vm107_vm0, %v111_v51, %v112_v52  ;;  %v1098_v51 = vld [vmem:[%s1476_s5 + $0x70] sm:$0xff]  }
   0xa   :  { %988 = vmatprep.subr.bf16.mxu1 %v1203_v10  ;;  %v100_v63 = vsel %vm94_vm2, %v98_v58, %v99_v59 }
   0xb   :  { %v121_v37 = vrot.slane %v1268_v32, %v1264_v30  ;;  %v65_v38 = vcombine.high %v64_v33, %v64_v33  ;;  %v369_v44 = vpack.c.bf16 %v64_v33, %v64_v33  ;;  %v1314_v48 = vcombine.high %v1268_v32, %v1268_v32 }
   0xc   :  { %961 = vmatpush3.bf16.msra.mxu0 %v1211_v14  ;;  %v105_v55 = vsel %vm94_vm2, %v64_v33, %v95_v50  ;;  %v1097_v50 = vld [vmem:[%s1476_s5 + $0x28] sm:$0xff]  }
   0xd   :  { %989 = vmatpush3.bf16.msra.mxu1 %v1211_v14  ;;  %962 = vmatprep.subr.bf16.mxu0 %v1218_v15  ;;  %v128_v39 = vsel %vm107_vm0, %v109_v29, %v121_v37  ;;  %v370_v40 = vpack.c.bf16 %v65_v38, %v65_v38  ;;  %v125_v53 = vrot.slane %v1314_v48, %v1264_v30  ;;  %v1087_v37 = vld [vmem:[%s1476_s5] sm:$0xff]  }
   0xe   :  { %990 = vmatprep.subr.bf16.mxu1 %v1218_v15  ;;  %v132_v42 = vpack.c.bf16 %v128_v39, %v110_v36  ;;  %v130_v60 = vpack.c.bf16 %v97_v54, %v105_v55  ;;  %v106_v3 = vsel %vm94_vm2, %v65_v38, %v98_v58  ;;  %v1086_v36 = vld [vmem:[%s1476_s5 + $0x40] sm:$0xff]   ;;  %v1088_v38 = vld [vmem:[%s1476_s5 + $0x48] sm:$0xff]   ;;  %v1101_v54 = vld [vmem:[%s1476_s5 + $0x38] sm:$0xff]   ;;  %v482_v55 = vpack.c.bf16 %v1268_v32, %v1268_v32 }
   0xf   :  { %377 = vrot.lane.b32.xlu1 %v370_v40, %s1102_s15  ;;  %v129_v57 = vsel %vm107_vm0, %v112_v52, %v125_v53  ;;  %v131_v6 = vpack.c.bf16 %v100_v63, %v106_v3  ;;  %v1089_v39 = vld [vmem:[%s1476_s5 + $0x8] sm:$0xff]   ;;  %v1090_v40 = vld [vmem:[%s1476_s5 + $0x50] sm:$0xff]   ;;  %v1100_v53 = vld [vmem:[%s1476_s5 + $0x78] sm:$0xff]  }
  0x10   :  { %963 = vmatpush3.bf16.msra.mxu0 %v1228_v19  ;;  %920 = vmatprep.mubr.msk.bf16.mxu0 %vm148_vm1, %v132_v42  ;;  %v133_v61 = vpack.c.bf16 %v129_v57, %v113_v56  ;;  %v1092_v42 = vld [vmem:[%s1476_s5 + $0x58] sm:$0xff]   ;;  %v1099_v52 = vld [vmem:[%s1476_s5 + $0x30] sm:$0xff]   ;;  %v483_v56 = vpack.c.bf16 %v1314_v48, %v1314_v48  ;;  %v41_v57 = vld [vmem:[%s1475_s1 + $0x3] sm:$0x1] }
  0x11   :  { %991 = vmatpush3.bf16.msra.mxu1 %v1228_v19  ;;  %964 = vmatprep.subr.bf16.mxu0 %v1238_v21  ;;  %v45_v59 = vunpack.c.l.bf16 %v41_v57  ;;  %v923_v32 = vld [vmem:[%s1478_s4] ss:$0 sm:$0xff] }
  0x12   :  { %992 = vmatprep.subr.bf16.mxu1 %v1238_v21 }
  0x13   :  { %375 = vrot.lane.b32.xlu1 %v369_v44, %s1102_s15  ;;  %v1094_v44 = vld [vmem:[%s1476_s5 + $0x60] sm:$0xff]   ;;  %v86_v3 = vrot.slane %v45_v59, %v1241_v22 }
  0x14   :  { %965 = vmatpush3.bf16.msra.mxu0 %v1247_v23 }
  0x15   :  { %993 = vmatpush3.bf16.msra.mxu1 %v1247_v23  ;;  %966 = vmatprep.subr.bf16.mxu0 %v1261_v27 }
  0x16   :  { %994 = vmatprep.subr.bf16.mxu1 %v1261_v27 }
  0x18   :  { %967 = vmatpush3.bf16.msra.mxu0 %v1275_v34 }
  0x19   :  { %995 = vmatpush3.bf16.msra.mxu1 %v1275_v34  ;;  %968 = vmatprep.subr.bf16.mxu0 %v1282_v35 }
  0x1a   :  { %996 = vmatprep.subr.bf16.mxu1 %v1282_v35 }
  0x1c   :  { %969 = vmatpush3.bf16.msra.mxu0 %v1082_v41 }
  0x1d   :  { %997 = vmatpush3.bf16.msra.mxu1 %v1082_v41  ;;  %970 = vmatprep.subr.bf16.mxu0 %v1083_v43 }
  0x1e   :  { %998 = vmatprep.subr.bf16.mxu1 %v1083_v43 }
  0x20   :  { %971 = vmatpush3.bf16.msra.mxu0 %v1084_v45 }
  0x21   :  { %999 = vmatpush3.bf16.msra.mxu1 %v1084_v45  ;;  %1006 = vmatprep.subr.bf16.mxu0 %v1175_v5 }
  0x22   :  { %1028 = vmatprep.subr.bf16.mxu1 %v1086_v36 }
  0x76   :  { %v145_v62 = vpop.permute.xlu0 %144 }
  0x77   :  { %v151_v5 = vsel %vm148_vm1, %v130_v60, %v145_v62 }
  0x78   :  { %325 = vmatmul.mubr.bf16.vlgmr.msra.gmra.mrb[0].mxu0 %v151_v5  ;;  %v487_v5 = vshll.u32 %v482_v55, 16 }
  0x79   :  { %921 = vmatprep.mubr.msk.bf16.mxu0 %vm148_vm1, %v133_v61  ;;  %1007 = vmatpush3.bf16.msra.mxu0 %v1183_v7  ;;  %v38_v7 = vld [vmem:[%s1475_s1] sm:$0x1] }
  0x7a   :  { %v147_v11 = vpop.permute.xlu0 %146  ;;  %1008 = vmatprep.subr.bf16.mxu0 %v1189_v8  ;;  %v42_v8 = vunpack.c.l.bf16 %v38_v7  ;;  %v922_v61 = vld [vmem:[%s1477_s3] ss:$0 sm:$0xff]  ;;  %v87_v7 = vcombine.high %v86_v3, %v86_v3 }
  0x7b   :  { %v155_v12 = vsel %vm148_vm1, %v131_v6, %v147_v11  ;;  %v491_v6 = vshll.u32 %v483_v56, 16 }
  0x7d   :  { %1009 = vmatpush3.bf16.msra.mxu0 %v1196_v9  ;;  %v53_v9 = vrot.slane %v42_v8, %v1241_v22 }
  0x7e   :  { %1010 = vmatprep.subr.bf16.mxu0 %v1203_v10 }
  0x7f   :  { %v54_v10 = vcombine.high %v53_v9, %v53_v9 }
  0x80   :  { %333 = vmatmul.mubr.bf16.gmra.mrb[4].mxu0 %v155_v12 }
  0x81   :  { %1011 = vmatpush3.bf16.msra.mxu0 %v1211_v14  ;;  %v378_v13 = vpop.permute.xlu1 %377  ;;  %v924_v14 = vcombine.low %v1153_v0, %v1153_v0 }
  0x82   :  { %1012 = vmatprep.subr.bf16.mxu0 %v1218_v15  ;;  %v368_v15 = vpack.c.bf16 %v54_v10, %v54_v10  ;;  %v484_v10 = vpack.c.bf16 %v86_v3, %v86_v3 }
  0x84   :  { %v384_v17 = vsel %vm148_vm1, %v368_v15, %v378_v13  ;;  %v485_v13 = vpack.c.bf16 %v87_v7, %v87_v7  ;;  %v493_v15 = vrot.slane %v491_v6, 5  ;;  %v499_v22 = vshll.u32 %v484_v10, 16 }
  0x85   :  { %1013 = vmatpush3.bf16.msra.mxu0 %v1228_v19  ;;  %v367_v19 = vpack.c.bf16 %v53_v9, %v53_v9  ;;  %v376_v24 = vpop.permute.xlu1 %375 }
  0x86   :  { %1014 = vmatprep.subr.bf16.mxu0 %v1238_v21  ;;  %v388_v21 = vsel %vm148_vm1, %v925_v16, 0 }
  0x87   :  { %v396_v25 = vunpack.c.l.b16 %v388_v21  ;;  %v381_v26 = vsel %vm148_vm1, %v367_v19, %v376_v24  ;;  %v503_v21 = vshll.u32 %v485_v13, 16 }
  0x88   :  { %v393_v29 = vunpack.c.l.b16 %v381_v26 }
  0x89   :  { %1015 = vmatpush3.bf16.msra.mxu0 %v1247_v23  ;;  %v395_v23 = vunpack.c.l.b16 %v384_v17  ;;  %v400_v0 = vrot.slane %v396_v25, 7 }
  0x8a   :  { %1016 = vmatprep.subr.bf16.mxu0 %v1261_v27  ;;  %v386_v27 = vsel %vm148_vm1, %v924_v14, 0  ;;  %v489_v14 = vrot.slane %v487_v5, 5 }
  0x8b   :  { %v397_v28 = vrot.slane %v395_v23, 7  ;;  %v394_v31 = vunpack.c.l.b16 %v386_v27  ;;  %v1104_v27 = vmov 0.0  }
  0x8d   :  { %1017 = vmatpush3.bf16.msra.mxu0 %v1275_v34  ;;  %v401_v33 = vsel %vm398_vm3, %v400_v0, %v394_v31  ;;  %v399_v34 = vsel %vm398_vm3, %v397_v28, %v393_v29  ;;  %v635_v28 = vrot.slane %v1104_v27, %v1264_v30 }
  0x8e   :  { %1018 = vmatprep.subr.bf16.mxu0 %v1282_v35  ;;  %v403_v2 = vpack.c.b16 %v401_v33, %v401_v33  ;;  %v402_v35 = vpack.c.b16 %v399_v34, %v399_v34  ;;  %v1059_v33 = vpack.i.bf16 %v493_v15, %v489_v14  ;;  %v505_v34 = vrot.slane %v503_v21, 5 }
  0x90   :  { %438 = vmatprep.mubr.bf16.mxu1 %v403_v2  ;;  %v501_v2 = vrot.slane %v499_v22, 5 }
  0x91   :  { %1019 = vmatpush3.bf16.msra.mxu0 %v1082_v41  ;;  %439 = vmatmul.mubr.bf16.vlgmr.msra.gmra.mrb[0].mxu1 %v402_v35  ;;  %v1091_v41 = vld [vmem:[%s1476_s5 + $0x10] sm:$0xff]  }
  0x92   :  { %1020 = vmatprep.subr.bf16.mxu0 %v1083_v43  ;;  %1029 = vmatpush3.bf16.msra.mxu1 %v1087_v37  ;;  %v1093_v43 = vld [vmem:[%s1476_s5 + $0x18] sm:$0xff]  }
  0x93   :  { %1030 = vmatprep.subr.bf16.mxu1 %v1088_v38 }
  0x95   :  { %1021 = vmatpush3.bf16.msra.mxu0 %v1084_v45  ;;  %v1095_v45 = vld [vmem:[%s1476_s5 + $0x20] sm:$0xff]  }
  0x96   :  { %1031 = vmatpush3.bf16.msra.mxu1 %v1089_v39 }
  0x97   :  { %1032 = vmatprep.subr.bf16.mxu1 %v1090_v40 }
  0x9a   :  { %1033 = vmatpush3.bf16.msra.mxu1 %v1091_v41  ;;  %v513_v41 = vsel %vm148_vm1, %v501_v2, 0  ;;  %v946_v2 = vld [vmem:[%s1479_s6] ss:$0 sm:$0xff] }
  0x9b   :  { %1034 = vmatprep.subr.bf16.mxu1 %v1092_v42  ;;  %v515_v42 = vsel %vm148_vm1, %v505_v34, 0 }
  0x9e   :  { %1035 = vmatpush3.bf16.msra.mxu1 %v1093_v43 }
  0x9f   :  { %1036 = vmatprep.subr.bf16.mxu1 %v1094_v44 }
  0xa2   :  { %1037 = vmatpush3.bf16.msra.mxu1 %v1095_v45 }
  0xa3   :  { %1038 = vmatprep.subr.bf16.mxu1 %v1096_v49 }
  0xa6   :  { %1039 = vmatpush3.bf16.msra.mxu1 %v1097_v50 }
  0xa7   :  { %1040 = vmatprep.subr.bf16.mxu1 %v1098_v51  ;;  %v521_v51 = vunpack.c.l.b16 %v513_v41 }
  0xa9   :  { %v527_v56 = vrot.slane %v521_v51, 7 }
  0xaa   :  { %1041 = vmatpush3.bf16.msra.mxu1 %v1099_v52  ;;  %v523_v52 = vunpack.c.l.b16 %v515_v42 }
  0xab   :  { %1042 = vmatprep.subr.bf16.mxu1 %v1100_v53 }
  0xac   :  { %v528_v57 = vrot.slane %v523_v52, 6 }
  0xae   :  { %1043 = vmatpush3.bf16.msra.mxu1 %v1101_v54 }
 0x14b   :  { %v972_v58 = vpop.f32.mrb[0].mxu0 }
 0x14c   :  { %v973_v60 = vpop.f32.mrb[1].mxu0 }
 0x14d   :  { %v974_v62 = vadd.f32 %v973_v60, %v972_v58  ;;  %v975_v63 = vpop.f32.mrb[2].mxu0  ;;  %v529_v60 = vsel %vm398_vm3, %v528_v57, %v527_v56 }
 0x14e   :  { %v976_v48 = vpop.f32.mrb[3].mxu0 }
 0x14f   :  { %v348_v11 = vmul.f32 %v974_v62, %v922_v61  ;;  %v977_v12 = vadd.f32 %v976_v48, %v975_v63  ;;  %v531_v48 = vpack.c.b16 %v529_v60, %v529_v60 }
 0x151   :  { %v359_v8 = vadd.f32 %v923_v32, %v348_v11  ;;  %v349_v9 = vmul.f32 %v977_v12, %v922_v61  ;;  %566 = vmatprep.mubr.bf16.mxu0 %v531_v48 }
 0x153   :  { %v363_v16 = vmax.f32 %v359_v8, 0.0  ;;  %v360_v17 = vadd.f32 %v923_v32, %v349_v9  ;;  %v978_v19 = vpop.f32.mrb[4].mxu0 }
 0x154   :  { %v979_v23 = vpop.f32.mrb[5].mxu0 }
 0x155   :  { %v364_v24 = vmax.f32 %v360_v17, 0.0  ;;  %v980_v25 = vadd.f32 %v979_v23, %v978_v19  ;;  %v981_v26 = vpop.f32.mrb[6].mxu0  ;;  %v608_v29 = vrot.slane %v363_v16, 7  ;;  %v620_v31 = vrot.slane %v363_v16, 1 }
 0x156   :  { %v982_v0 = vpop.f32.mrb[7].mxu0  ;;  %v927_v17 = vcombine.low %v1170_v4, %v1170_v4 }
 0x157   :  { %v609_v35 = vrot.slane %v364_v24, 7  ;;  %v621_v36 = vrot.slane %v364_v24, 1  ;;  %v350_v37 = vmul.f32 %v980_v25, %v922_v61  ;;  %v983_v38 = vadd.f32 %v982_v0, %v981_v26 }
 0x158   :  { %v646_v39 = vpack.c.bf16 %v364_v24, %v363_v16  ;;  %v618_v40 = vsel %vm94_vm2, 0.0, %v608_v29  ;;  %v926_v16 = vcombine.low %v1158_v1, %v1158_v1 }
 0x159   :  { %v361_v43 = vadd.f32 %v923_v32, %v350_v37  ;;  %v351_v44 = vmul.f32 %v983_v38, %v922_v61  ;;  %v622_v30 = vsel %vm107_vm0, %v620_v31, %v621_v36  ;;  %v642_v45 = vsel %vm107_vm0, %v621_v36, %v635_v28  ;;  %v947_v36 = vld [vmem:[%s1480_s7] ss:$0 sm:$0xff] }
 0x15a   :  { %652 = vrot.lane.b32.xlu0 %v646_v39, %s1102_s15  ;;  %v648_v49 = vpack.c.bf16 %v642_v45, %v622_v30  ;;  %v610_v50 = vsel %vm94_vm2, %v608_v29, %v609_v35 }
 0x15b   :  { %v365_v53 = vmax.f32 %v361_v43, 0.0  ;;  %v362_v54 = vadd.f32 %v923_v32, %v351_v44  ;;  %v644_v55 = vpack.c.bf16 %v610_v50, %v618_v40 }
 0x15c   :  { %944 = vmatprep.mubr.msk.bf16.mxu1 %vm148_vm1, %v648_v49 }
 0x15d   :  { %v366_v58 = vmax.f32 %v362_v54, 0.0  ;;  %v611_v59 = vrot.slane %v365_v53, 7  ;;  %v623_v61 = vrot.slane %v365_v53, 1 }
 0x15e   :  { %1060 = vrot.lane.b32.xlu0 %v1059_v33, %s1102_s15 }
 0x15f   :  { %v612_v62 = vrot.slane %v366_v58, 7  ;;  %v624_v63 = vrot.slane %v366_v58, 1  ;;  %v647_v3 = vpack.c.bf16 %v366_v58, %v365_v53  ;;  %v619_v11 = vsel %vm94_vm2, 0.0, %v611_v59 }
 0x161   :  { %654 = vrot.lane.b32.xlu1 %v647_v3, %s1102_s15  ;;  %v625_v32 = vsel %vm107_vm0, %v623_v61, %v624_v63  ;;  %v643_v5 = vsel %vm107_vm0, %v624_v63, %v635_v28  ;;  %v613_v6 = vsel %vm94_vm2, %v611_v59, %v612_v62 }
 0x162   :  { %v649_v12 = vpack.c.bf16 %v643_v5, %v625_v32  ;;  %v645_v7 = vpack.c.bf16 %v613_v6, %v619_v11 }
 0x164   :  { %v1000_v8 = vpop.f32.mrb[0].mxu1 }
 0x165   :  { %v1001_v9 = vpop.f32.mrb[1].mxu1 }
 0x166   :  { %v1003_v10 = vpop.f32.mrb[2].mxu1 }
 0x167   :  { %v1004_v13 = vpop.f32.mrb[3].mxu1 }
 0x1cc   :  { %v653_v14 = vpop.permute.xlu0 %652 }
 0x1cd   :  { %v658_v15 = vsel %vm148_vm1, %v644_v55, %v653_v14 }
 0x1ce   :  { %831 = vmatmul.mubr.bf16.vlgmr.msra.gmra.mrb[4].mxu1 %v658_v15 }
 0x1cf   :  { %945 = vmatprep.mubr.msk.bf16.mxu1 %vm148_vm1, %v649_v12 }
 0x1d0   :  { %v1061_v19 = vpop.permute.xlu0 %1060 }
 0x1d1   :  { %v1063_v22 = vunpack.i.h.bf16 %v1061_v19  ;;  %v1062_v21 = vunpack.i.l.bf16 %v1061_v19 }
 0x1d3   :  { %v655_v23 = vpop.permute.xlu1 %654  ;;  %v511_v24 = vsel %vm148_vm1, %v927_v17, %v1063_v22  ;;  %v508_v25 = vsel %vm148_vm1, %v926_v16, %v1062_v21 }
 0x1d4   :  { %v522_v26 = vunpack.c.l.b16 %v511_v24  ;;  %v520_v27 = vunpack.c.l.b16 %v508_v25  ;;  %v662_v28 = vsel %vm148_vm1, %v645_v7, %v655_v23 }
 0x1d6   :  { %v525_v29 = vrot.slane %v522_v26, 6  ;;  %v524_v31 = vrot.slane %v520_v27, 7  ;;  %839 = vmatmul.mubr.bf16.gmra.mrb[8].mxu1 %v662_v28 }
 0x1d8   :  { %v526_v1 = vsel %vm398_vm3, %v525_v29, %v524_v31 }
 0x1d9   :  { %v530_v4 = vpack.c.b16 %v526_v1, %v526_v1 }
 0x1db   :  { %567 = vmatmul.mubr.bf16.vlgmr.msra.gmra.mrb[8].mxu0 %v530_v4 }
 0x2a1   :  { %v1044_v0 = vpop.f32.mrb[4].mxu1 }
 0x2a2   :  { %v1045_v33 = vpop.f32.mrb[5].mxu1 }
 0x2a3   :  { %v1046_v34 = vadd.f32 %v1045_v33, %v1044_v0  ;;  %v1047_v35 = vpop.f32.mrb[6].mxu1 }
 0x2a4   :  { %v1048_v37 = vpop.f32.mrb[7].mxu1 }
 0x2a5   :  { %v854_v38 = vmul.f32 %v1046_v34, %v946_v2  ;;  %v1049_v39 = vadd.f32 %v1048_v37, %v1047_v35 }
 0x2a7   :  { %v865_v40 = vadd.f32 %v947_v36, %v854_v38  ;;  %v855_v41 = vmul.f32 %v1049_v39, %v946_v2 }
 0x2a9   :  { %v869_v42 = vadd.f32 %v865_v40, %v1222_v18  ;;  %v866_v43 = vadd.f32 %v947_v36, %v855_v41  ;;  %v1050_v44 = vpop.f32.mrb[8].mxu1 }
 0x2aa   :  { %v1051_v30 = vpop.f32.mrb[9].mxu1 }
 0x2ab   :  { %v873_v45 = vmax.f32 %v869_v42, 0.0  ;;  %v870_v49 = vadd.f32 %v866_v43, %v1232_v20  ;;  %v1052_v50 = vadd.f32 %v1051_v30, %v1050_v44  ;;  %v1053_v51 = vpop.f32.mrb[10].mxu1 }
 0x2ac   :  { %v1054_v52 = vpop.f32.mrb[11].mxu1 }
 0x2ad   :  { %v952_v53 = vpack.c.bf16 %v873_v45, %v873_v45  ;;  %v874_v54 = vmax.f32 %v870_v49, 0.0  ;;  %v856_v55 = vmul.f32 %v1052_v50, %v946_v2  ;;  %v1055_v56 = vadd.f32 %v1054_v52, %v1053_v51 }
 0x2ae   :  { %v1022_v57 = vpop.f32.mrb[8].mxu0 }
 0x2af   :  { %894 = vst.msk [vmem:[%s1481_s8] sm:$0xf] %vm893_vm4, %v952_v53  ;;  %v953_v18 = vpack.c.bf16 %v874_v54, %v874_v54  ;;  %v867_v58 = vadd.f32 %v947_v36, %v856_v55  ;;  %v857_v59 = vmul.f32 %v1055_v56, %v946_v2  ;;  %v1023_v60 = vpop.f32.mrb[9].mxu0 }
 0x2b0   :  { %v1025_v61 = vpop.f32.mrb[10].mxu0 }
 0x2b1   :  { %895 = vst.msk [vmem:[%s1481_s8 + $0x4] sm:$0xf] %vm893_vm4, %v953_v18  ;;  %v871_v20 = vadd.f32 %v867_v58, %v1307_v46  ;;  %v868_v62 = vadd.f32 %v947_v36, %v857_v59  ;;  %v1026_v63 = vpop.f32.mrb[11].mxu0 }
 0x2b3   :  { %v875_v3 = vmax.f32 %v871_v20, 0.0  ;;  %v872_v48 = vadd.f32 %v868_v62, %v1310_v47 }
 0x2b5   :  { %v954_v32 = vpack.c.bf16 %v875_v3, %v875_v3  ;;  %v876_v5 = vmax.f32 %v872_v48, 0.0 }
 0x2b7   :  { %896 = vst.msk [vmem:[%s1481_s8 + $0x8] sm:$0xf] %vm893_vm4, %v954_v32  ;;  %v955_v6 = vpack.c.bf16 %v876_v5, %v876_v5 }
 0x2b9   :  { %897 = vst.msk [vmem:[%s1481_s8 + $0xc] sm:$0xf] %vm893_vm4, %v955_v6 }

// kernel: resnet34_forward.8
= control target key start
LH: loop header
LB: loop body
LE: loop exit
PB: predicated region body
PF: predicated region fallthrough
CT: control target
= control target key end

     0   :  { %s1406_s27 = smov 64   ;;  %vm116_vm0 = vcmask 1046528   ;;  %v1407_v22 = vmov 1966171168   ;;  %v59_v24 = vlaneseq  ;;  %vm103_vm1 = vcmask 1040384   ;;  %s1849_s0 = inlined_call_operand.vmem [shape: bf16[2,16,64], index: 0, kind: input, shape index: {}]   ;;  %s1850_s2 = inlined_call_operand.vmem [shape: bf16[256,128], index: 2, kind: input, shape index: {}]   ;;  %s1851_s1 = inlined_call_operand.vmem [shape: bf16[1,4,2,64], index: 1, kind: input, shape index: {}]   ;;  %s1852_s8 = inlined_call_operand.vmem [shape: bf16[64,128], index: 8, kind: input, shape index: {}]   ;;  %s1853_s5 = inlined_call_operand.vmem [shape: bf16[384,128], index: 5, kind: input, shape index: {}]   ;;  %s1854_s3 = inlined_call_operand.vmem [shape: f32[1,128], index: 3, kind: input, shape index: {}]   ;;  %s1855_s4 = inlined_call_operand.vmem [shape: f32[1,128], index: 4, kind: input, shape index: {}]   ;;  %s1856_s9 = inlined_call_operand.vmem [shape: f32[1,128], index: 9, kind: input, shape index: {}]   ;;  %s1857_s6 = inlined_call_operand.vmem [shape: f32[1,128], index: 6, kind: input, shape index: {}]   ;;  %s1858_s10 = inlined_call_operand.vmem [shape: f32[1,128], index: 10, kind: input, shape index: {}]   ;;  %s1859_s7 = inlined_call_operand.vmem [shape: f32[1,128], index: 7, kind: input, shape index: {}]   ;;  %s1860_s11 = inlined_call_operand.vmem [shape: bf16[2,16,128], index: 11, kind: output, shape index: {}]  }
   0x1   :  { %v1473_v0 = vld [vmem:[%s1849_s0] sm:$0xf]  ;;  %v1478_v1 = vld [vmem:[%s1849_s0 + $0x4] sm:$0xf]  ;;  %v1483_v2 = vld [vmem:[%s1849_s0 + $0x8] sm:$0xf]  ;;  %v57_v23 = vunpack.c.l.s4 %v1407_v22 }
   0x2   :  { %v1487_v3 = vcombine.low %v1473_v0, %v1478_v1  ;;  %v1492_v4 = vld [vmem:[%s1849_s0 + $0xc] sm:$0xf]  ;;  %v45_v5 = vunpack.c.l.bf16 %v1483_v2  ;;  %v1499_v7 = vld [vmem:[%s1850_s2 + $0x40] sm:$0xff]   ;;  %v44_v8 = vunpack.c.l.bf16 %v1478_v1  ;;  %v43_v9 = vunpack.c.l.bf16 %v1473_v0  ;;  %v1532_v16 = vld [vmem:[%s1850_s2 + $0x50] sm:$0xff]  }
   0x3   :  { %v46_v6 = vunpack.c.l.bf16 %v1492_v4  ;;  %v1507_v10 = vcombine.low %v1483_v2, %v1492_v4  ;;  %v1512_v11 = vld [vmem:[%s1850_s2] sm:$0xff]   ;;  %1199 = vmatprep.subr.bf16.mxu0 %v1499_v7  ;;  %v1518_v13 = vld [vmem:[%s1850_s2 + $0x48] sm:$0xff]   ;;  %1227 = vmatprep.subr.bf16.mxu1 %v1499_v7  ;;  %v1549_v25 = vld [vmem:[%s1850_s2 + $0x10] sm:$0xff]   ;;  %v58_v27 = vunpack.c.0.s8 %v57_v23  ;;  %v60_v28 = vshrl.u32 %v59_v24, 7 }
   0x4   :  { %153 = vrot.lane.b32.xlu0 %v1487_v3, %s1406_s27  ;;  %v120_v12 = vrot.slane %v45_v5, 1  ;;  %v1523_v14 = vld [vmem:[%s1850_s2 + $0x8] sm:$0xff]   ;;  %1200 = vmatpush3.bf16.msra.mxu0 %v1512_v11  ;;  %v105_v17 = vrot.slane %v44_v8, 7  ;;  %v104_v18 = vrot.slane %v43_v9, 7  ;;  %v1543_v20 = vrot.slane %v45_v5, 7  ;;  %v1556_v26 = vld [vmem:[%s1850_s2 + $0x58] sm:$0xff]   ;;  %vm1170_vm4 = vmneg %vm103_vm1 }
   0x5   :  { %v1526_v15 = vrot.slane %v46_v6, 1  ;;  %1228 = vmatpush3.bf16.msra.mxu1 %v1512_v11  ;;  %1201 = vmatprep.subr.bf16.mxu0 %v1518_v13  ;;  %v108_v21 = vrot.slane %v46_v6, 7  ;;  %v1570_v31 = vld [vmem:[%s1850_s2 + $0x18] sm:$0xff]   ;;  %v1577_v32 = vld [vmem:[%s1850_s2 + $0x60] sm:$0xff]   ;;  %v1134_v33 = vcombine.low %v1473_v0, %v1473_v0  ;;  %v1582_v34 = vsub.s32 %v58_v27, %v60_v28  ;;  %v1598_v39 = vld [vmem:[%s1850_s2 + $0x68] sm:$0xff]  }
   0x6   :  { %1229 = vmatprep.subr.bf16.mxu1 %v1518_v13  ;;  %v1560_v29 = vsel %vm103_vm1, %v104_v18, %v105_v17  ;;  %v117_v35 = vrot.slane %v43_v9, 1  ;;  %v1588_v36 = vld [vmem:[%s1850_s2 + $0x20] sm:$0xff]   ;;  %v118_v38 = vrot.slane %v44_v8, 1  ;;  %v1600_v41 = vsub.s32 0, %v60_v28  ;;  %v1617_v49 = vld [vmem:[%s1850_s2 + $0x28] sm:$0xff]   ;;  %v1630_v54 = vld [vmem:[%s1850_s2 + $0x70] sm:$0xff]  }
   0x7   :  { %v1541_v19 = vsel %vm116_vm0, %v120_v12, %v1526_v15  ;;  %v1564_v30 = vsel %vm103_vm1, %v1543_v20, %v108_v21  ;;  %v49_v37 = vld [vmem:[%s1851_s1 + $0x2] sm:$0x1]  ;;  %v48_v42 = vld [vmem:[%s1851_s1 + $0x1] sm:$0x1]  ;;  %v47_v43 = vld [vmem:[%s1851_s1] sm:$0x1]  ;;  %v1135_v46 = vcombine.low %v1483_v2, %v1483_v2 }
   0x8   :  { %155 = vrot.lane.b32.xlu0 %v1507_v10, %s1406_s27  ;;  %1202 = vmatpush3.bf16.msra.mxu0 %v1523_v14  ;;  %v53_v40 = vunpack.c.l.bf16 %v49_v37  ;;  %vm157_vm2 = vcmask 523264   ;;  %v52_v44 = vunpack.c.l.bf16 %v48_v42  ;;  %v51_v45 = vunpack.c.l.bf16 %v47_v43  ;;  %v1640_v62 = vld [vmem:[%s1850_s2 + $0x30] sm:$0xff]   ;;  %v1650_v6 = vld [vmem:[%s1850_s2 + $0x78] sm:$0xff]  }
   0x9   :  { %1230 = vmatpush3.bf16.msra.mxu1 %v1523_v14  ;;  %1203 = vmatprep.subr.bf16.mxu0 %v1532_v16  ;;  %v395_v48 = vsel %vm157_vm2, %v1134_v33, 0  ;;  %v119_v50 = vsel %vm116_vm0, %v117_v35, %v118_v38  ;;  %v397_v53 = vsel %vm157_vm2, %v1135_v46, 0  ;;  %vm407_vm3 = vcmask 1041409   ;;  %v1676_v33 = vld [vmem:[%s1852_s8] sm:$0xff]  }
   0xa   :  { %1231 = vmatprep.subr.bf16.mxu1 %v1532_v16  ;;  %v84_v47 = vrot.slane %v53_v40, %v1582_v34  ;;  %v73_v51 = vrot.slane %v52_v44, %v1582_v34  ;;  %v1623_v52 = vrot.slane %v51_v45, %v1582_v34  ;;  %v403_v60 = vunpack.c.l.b16 %v395_v48  ;;  %v50_v35 = vld [vmem:[%s1851_s1 + $0x3] sm:$0x1] }
   0xb   :  { %v405_v61 = vunpack.c.l.b16 %v397_v53  ;;  %v54_v37 = vunpack.c.l.bf16 %v50_v35  ;;  %v1395_v35 = vld [vmem:[%s1853_s5 + $0x68] sm:$0xff]   ;;  %vm1409_vm5 = vmmov 1  }
   0xc   :  { %1204 = vmatpush3.bf16.msra.mxu0 %v1549_v25  ;;  %v130_v55 = vrot.slane %v84_v47, %v1600_v41  ;;  %v85_v56 = vcombine.high %v84_v47, %v84_v47  ;;  %v491_v57 = vpack.c.bf16 %v84_v47, %v84_v47  ;;  %v1635_v58 = vsel %vm103_vm1, %v73_v51, %v104_v18  ;;  %vm1818_vm6 = vmpackc.low %vm1409_vm5, %vm1170_vm4 }
   0xd   :  { %1232 = vmatpush3.bf16.msra.mxu1 %v1549_v25  ;;  %1205 = vmatprep.subr.bf16.mxu0 %v1556_v26  ;;  %v74_v59 = vcombine.high %v73_v51, %v73_v51  ;;  %v139_v0 = vpack.c.bf16 %v1560_v29, %v1635_v58  ;;  %v409_v27 = vrot.slane %v405_v61, 7 }
   0xe   :  { %1233 = vmatprep.subr.bf16.mxu1 %v1556_v26  ;;  %v137_v63 = vsel %vm116_vm0, %v118_v38, %v130_v55  ;;  %v134_v2 = vrot.slane %v85_v56, %v1600_v41  ;;  %v492_v5 = vpack.c.bf16 %v85_v56, %v85_v56  ;;  %v496_v17 = vshll.u32 %v491_v57, 16 }
   0xf   :  { %v141_v8 = vpack.c.bf16 %v137_v63, %v119_v50  ;;  %v115_v9 = vsel %vm103_vm1, %v74_v59, %v1543_v20  ;;  %v379_v12 = vpack.c.bf16 %v74_v59, %v74_v59  ;;  %v378_v20 = vpack.c.bf16 %v73_v51, %v73_v51 }
  0x10   :  { %1206 = vmatpush3.bf16.msra.mxu0 %v1570_v31  ;;  %v138_v18 = vsel %vm116_vm0, %v1526_v15, %v134_v2  ;;  %v140_v21 = vpack.c.bf16 %v1564_v30, %v115_v9  ;;  %v500_v22 = vshll.u32 %v492_v5, 16  ;;  %v498_v24 = vrot.slane %v496_v17, 5  ;;  %v1667_v15 = vld [vmem:[%s1850_s2 + $0x38] sm:$0xff]   ;;  %v1379_v5 = vld [vmem:[%s1852_s8 + $0x8] sm:$0xff]   ;;  %v1380_v17 = vld [vmem:[%s1852_s8 + $0x10] sm:$0xff]  }
  0x11   :  { %1234 = vmatpush3.bf16.msra.mxu1 %v1570_v31  ;;  %1207 = vmatprep.subr.bf16.mxu0 %v1577_v32  ;;  %v142_v23 = vpack.c.bf16 %v138_v18, %v1541_v19  ;;  %v410_v29 = vsel %vm407_vm3, %v409_v27, %v403_v60  ;;  %v95_v38 = vrot.slane %v54_v37, %v1582_v34  ;;  %v1385_v27 = vld [vmem:[%s1853_s5 + $0x8] sm:$0xff]   ;;  %v1396_v37 = vld [vmem:[%s1853_s5 + $0x98] sm:$0xff]  }
  0x12   :  { %1235 = vmatprep.subr.bf16.mxu1 %v1577_v32  ;;  %1130 = vmatprep.mubr.msk.bf16.mxu0 %vm157_vm2, %v141_v8  ;;  %v502_v28 = vrot.slane %v500_v22, 5  ;;  %v412_v30 = vpack.c.b16 %v410_v29, %v410_v29  ;;  %v1390_v22 = vld [vmem:[%s1853_s5 + $0x88] sm:$0xff]   ;;  %v1391_v29 = vld [vmem:[%s1853_s5 + $0x18] sm:$0xff]  }
  0x13   :  { %386 = vrot.lane.b32.xlu1 %v379_v12, %s1406_s27  ;;  %v96_v40 = vcombine.high %v95_v38, %v95_v38  ;;  %v493_v42 = vpack.c.bf16 %v95_v38, %v95_v38  ;;  %v1397_v38 = vld [vmem:[%s1853_s5 + $0x28] sm:$0xff]  }
  0x14   :  { %1208 = vmatpush3.bf16.msra.mxu0 %v1588_v36  ;;  %v1351_v19 = vpack.i.bf16 %v502_v28, %v498_v24  ;;  %447 = vmatprep.mubr.bf16.mxu1 %v412_v30  ;;  %v1384_v24 = vld [vmem:[%s1853_s5 + $0x48] sm:$0xff]   ;;  %v1386_v28 = vld [vmem:[%s1853_s5 + $0x50] sm:$0xff]  }
  0x15   :  { %1236 = vmatpush3.bf16.msra.mxu1 %v1588_v36  ;;  %1209 = vmatprep.subr.bf16.mxu0 %v1598_v39  ;;  %v494_v43 = vpack.c.bf16 %v96_v40, %v96_v40  ;;  %v508_v44 = vshll.u32 %v493_v42, 16  ;;  %v1393_v30 = vld [vmem:[%s1853_s5 + $0x90] sm:$0xff]   ;;  %v1399_v42 = vld [vmem:[%s1853_s5 + $0xa0] sm:$0xff]  }
  0x16   :  { %1237 = vmatprep.subr.bf16.mxu1 %v1598_v39  ;;  %1352 = vrot.lane.b32.xlu0 %v1351_v19, %s1406_s27  ;;  %v1392_v19 = vld [vmem:[%s1853_s5 + $0x60] sm:$0xff]   ;;  %v1398_v40 = vld [vmem:[%s1853_s5 + $0x70] sm:$0xff]  }
  0x17   :  { %384 = vrot.lane.b32.xlu1 %v378_v20, %s1406_s27  ;;  %v512_v45 = vshll.u32 %v494_v43, 16  ;;  %v510_v46 = vrot.slane %v508_v44, 5  ;;  %v1383_v20 = vld [vmem:[%s1853_s5] sm:$0xff]   ;;  %v1400_v43 = vld [vmem:[%s1853_s5 + $0x30] sm:$0xff]   ;;  %v1401_v44 = vld [vmem:[%s1853_s5 + $0x78] sm:$0xff]  }
  0x18   :  { %1210 = vmatpush3.bf16.msra.mxu0 %v1617_v49 }
  0x19   :  { %1238 = vmatpush3.bf16.msra.mxu1 %v1617_v49  ;;  %1211 = vmatprep.subr.bf16.mxu0 %v1630_v54  ;;  %v514_v47 = vrot.slane %v512_v45, 5  ;;  %v522_v48 = vsel %vm157_vm2, %v510_v46, 0  ;;  %v1402_v45 = vld [vmem:[%s1853_s5 + $0xa8] sm:$0xff]   ;;  %v1403_v46 = vld [vmem:[%s1853_s5 + $0x38] sm:$0xff]  }
  0x1a   :  { %1239 = vmatprep.subr.bf16.mxu1 %v1630_v54  ;;  %v530_v50 = vunpack.c.l.b16 %v522_v48  ;;  %v1405_v48 = vld [vmem:[%s1853_s5 + $0xb8] sm:$0xff]  }
  0x1c   :  { %1212 = vmatpush3.bf16.msra.mxu0 %v1640_v62  ;;  %v536_v55 = vrot.slane %v530_v50, 7 }
  0x1d   :  { %1240 = vmatpush3.bf16.msra.mxu1 %v1640_v62  ;;  %1213 = vmatprep.subr.bf16.mxu0 %v1650_v6 }
  0x1e   :  { %1241 = vmatprep.subr.bf16.mxu1 %v1650_v6 }
  0x20   :  { %1214 = vmatpush3.bf16.msra.mxu0 %v1667_v15 }
  0x21   :  { %1242 = vmatpush3.bf16.msra.mxu1 %v1667_v15  ;;  %1249 = vmatprep.subr.bf16.mxu0 %v1499_v7  ;;  %v524_v7 = vsel %vm157_vm2, %v514_v47, 0  ;;  %v1404_v47 = vld [vmem:[%s1853_s5 + $0xb0] sm:$0xff]  }
  0x22   :  { %1315 = vmatprep.subr.bf16.mxu1 %v1676_v33  ;;  %v532_v51 = vunpack.c.l.b16 %v524_v7 }
  0x24   :  { %v537_v56 = vrot.slane %v532_v51, 6  ;;  %v1132_v51 = vld [vmem:[%s1854_s3] ss:$0 sm:$0xff] }
  0x26   :  { %v538_v58 = vsel %vm407_vm3, %v537_v56, %v536_v55  ;;  %v1133_v56 = vld [vmem:[%s1855_s4] ss:$0 sm:$0xff] }
  0x27   :  { %v540_v60 = vpack.c.b16 %v538_v58, %v538_v58 }
  0x76   :  { %v154_v53 = vpop.permute.xlu0 %153 }
  0x77   :  { %v160_v57 = vsel %vm157_vm2, %v139_v0, %v154_v53 }
  0x78   :  { %334 = vmatmul.mubr.bf16.vlgmr.msra.gmra.mrb[0].mxu0 %v160_v57 }
  0x79   :  { %1131 = vmatprep.mubr.msk.bf16.mxu0 %vm157_vm2, %v142_v23  ;;  %1250 = vmatpush3.bf16.msra.mxu0 %v1512_v11  ;;  %v63_v11 = vcombine.high %v1623_v52, %v1623_v52  ;;  %v1381_v23 = vld [vmem:[%s1852_s8 + $0x18] sm:$0xff]  }
  0x7a   :  { %v156_v34 = vpop.permute.xlu0 %155  ;;  %1251 = vmatprep.subr.bf16.mxu0 %v1518_v13 }
  0x7b   :  { %v164_v59 = vsel %vm157_vm2, %v140_v21, %v156_v34  ;;  %v377_v13 = vpack.c.bf16 %v63_v11, %v63_v11 }
  0x7d   :  { %1252 = vmatpush3.bf16.msra.mxu0 %v1523_v14 }
  0x7e   :  { %1253 = vmatprep.subr.bf16.mxu0 %v1532_v16 }
  0x80   :  { %342 = vmatmul.mubr.bf16.gmra.mrb[4].mxu0 %v164_v59 }
  0x81   :  { %1254 = vmatpush3.bf16.msra.mxu0 %v1549_v25  ;;  %575 = vmatprep.mubr.bf16.mxu0 %v540_v60  ;;  %v376_v25 = vpack.c.bf16 %v1623_v52, %v1623_v52 }
  0x82   :  { %1255 = vmatprep.subr.bf16.mxu0 %v1556_v26 }
  0x85   :  { %1256 = vmatpush3.bf16.msra.mxu0 %v1570_v31  ;;  %v387_v14 = vpop.permute.xlu1 %386  ;;  %v1136_v31 = vcombine.low %v1478_v1, %v1478_v1 }
  0x86   :  { %1257 = vmatprep.subr.bf16.mxu0 %v1577_v32  ;;  %v393_v16 = vsel %vm157_vm2, %v377_v13, %v387_v14  ;;  %v1137_v32 = vcombine.low %v1492_v4, %v1492_v4 }
  0x87   :  { %v404_v26 = vunpack.c.l.b16 %v393_v16 }
  0x88   :  { %v1353_v52 = vpop.permute.xlu0 %1352 }
  0x89   :  { %1258 = vmatpush3.bf16.msra.mxu0 %v1588_v36  ;;  %v406_v36 = vrot.slane %v404_v26, 7  ;;  %v1355_v63 = vunpack.i.h.bf16 %v1353_v52 }
  0x8a   :  { %1259 = vmatprep.subr.bf16.mxu0 %v1598_v39  ;;  %v385_v39 = vpop.permute.xlu1 %384 }
  0x8b   :  { %v520_v4 = vsel %vm157_vm2, %v1137_v32, %v1355_v63 }
  0x8d   :  { %1260 = vmatpush3.bf16.msra.mxu0 %v1617_v49  ;;  %v1387_v49 = vld [vmem:[%s1853_s5 + $0x80] sm:$0xff]  }
  0x8e   :  { %1261 = vmatprep.subr.bf16.mxu0 %v1630_v54  ;;  %v390_v54 = vsel %vm157_vm2, %v376_v25, %v385_v39  ;;  %v1408_v39 = vmov 0.0  }
  0x8f   :  { %v402_v61 = vunpack.c.l.b16 %v390_v54 }
  0x91   :  { %1262 = vmatpush3.bf16.msra.mxu0 %v1640_v62  ;;  %v1354_v62 = vunpack.i.l.bf16 %v1353_v52  ;;  %v408_v1 = vsel %vm407_vm3, %v406_v36, %v402_v61 }
  0x92   :  { %1263 = vmatprep.subr.bf16.mxu0 %v1650_v6  ;;  %v411_v2 = vpack.c.b16 %v408_v1, %v408_v1  ;;  %v531_v6 = vunpack.c.l.b16 %v520_v4 }
  0x93   :  { %v517_v0 = vsel %vm157_vm2, %v1136_v31, %v1354_v62 }
  0x94   :  { %v529_v8 = vunpack.c.l.b16 %v517_v0  ;;  %448 = vmatmul.mubr.bf16.vlgmr.msra.gmra.mrb[0].mxu1 %v411_v2  ;;  %v534_v9 = vrot.slane %v531_v6, 6 }
  0x95   :  { %1264 = vmatpush3.bf16.msra.mxu0 %v1667_v15  ;;  %1316 = vmatpush3.bf16.msra.mxu1 %v1676_v33  ;;  %v1388_v15 = vld [vmem:[%s1853_s5 + $0x10] sm:$0xff]   ;;  %v1394_v33 = vld [vmem:[%s1853_s5 + $0x20] sm:$0xff]  }
  0x96   :  { %1327 = vmatprep.subr.bf16.mxu0 %v1387_v49  ;;  %v533_v12 = vrot.slane %v529_v8, 7  ;;  %1323 = vmatprep.mubr.msk.bf16.mxu1 %vm157_vm2, %v1487_v3  ;;  %v1382_v3 = vld [vmem:[%s1853_s5 + $0x40] sm:$0xff]  }
  0x97   :  { %1317 = vmatprep.subr.bf16.mxu1 %v1379_v5 }
  0x98   :  { %v535_v18 = vsel %vm407_vm3, %v534_v9, %v533_v12 }
  0x99   :  { %v539_v21 = vpack.c.b16 %v535_v18, %v535_v18  ;;  %1318 = vmatpush3.bf16.msra.mxu1 %v1379_v5 }
  0x9a   :  { %1319 = vmatprep.subr.bf16.mxu1 %v1380_v17 }
  0x9b   :  { %576 = vmatmul.mubr.bf16.vlgmr.msra.gmra.mrb[8].mxu0 %v539_v21 }
  0x9c   :  { %1328 = vmatpush3.bf16.msra.mxu0 %v1387_v49  ;;  %v753_v49 = vrot.slane %v1408_v39, %v1600_v41 }
  0x9d   :  { %1329 = vmatprep.subr.bf16.mxu0 %v1390_v22  ;;  %1320 = vmatpush3.bf16.msra.mxu1 %v1380_v17 }
  0x9e   :  { %1321 = vmatprep.subr.bf16.mxu1 %v1381_v23 }
  0xa0   :  { %1330 = vmatpush3.bf16.msra.mxu0 %v1390_v22 }
  0xa1   :  { %1322 = vmatpush3.bf16.msra.mxu1 %v1381_v23  ;;  %1331 = vmatprep.subr.bf16.mxu0 %v1393_v30 }
  0xa2   :  { %1277 = vmatprep.subr.bf16.mxu1 %v1382_v3 }
  0xa4   :  { %1324 = vmatmul.mubr.msk.bf16.vlgmr.msra.gmra.mrb[4].mxu1 %vm157_vm2, %v1507_v10  ;;  %v1389_v10 = vld [vmem:[%s1853_s5 + $0x58] sm:$0xff]   ;;  %1332 = vmatpush3.bf16.msra.mxu0 %v1393_v30 }
  0xa5   :  { %1278 = vmatpush3.bf16.msra.mxu1 %v1383_v20  ;;  %1333 = vmatprep.subr.bf16.mxu0 %v1396_v37 }
  0xa6   :  { %1279 = vmatprep.subr.bf16.mxu1 %v1384_v24 }
  0xa8   :  { %1334 = vmatpush3.bf16.msra.mxu0 %v1396_v37 }
  0xa9   :  { %1280 = vmatpush3.bf16.msra.mxu1 %v1385_v27  ;;  %1335 = vmatprep.subr.bf16.mxu0 %v1399_v42 }
  0xaa   :  { %1281 = vmatprep.subr.bf16.mxu1 %v1386_v28 }
  0xac   :  { %1336 = vmatpush3.bf16.msra.mxu0 %v1399_v42 }
  0xad   :  { %1282 = vmatpush3.bf16.msra.mxu1 %v1388_v15  ;;  %1337 = vmatprep.subr.bf16.mxu0 %v1402_v45 }
  0xae   :  { %1283 = vmatprep.subr.bf16.mxu1 %v1389_v10 }
  0xb0   :  { %1338 = vmatpush3.bf16.msra.mxu0 %v1402_v45 }
  0xb1   :  { %1284 = vmatpush3.bf16.msra.mxu1 %v1391_v29  ;;  %1339 = vmatprep.subr.bf16.mxu0 %v1404_v47 }
  0xb2   :  { %1285 = vmatprep.subr.bf16.mxu1 %v1392_v19 }
  0xb4   :  { %1340 = vmatpush3.bf16.msra.mxu0 %v1404_v47 }
  0xb5   :  { %1286 = vmatpush3.bf16.msra.mxu1 %v1394_v33  ;;  %1341 = vmatprep.subr.bf16.mxu0 %v1405_v48 }
  0xb6   :  { %1287 = vmatprep.subr.bf16.mxu1 %v1395_v35 }
  0xb8   :  { %1342 = vmatpush3.bf16.msra.mxu0 %v1405_v48 }
  0xb9   :  { %1288 = vmatpush3.bf16.msra.mxu1 %v1397_v38 }
  0xba   :  { %1289 = vmatprep.subr.bf16.mxu1 %v1398_v40 }
  0xbd   :  { %1290 = vmatpush3.bf16.msra.mxu1 %v1400_v43 }
  0xbe   :  { %1291 = vmatprep.subr.bf16.mxu1 %v1401_v44 }
  0xc1   :  { %1292 = vmatpush3.bf16.msra.mxu1 %v1403_v46 }
 0x14b   :  { %v1215_v7 = vpop.f32.mrb[0].mxu0 }
 0x14c   :  { %v1216_v50 = vpop.f32.mrb[1].mxu0 }
 0x14d   :  { %v1217_v53 = vadd.f32 %v1216_v50, %v1215_v7  ;;  %v1218_v55 = vpop.f32.mrb[2].mxu0 }
 0x14e   :  { %v1219_v57 = vpop.f32.mrb[3].mxu0 }
 0x14f   :  { %v357_v34 = vmul.f32 %v1217_v53, %v1132_v51  ;;  %v1220_v58 = vadd.f32 %v1219_v57, %v1218_v55  ;;  %v1144_v53 = vld [vmem:[%s1856_s9] ss:$0 sm:$0xff] }
 0x151   :  { %v368_v59 = vadd.f32 %v1133_v56, %v357_v34  ;;  %v358_v60 = vmul.f32 %v1220_v58, %v1132_v51  ;;  %v1178_v58 = vld [vmem:[%s1857_s6] ss:$0 sm:$0xff] }
 0x153   :  { %v372_v11 = vmax.f32 %v368_v59, 0.0  ;;  %v369_v13 = vadd.f32 %v1133_v56, %v358_v60  ;;  %v1221_v14 = vpop.f32.mrb[4].mxu0  ;;  %v1145_v60 = vld [vmem:[%s1858_s10] ss:$0 sm:$0xff] }
 0x154   :  { %v1222_v16 = vpop.f32.mrb[5].mxu0 }
 0x155   :  { %v373_v25 = vmax.f32 %v369_v13, 0.0  ;;  %v1223_v26 = vadd.f32 %v1222_v16, %v1221_v14  ;;  %v1224_v31 = vpop.f32.mrb[6].mxu0  ;;  %v726_v32 = vrot.slane %v372_v11, 7  ;;  %v738_v62 = vrot.slane %v372_v11, 1 }
 0x156   :  { %v1225_v36 = vpop.f32.mrb[7].mxu0 }
 0x157   :  { %v727_v54 = vrot.slane %v373_v25, 7  ;;  %v359_v52 = vmul.f32 %v1223_v26, %v1132_v51  ;;  %v1226_v61 = vadd.f32 %v1225_v36, %v1224_v31  ;;  %v764_v63 = vpack.c.bf16 %v373_v25, %v372_v11  ;;  %v1179_v31 = vld [vmem:[%s1859_s7] ss:$0 sm:$0xff] }
 0x158   :  { %v739_v1 = vrot.slane %v373_v25, 1 }
 0x159   :  { %v370_v4 = vadd.f32 %v1133_v56, %v359_v52  ;;  %v360_v0 = vmul.f32 %v1226_v61, %v1132_v51  ;;  %992 = vmatprep.mubr.bf16.mxu1 %v764_v63  ;;  %v728_v2 = vsel %vm103_vm1, %v726_v32, %v727_v54 }
 0x15a   :  { %v1172_v6 = vpack.c.bf16 %v728_v2, %v726_v32  ;;  %v740_v8 = vsel %vm116_vm0, %v738_v62, %v739_v1  ;;  %v760_v41 = vsel %vm116_vm0, %v739_v1, %v753_v49 }
 0x15b   :  { %v374_v9 = vmax.f32 %v370_v4, 0.0  ;;  %v371_v12 = vadd.f32 %v1133_v56, %v360_v0  ;;  %v766_v17 = vpack.c.bf16 %v760_v41, %v740_v8 }
 0x15c   :  { %1173 = vmatmul.mubr.msk.bf16.vlgmr.msra.gmra.mrb[8].mxu1 %vm1818_vm6, %v1172_v6 }
 0x15d   :  { %v375_v18 = vmax.f32 %v371_v12, 0.0  ;;  %1343 = vmatprep.mubr.bf16.mxu0 %v766_v17  ;;  %v741_v21 = vrot.slane %v374_v9, 1  ;;  %v729_v20 = vrot.slane %v374_v9, 7 }
 0x15f   :  { %v730_v22 = vrot.slane %v375_v18, 7  ;;  %v742_v23 = vrot.slane %v375_v18, 1  ;;  %v765_v3 = vpack.c.bf16 %v375_v18, %v374_v9 }
 0x161   :  { %1000 = vmatprep.mubr.bf16.mxu1 %v765_v3  ;;  %v731_v24 = vsel %vm103_vm1, %v729_v20, %v730_v22  ;;  %v743_v27 = vsel %vm116_vm0, %v741_v21, %v742_v23  ;;  %v761_v28 = vsel %vm116_vm0, %v742_v23, %v753_v49 }
 0x162   :  { %v1176_v15 = vpack.c.bf16 %v731_v24, %v729_v20  ;;  %v767_v10 = vpack.c.bf16 %v761_v28, %v743_v27 }
 0x164   :  { %1177 = vmatmul.mubr.msk.bf16.gmra.mrb[12].mxu1 %vm1818_vm6, %v1176_v15  ;;  %1344 = vmatmul.mubr.bf16.vlgmr.msra.gmra.mrb[12].mxu0 %v767_v10 }
 0x167   :  { %v1243_v29 = vpop.f32.mrb[0].mxu1 }
 0x168   :  { %v1244_v19 = vpop.f32.mrb[1].mxu1 }
 0x169   :  { %v1246_v30 = vpop.f32.mrb[2].mxu1 }
 0x16a   :  { %v1247_v33 = vpop.f32.mrb[3].mxu1 }
 0x16e   :  { %v1265_v35 = vpop.f32.mrb[8].mxu0 }
 0x16f   :  { %v1266_v37 = vpop.f32.mrb[9].mxu0 }
 0x170   :  { %v1268_v38 = vpop.f32.mrb[10].mxu0 }
 0x171   :  { %v1269_v40 = vpop.f32.mrb[11].mxu0 }
 0x177   :  { %v1325_v42 = vpop.f32.mrb[4].mxu1 }
 0x178   :  { %v685_v43 = vpop.f32.mrb[5].mxu1  ;;  %v709_v25 = vmul.f32 %v1325_v42, %v1144_v53 }
 0x179   :  { %v1326_v44 = vpop.f32.mrb[6].mxu1  ;;  %v707_v57 = vmul.f32 %v1144_v53, %v685_v43 }
 0x17a   :  { %v688_v45 = vpop.f32.mrb[7].mxu1  ;;  %v710_v63 = vmul.f32 %v1326_v44, %v1144_v53  ;;  %v720_v2 = vadd.f32 %v1145_v60, %v709_v25 }
 0x17b   :  { %v708_v26 = vmul.f32 %v1144_v53, %v688_v45  ;;  %v718_v61 = vadd.f32 %v1145_v60, %v707_v57 }
 0x17c   :  { %v721_v12 = vadd.f32 %v1145_v60, %v710_v63 }
 0x17d   :  { %v719_v5 = vadd.f32 %v1145_v60, %v708_v26 }
 0x22f   :  { %v1293_v46 = vpop.f32.mrb[8].mxu1 }
 0x230   :  { %v1294_v47 = vpop.f32.mrb[9].mxu1 }
 0x231   :  { %v1295_v48 = vadd.f32 %v1294_v47, %v1293_v46  ;;  %v1296_v7 = vpop.f32.mrb[10].mxu1 }
 0x232   :  { %v1297_v50 = vpop.f32.mrb[11].mxu1 }
 0x233   :  { %v1298_v51 = vadd.f32 %v1297_v50, %v1296_v7 }
 0x237   :  { %v1299_v55 = vpop.f32.mrb[12].mxu1  ;;  %v1345_v56 = vpop.f32.mrb[12].mxu0 }
 0x238   :  { %v1300_v34 = vpop.f32.mrb[13].mxu1  ;;  %v1043_v59 = vpop.f32.mrb[13].mxu0 }
 0x239   :  { %v1301_v11 = vadd.f32 %v1300_v34, %v1299_v55  ;;  %v1044_v13 = vadd.f32 %v1295_v48, %v1043_v59  ;;  %v1302_v14 = vpop.f32.mrb[14].mxu1  ;;  %v1346_v16 = vpop.f32.mrb[14].mxu0 }
 0x23a   :  { %v1303_v32 = vpop.f32.mrb[15].mxu1  ;;  %v1046_v36 = vpop.f32.mrb[15].mxu0 }
 0x23b   :  { %v1052_v39 = vadd.f32 %v1345_v56, %v1301_v11  ;;  %v1065_v49 = vmul.f32 %v1178_v58, %v1044_v13  ;;  %v1304_v54 = vadd.f32 %v1303_v32, %v1302_v14  ;;  %v1047_v52 = vadd.f32 %v1298_v51, %v1046_v36 }
 0x23d   :  { %v1067_v62 = vmul.f32 %v1178_v58, %v1052_v39  ;;  %v1076_v1 = vadd.f32 %v1179_v31, %v1065_v49  ;;  %v1055_v4 = vadd.f32 %v1346_v16, %v1304_v54  ;;  %v1066_v0 = vmul.f32 %v1178_v58, %v1047_v52 }
 0x23f   :  { %v1078_v6 = vadd.f32 %v1179_v31, %v1067_v62  ;;  %v1080_v8 = vadd.f32 %v1076_v1, %v718_v61  ;;  %v1068_v41 = vmul.f32 %v1178_v58, %v1055_v4  ;;  %v1077_v9 = vadd.f32 %v1179_v31, %v1066_v0 }
 0x241   :  { %v1082_v17 = vadd.f32 %v1078_v6, %v720_v2  ;;  %v1079_v18 = vadd.f32 %v1179_v31, %v1068_v41  ;;  %v1081_v21 = vadd.f32 %v1077_v9, %v719_v5  ;;  %v1084_v22 = vmax.f32 %v1080_v8, 0.0 }
 0x243   :  { %v1083_v23 = vadd.f32 %v1079_v18, %v721_v12  ;;  %v1085_v3 = vmax.f32 %v1081_v21, 0.0  ;;  %v1086_v20 = vmax.f32 %v1082_v17, 0.0 }
 0x245   :  { %v1087_v24 = vmax.f32 %v1083_v23, 0.0  ;;  %v1191_v27 = vpack.c.bf16 %v1085_v3, %v1084_v22 }
 0x247   :  { %v1196_v28 = vpack.c.bf16 %v1087_v24, %v1086_v20  ;;  %1192 = vst [vmem:[%s1860_s11] sm:$0xff] %v1191_v27  }
 0x249   :  { %1198 = vst [vmem:[%s1860_s11 + $0x8] sm:$0xff] %v1196_v28  }

// kernel: resnet34_forward.9
= control target key start
LH: loop header
LB: loop body
LE: loop exit
PB: predicated region body
PF: predicated region fallthrough
CT: control target
= control target key end

     0   :  { %v2490_v11 = vmov 1966171168   ;;  %v59_v13 = vlaneseq  ;;  %vm616_vm0 = vcmask 1041409   ;;  %vm103_vm1 = vcmask 1040384   ;;  %s3547_s2 = inlined_call_operand.vmem [shape: bf16[384,256], index: 2, kind: input, shape index: {}]   ;;  %s3548_s0 = inlined_call_operand.vmem [shape: bf16[2,16,128], index: 0, kind: input, shape index: {}]   ;;  %s3549_s1 = inlined_call_operand.vmem [shape: bf16[1,4,2,128], index: 1, kind: input, shape index: {}]   ;;  %s3550_s5 = inlined_call_operand.vmem [shape: bf16[768,256], index: 5, kind: input, shape index: {}]   ;;  %s3551_s8 = inlined_call_operand.vmem [shape: bf16[128,256], index: 8, kind: input, shape index: {}]   ;;  %s3552_s3 = inlined_call_operand.vmem [shape: f32[1,256], index: 3, kind: input, shape index: {}]   ;;  %s3553_s4 = inlined_call_operand.vmem [shape: f32[1,256], index: 4, kind: input, shape index: {}]   ;;  %s3554_s9 = inlined_call_operand.vmem [shape: f32[1,256], index: 9, kind: input, shape index: {}]   ;;  %s3555_s10 = inlined_call_operand.vmem [shape: f32[1,256], index: 10, kind: input, shape index: {}]   ;;  %s3556_s6 = inlined_call_operand.vmem [shape: f32[1,256], index: 6, kind: input, shape index: {}]   ;;  %s3557_s7 = inlined_call_operand.vmem [shape: f32[1,256], index: 7, kind: input, shape index: {}]   ;;  %s3558_s11 = inlined_call_operand.vmem [shape: bf16[2,16,256], index: 11, kind: output, shape index: {}]  }
   0x1   :  { %v2556_v0 = vld [vmem:[%s3547_s2 + $0x4] ss:$8 sps:$4 sm:$0xff]   ;;  %v2561_v1 = vld [vmem:[%s3547_s2] ss:$8 sps:$4 sm:$0xff]   ;;  %v2567_v2 = vld [vmem:[%s3547_s2 + $0x14] ss:$8 sps:$4 sm:$0xff]   ;;  %v57_v12 = vunpack.c.l.s4 %v2490_v11 }
   0x2   :  { %443 = vmatprep.subr.bf16.mxu1 %v2556_v0  ;;  %794 = vmatprep.subr.bf16.mxu0 %v2556_v0  ;;  %v2574_v3 = vld [vmem:[%s3547_s2 + $0x10] ss:$8 sps:$4 sm:$0xff]   ;;  %v2581_v4 = vld [vmem:[%s3547_s2 + $0x24] ss:$8 sps:$4 sm:$0xff]   ;;  %v2588_v5 = vld [vmem:[%s3547_s2 + $0x20] ss:$8 sps:$4 sm:$0xff]  }
   0x3   :  { %444 = vmatpush1.bf16.msra.mxu1 %v2561_v1  ;;  %795 = vmatpush1.bf16.msra.mxu0 %v2561_v1  ;;  %v2595_v6 = vld [vmem:[%s3547_s2 + $0x34] ss:$8 sps:$4 sm:$0xff]   ;;  %v2602_v7 = vld [vmem:[%s3547_s2 + $0x30] ss:$8 sps:$4 sm:$0xff]   ;;  %v2609_v8 = vld [vmem:[%s3547_s2 + $0x44] ss:$8 sps:$4 sm:$0xff]   ;;  %v58_v16 = vunpack.c.0.s8 %v57_v12 }
   0x4   :  { %445 = vmatprep.subr.bf16.mxu1 %v2567_v2  ;;  %796 = vmatprep.subr.bf16.mxu0 %v2567_v2  ;;  %v2616_v9 = vld [vmem:[%s3547_s2 + $0x40] ss:$8 sps:$4 sm:$0xff]   ;;  %v2623_v10 = vld [vmem:[%s3547_s2 + $0x54] ss:$8 sps:$4 sm:$0xff]   ;;  %v2630_v14 = vld [vmem:[%s3547_s2 + $0x50] ss:$8 sps:$4 sm:$0xff]  }
   0x5   :  { %v2637_v15 = vld [vmem:[%s3547_s2 + $0x64] ss:$8 sps:$4 sm:$0xff]   ;;  %v2639_v17 = vshrl.u32 %v59_v13, 7  ;;  %v2645_v18 = vld [vmem:[%s3548_s0] sm:$0xf]  ;;  %vm116_vm2 = vcmask 1046528  }
   0x6   :  { %v2650_v19 = vld [vmem:[%s3548_s0 + $0x4] sm:$0xf]  ;;  %v49_v20 = vld [vmem:[%s3549_s1 + $0x2] sm:$0x1]  ;;  %v2670_v24 = vld [vmem:[%s3547_s2 + $0x74] ss:$8 sps:$4 sm:$0xff]   ;;  %v43_v56 = vunpack.c.l.bf16 %v2645_v18 }
   0x7   :  { %446 = vmatpush1.bf16.msra.mxu1 %v2574_v3  ;;  %797 = vmatpush1.bf16.msra.mxu0 %v2574_v3  ;;  %3573 = vst [vmem:[#allocation2_spill] sm:$0xff] %v2639_v17  ;;  %v2657_v21 = vcombine.low %v2645_v18, %v2650_v19  ;;  %v2663_v22 = vld [vmem:[%s3547_s2 + $0x60] ss:$8 sps:$4 sm:$0xff]   ;;  %v53_v23 = vunpack.c.l.bf16 %v49_v20  ;;  %v2673_v25 = vsub.s32 %v58_v16, %v2639_v17  ;;  %v2684_v27 = vld [vmem:[%s3547_s2 + $0x70] ss:$8 sps:$4 sm:$0xff]   ;;  %v3563_v57 = vunpack.c.l.bf16 %v2650_v19 }
   0x8   :  { %447 = vmatprep.subr.bf16.mxu1 %v2581_v4  ;;  %798 = vmatprep.subr.bf16.mxu0 %v2581_v4  ;;  %v2691_v28 = vld [vmem:[%s3547_s2 + $0x84] ss:$8 sps:$4 sm:$0xff]   ;;  %v2706_v33 = vld [vmem:[%s3547_s2 + $0x80] ss:$8 sps:$4 sm:$0xff]   ;;  %v2713_v34 = vld [vmem:[%s3547_s2 + $0x94] ss:$8 sps:$4 sm:$0xff]   ;;  %v2095_v53 = vcombine.low %v2650_v19, %v2650_v19 }
   0x9   :  { %3574 = vst [vmem:[#allocation3_spill] sm:$0xff] %v2657_v21  ;;  %475 = vmatprep.mubr.bf16.mxu1 %v2657_v21  ;;  %v2678_v26 = vrot.slane %v53_v23, %v2673_v25  ;;  %v2720_v37 = vld [vmem:[%s3547_s2 + $0x90] ss:$8 sps:$4 sm:$0xff]   ;;  %v2727_v40 = vld [vmem:[%s3547_s2 + $0xa4] ss:$8 sps:$4 sm:$0xff]   ;;  %v104_v12 = vrot.slane %v43_v56, 7 }
   0xa   :  { %v2734_v43 = vld [vmem:[%s3547_s2 + $0xa0] ss:$8 sps:$4 sm:$0xff]   ;;  %v2741_v45 = vld [vmem:[%s3547_s2 + $0xb4] ss:$8 sps:$4 sm:$0xff]   ;;  %v2749_v48 = vld [vmem:[%s3547_s2 + $0xb0] ss:$8 sps:$4 sm:$0xff]   ;;  %v773_v59 = vunpack.c.l.b16 %v2095_v53 }
   0xb   :  { %448 = vmatpush1.bf16.msra.mxu1 %v2588_v5  ;;  %799 = vmatpush1.bf16.msra.mxu0 %v2588_v5  ;;  %v2695_v29 = vcombine.high %v2678_v26, %v2678_v26  ;;  %v751_v30 = vpack.c.bf16 %v2678_v26, %v2678_v26  ;;  %v2756_v49 = vld [vmem:[%s3547_s2 + $0xc4] ss:$8 sps:$4 sm:$0xff]   ;;  %v2762_v50 = vld [vmem:[%s3547_s2 + $0xc0] ss:$8 sps:$4 sm:$0xff]   ;;  %v2773_v52 = vld [vmem:[%s3547_s2 + $0xd4] ss:$8 sps:$4 sm:$0xff]  }
   0xc   :  { %449 = vmatprep.subr.bf16.mxu1 %v2595_v6  ;;  %800 = vmatprep.subr.bf16.mxu0 %v2595_v6  ;;  %v2767_v51 = vld [vmem:[%s3548_s0 + $0xc] sm:$0xf]  ;;  %v48_v55 = vld [vmem:[%s3549_s1 + $0x1] sm:$0x1]  ;;  %v2791_v58 = vld [vmem:[%s3547_s2 + $0xd0] ss:$8 sps:$4 sm:$0xff]  }
   0xd   :  { %v752_v31 = vpack.c.bf16 %v2695_v29, %v2695_v29  ;;  %v756_v32 = vshll.u32 %v751_v30, 16  ;;  %v2096_v54 = vcombine.low %v2767_v51, %v2767_v51  ;;  %v52_v60 = vunpack.c.l.bf16 %v48_v55  ;;  %v2798_v62 = vld [vmem:[%s3547_s2 + $0xe4] ss:$8 sps:$4 sm:$0xff]   ;;  %v2804_v63 = vld [vmem:[%s3547_s2 + $0xe0] ss:$8 sps:$4 sm:$0xff]  }
   0xe   :  { %v2809_v11 = vld [vmem:[%s3547_s2 + $0xf4] ss:$8 sps:$4 sm:$0xff]   ;;  %v105_v13 = vrot.slane %v3563_v57, 7  ;;  %v2818_v16 = vld [vmem:[%s3548_s0 + $0x8] sm:$0xf]  ;;  %v779_v20 = vrot.slane %v773_v59, 7 }
   0xf   :  { %450 = vmatpush1.bf16.msra.mxu1 %v2602_v7  ;;  %801 = vmatpush1.bf16.msra.mxu0 %v2602_v7  ;;  %v758_v35 = vrot.slane %v756_v32, 5  ;;  %v760_v36 = vshll.u32 %v752_v31, 16  ;;  %v776_v61 = vunpack.c.l.b16 %v2096_v54  ;;  %v2822_v23 = vrot.slane %v52_v60, %v2673_v25  ;;  %v2830_v31 = vld [vmem:[%s3547_s2 + $0xf0] ss:$8 sps:$4 sm:$0xff]   ;;  %v2835_v32 = vld [vmem:[%s3547_s2 + $0x104] ss:$8 sps:$4 sm:$0xff]  }
  0x10   :  { %451 = vmatprep.subr.bf16.mxu1 %v2609_v8  ;;  %802 = vmatprep.subr.bf16.mxu0 %v2609_v8  ;;  %v2322_v54 = vld [vmem:[%s3550_s5 + $0x100] ss:$8 sps:$4 sm:$0xff]   ;;  %v2866_v55 = vcombine.low %v2818_v16, %v2767_v51  ;;  %v117_v57 = vrot.slane %v43_v56, 1  ;;  %v2995_v56 = vld [vmem:[%s3547_s2 + $0x174] ss:$8 sps:$4 sm:$0xff]  }
  0x11   :  { %v762_v38 = vrot.slane %v760_v36, 5  ;;  %v774_v39 = vunpack.c.l.b16 %v758_v35  ;;  %v780_v30 = vrot.slane %v776_v61, 6  ;;  %v106_v35 = vsel %vm103_vm1, %v104_v12, %v105_v13  ;;  %v2324_v36 = vld [vmem:[%s3550_s5 + $0x104] ss:$8 sps:$4 sm:$0xff]   ;;  %v2884_v13 = vld [vmem:[%s3547_s2 + $0x110] ss:$8 sps:$4 sm:$0xff]  }
  0x12   :  { %3575 = vst [vmem:[#allocation4_spill] sm:$0xff] %v2866_v55  ;;  %v2870_v59 = vcombine.high %v2822_v23, %v2822_v23 }
  0x13   :  { %452 = vmatpush1.bf16.msra.mxu1 %v2616_v9  ;;  %803 = vmatpush1.bf16.msra.mxu0 %v2616_v9  ;;  %v777_v41 = vunpack.c.l.b16 %v762_v38  ;;  %v782_v42 = vrot.slane %v774_v39, 7  ;;  %v114_v38 = vsel %vm103_vm1, %v2822_v23, %v104_v12  ;;  %v3562_v39 = vunpack.c.l.bf16 %v2818_v16  ;;  %v2327_v12 = vld [vmem:[%s3550_s5 + $0x114] ss:$8 sps:$4 sm:$0xff]  }
  0x14   :  { %453 = vmatprep.subr.bf16.mxu1 %v2623_v10  ;;  %804 = vmatprep.subr.bf16.mxu0 %v2623_v10 }
  0x15   :  { %v783_v44 = vrot.slane %v777_v41, 6  ;;  %v3561_v41 = vunpack.c.l.bf16 %v2767_v51  ;;  %v107_v60 = vrot.slane %v3562_v39, 7  ;;  %v2342_v39 = vld [vmem:[%s3550_s5 + $0x164] ss:$8 sps:$4 sm:$0xff]  }
  0x17   :  { %454 = vmatpush1.bf16.msra.mxu1 %v2630_v14  ;;  %805 = vmatpush1.bf16.msra.mxu0 %v2630_v14  ;;  %v784_v46 = vsel %vm616_vm0, %v783_v44, %v782_v42  ;;  %v781_v42 = vsel %vm616_vm0, %v780_v30, %v779_v20  ;;  %v2853_v44 = vld [vmem:[%s3547_s2 + $0x100] ss:$8 sps:$4 sm:$0xff]   ;;  %v108_v61 = vrot.slane %v3561_v41, 7  ;;  %v2889_v20 = vld [vmem:[%s3547_s2 + $0x124] ss:$8 sps:$4 sm:$0xff]  }
  0x18   :  { %455 = vmatprep.subr.bf16.mxu1 %v2637_v15  ;;  %806 = vmatprep.subr.bf16.mxu0 %v2637_v15  ;;  %v789_v47 = vpack.c.b16 %v784_v46, %v784_v46  ;;  %v139_v46 = vpack.c.bf16 %v106_v35, %v114_v38  ;;  %v788_v53 = vpack.c.b16 %v781_v42, %v781_v42  ;;  %v2325_v30 = vld [vmem:[%s3550_s5 + $0x110] ss:$8 sps:$4 sm:$0xff]   ;;  %v2330_v38 = vld [vmem:[%s3550_s5 + $0x124] ss:$8 sps:$4 sm:$0xff]   ;;  %v2906_v42 = vld [vmem:[%s3547_s2 + $0x120] ss:$8 sps:$4 sm:$0xff]  }
  0x19   :  { %v109_v35 = vsel %vm103_vm1, %v107_v60, %v108_v61  ;;  %v2925_v61 = vld [vmem:[%s3547_s2 + $0x130] ss:$8 sps:$4 sm:$0xff]  }
  0x1a   :  { %826 = vmatprep.mubr.bf16.mxu0 %v789_v47  ;;  %v2858_v47 = vld [vmem:[%s3547_s2 + $0x114] ss:$8 sps:$4 sm:$0xff]   ;;  %v2965_v41 = vld [vmem:[%s3547_s2 + $0x150] ss:$8 sps:$4 sm:$0xff]  }
  0x1b   :  { %456 = vmatpush1.bf16.msra.mxu1 %v2663_v22  ;;  %807 = vmatpush1.bf16.msra.mxu0 %v2663_v22  ;;  %3576 = vst [vmem:[#allocation5_spill] sm:$0xff] %v2965_v41 }
  0x1c   :  { %457 = vmatprep.subr.bf16.mxu1 %v2670_v24  ;;  %808 = vmatprep.subr.bf16.mxu0 %v2670_v24 }
  0x1f   :  { %458 = vmatpush1.bf16.msra.mxu1 %v2684_v27  ;;  %809 = vmatpush1.bf16.msra.mxu0 %v2684_v27 }
  0x20   :  { %459 = vmatprep.subr.bf16.mxu1 %v2691_v28  ;;  %810 = vmatprep.subr.bf16.mxu0 %v2691_v28 }
  0x23   :  { %460 = vmatpush1.bf16.msra.mxu1 %v2706_v33  ;;  %811 = vmatpush1.bf16.msra.mxu0 %v2706_v33 }
  0x24   :  { %461 = vmatprep.subr.bf16.mxu1 %v2713_v34  ;;  %812 = vmatprep.subr.bf16.mxu0 %v2713_v34 }
  0x27   :  { %462 = vmatpush1.bf16.msra.mxu1 %v2720_v37  ;;  %813 = vmatpush1.bf16.msra.mxu0 %v2720_v37 }
  0x28   :  { %463 = vmatprep.subr.bf16.mxu1 %v2727_v40  ;;  %814 = vmatprep.subr.bf16.mxu0 %v2727_v40 }
  0x2b   :  { %464 = vmatpush1.bf16.msra.mxu1 %v2734_v43  ;;  %815 = vmatpush1.bf16.msra.mxu0 %v2734_v43 }
  0x2c   :  { %465 = vmatprep.subr.bf16.mxu1 %v2741_v45  ;;  %816 = vmatprep.subr.bf16.mxu0 %v2741_v45 }
  0x2f   :  { %466 = vmatpush1.bf16.msra.mxu1 %v2749_v48  ;;  %817 = vmatpush1.bf16.msra.mxu0 %v2749_v48 }
  0x30   :  { %467 = vmatprep.subr.bf16.mxu1 %v2756_v49  ;;  %818 = vmatprep.subr.bf16.mxu0 %v2756_v49 }
  0x33   :  { %468 = vmatpush1.bf16.msra.mxu1 %v2762_v50  ;;  %819 = vmatpush1.bf16.msra.mxu0 %v2762_v50 }
  0x34   :  { %469 = vmatprep.subr.bf16.mxu1 %v2773_v52  ;;  %820 = vmatprep.subr.bf16.mxu0 %v2773_v52 }
  0x37   :  { %470 = vmatpush1.bf16.msra.mxu1 %v2791_v58  ;;  %821 = vmatpush1.bf16.msra.mxu0 %v2791_v58 }
  0x38   :  { %471 = vmatprep.subr.bf16.mxu1 %v2798_v62  ;;  %822 = vmatprep.subr.bf16.mxu0 %v2798_v62 }
  0x3b   :  { %472 = vmatpush1.bf16.msra.mxu1 %v2804_v63  ;;  %823 = vmatpush1.bf16.msra.mxu0 %v2804_v63 }
  0x3c   :  { %473 = vmatprep.subr.bf16.mxu1 %v2809_v11  ;;  %824 = vmatprep.subr.bf16.mxu0 %v2809_v11 }
  0x3f   :  { %474 = vmatpush1.bf16.msra.mxu1 %v2830_v31  ;;  %825 = vmatpush1.bf16.msra.mxu0 %v2830_v31 }
  0x40   :  { %496 = vmatprep.subr.bf16.mxu1 %v2835_v32  ;;  %1432 = vmatprep.subr.bf16.mxu0 %v2324_v36  ;;  %v115_v36 = vsel %vm103_vm1, %v2870_v59, %v107_v60  ;;  %v2328_v60 = vld [vmem:[%s3550_s5 + $0x120] ss:$8 sps:$4 sm:$0xff]  }
  0x42   :  { %476 = vmatmul.mubr.bf16.vlgmr.msra.gmra.mrb[0].mxu1 %v139_v46  ;;  %827 = vmatmul.mubr.bf16.vlgmr.msra.gmra.mrb[0].mxu0 %v788_v53  ;;  %v2911_v46 = vld [vmem:[%s3547_s2 + $0x134] ss:$8 sps:$4 sm:$0xff]   ;;  %v140_v53 = vpack.c.bf16 %v109_v35, %v115_v36  ;;  %v2932_v35 = vld [vmem:[%s3547_s2 + $0x144] ss:$8 sps:$4 sm:$0xff]  }
  0x43   :  { %497 = vmatpush1.bf16.msra.mxu1 %v2853_v44  ;;  %485 = vmatprep.mubr.bf16.mxu1 %v2866_v55  ;;  %v2336_v36 = vld [vmem:[%s3550_s5 + $0x144] ss:$8 sps:$4 sm:$0xff]   ;;  %v3578_v55 = vunpack.c.l.bf16 %v2650_v19  ;;  %v2340_v19 = vld [vmem:[%s3550_s5 + $0x160] ss:$8 sps:$4 sm:$0xff]  }
  0x44   :  { %498 = vmatprep.subr.bf16.mxu1 %v2858_v47  ;;  %1433 = vmatpush1.bf16.msra.mxu0 %v2322_v54  ;;  %v2333_v54 = vld [vmem:[%s3550_s5 + $0x134] ss:$8 sps:$4 sm:$0xff]  }
  0x45   :  { %1434 = vmatprep.subr.bf16.mxu0 %v2327_v12  ;;  %v3559_v12 = vmov 0   ;;  %v118_v21 = vrot.slane %v3578_v55, 1 }
  0x47   :  { %499 = vmatpush1.bf16.msra.mxu1 %v2884_v13  ;;  %v119_v55 = vsel %vm116_vm2, %v117_v57, %v118_v21  ;;  %v2348_v57 = vld [vmem:[%s3550_s5 + $0x184] ss:$8 sps:$4 sm:$0xff]  }
  0x48   :  { %500 = vmatprep.subr.bf16.mxu1 %v2889_v20  ;;  %1435 = vmatpush1.bf16.msra.mxu0 %v2325_v30  ;;  %v2331_v30 = vld [vmem:[%s3550_s5 + $0x130] ss:$8 sps:$4 sm:$0xff]  }
  0x49   :  { %1436 = vmatprep.subr.bf16.mxu0 %v2330_v38  ;;  %v2944_v38 = vld [vmem:[%s3547_s2 + $0x140] ss:$8 sps:$4 sm:$0xff]  }
  0x4a   :  { %486 = vmatmul.mubr.bf16.gmra.mrb[4].mxu1 %v140_v53  ;;  %v2950_v53 = vld [vmem:[%s3547_s2 + $0x154] ss:$8 sps:$4 sm:$0xff]  }
  0x4b   :  { %501 = vmatpush1.bf16.msra.mxu1 %v2906_v42  ;;  %528 = vmatprep.mubr.bf16.mxu1 %v3559_v12  ;;  %v2959_v12 = vsub.s32 0, %v2639_v17 }
  0x4c   :  { %502 = vmatprep.subr.bf16.mxu1 %v2911_v46  ;;  %1437 = vmatpush1.bf16.msra.mxu0 %v2328_v60  ;;  %v2334_v60 = vld [vmem:[%s3550_s5 + $0x140] ss:$8 sps:$4 sm:$0xff]  }
  0x4d   :  { %1438 = vmatprep.subr.bf16.mxu0 %v2333_v54  ;;  %v2339_v54 = vld [vmem:[%s3550_s5 + $0x154] ss:$8 sps:$4 sm:$0xff]   ;;  %v130_v17 = vrot.slane %v2678_v26, %v2959_v12 }
  0x4e   :  { %v2345_v26 = vld [vmem:[%s3550_s5 + $0x174] ss:$8 sps:$4 sm:$0xff]  }
  0x4f   :  { %503 = vmatpush1.bf16.msra.mxu1 %v2925_v61 }
  0x50   :  { %504 = vmatprep.subr.bf16.mxu1 %v2932_v35  ;;  %1439 = vmatpush1.bf16.msra.mxu0 %v2331_v30  ;;  %v2971_v30 = vld [vmem:[%s3547_s2 + $0x164] ss:$8 sps:$4 sm:$0xff]  }
  0x51   :  { %1440 = vmatprep.subr.bf16.mxu0 %v2336_v36  ;;  %3577 = vst [vmem:[#allocation6_spill] sm:$0xff] %v2971_v30  ;;  %v2337_v36 = vld [vmem:[%s3550_s5 + $0x150] ss:$8 sps:$4 sm:$0xff]  }
  0x53   :  { %505 = vmatpush1.bf16.msra.mxu1 %v2944_v38 }
  0x54   :  { %506 = vmatprep.subr.bf16.mxu1 %v2950_v53  ;;  %1441 = vmatpush1.bf16.msra.mxu0 %v2334_v60  ;;  %v2989_v60 = vld [vmem:[%s3547_s2 + $0x160] ss:$8 sps:$4 sm:$0xff]  }
  0x55   :  { %1442 = vmatprep.subr.bf16.mxu0 %v2339_v54  ;;  %3579 = vst [vmem:[#allocation7_spill] sm:$0xff] %v2989_v60  ;;  %v137_v54 = vsel %vm116_vm2, %v118_v21, %v130_v17  ;;  %v3580_v21 = vunpack.c.l.bf16 %v2818_v16 }
  0x56   :  { %v141_v17 = vpack.c.bf16 %v137_v54, %v119_v55  ;;  %v2351_v55 = vld [vmem:[%s3550_s5 + $0x194] ss:$8 sps:$4 sm:$0xff]   ;;  %v3582_v54 = vmov 0  }
  0x57   :  { %507 = vmatpush1.bf16.msra.mxu1 %v2965_v41 }
  0x58   :  { %508 = vmatprep.subr.bf16.mxu1 %v2971_v30  ;;  %1443 = vmatpush1.bf16.msra.mxu0 %v2337_v36  ;;  %v3009_v30 = vld [vmem:[%s3547_s2 + $0x170] ss:$8 sps:$4 sm:$0xff]   ;;  %v120_v36 = vrot.slane %v3580_v21, 1 }
  0x59   :  { %1444 = vmatprep.subr.bf16.mxu0 %v2342_v39  ;;  %v2343_v39 = vld [vmem:[%s3550_s5 + $0x170] ss:$8 sps:$4 sm:$0xff]  }
  0x5b   :  { %509 = vmatpush1.bf16.msra.mxu1 %v2989_v60  ;;  %v3581_v60 = vunpack.c.l.bf16 %v2767_v51 }
  0x5c   :  { %510 = vmatprep.subr.bf16.mxu1 %v2995_v56  ;;  %1445 = vmatpush1.bf16.msra.mxu0 %v2340_v19  ;;  %v134_v19 = vrot.slane %v2695_v29, %v2959_v12  ;;  %v2354_v29 = vld [vmem:[%s3550_s5 + $0x1a4] ss:$8 sps:$4 sm:$0xff]  }
  0x5d   :  { %1446 = vmatprep.subr.bf16.mxu0 %v2345_v26  ;;  %v121_v41 = vrot.slane %v3581_v60, 1  ;;  %v2346_v26 = vld [vmem:[%s3550_s5 + $0x180] ss:$8 sps:$4 sm:$0xff]  }
  0x5f   :  { %511 = vmatpush1.bf16.msra.mxu1 %v3009_v30  ;;  %v122_v51 = vsel %vm116_vm2, %v120_v36, %v121_v41  ;;  %v138_v60 = vsel %vm116_vm2, %v121_v41, %v134_v19  ;;  %v3585_v36 = vld [vmem:[#allocation7_spill] sm:$0xff] }
  0x60   :  { %628 = vmatprep.subr.bf16.mxu1 %v2556_v0  ;;  %1447 = vmatpush1.bf16.msra.mxu0 %v2343_v39  ;;  %v2349_v0 = vld [vmem:[%s3550_s5 + $0x190] ss:$8 sps:$4 sm:$0xff]   ;;  %v142_v39 = vpack.c.bf16 %v138_v60, %v122_v51 }
  0x61   :  { %1448 = vmatprep.subr.bf16.mxu0 %v2348_v57  ;;  %v3584_v57 = vld [vmem:[#allocation6_spill] sm:$0xff] }
  0x62   :  { %529 = vmatmul.mubr.bf16.vlgmr.msra.gmra.mrb[0].mxu1 %v141_v17 }
  0x63   :  { %538 = vmatprep.mubr.bf16.mxu1 %v3582_v54  ;;  %629 = vmatpush1.bf16.msra.mxu1 %v2561_v1  ;;  %v2352_v1 = vld [vmem:[%s3550_s5 + $0x1a0] ss:$8 sps:$4 sm:$0xff]  }
  0x64   :  { %630 = vmatprep.subr.bf16.mxu1 %v2567_v2  ;;  %1449 = vmatpush1.bf16.msra.mxu0 %v2346_v26  ;;  %v2357_v2 = vld [vmem:[%s3550_s5 + $0x1b4] ss:$8 sps:$4 sm:$0xff]  }
  0x65   :  { %1450 = vmatprep.subr.bf16.mxu0 %v2351_v55 }
  0x67   :  { %631 = vmatpush1.bf16.msra.mxu1 %v2574_v3  ;;  %v2355_v3 = vld [vmem:[%s3550_s5 + $0x1b0] ss:$8 sps:$4 sm:$0xff]  }
  0x68   :  { %632 = vmatprep.subr.bf16.mxu1 %v2581_v4  ;;  %1451 = vmatpush1.bf16.msra.mxu0 %v2349_v0  ;;  %v2360_v4 = vld [vmem:[%s3550_s5 + $0x1c4] ss:$8 sps:$4 sm:$0xff]  }
  0x69   :  { %1452 = vmatprep.subr.bf16.mxu0 %v2354_v29  ;;  %v2444_v29 = vld [vmem:[%s3551_s8 + $0x4] ss:$8 sps:$4 sm:$0xff]  }
  0x6a   :  { %539 = vmatmul.mubr.bf16.gmra.mrb[4].mxu1 %v142_v39  ;;  %v2442_v39 = vld [vmem:[%s3551_s8] ss:$8 sps:$4 sm:$0xff]  }
  0x6b   :  { %633 = vmatpush1.bf16.msra.mxu1 %v2588_v5  ;;  %v2358_v5 = vld [vmem:[%s3550_s5 + $0x1c0] ss:$8 sps:$4 sm:$0xff]  }
  0x6c   :  { %634 = vmatprep.subr.bf16.mxu1 %v2595_v6  ;;  %1453 = vmatpush1.bf16.msra.mxu0 %v2352_v1  ;;  %v2363_v6 = vld [vmem:[%s3550_s5 + $0x1d4] ss:$8 sps:$4 sm:$0xff]  }
  0x6d   :  { %1454 = vmatprep.subr.bf16.mxu0 %v2357_v2 }
  0x6f   :  { %635 = vmatpush1.bf16.msra.mxu1 %v2602_v7  ;;  %v2361_v7 = vld [vmem:[%s3550_s5 + $0x1d0] ss:$8 sps:$4 sm:$0xff]  }
  0x70   :  { %636 = vmatprep.subr.bf16.mxu1 %v2609_v8  ;;  %1455 = vmatpush1.bf16.msra.mxu0 %v2355_v3  ;;  %v2366_v8 = vld [vmem:[%s3550_s5 + $0x1e4] ss:$8 sps:$4 sm:$0xff]  }
  0x71   :  { %1456 = vmatprep.subr.bf16.mxu0 %v2360_v4  ;;  %v2456_v3 = vld [vmem:[%s3551_s8 + $0x24] ss:$8 sps:$4 sm:$0xff]   ;;  %v2454_v4 = vld [vmem:[%s3551_s8 + $0x20] ss:$8 sps:$4 sm:$0xff]  }
  0x73   :  { %637 = vmatpush1.bf16.msra.mxu1 %v2616_v9  ;;  %v2364_v9 = vld [vmem:[%s3550_s5 + $0x1e0] ss:$8 sps:$4 sm:$0xff]  }
  0x74   :  { %638 = vmatprep.subr.bf16.mxu1 %v2623_v10  ;;  %1457 = vmatpush1.bf16.msra.mxu0 %v2358_v5  ;;  %v2369_v10 = vld [vmem:[%s3550_s5 + $0x1f4] ss:$8 sps:$4 sm:$0xff]  }
  0x75   :  { %1458 = vmatprep.subr.bf16.mxu0 %v2363_v6  ;;  %v2462_v5 = vld [vmem:[%s3551_s8 + $0x34] ss:$8 sps:$4 sm:$0xff]   ;;  %v2460_v6 = vld [vmem:[%s3551_s8 + $0x30] ss:$8 sps:$4 sm:$0xff]  }
  0x77   :  { %639 = vmatpush1.bf16.msra.mxu1 %v2630_v14  ;;  %v2367_v14 = vld [vmem:[%s3550_s5 + $0x1f0] ss:$8 sps:$4 sm:$0xff]  }
  0x78   :  { %640 = vmatprep.subr.bf16.mxu1 %v2637_v15  ;;  %1459 = vmatpush1.bf16.msra.mxu0 %v2361_v7  ;;  %v2372_v15 = vld [vmem:[%s3550_s5 + $0x4] ss:$8 sps:$4 sm:$0xff]  }
  0x79   :  { %1460 = vmatprep.subr.bf16.mxu0 %v2366_v8  ;;  %v2468_v7 = vld [vmem:[%s3551_s8 + $0x44] ss:$8 sps:$4 sm:$0xff]   ;;  %v549_v8 = vld [vmem:[%s3552_s3] sm:$0x3] }
  0x7b   :  { %641 = vmatpush1.bf16.msra.mxu1 %v2663_v22  ;;  %v47_v22 = vld [vmem:[%s3549_s1] sm:$0x1] }
  0x7c   :  { %642 = vmatprep.subr.bf16.mxu1 %v2670_v24  ;;  %1461 = vmatpush1.bf16.msra.mxu0 %v2364_v9  ;;  %v51_v24 = vunpack.c.l.bf16 %v47_v22  ;;  %v3586_v9 = vld [vmem:[#allocation2_spill] sm:$0xff]  ;;  %v2474_v22 = vld [vmem:[%s3551_s8 + $0x54] ss:$8 sps:$4 sm:$0xff]  }
  0x7d   :  { %1462 = vmatprep.subr.bf16.mxu0 %v2369_v10  ;;  %v3194_v10 = vsub.s32 1, %v3586_v9 }
  0x7f   :  { %643 = vmatpush1.bf16.msra.mxu1 %v2684_v27  ;;  %v62_v27 = vrot.slane %v51_v24, %v2673_v25  ;;  %v554_v24 = vrot.slane %v549_v8, %v2959_v12 }
  0x80   :  { %644 = vmatprep.subr.bf16.mxu1 %v2691_v28  ;;  %1463 = vmatpush1.bf16.msra.mxu0 %v2367_v14  ;;  %v2466_v14 = vld [vmem:[%s3551_s8 + $0x40] ss:$8 sps:$4 sm:$0xff]  }
  0x81   :  { %1645 = vmatprep.subr.bf16.mxu0 %v2372_v15  ;;  %v63_v28 = vcombine.high %v62_v27, %v62_v27  ;;  %v569_v15 = vld [vmem:[%s3553_s4] sm:$0x3] }
  0x83   :  { %645 = vmatpush1.bf16.msra.mxu1 %v2706_v33  ;;  %v600_v33 = vpack.c.bf16 %v2870_v59, %v2870_v59  ;;  %v3583_v59 = vld [vmem:[#allocation5_spill] sm:$0xff] }
  0x84   :  { %646 = vmatprep.subr.bf16.mxu1 %v2713_v34  ;;  %v598_v34 = vpack.c.bf16 %v63_v28, %v63_v28  ;;  %v3208_v28 = vrot.slane %v569_v15, %v2959_v12 }
  0x87   :  { %647 = vmatpush1.bf16.msra.mxu1 %v2720_v37  ;;  %v599_v37 = vpack.c.bf16 %v2822_v23, %v2822_v23  ;;  %v2094_v23 = vcombine.low %v2818_v16, %v2818_v16 }
  0x88   :  { %648 = vmatprep.subr.bf16.mxu1 %v2727_v40  ;;  %v613_v40 = vunpack.c.l.b16 %v600_v33  ;;  %v2472_v33 = vld [vmem:[%s3551_s8 + $0x50] ss:$8 sps:$4 sm:$0xff]  }
  0x89   :  { %v614_v41 = vunpack.c.l.b16 %v2094_v23  ;;  %v2486_v23 = vld [vmem:[%s3551_s8 + $0x74] ss:$8 sps:$4 sm:$0xff]  }
  0x8b   :  { %649 = vmatpush1.bf16.msra.mxu1 %v2734_v43  ;;  %v597_v43 = vpack.c.bf16 %v62_v27, %v62_v27  ;;  %v620_v21 = vrot.slane %v614_v41, 7  ;;  %v558_v27 = vrot.slane %v549_v8, %v3194_v10  ;;  %v2492_v41 = vmov 0.0  }
  0x8c   :  { %650 = vmatprep.subr.bf16.mxu1 %v2741_v45  ;;  %v612_v45 = vunpack.c.l.b16 %v598_v34 }
  0x8f   :  { %651 = vmatpush1.bf16.msra.mxu1 %v2749_v48  ;;  %v610_v48 = vunpack.c.l.b16 %v599_v37  ;;  %v578_v37 = vrot.slane %v569_v15, %v3194_v10 }
  0x90   :  { %652 = vmatprep.subr.bf16.mxu1 %v2756_v49  ;;  %v618_v49 = vrot.slane %v613_v40, 7  ;;  %v2480_v40 = vld [vmem:[%s3551_s8 + $0x64] ss:$8 sps:$4 sm:$0xff]  }
  0x93   :  { %653 = vmatpush1.bf16.msra.mxu1 %v2762_v50  ;;  %v609_v50 = vunpack.c.l.b16 %v597_v43 }
  0x94   :  { %654 = vmatprep.subr.bf16.mxu1 %v2773_v52  ;;  %v615_v52 = vrot.slane %v612_v45, 7 }
  0x97   :  { %655 = vmatpush1.bf16.msra.mxu1 %v2791_v58  ;;  %v619_v58 = vsel %vm616_vm0, %v618_v49, %v610_v48 }
  0x98   :  { %656 = vmatprep.subr.bf16.mxu1 %v2798_v62  ;;  %v623_v62 = vpack.c.b16 %v619_v58, %v619_v58 }
  0x9a   :  { %660 = vmatprep.mubr.bf16.mxu1 %v623_v62  ;;  %v2478_v62 = vld [vmem:[%s3551_s8 + $0x60] ss:$8 sps:$4 sm:$0xff]  }
  0x9b   :  { %657 = vmatpush1.bf16.msra.mxu1 %v2804_v63  ;;  %v617_v63 = vsel %vm616_vm0, %v615_v52, %v609_v50 }
  0x9c   :  { %658 = vmatprep.subr.bf16.mxu1 %v2809_v11  ;;  %v622_v11 = vpack.c.b16 %v617_v63, %v617_v63 }
  0x9f   :  { %659 = vmatpush1.bf16.msra.mxu1 %v2830_v31  ;;  %v2093_v31 = vcombine.low %v2645_v18, %v2645_v18  ;;  %v50_v18 = vld [vmem:[%s3549_s1 + $0x3] sm:$0x1] }
  0xa0   :  { %669 = vmatprep.subr.bf16.mxu1 %v2835_v32 }
  0xa1   :  { %v611_v17 = vunpack.c.l.b16 %v2093_v31 }
  0xa2   :  { %661 = vmatmul.mubr.bf16.vlgmr.msra.gmra.mrb[8].mxu1 %v622_v11 }
  0xa3   :  { %670 = vmatpush1.bf16.msra.mxu1 %v2853_v44  ;;  %701 = vmatprep.mubr.bf16.mxu1 %v3582_v54  ;;  %v621_v16 = vsel %vm616_vm0, %v620_v21, %v611_v17 }
  0xa4   :  { %671 = vmatprep.subr.bf16.mxu1 %v2858_v47  ;;  %v624_v19 = vpack.c.b16 %v621_v16, %v621_v16 }
  0xa7   :  { %672 = vmatpush1.bf16.msra.mxu1 %v2884_v13 }
  0xa8   :  { %673 = vmatprep.subr.bf16.mxu1 %v2889_v20 }
  0xab   :  { %674 = vmatpush1.bf16.msra.mxu1 %v2906_v42 }
  0xac   :  { %675 = vmatprep.subr.bf16.mxu1 %v2911_v46 }
  0xaf   :  { %676 = vmatpush1.bf16.msra.mxu1 %v2925_v61 }
  0xb0   :  { %677 = vmatprep.subr.bf16.mxu1 %v2932_v35 }
  0xb3   :  { %678 = vmatpush1.bf16.msra.mxu1 %v2944_v38 }
  0xb4   :  { %679 = vmatprep.subr.bf16.mxu1 %v2950_v53 }
  0xb7   :  { %680 = vmatpush1.bf16.msra.mxu1 %v3583_v59 }
  0xb8   :  { %681 = vmatprep.subr.bf16.mxu1 %v3584_v57 }
  0xbb   :  { %682 = vmatpush1.bf16.msra.mxu1 %v3585_v36 }
  0xbc   :  { %683 = vmatprep.subr.bf16.mxu1 %v2995_v56 }
  0xbf   :  { %684 = vmatpush1.bf16.msra.mxu1 %v3009_v30 }
  0xc0   :  { %835 = vmatprep.subr.bf16.mxu1 %v2835_v32  ;;  %v54_v32 = vunpack.c.l.bf16 %v50_v18  ;;  %v2484_v18 = vld [vmem:[%s3551_s8 + $0x70] ss:$8 sps:$4 sm:$0xff]  }
  0xc2   :  { %702 = vmatmul.mubr.bf16.vlgmr.msra.gmra.mrb[12].mxu1 %v624_v19  ;;  %v3229_v19 = vrot.slane %v2492_v41, %v3194_v10 }
  0xc3   :  { %836 = vmatpush1.bf16.msra.mxu1 %v2853_v44  ;;  %867 = vmatprep.mubr.bf16.mxu1 %v3582_v54  ;;  %v95_v44 = vrot.slane %v54_v32, %v2673_v25 }
  0xc4   :  { %837 = vmatprep.subr.bf16.mxu1 %v2858_v47 }
  0xc5   :  { %v96_v47 = vcombine.high %v95_v44, %v95_v44 }
  0xc7   :  { %838 = vmatpush1.bf16.msra.mxu1 %v2884_v13 }
  0xc8   :  { %839 = vmatprep.subr.bf16.mxu1 %v2889_v20  ;;  %v753_v20 = vpack.c.bf16 %v95_v44, %v95_v44 }
  0xca   :  { %v764_v26 = vshll.u32 %v753_v20, 16 }
  0xcb   :  { %840 = vmatpush1.bf16.msra.mxu1 %v2906_v42  ;;  %v754_v42 = vpack.c.bf16 %v96_v47, %v96_v47 }
  0xcc   :  { %841 = vmatprep.subr.bf16.mxu1 %v2911_v46  ;;  %v766_v51 = vrot.slane %v764_v26, 5 }
  0xcd   :  { %v768_v55 = vshll.u32 %v754_v42, 16 }
  0xce   :  { %v775_v25 = vunpack.c.l.b16 %v766_v51 }
  0xcf   :  { %842 = vmatpush1.bf16.msra.mxu1 %v2925_v61  ;;  %v770_v60 = vrot.slane %v768_v55, 5 }
  0xd0   :  { %843 = vmatprep.subr.bf16.mxu1 %v2932_v35 }
  0xd3   :  { %844 = vmatpush1.bf16.msra.mxu1 %v2944_v38  ;;  %v778_v38 = vunpack.c.l.b16 %v770_v60 }
  0xd4   :  { %845 = vmatprep.subr.bf16.mxu1 %v2950_v53  ;;  %v785_v53 = vrot.slane %v775_v25, 7 }
  0xd5   :  { %v786_v0 = vrot.slane %v778_v38, 6 }
  0xd7   :  { %846 = vmatpush1.bf16.msra.mxu1 %v3583_v59  ;;  %v787_v1 = vsel %vm616_vm0, %v786_v0, %v785_v53  ;;  %v3225_v59 = vrot.slane %v2492_v41, %v2959_v12 }
  0xd8   :  { %847 = vmatprep.subr.bf16.mxu1 %v3584_v57  ;;  %v790_v2 = vpack.c.b16 %v787_v1, %v787_v1 }
  0xdb   :  { %848 = vmatpush1.bf16.msra.mxu1 %v3585_v36 }
  0xdc   :  { %849 = vmatprep.subr.bf16.mxu1 %v2995_v56  ;;  %v2450_v56 = vld [vmem:[%s3551_s8 + $0x14] ss:$8 sps:$4 sm:$0xff]  }
  0xdf   :  { %850 = vmatpush1.bf16.msra.mxu1 %v3009_v30  ;;  %v2448_v30 = vld [vmem:[%s3551_s8 + $0x10] ss:$8 sps:$4 sm:$0xff]  }
  0xe0   :  { %1007 = vmatprep.subr.bf16.mxu1 %v2444_v29 }
  0xe2   :  { %868 = vmatmul.mubr.bf16.vlgmr.msra.gmra.mrb[16].mxu1 %v790_v2  ;;  %v2370_v2 = vld [vmem:[%s3550_s5] ss:$8 sps:$4 sm:$0xff]  }
  0xe3   :  { %1008 = vmatpush1.bf16.msra.mxu1 %v2442_v39  ;;  %1039 = vmatprep.mubr.bf16.mxu1 %v3582_v54 }
  0xe4   :  { %1009 = vmatprep.subr.bf16.mxu1 %v2450_v56 }
  0xe7   :  { %1010 = vmatpush1.bf16.msra.mxu1 %v2448_v30 }
  0xe8   :  { %1011 = vmatprep.subr.bf16.mxu1 %v2456_v3 }
  0xeb   :  { %1012 = vmatpush1.bf16.msra.mxu1 %v2454_v4 }
  0xec   :  { %1013 = vmatprep.subr.bf16.mxu1 %v2462_v5  ;;  %v2375_v5 = vld [vmem:[%s3550_s5 + $0x14] ss:$8 sps:$4 sm:$0xff]  }
  0xef   :  { %1014 = vmatpush1.bf16.msra.mxu1 %v2460_v6 }
  0xf0   :  { %1015 = vmatprep.subr.bf16.mxu1 %v2468_v7 }
  0xf3   :  { %1016 = vmatpush1.bf16.msra.mxu1 %v2466_v14 }
  0xf4   :  { %1017 = vmatprep.subr.bf16.mxu1 %v2474_v22 }
  0xf7   :  { %1018 = vmatpush1.bf16.msra.mxu1 %v2472_v33 }
  0xf8   :  { %1019 = vmatprep.subr.bf16.mxu1 %v2480_v40 }
  0xfb   :  { %1020 = vmatpush1.bf16.msra.mxu1 %v2478_v62 }
  0xfc   :  { %1021 = vmatprep.subr.bf16.mxu1 %v2486_v23 }
  0xff   :  { %1022 = vmatpush1.bf16.msra.mxu1 %v2484_v18 }
 0x115   :  { %v828_v13 = vpop.f32.mrb[0].mxu0 }
 0x116   :  { %v830_v46 = vpop.f32.mrb[1].mxu0 }
 0x117   :  { %v832_v61 = vpop.f32.mrb[2].mxu0 }
 0x118   :  { %v833_v35 = vpop.f32.mrb[3].mxu0 }
 0x135   :  { %v530_v34 = vpop.f32.mrb[0].mxu1 }
 0x136   :  { %v561_v43 = vmul.f32 %v554_v24, %v530_v34  ;;  %v532_v45 = vpop.f32.mrb[1].mxu1  ;;  %v2373_v34 = vld [vmem:[%s3550_s5 + $0x10] ss:$8 sps:$4 sm:$0xff]  }
 0x137   :  { %v562_v48 = vmul.f32 %v558_v27, %v532_v45  ;;  %v534_v49 = vpop.f32.mrb[2].mxu1 }
 0x138   :  { %v581_v50 = vadd.f32 %v3208_v28, %v561_v43  ;;  %v563_v52 = vmul.f32 %v554_v24, %v534_v49  ;;  %v536_v58 = vpop.f32.mrb[3].mxu1 }
 0x139   :  { %v582_v63 = vadd.f32 %v578_v37, %v562_v48  ;;  %v564_v11 = vmul.f32 %v558_v27, %v536_v58  ;;  %v2378_v48 = vld [vmem:[%s3550_s5 + $0x24] ss:$8 sps:$4 sm:$0xff]  }
 0x13a   :  { %v589_v31 = vmax.f32 %v581_v50, 0.0  ;;  %v583_v57 = vadd.f32 %v3208_v28, %v563_v52 }
 0x13b   :  { %v590_v17 = vmax.f32 %v582_v63, 0.0  ;;  %v584_v21 = vadd.f32 %v578_v37, %v564_v11 }
 0x13c   :  { %v1130_v36 = vrot.slane %v589_v31, 7  ;;  %v591_v16 = vmax.f32 %v583_v57, 0.0  ;;  %v1154_v32 = vrot.slane %v589_v31, 1 }
 0x13d   :  { %v1131_v44 = vrot.slane %v590_v17, 7  ;;  %v1157_v47 = vrot.slane %v590_v17, 1  ;;  %v592_v13 = vmax.f32 %v584_v21, 0.0  ;;  %v540_v20 = vpop.f32.mrb[4].mxu1  ;;  %v2381_v21 = vld [vmem:[%s3550_s5 + $0x34] ss:$8 sps:$4 sm:$0xff]  }
 0x13e   :  { %v3236_v42 = vsel %vm103_vm1, %v3225_v59, %v1130_v36  ;;  %v1132_v46 = vrot.slane %v591_v16, 7  ;;  %v1155_v61 = vrot.slane %v591_v16, 1  ;;  %v565_v26 = vmul.f32 %v554_v24, %v540_v20  ;;  %v542_v55 = vpop.f32.mrb[5].mxu1 }
 0x13f   :  { %v1134_v35 = vrot.slane %v592_v13, 7  ;;  %v1158_v51 = vrot.slane %v592_v13, 1  ;;  %v566_v60 = vmul.f32 %v558_v27, %v542_v55  ;;  %v544_v25 = vpop.f32.mrb[6].mxu1  ;;  %v1237_v38 = vpack.c.bf16 %v592_v13, %v590_v17  ;;  %v2384_v55 = vld [vmem:[%s3550_s5 + $0x44] ss:$8 sps:$4 sm:$0xff]  }
 0x140   :  { %v3239_v53 = vsel %vm103_vm1, %v1130_v36, %v1132_v46  ;;  %v3242_v0 = vsel %vm116_vm2, %v1154_v32, %v1155_v61  ;;  %v3246_v29 = vsel %vm116_vm2, %v1155_v61, %v3225_v59  ;;  %v585_v39 = vadd.f32 %v3208_v28, %v565_v26  ;;  %v546_v1 = vpop.f32.mrb[7].mxu1  ;;  %v3588_v46 = vld [vmem:[#allocation4_spill] sm:$0xff] }
 0x141   :  { %v586_v56 = vadd.f32 %v578_v37, %v566_v60  ;;  %v567_v30 = vmul.f32 %v554_v24, %v544_v25  ;;  %v568_v3 = vmul.f32 %v558_v27, %v546_v1  ;;  %1464 = vmatprep.mubr.bf16.mxu0 %v1237_v38  ;;  %v1236_v4 = vpack.c.bf16 %v591_v16, %v589_v31  ;;  %v3587_v27 = vld [vmem:[#allocation3_spill] sm:$0xff]  ;;  %v2379_v61 = vld [vmem:[%s3550_s5 + $0x30] ss:$8 sps:$4 sm:$0xff]   ;;  %v2393_v38 = vld [vmem:[%s3550_s5 + $0x74] ss:$8 sps:$4 sm:$0xff]  }
 0x142   :  { %v593_v6 = vmax.f32 %v585_v39, 0.0  ;;  %v1135_v7 = vsel %vm103_vm1, %v1131_v44, %v1134_v35  ;;  %v1151_v8 = vsel %vm103_vm1, %v3229_v19, %v1131_v44  ;;  %v1200_v9 = vpack.c.bf16 %v3239_v53, %v3236_v42  ;;  %1040 = vmatmul.mubr.bf16.vlgmr.msra.gmra.mrb[20].mxu1 %v3587_v27  ;;  %v2376_v31 = vld [vmem:[%s3550_s5 + $0x20] ss:$8 sps:$4 sm:$0xff]   ;;  %v2387_v35 = vld [vmem:[%s3550_s5 + $0x54] ss:$8 sps:$4 sm:$0xff]  }
 0x143   :  { %v594_v14 = vmax.f32 %v586_v56, 0.0  ;;  %v587_v15 = vadd.f32 %v3208_v28, %v567_v30  ;;  %v588_v22 = vadd.f32 %v578_v37, %v568_v3  ;;  %1465 = vmatmul.mubr.bf16.vlgmr.msra.gmra.mrb[4].mxu0 %v1236_v4  ;;  %v1201_v24 = vpack.c.bf16 %v1135_v7, %v1151_v8  ;;  %1049 = vmatprep.mubr.bf16.mxu1 %v3582_v54  ;;  %v2390_v60 = vld [vmem:[%s3550_s5 + $0x64] ss:$8 sps:$4 sm:$0xff]   ;;  %v2388_v25 = vld [vmem:[%s3550_s5 + $0x60] ss:$8 sps:$4 sm:$0xff]  }
 0x144   :  { %v1136_v33 = vrot.slane %v593_v6, 7  ;;  %1646 = vmatpush1.bf16.msra.mxu0 %v2370_v2  ;;  %v3266_v40 = vsel %vm116_vm2, %v1157_v47, %v1158_v51  ;;  %v3270_v43 = vsel %vm116_vm2, %v1158_v51, %v3229_v19  ;;  %v1160_v49 = vrot.slane %v593_v6, 1  ;;  %v2385_v51 = vld [vmem:[%s3550_s5 + $0x50] ss:$8 sps:$4 sm:$0xff]   ;;  %v2396_v1 = vld [vmem:[%s3550_s5 + $0x84] ss:$8 sps:$4 sm:$0xff]  }
 0x145   :  { %v1137_v28 = vrot.slane %v594_v14, 7  ;;  %v595_v37 = vmax.f32 %v587_v15, 0.0  ;;  %v596_v45 = vmax.f32 %v588_v22, 0.0  ;;  %1647 = vmatprep.subr.bf16.mxu0 %v2375_v5  ;;  %v1163_v50 = vrot.slane %v594_v14, 1  ;;  %v2391_v39 = vld [vmem:[%s3550_s5 + $0x70] ss:$8 sps:$4 sm:$0xff]  }
 0x146   :  { %v1699_v52 = vpack.c.bf16 %v3270_v43, %v3266_v40  ;;  %v1698_v58 = vpack.c.bf16 %v3246_v29, %v3242_v0  ;;  %v3289_v17 = vsel %vm103_vm1, %v3225_v59, %v1136_v33  ;;  %v2394_v2 = vld [vmem:[%s3550_s5 + $0x80] ss:$8 sps:$4 sm:$0xff]   ;;  %v2399_v56 = vld [vmem:[%s3550_s5 + $0x94] ss:$8 sps:$4 sm:$0xff]   ;;  %v2397_v30 = vld [vmem:[%s3550_s5 + $0x90] ss:$8 sps:$4 sm:$0xff]  }
 0x147   :  { %v1138_v62 = vrot.slane %v595_v37, 7  ;;  %v1161_v63 = vrot.slane %v595_v37, 1  ;;  %v1140_v11 = vrot.slane %v596_v45, 7  ;;  %v1164_v54 = vrot.slane %v596_v45, 1  ;;  %v2402_v3 = vld [vmem:[%s3550_s5 + $0xa4] ss:$8 sps:$4 sm:$0xff]  }
 0x148   :  { %1648 = vmatpush1.bf16.msra.mxu0 %v2373_v34  ;;  %v1239_v23 = vpack.c.bf16 %v596_v45, %v594_v14  ;;  %v1238_v41 = vpack.c.bf16 %v595_v37, %v593_v6  ;;  %v3285_v57 = vsel %vm103_vm1, %v3229_v19, %v1137_v28  ;;  %v2400_v4 = vld [vmem:[%s3550_s5 + $0xa0] ss:$8 sps:$4 sm:$0xff]   ;;  %v2405_v5 = vld [vmem:[%s3550_s5 + $0xb4] ss:$8 sps:$4 sm:$0xff]   ;;  %v2403_v6 = vld [vmem:[%s3550_s5 + $0xb0] ss:$8 sps:$4 sm:$0xff]  }
 0x149   :  { %1649 = vmatprep.subr.bf16.mxu0 %v2378_v48  ;;  %v3295_v36 = vsel %vm103_vm1, %v1137_v28, %v1140_v11  ;;  %v3298_v16 = vsel %vm103_vm1, %v1136_v33, %v1138_v62  ;;  %v3301_v18 = vsel %vm116_vm2, %v1163_v50, %v1164_v54  ;;  %v3305_v32 = vsel %vm116_vm2, %v1164_v54, %v3229_v19  ;;  %v2408_v7 = vld [vmem:[%s3550_s5 + $0xc4] ss:$8 sps:$4 sm:$0xff]   ;;  %v2406_v8 = vld [vmem:[%s3550_s5 + $0xc0] ss:$8 sps:$4 sm:$0xff]   ;;  %v2411_v14 = vld [vmem:[%s3550_s5 + $0xd4] ss:$8 sps:$4 sm:$0xff]  }
 0x14a   :  { %1474 = vmatprep.mubr.bf16.mxu0 %v1239_v23  ;;  %v1203_v44 = vpack.c.bf16 %v3295_v36, %v3285_v57  ;;  %v1202_v47 = vpack.c.bf16 %v3298_v16, %v3289_v17  ;;  %v1701_v13 = vpack.c.bf16 %v3305_v32, %v3301_v18  ;;  %v3314_v20 = vsel %vm116_vm2, %v1160_v49, %v1161_v63  ;;  %v2409_v15 = vld [vmem:[%s3550_s5 + $0xd0] ss:$8 sps:$4 sm:$0xff]   ;;  %v2414_v22 = vld [vmem:[%s3550_s5 + $0xe4] ss:$8 sps:$4 sm:$0xff]   ;;  %v2417_v27 = vld [vmem:[%s3550_s5 + $0xf4] ss:$8 sps:$4 sm:$0xff]  }
 0x14b   :  { %1475 = vmatmul.mubr.bf16.gmra.mrb[8].mxu0 %v1238_v41  ;;  %1050 = vmatmul.mubr.bf16.gmra.mrb[24].mxu1 %v3588_v46  ;;  %v3319_v19 = vsel %vm116_vm2, %v1161_v63, %v3225_v59  ;;  %v2382_v59 = vld [vmem:[%s3550_s5 + $0x40] ss:$8 sps:$4 sm:$0xff]   ;;  %v2415_v33 = vld [vmem:[%s3550_s5 + $0xf0] ss:$8 sps:$4 sm:$0xff]   ;;  %v2420_v34 = vld [vmem:[%s3550_s5 + $0x204] ss:$8 sps:$4 sm:$0xff]  }
 0x14c   :  { %1650 = vmatpush1.bf16.msra.mxu0 %v2376_v31  ;;  %1677 = vmatprep.mubr.bf16.mxu0 %v1201_v24  ;;  %v1700_v26 = vpack.c.bf16 %v3319_v19, %v3314_v20  ;;  %v2412_v24 = vld [vmem:[%s3550_s5 + $0xe0] ss:$8 sps:$4 sm:$0xff]   ;;  %v2423_v37 = vld [vmem:[%s3550_s5 + $0x214] ss:$8 sps:$4 sm:$0xff]   ;;  %v2421_v45 = vld [vmem:[%s3550_s5 + $0x210] ss:$8 sps:$4 sm:$0xff]  }
 0x14d   :  { %1651 = vmatprep.subr.bf16.mxu0 %v2381_v21  ;;  %v2418_v28 = vld [vmem:[%s3550_s5 + $0x200] ss:$8 sps:$4 sm:$0xff]   ;;  %v2426_v48 = vld [vmem:[%s3550_s5 + $0x224] ss:$8 sps:$4 sm:$0xff]   ;;  %v2429_v53 = vld [vmem:[%s3550_s5 + $0x234] ss:$8 sps:$4 sm:$0xff]  }
 0x14e   :  { %v2424_v42 = vld [vmem:[%s3550_s5 + $0x220] ss:$8 sps:$4 sm:$0xff]   ;;  %v2432_v49 = vld [vmem:[%s3550_s5 + $0x244] ss:$8 sps:$4 sm:$0xff]   ;;  %v2435_v40 = vld [vmem:[%s3550_s5 + $0x254] ss:$8 sps:$4 sm:$0xff]  }
 0x14f   :  { %v2430_v50 = vld [vmem:[%s3550_s5 + $0x240] ss:$8 sps:$4 sm:$0xff]   ;;  %v2433_v43 = vld [vmem:[%s3550_s5 + $0x250] ss:$8 sps:$4 sm:$0xff]   ;;  %v2441_v63 = vld [vmem:[%s3550_s5 + $0x274] ss:$8 sps:$4 sm:$0xff]  }
 0x150   :  { %1652 = vmatpush1.bf16.msra.mxu0 %v2379_v61  ;;  %v2436_v62 = vld [vmem:[%s3550_s5 + $0x260] ss:$8 sps:$4 sm:$0xff]   ;;  %v2439_v11 = vld [vmem:[%s3550_s5 + $0x270] ss:$8 sps:$4 sm:$0xff]   ;;  %v2447_v54 = vld [vmem:[%s3550_s5 + $0x284] ss:$8 sps:$4 sm:$0xff]  }
 0x151   :  { %1653 = vmatprep.subr.bf16.mxu0 %v2384_v55  ;;  %v2445_v23 = vld [vmem:[%s3550_s5 + $0x280] ss:$8 sps:$4 sm:$0xff]   ;;  %v2453_v31 = vld [vmem:[%s3550_s5 + $0x294] ss:$8 sps:$4 sm:$0xff]   ;;  %v2451_v41 = vld [vmem:[%s3550_s5 + $0x290] ss:$8 sps:$4 sm:$0xff]  }
 0x152   :  { %v2459_v57 = vld [vmem:[%s3550_s5 + $0x2a4] ss:$8 sps:$4 sm:$0xff]   ;;  %v2457_v17 = vld [vmem:[%s3550_s5 + $0x2a0] ss:$8 sps:$4 sm:$0xff]   ;;  %v2465_v21 = vld [vmem:[%s3550_s5 + $0x2b4] ss:$8 sps:$4 sm:$0xff]  }
 0x153   :  { %v2463_v36 = vld [vmem:[%s3550_s5 + $0x2b0] ss:$8 sps:$4 sm:$0xff]   ;;  %v2471_v16 = vld [vmem:[%s3550_s5 + $0x2c4] ss:$8 sps:$4 sm:$0xff]   ;;  %v1080_v19 = vld [vmem:[%s3555_s10] sm:$0x3] }
 0x154   :  { %1654 = vmatpush1.bf16.msra.mxu0 %v2382_v59  ;;  %v2475_v46 = vld [vmem:[%s3550_s5 + $0x2d0] ss:$8 sps:$4 sm:$0xff]   ;;  %v2483_v61 = vld [vmem:[%s3550_s5 + $0x2e4] ss:$8 sps:$4 sm:$0xff]  }
 0x155   :  { %1655 = vmatprep.subr.bf16.mxu0 %v2387_v35 }
 0x158   :  { %1656 = vmatpush1.bf16.msra.mxu0 %v2385_v51  ;;  %v2481_v51 = vld [vmem:[%s3550_s5 + $0x2e0] ss:$8 sps:$4 sm:$0xff]  }
 0x159   :  { %1657 = vmatprep.subr.bf16.mxu0 %v2390_v60 }
 0x15c   :  { %1658 = vmatpush1.bf16.msra.mxu0 %v2388_v25  ;;  %v2489_v25 = vld [vmem:[%s3550_s5 + $0x2f4] ss:$8 sps:$4 sm:$0xff]  }
 0x15d   :  { %1659 = vmatprep.subr.bf16.mxu0 %v2393_v38  ;;  %v2487_v38 = vld [vmem:[%s3550_s5 + $0x2f0] ss:$8 sps:$4 sm:$0xff]  }
 0x160   :  { %1660 = vmatpush1.bf16.msra.mxu0 %v2391_v39 }
 0x161   :  { %1661 = vmatprep.subr.bf16.mxu0 %v2396_v1 }
 0x164   :  { %1662 = vmatpush1.bf16.msra.mxu0 %v2394_v2 }
 0x165   :  { %1663 = vmatprep.subr.bf16.mxu0 %v2399_v56 }
 0x168   :  { %1664 = vmatpush1.bf16.msra.mxu0 %v2397_v30 }
 0x169   :  { %1665 = vmatprep.subr.bf16.mxu0 %v2402_v3 }
 0x16c   :  { %1666 = vmatpush1.bf16.msra.mxu0 %v2400_v4 }
 0x16d   :  { %1667 = vmatprep.subr.bf16.mxu0 %v2405_v5 }
 0x170   :  { %1668 = vmatpush1.bf16.msra.mxu0 %v2403_v6 }
 0x171   :  { %1669 = vmatprep.subr.bf16.mxu0 %v2408_v7 }
 0x174   :  { %1670 = vmatpush1.bf16.msra.mxu0 %v2406_v8 }
 0x175   :  { %1671 = vmatprep.subr.bf16.mxu0 %v2411_v14  ;;  %v662_v55 = vpop.f32.mrb[8].mxu1  ;;  %v1955_v14 = vld [vmem:[%s3556_s6] sm:$0x3] }
 0x176   :  { %v664_v59 = vpop.f32.mrb[9].mxu1 }
 0x177   :  { %v666_v35 = vpop.f32.mrb[10].mxu1 }
 0x178   :  { %1672 = vmatpush1.bf16.msra.mxu0 %v2409_v15  ;;  %v667_v60 = vpop.f32.mrb[11].mxu1  ;;  %v1975_v15 = vld [vmem:[%s3557_s7] sm:$0x3] }
 0x179   :  { %1673 = vmatprep.subr.bf16.mxu0 %v2414_v22 }
 0x17c   :  { %1674 = vmatpush1.bf16.msra.mxu0 %v2412_v24  ;;  %v1085_v24 = vrot.slane %v1080_v19, %v2959_v12 }
 0x17d   :  { %1675 = vmatprep.subr.bf16.mxu0 %v2417_v27  ;;  %v1960_v27 = vrot.slane %v1955_v14, %v2959_v12 }
 0x180   :  { %1676 = vmatpush1.bf16.msra.mxu0 %v2415_v33 }
 0x181   :  { %1894 = vmatprep.subr.bf16.mxu0 %v2420_v34  ;;  %v1089_v34 = vrot.slane %v1080_v19, %v3194_v10 }
 0x183   :  { %1678 = vmatmul.mubr.bf16.vlgmr.msra.gmra.mrb[4].mxu0 %v1200_v9  ;;  %v2427_v9 = vld [vmem:[%s3550_s5 + $0x230] ss:$8 sps:$4 sm:$0xff]  }
 0x184   :  { %1687 = vmatprep.mubr.bf16.mxu0 %v1203_v44  ;;  %1895 = vmatpush1.bf16.msra.mxu0 %v2418_v28  ;;  %v2469_v44 = vld [vmem:[%s3550_s5 + $0x2c0] ss:$8 sps:$4 sm:$0xff]   ;;  %v1964_v28 = vrot.slane %v1955_v14, %v3194_v10 }
 0x185   :  { %1896 = vmatprep.subr.bf16.mxu0 %v2423_v37  ;;  %v1980_v37 = vrot.slane %v1975_v15, %v2959_v12 }
 0x188   :  { %1897 = vmatpush1.bf16.msra.mxu0 %v2421_v45 }
 0x189   :  { %1898 = vmatprep.subr.bf16.mxu0 %v2426_v48  ;;  %v1984_v48 = vrot.slane %v1975_v15, %v3194_v10 }
 0x18b   :  { %1688 = vmatmul.mubr.bf16.gmra.mrb[8].mxu0 %v1202_v47  ;;  %v2477_v47 = vld [vmem:[%s3550_s5 + $0x2d4] ss:$8 sps:$4 sm:$0xff]  }
 0x18c   :  { %1899 = vmatpush1.bf16.msra.mxu0 %v2424_v42  ;;  %1926 = vmatprep.mubr.bf16.mxu0 %v1699_v52  ;;  %v2438_v52 = vld [vmem:[%s3550_s5 + $0x264] ss:$8 sps:$4 sm:$0xff]  }
 0x18d   :  { %1900 = vmatprep.subr.bf16.mxu0 %v2429_v53 }
 0x190   :  { %1901 = vmatpush1.bf16.msra.mxu0 %v2427_v9 }
 0x191   :  { %1902 = vmatprep.subr.bf16.mxu0 %v2432_v49 }
 0x194   :  { %1903 = vmatpush1.bf16.msra.mxu0 %v2430_v50 }
 0x195   :  { %1904 = vmatprep.subr.bf16.mxu0 %v2435_v40  ;;  %v703_v39 = vpop.f32.mrb[12].mxu1 }
 0x196   :  { %v705_v1 = vpop.f32.mrb[13].mxu1 }
 0x197   :  { %v707_v2 = vpop.f32.mrb[14].mxu1 }
 0x198   :  { %1905 = vmatpush1.bf16.msra.mxu0 %v2433_v43  ;;  %v708_v56 = vpop.f32.mrb[15].mxu1 }
 0x199   :  { %1906 = vmatprep.subr.bf16.mxu0 %v2438_v52 }
 0x19c   :  { %1907 = vmatpush1.bf16.msra.mxu0 %v2436_v62 }
 0x19d   :  { %1908 = vmatprep.subr.bf16.mxu0 %v2441_v63 }
 0x1a0   :  { %1909 = vmatpush1.bf16.msra.mxu0 %v2439_v11 }
 0x1a1   :  { %1910 = vmatprep.subr.bf16.mxu0 %v2447_v54 }
 0x1a4   :  { %1911 = vmatpush1.bf16.msra.mxu0 %v2445_v23 }
 0x1a5   :  { %1912 = vmatprep.subr.bf16.mxu0 %v2453_v31 }
 0x1a8   :  { %1913 = vmatpush1.bf16.msra.mxu0 %v2451_v41 }
 0x1a9   :  { %1914 = vmatprep.subr.bf16.mxu0 %v2459_v57 }
 0x1ac   :  { %1915 = vmatpush1.bf16.msra.mxu0 %v2457_v17 }
 0x1ad   :  { %1916 = vmatprep.subr.bf16.mxu0 %v2465_v21 }
 0x1b0   :  { %1917 = vmatpush1.bf16.msra.mxu0 %v2463_v36 }
 0x1b1   :  { %1918 = vmatprep.subr.bf16.mxu0 %v2471_v16 }
 0x1b4   :  { %1919 = vmatpush1.bf16.msra.mxu0 %v2469_v44 }
 0x1b5   :  { %1920 = vmatprep.subr.bf16.mxu0 %v2477_v47  ;;  %v869_v30 = vpop.f32.mrb[16].mxu1 }
 0x1b6   :  { %v871_v3 = vpop.f32.mrb[17].mxu1 }
 0x1b7   :  { %v873_v4 = vpop.f32.mrb[18].mxu1 }
 0x1b8   :  { %1921 = vmatpush1.bf16.msra.mxu0 %v2475_v46  ;;  %v874_v5 = vpop.f32.mrb[19].mxu1 }
 0x1b9   :  { %1922 = vmatprep.subr.bf16.mxu0 %v2483_v61 }
 0x1bc   :  { %1923 = vmatpush1.bf16.msra.mxu0 %v2481_v51 }
 0x1bd   :  { %1924 = vmatprep.subr.bf16.mxu0 %v2489_v25 }
 0x1c0   :  { %1925 = vmatpush1.bf16.msra.mxu0 %v2487_v38 }
 0x1c3   :  { %1927 = vmatmul.mubr.bf16.vlgmr.msra.gmra.mrb[4].mxu0 %v1698_v58 }
 0x1c4   :  { %1936 = vmatprep.mubr.bf16.mxu0 %v1701_v13  ;;  %v1060_v13 = vld [vmem:[%s3554_s9] sm:$0x3] }
 0x1c5   :  { %v1065_v20 = vrot.slane %v1060_v13, %v2959_v12 }
 0x1cb   :  { %1937 = vmatmul.mubr.bf16.gmra.mrb[8].mxu0 %v1700_v26  ;;  %v1069_v26 = vrot.slane %v1060_v13, %v3194_v10 }
 0x215   :  { %v1041_v6 = vpop.f32.mrb[20].mxu1 }
 0x216   :  { %v1043_v7 = vpop.f32.mrb[21].mxu1  ;;  %v1072_v22 = vmul.f32 %v1065_v20, %v1041_v6 }
 0x217   :  { %v1045_v0 = vpop.f32.mrb[22].mxu1  ;;  %v1073_v33 = vmul.f32 %v1069_v26, %v1043_v7 }
 0x218   :  { %v1047_v29 = vpop.f32.mrb[23].mxu1  ;;  %v1092_v42 = vadd.f32 %v1085_v24, %v1072_v22  ;;  %v1074_v53 = vmul.f32 %v1065_v20, %v1045_v0 }
 0x219   :  { %v1093_v50 = vadd.f32 %v1089_v34, %v1073_v33  ;;  %v1075_v40 = vmul.f32 %v1069_v26, %v1047_v29 }
 0x21a   :  { %v1094_v31 = vadd.f32 %v1085_v24, %v1074_v53 }
 0x21b   :  { %v1095_v17 = vadd.f32 %v1089_v34, %v1075_v40 }
 0x21e   :  { %v1051_v58 = vpop.f32.mrb[24].mxu1 }
 0x21f   :  { %v1053_v8 = vpop.f32.mrb[25].mxu1  ;;  %v1076_v12 = vmul.f32 %v1065_v20, %v1051_v58 }
 0x220   :  { %v1055_v18 = vpop.f32.mrb[26].mxu1  ;;  %v1077_v36 = vmul.f32 %v1069_v26, %v1053_v8 }
 0x221   :  { %v1057_v32 = vpop.f32.mrb[27].mxu1  ;;  %v1078_v61 = vmul.f32 %v1065_v20, %v1055_v18  ;;  %v1096_v35 = vadd.f32 %v1085_v24, %v1076_v12 }
 0x222   :  { %v1079_v51 = vmul.f32 %v1069_v26, %v1057_v32  ;;  %v1097_v1 = vadd.f32 %v1089_v34, %v1077_v36 }
 0x223   :  { %v1098_v0 = vadd.f32 %v1085_v24, %v1078_v61 }
 0x224   :  { %v1099_v8 = vadd.f32 %v1089_v34, %v1079_v51 }
 0x296   :  { %v1928_v45 = vpop.f32.mrb[4].mxu0 }
 0x297   :  { %v1967_v9 = vmul.f32 %v1960_v27, %v1928_v45  ;;  %v1930_v49 = vpop.f32.mrb[5].mxu0 }
 0x298   :  { %v1968_v43 = vmul.f32 %v1964_v28, %v1930_v49  ;;  %v1932_v52 = vpop.f32.mrb[6].mxu0 }
 0x299   :  { %v1987_v62 = vadd.f32 %v1980_v37, %v1967_v9  ;;  %v1969_v63 = vmul.f32 %v1960_v27, %v1932_v52  ;;  %v1934_v11 = vpop.f32.mrb[7].mxu0 }
 0x29a   :  { %v1988_v54 = vadd.f32 %v1984_v48, %v1968_v43  ;;  %v1970_v23 = vmul.f32 %v1964_v28, %v1934_v11 }
 0x29b   :  { %v1995_v41 = vadd.f32 %v1987_v62, %v1092_v42  ;;  %v1989_v57 = vadd.f32 %v1980_v37, %v1969_v63 }
 0x29c   :  { %v1996_v21 = vadd.f32 %v1988_v54, %v1093_v50  ;;  %v1990_v10 = vadd.f32 %v1984_v48, %v1970_v23 }
 0x29d   :  { %v2003_v16 = vmax.f32 %v1995_v41, 0.0  ;;  %v1997_v44 = vadd.f32 %v1989_v57, %v1094_v31 }
 0x29e   :  { %v2004_v47 = vmax.f32 %v1996_v21, 0.0  ;;  %v1998_v46 = vadd.f32 %v1990_v10, %v1095_v17  ;;  %v1938_v55 = vpop.f32.mrb[8].mxu0 }
 0x29f   :  { %v2005_v59 = vmax.f32 %v1997_v44, 0.0  ;;  %v1971_v60 = vmul.f32 %v1960_v27, %v1938_v55  ;;  %v1940_v25 = vpop.f32.mrb[9].mxu0 }
 0x2a0   :  { %v2213_v38 = vpack.c.bf16 %v2004_v47, %v2003_v16  ;;  %v2006_v39 = vmax.f32 %v1998_v46, 0.0  ;;  %v1972_v2 = vmul.f32 %v1964_v28, %v1940_v25  ;;  %v1942_v56 = vpop.f32.mrb[10].mxu0 }
 0x2a1   :  { %v1991_v30 = vadd.f32 %v1980_v37, %v1971_v60  ;;  %v1973_v3 = vmul.f32 %v1960_v27, %v1942_v56  ;;  %v1944_v4 = vpop.f32.mrb[11].mxu0 }
 0x2a2   :  { %2035 = vst [vmem:[%s3558_s11] sm:$0xff] %v2213_v38  ;;  %v2214_v5 = vpack.c.bf16 %v2006_v39, %v2005_v59  ;;  %v1992_v6 = vadd.f32 %v1984_v48, %v1972_v2  ;;  %v1974_v7 = vmul.f32 %v1964_v28, %v1944_v4 }
 0x2a3   :  { %v1999_v29 = vadd.f32 %v1991_v30, %v1096_v35  ;;  %v1993_v58 = vadd.f32 %v1980_v37, %v1973_v3 }
 0x2a4   :  { %2036 = vst [vmem:[%s3558_s11 + $0x8] sm:$0xff] %v2214_v5  ;;  %v2000_v18 = vadd.f32 %v1992_v6, %v1097_v1  ;;  %v1994_v32 = vadd.f32 %v1984_v48, %v1974_v7 }
 0x2a5   :  { %v2007_v13 = vmax.f32 %v1999_v29, 0.0  ;;  %v2001_v20 = vadd.f32 %v1993_v58, %v1098_v0 }
 0x2a6   :  { %v2008_v19 = vmax.f32 %v2000_v18, 0.0  ;;  %v2002_v26 = vadd.f32 %v1994_v32, %v1099_v8 }
 0x2a7   :  { %v2009_v14 = vmax.f32 %v2001_v20, 0.0 }
 0x2a8   :  { %v2215_v15 = vpack.c.bf16 %v2008_v19, %v2007_v13  ;;  %v2010_v22 = vmax.f32 %v2002_v26, 0.0 }
 0x2aa   :  { %2037 = vst [vmem:[%s3558_s11 + $0x10] sm:$0xff] %v2215_v15  ;;  %v2216_v24 = vpack.c.bf16 %v2010_v22, %v2009_v14 }
 0x2ac   :  { %2038 = vst [vmem:[%s3558_s11 + $0x18] sm:$0xff] %v2216_v24 }

// kernel: resnet34_forward.11
= control target key start
LH: loop header
LB: loop body
LE: loop exit
PB: predicated region body
PF: predicated region fallthrough
CT: control target
= control target key end

     0   :  { %v159_v3 = vmov 1983009808   ;;  %v110_v5 = vlaneseq  ;;  %vm144_vm0 = vcmask 1041409   ;;  %vm146_vm1 = vcmask 1043459   ;;  %s201_s0 = inlined_call_operand.vmem [shape: bf16[2,16,512], index: 0, kind: input, shape index: {}]   ;;  %s202_s1 = inlined_call_operand.vmem [shape: f32[2,512], index: 1, kind: output, shape index: {}]  }
   0x1   :  { %v8_v0 = vld [vmem:[%s201_s0] sm:$0xff]  ;;  %v9_v1 = vld [vmem:[%s201_s0 + $0x8] sm:$0xff]  ;;  %v10_v2 = vld [vmem:[%s201_s0 + $0x10] sm:$0xff]  ;;  %v179_v4 = vunpack.c.l.s4 %v159_v3  ;;  %vm148_vm2 = vcmask 1045509   ;;  %vm150_vm3 = vcmask 1047559  }
   0x2   :  { %v11_v6 = vld [vmem:[%s201_s0 + $0x18] sm:$0xff]  ;;  %v12_v7 = vld [vmem:[%s201_s0 + $0x20] sm:$0xff]  ;;  %v13_v8 = vld [vmem:[%s201_s0 + $0x28] sm:$0xff]  ;;  %v16_v9 = vunpack.c.l.bf16 %v8_v0  ;;  %v17_v10 = vunpack.c.h.bf16 %v8_v0  ;;  %v18_v11 = vunpack.c.l.bf16 %v9_v1  ;;  %v19_v12 = vunpack.c.h.bf16 %v9_v1 }
   0x3   :  { %v14_v13 = vld [vmem:[%s201_s0 + $0x30] sm:$0xff]  ;;  %v15_v14 = vld [vmem:[%s201_s0 + $0x38] sm:$0xff]  ;;  %v20_v15 = vunpack.c.l.bf16 %v10_v2  ;;  %v21_v16 = vunpack.c.h.bf16 %v10_v2  ;;  %v22_v17 = vunpack.c.l.bf16 %v11_v6  ;;  %v23_v18 = vunpack.c.h.bf16 %v11_v6 }
   0x4   :  { %v24_v19 = vunpack.c.l.bf16 %v12_v7  ;;  %v25_v20 = vunpack.c.h.bf16 %v12_v7  ;;  %v26_v21 = vunpack.c.l.bf16 %v13_v8  ;;  %v27_v22 = vunpack.c.h.bf16 %v13_v8 }
   0x5   :  { %v28_v23 = vunpack.c.l.bf16 %v14_v13  ;;  %v29_v24 = vunpack.c.h.bf16 %v14_v13  ;;  %v30_v25 = vunpack.c.l.bf16 %v15_v14  ;;  %v31_v26 = vunpack.c.h.bf16 %v15_v14 }
   0x6   :  { %v32_v27 = vadd.f32 %v20_v15, %v16_v9  ;;  %v39_v28 = vadd.f32 %v21_v16, %v17_v10  ;;  %v46_v29 = vadd.f32 %v22_v17, %v18_v11  ;;  %v53_v30 = vadd.f32 %v23_v18, %v19_v12 }
   0x7   :  { %v60_v31 = vadd.f32 %v28_v23, %v24_v19  ;;  %v67_v32 = vadd.f32 %v29_v24, %v25_v20  ;;  %v74_v33 = vadd.f32 %v30_v25, %v26_v21  ;;  %v81_v34 = vadd.f32 %v31_v26, %v27_v22 }
   0x8   :  { %v33_v35 = vrot.slane %v32_v27, 4  ;;  %v40_v36 = vrot.slane %v39_v28, 4  ;;  %v47_v37 = vrot.slane %v46_v29, 4  ;;  %v54_v38 = vrot.slane %v53_v30, 4 }
   0x9   :  { %v61_v39 = vrot.slane %v60_v31, 4  ;;  %v68_v40 = vrot.slane %v67_v32, 4  ;;  %v75_v41 = vrot.slane %v74_v33, 4  ;;  %v82_v42 = vrot.slane %v81_v34, 4 }
   0xa   :  { %v34_v43 = vadd.f32 %v33_v35, %v32_v27  ;;  %v41_v44 = vadd.f32 %v40_v36, %v39_v28  ;;  %v48_v45 = vadd.f32 %v47_v37, %v46_v29  ;;  %v55_v46 = vadd.f32 %v54_v38, %v53_v30 }
   0xb   :  { %v62_v47 = vadd.f32 %v61_v39, %v60_v31  ;;  %v69_v48 = vadd.f32 %v68_v40, %v67_v32  ;;  %v76_v49 = vadd.f32 %v75_v41, %v74_v33  ;;  %v83_v50 = vadd.f32 %v82_v42, %v81_v34 }
   0xc   :  { %v35_v51 = vrot.slane %v34_v43, 2  ;;  %v42_v52 = vrot.slane %v41_v44, 2  ;;  %v49_v53 = vrot.slane %v48_v45, 2  ;;  %v56_v54 = vrot.slane %v55_v46, 2 }
   0xd   :  { %v63_v55 = vrot.slane %v62_v47, 2  ;;  %v70_v56 = vrot.slane %v69_v48, 2  ;;  %v77_v57 = vrot.slane %v76_v49, 2  ;;  %v84_v58 = vrot.slane %v83_v50, 2 }
   0xe   :  { %v36_v59 = vadd.f32 %v35_v51, %v34_v43  ;;  %v43_v60 = vadd.f32 %v42_v52, %v41_v44  ;;  %v50_v61 = vadd.f32 %v49_v53, %v48_v45  ;;  %v57_v62 = vadd.f32 %v56_v54, %v55_v46 }
   0xf   :  { %v64_v63 = vadd.f32 %v63_v55, %v62_v47  ;;  %v71_v0 = vadd.f32 %v70_v56, %v69_v48  ;;  %v78_v1 = vadd.f32 %v77_v57, %v76_v49  ;;  %v85_v2 = vadd.f32 %v84_v58, %v83_v50 }
  0x10   :  { %v37_v3 = vrot.slane %v36_v59, 1  ;;  %v44_v6 = vrot.slane %v43_v60, 1  ;;  %v51_v7 = vrot.slane %v50_v61, 1  ;;  %v58_v8 = vrot.slane %v57_v62, 1 }
  0x11   :  { %v65_v9 = vrot.slane %v64_v63, 1  ;;  %v72_v10 = vrot.slane %v71_v0, 1  ;;  %v79_v11 = vrot.slane %v78_v1, 1  ;;  %v86_v12 = vrot.slane %v85_v2, 1 }
  0x12   :  { %v38_v13 = vadd.f32 %v37_v3, %v36_v59  ;;  %v45_v14 = vadd.f32 %v44_v6, %v43_v60  ;;  %v52_v15 = vadd.f32 %v51_v7, %v50_v61  ;;  %v59_v16 = vadd.f32 %v58_v8, %v57_v62 }
  0x13   :  { %v66_v17 = vadd.f32 %v65_v9, %v64_v63  ;;  %v73_v18 = vadd.f32 %v72_v10, %v71_v0  ;;  %v80_v19 = vadd.f32 %v79_v11, %v78_v1  ;;  %v87_v20 = vadd.f32 %v86_v12, %v85_v2 }
  0x14   :  { %v89_v21 = vmul.f32 0.0625, %v38_v13  ;;  %v90_v22 = vmul.f32 0.0625, %v45_v14  ;;  %v91_v23 = vmul.f32 0.0625, %v52_v15  ;;  %v92_v24 = vmul.f32 0.0625, %v59_v16 }
  0x15   :  { %v93_v25 = vmul.f32 0.0625, %v66_v17  ;;  %v94_v26 = vmul.f32 0.0625, %v73_v18  ;;  %v95_v27 = vmul.f32 0.0625, %v80_v19  ;;  %v96_v28 = vmul.f32 0.0625, %v87_v20 }
  0x16   :  { %v105_v29 = vcombine.low %v89_v21, %v90_v22  ;;  %v106_v30 = vcombine.low %v91_v23, %v92_v24  ;;  %v109_v31 = vunpack.c.0.s8 %v179_v4  ;;  %v111_v32 = vshrl.u32 %v110_v5, 7 }
  0x17   :  { %v122_v33 = vcombine.low %v93_v25, %v94_v26  ;;  %v123_v34 = vcombine.low %v95_v27, %v96_v28 }
  0x18   :  { %v112_v35 = vsub.s32 %v109_v31, %v111_v32 }
  0x1a   :  { %v113_v36 = vrot.slane %v105_v29, %v112_v35  ;;  %v120_v37 = vrot.slane %v106_v30, %v112_v35  ;;  %v130_v38 = vrot.slane %v122_v33, %v112_v35  ;;  %v137_v39 = vrot.slane %v123_v34, %v112_v35 }
  0x1c   :  { %v121_v40 = vcombine.low %v113_v36, %v120_v37  ;;  %v138_v41 = vcombine.low %v130_v38, %v137_v39 }
  0x1e   :  { %v143_v42 = vrot.slane %v138_v41, 7 }
  0x20   :  { %v145_v43 = vsel %vm144_vm0, %v143_v42, %v121_v40 }
  0x21   :  { %v147_v44 = vsel %vm146_vm1, %v143_v42, %v145_v43 }
  0x22   :  { %v149_v45 = vsel %vm148_vm2, %v143_v42, %v147_v44 }
  0x23   :  { %v151_v4 = vsel %vm150_vm3, %v143_v42, %v149_v45 }
  0x24   :  { %153 = vst [vmem:[%s202_s1] sm:$0xff] %v151_v4 }

// kernel: resnet34_forward.10
= control target key start
LH: loop header
LB: loop body
LE: loop exit
PB: predicated region body
PF: predicated region fallthrough
CT: control target
= control target key end

     0   :  { %vm147_vm0 = vcmask 1046528   ;;  %vm122_vm1 = vcmask 1040384   ;;  %vm1835_vm2 = vcmask 1041409   ;;  %s12568_s2 = inlined_call_operand.vmem [shape: bf16[768,512], index: 2, kind: input, shape index: {}]   ;;  %s12569_s0 = inlined_call_operand.vmem [shape: bf16[2,16,256], index: 0, kind: input, shape index: {}]   ;;  %s12570_s1 = inlined_call_operand.vmem [shape: bf16[1,4,2,256], index: 1, kind: input, shape index: {}]   ;;  %s12571_s3 = inlined_call_operand.vmem [shape: f32[1,512], index: 3, kind: input, shape index: {}]   ;;  %s12572_s4 = inlined_call_operand.vmem [shape: f32[1,512], index: 4, kind: input, shape index: {}]   ;;  %s12573_s8 = inlined_call_operand.vmem [shape: bf16[256,512], index: 8, kind: input, shape index: {}]   ;;  %s12574_s5 = inlined_call_operand.vmem [shape: bf16[1536,512], index: 5, kind: input, shape index: {}]   ;;  %s12575_s9 = inlined_call_operand.vmem [shape: f32[1,512], index: 9, kind: input, shape index: {}]   ;;  %s12576_s10 = inlined_call_operand.vmem [shape: f32[1,512], index: 10, kind: input, shape index: {}]   ;;  %s12577_s6 = inlined_call_operand.vmem [shape: f32[1,512], index: 6, kind: input, shape index: {}]   ;;  %s12578_s7 = inlined_call_operand.vmem [shape: f32[1,512], index: 7, kind: input, shape index: {}]   ;;  %s12579_s11 = inlined_call_operand.vmem [shape: bf16[2,16,512], index: 11, kind: output, shape index: {}]  }
   0x1   :  { %v7261_v0 = vld [vmem:[%s12568_s2 + $0x204] ss:$16 sps:$4 sm:$0xff]   ;;  %v7263_v1 = vld [vmem:[%s12568_s2 + $0x20c] ss:$16 sps:$4 sm:$0xff]   ;;  %v7265_v2 = vld [vmem:[%s12568_s2 + $0x200] ss:$16 sps:$4 sm:$0xff]  }
   0x2   :  { %664 = vmatprep.subr.bf16.mxu0 %v7261_v0  ;;  %v7266_v3 = vld [vmem:[%s12568_s2 + $0x208] ss:$16 sps:$4 sm:$0xff]   ;;  %717 = vmatprep.subr.bf16.mxu1 %v7263_v1  ;;  %v7267_v4 = vld [vmem:[%s12568_s2 + $0x224] ss:$16 sps:$4 sm:$0xff]   ;;  %v7269_v5 = vld [vmem:[%s12568_s2 + $0x22c] ss:$16 sps:$4 sm:$0xff]  }
   0x3   :  { %665 = vmatpush1.bf16.msra.mxu0 %v7265_v2  ;;  %718 = vmatpush1.bf16.msra.mxu1 %v7266_v3  ;;  %v7271_v6 = vld [vmem:[%s12568_s2 + $0x220] ss:$16 sps:$4 sm:$0xff]   ;;  %v7272_v7 = vld [vmem:[%s12568_s2 + $0x228] ss:$16 sps:$4 sm:$0xff]   ;;  %v7273_v8 = vld [vmem:[%s12568_s2 + $0x244] ss:$16 sps:$4 sm:$0xff]  }
   0x4   :  { %666 = vmatprep.subr.bf16.mxu0 %v7267_v4  ;;  %719 = vmatprep.subr.bf16.mxu1 %v7269_v5  ;;  %v7275_v9 = vld [vmem:[%s12568_s2 + $0x24c] ss:$16 sps:$4 sm:$0xff]   ;;  %v7277_v10 = vld [vmem:[%s12568_s2 + $0x240] ss:$16 sps:$4 sm:$0xff]   ;;  %v7278_v11 = vld [vmem:[%s12568_s2 + $0x248] ss:$16 sps:$4 sm:$0xff]  }
   0x5   :  { %v7279_v12 = vld [vmem:[%s12568_s2 + $0x264] ss:$16 sps:$4 sm:$0xff]   ;;  %v7281_v13 = vld [vmem:[%s12568_s2 + $0x26c] ss:$16 sps:$4 sm:$0xff]   ;;  %v7283_v14 = vld [vmem:[%s12568_s2 + $0x260] ss:$16 sps:$4 sm:$0xff]  }
   0x6   :  { %v7284_v15 = vld [vmem:[%s12568_s2 + $0x268] ss:$16 sps:$4 sm:$0xff]   ;;  %v7285_v16 = vld [vmem:[%s12568_s2 + $0x284] ss:$16 sps:$4 sm:$0xff]   ;;  %v7287_v17 = vld [vmem:[%s12568_s2 + $0x28c] ss:$16 sps:$4 sm:$0xff]  }
   0x7   :  { %667 = vmatpush1.bf16.msra.mxu0 %v7271_v6  ;;  %720 = vmatpush1.bf16.msra.mxu1 %v7272_v7  ;;  %v7289_v18 = vld [vmem:[%s12568_s2 + $0x280] ss:$16 sps:$4 sm:$0xff]   ;;  %v7290_v19 = vld [vmem:[%s12568_s2 + $0x288] ss:$16 sps:$4 sm:$0xff]   ;;  %v7291_v20 = vld [vmem:[%s12568_s2 + $0x2a4] ss:$16 sps:$4 sm:$0xff]  }
   0x8   :  { %668 = vmatprep.subr.bf16.mxu0 %v7273_v8  ;;  %721 = vmatprep.subr.bf16.mxu1 %v7275_v9  ;;  %v7293_v21 = vld [vmem:[%s12568_s2 + $0x2ac] ss:$16 sps:$4 sm:$0xff]   ;;  %v7295_v22 = vld [vmem:[%s12568_s2 + $0x2a0] ss:$16 sps:$4 sm:$0xff]   ;;  %v7296_v23 = vld [vmem:[%s12568_s2 + $0x2a8] ss:$16 sps:$4 sm:$0xff]  }
   0x9   :  { %v7297_v24 = vld [vmem:[%s12568_s2 + $0x2c4] ss:$16 sps:$4 sm:$0xff]   ;;  %v7299_v25 = vld [vmem:[%s12568_s2 + $0x2cc] ss:$16 sps:$4 sm:$0xff]   ;;  %v7301_v26 = vld [vmem:[%s12568_s2 + $0x2c0] ss:$16 sps:$4 sm:$0xff]  }
   0xa   :  { %v7302_v27 = vld [vmem:[%s12568_s2 + $0x2c8] ss:$16 sps:$4 sm:$0xff]   ;;  %v7303_v28 = vld [vmem:[%s12568_s2 + $0x2e4] ss:$16 sps:$4 sm:$0xff]   ;;  %v7305_v29 = vld [vmem:[%s12568_s2 + $0x2ec] ss:$16 sps:$4 sm:$0xff]  }
   0xb   :  { %669 = vmatpush1.bf16.msra.mxu0 %v7277_v10  ;;  %722 = vmatpush1.bf16.msra.mxu1 %v7278_v11  ;;  %v7307_v30 = vld [vmem:[%s12568_s2 + $0x2e0] ss:$16 sps:$4 sm:$0xff]   ;;  %v7308_v31 = vld [vmem:[%s12568_s2 + $0x2e8] ss:$16 sps:$4 sm:$0xff]   ;;  %v7309_v32 = vld [vmem:[%s12568_s2 + $0x304] ss:$16 sps:$4 sm:$0xff]  }
   0xc   :  { %670 = vmatprep.subr.bf16.mxu0 %v7279_v12  ;;  %723 = vmatprep.subr.bf16.mxu1 %v7281_v13  ;;  %v7311_v33 = vld [vmem:[%s12568_s2 + $0x30c] ss:$16 sps:$4 sm:$0xff]   ;;  %v7313_v34 = vld [vmem:[%s12568_s2 + $0x300] ss:$16 sps:$4 sm:$0xff]   ;;  %v7314_v35 = vld [vmem:[%s12568_s2 + $0x308] ss:$16 sps:$4 sm:$0xff]  }
   0xd   :  { %v7315_v36 = vld [vmem:[%s12568_s2 + $0x324] ss:$16 sps:$4 sm:$0xff]   ;;  %v7317_v37 = vld [vmem:[%s12568_s2 + $0x32c] ss:$16 sps:$4 sm:$0xff]   ;;  %v7319_v38 = vld [vmem:[%s12568_s2 + $0x320] ss:$16 sps:$4 sm:$0xff]  }
   0xe   :  { %v7320_v39 = vld [vmem:[%s12568_s2 + $0x328] ss:$16 sps:$4 sm:$0xff]   ;;  %v7321_v40 = vld [vmem:[%s12568_s2 + $0x344] ss:$16 sps:$4 sm:$0xff]   ;;  %v7323_v41 = vld [vmem:[%s12568_s2 + $0x34c] ss:$16 sps:$4 sm:$0xff]  }
   0xf   :  { %671 = vmatpush1.bf16.msra.mxu0 %v7283_v14  ;;  %724 = vmatpush1.bf16.msra.mxu1 %v7284_v15  ;;  %v7325_v42 = vld [vmem:[%s12568_s2 + $0x340] ss:$16 sps:$4 sm:$0xff]   ;;  %v7326_v43 = vld [vmem:[%s12568_s2 + $0x348] ss:$16 sps:$4 sm:$0xff]   ;;  %v7327_v44 = vld [vmem:[%s12568_s2 + $0x364] ss:$16 sps:$4 sm:$0xff]  }
  0x10   :  { %672 = vmatprep.subr.bf16.mxu0 %v7285_v16  ;;  %725 = vmatprep.subr.bf16.mxu1 %v7287_v17  ;;  %v7329_v45 = vld [vmem:[%s12568_s2 + $0x36c] ss:$16 sps:$4 sm:$0xff]   ;;  %v8632_v46 = vld [vmem:[%s12569_s0] sm:$0xff]  ;;  %v7332_v49 = vld [vmem:[%s12568_s2 + $0x368] ss:$16 sps:$4 sm:$0xff]  }
  0x11   :  { %v8637_v47 = vld [vmem:[%s12569_s0 + $0x8] sm:$0xff]  ;;  %v7331_v48 = vld [vmem:[%s12568_s2 + $0x360] ss:$16 sps:$4 sm:$0xff]   ;;  %v7333_v51 = vld [vmem:[%s12568_s2 + $0x384] ss:$16 sps:$4 sm:$0xff]   ;;  %v12587_v5 = vunpack.c.l.bf16 %v8632_v46 }
  0x12   :  { %v8647_v50 = vcombine.high %v8632_v46, %v8637_v47  ;;  %v7335_v52 = vld [vmem:[%s12568_s2 + $0x38c] ss:$16 sps:$4 sm:$0xff]   ;;  %v7337_v53 = vld [vmem:[%s12568_s2 + $0x380] ss:$16 sps:$4 sm:$0xff]   ;;  %v7338_v54 = vld [vmem:[%s12568_s2 + $0x388] ss:$16 sps:$4 sm:$0xff]   ;;  %v12586_v6 = vunpack.c.l.bf16 %v8637_v47  ;;  %v8709_v7 = vcombine.low %v8632_v46, %v8637_v47 }
  0x13   :  { %673 = vmatpush1.bf16.msra.mxu0 %v7289_v18  ;;  %726 = vmatpush1.bf16.msra.mxu1 %v7290_v19  ;;  %v7339_v55 = vld [vmem:[%s12568_s2 + $0x3a4] ss:$16 sps:$4 sm:$0xff]   ;;  %v7341_v56 = vld [vmem:[%s12568_s2 + $0x3ac] ss:$16 sps:$4 sm:$0xff]   ;;  %v7343_v57 = vld [vmem:[%s12568_s2 + $0x3a0] ss:$16 sps:$4 sm:$0xff]  }
  0x14   :  { %674 = vmatprep.subr.bf16.mxu0 %v7291_v20  ;;  %727 = vmatprep.subr.bf16.mxu1 %v7293_v21  ;;  %12745 = vst [vmem:[#allocation2_spill] sm:$0xff] %v8647_v50  ;;  %v7344_v58 = vld [vmem:[%s12568_s2 + $0x3a8] ss:$16 sps:$4 sm:$0xff]   ;;  %v7345_v59 = vld [vmem:[%s12568_s2 + $0x3c4] ss:$16 sps:$4 sm:$0xff]   ;;  %12746 = vst [vmem:[#allocation3_spill] sm:$0xff] %v8709_v7 }
  0x15   :  { %696 = vmatprep.mubr.bf16.mxu0 %v8647_v50  ;;  %749 = vmatprep.mubr.bf16.mxu1 %v8647_v50  ;;  %v7347_v60 = vld [vmem:[%s12568_s2 + $0x3cc] ss:$16 sps:$4 sm:$0xff]   ;;  %v7349_v61 = vld [vmem:[%s12568_s2 + $0x3c0] ss:$16 sps:$4 sm:$0xff]   ;;  %v7350_v62 = vld [vmem:[%s12568_s2 + $0x3c8] ss:$16 sps:$4 sm:$0xff]  }
  0x16   :  { %v7351_v63 = vld [vmem:[%s12568_s2 + $0x3e4] ss:$16 sps:$4 sm:$0xff]   ;;  %v7353_v0 = vld [vmem:[%s12568_s2 + $0x3ec] ss:$16 sps:$4 sm:$0xff]   ;;  %v7355_v1 = vld [vmem:[%s12568_s2 + $0x3e0] ss:$16 sps:$4 sm:$0xff]  }
  0x17   :  { %675 = vmatpush1.bf16.msra.mxu0 %v7295_v22  ;;  %728 = vmatpush1.bf16.msra.mxu1 %v7296_v23  ;;  %v7356_v2 = vld [vmem:[%s12568_s2 + $0x3e8] ss:$16 sps:$4 sm:$0xff]   ;;  %v7360_v3 = vld [vmem:[%s12568_s2 + $0x4] ss:$16 sps:$4 sm:$0xff]   ;;  %v7363_v4 = vld [vmem:[%s12568_s2 + $0xc] ss:$16 sps:$4 sm:$0xff]  }
  0x18   :  { %676 = vmatprep.subr.bf16.mxu0 %v7297_v24  ;;  %729 = vmatprep.subr.bf16.mxu1 %v7299_v25  ;;  %v148_v8 = vrot.slane %v12587_v5, 1  ;;  %v8715_v9 = vrot.slane %v12586_v6, 1  ;;  %v7358_v10 = vld [vmem:[%s12568_s2] ss:$16 sps:$4 sm:$0xff]   ;;  %v7361_v11 = vld [vmem:[%s12568_s2 + $0x8] ss:$16 sps:$4 sm:$0xff]  }
  0x19   :  { %v7367_v12 = vld [vmem:[%s12568_s2 + $0x24] ss:$16 sps:$4 sm:$0xff]   ;;  %v7370_v13 = vld [vmem:[%s12568_s2 + $0x2c] ss:$16 sps:$4 sm:$0xff]   ;;  %v7365_v15 = vld [vmem:[%s12568_s2 + $0x20] ss:$16 sps:$4 sm:$0xff]  }
  0x1a   :  { %v8731_v14 = vsel %vm147_vm0, %v148_v8, %v8715_v9  ;;  %v7368_v16 = vld [vmem:[%s12568_s2 + $0x28] ss:$16 sps:$4 sm:$0xff]   ;;  %v7373_v17 = vld [vmem:[%s12568_s2 + $0x44] ss:$16 sps:$4 sm:$0xff]   ;;  %v7376_v18 = vld [vmem:[%s12568_s2 + $0x4c] ss:$16 sps:$4 sm:$0xff]  }
  0x1b   :  { %677 = vmatpush1.bf16.msra.mxu0 %v7301_v26  ;;  %730 = vmatpush1.bf16.msra.mxu1 %v7302_v27  ;;  %v7371_v19 = vld [vmem:[%s12568_s2 + $0x40] ss:$16 sps:$4 sm:$0xff]   ;;  %v7374_v20 = vld [vmem:[%s12568_s2 + $0x48] ss:$16 sps:$4 sm:$0xff]   ;;  %v7379_v21 = vld [vmem:[%s12568_s2 + $0x64] ss:$16 sps:$4 sm:$0xff]  }
  0x1c   :  { %678 = vmatprep.subr.bf16.mxu0 %v7303_v28  ;;  %731 = vmatprep.subr.bf16.mxu1 %v7305_v29  ;;  %v7382_v22 = vld [vmem:[%s12568_s2 + $0x6c] ss:$16 sps:$4 sm:$0xff]   ;;  %v7377_v23 = vld [vmem:[%s12568_s2 + $0x60] ss:$16 sps:$4 sm:$0xff]   ;;  %v7380_v24 = vld [vmem:[%s12568_s2 + $0x68] ss:$16 sps:$4 sm:$0xff]   ;;  %v62_v29 = vlaneseq }
  0x1d   :  { %v8768_v25 = vld [vmem:[%s12568_s2 + $0x84] ss:$16 sps:$4 sm:$0xff]   ;;  %v8773_v26 = vld [vmem:[%s12568_s2 + $0x8c] ss:$16 sps:$4 sm:$0xff]   ;;  %v8429_v27 = vmov 1966171168  }
  0x1e   :  { %v60_v28 = vunpack.c.l.s4 %v8429_v27  ;;  %v8983_v27 = vld [vmem:[%s12568_s2 + $0x144] ss:$16 sps:$4 sm:$0xff]   ;;  %v9107_v50 = vld [vmem:[%s12568_s2 + $0x1c8] ss:$16 sps:$4 sm:$0xff]  }
  0x1f   :  { %679 = vmatpush1.bf16.msra.mxu0 %v7307_v30  ;;  %732 = vmatpush1.bf16.msra.mxu1 %v7308_v31  ;;  %v8778_v30 = vld [vmem:[%s12568_s2 + $0x80] ss:$16 sps:$4 sm:$0xff]   ;;  %v8783_v31 = vld [vmem:[%s12568_s2 + $0x88] ss:$16 sps:$4 sm:$0xff]   ;;  %v9089_v5 = vld [vmem:[%s12568_s2 + $0x1c4] ss:$16 sps:$4 sm:$0xff]  }
  0x20   :  { %680 = vmatprep.subr.bf16.mxu0 %v7309_v32  ;;  %733 = vmatprep.subr.bf16.mxu1 %v7311_v33  ;;  %v8788_v32 = vld [vmem:[%s12568_s2 + $0xa4] ss:$16 sps:$4 sm:$0xff]   ;;  %v8793_v33 = vld [vmem:[%s12568_s2 + $0xac] ss:$16 sps:$4 sm:$0xff]   ;;  %12764 = vst [vmem:[#allocation21_spill] sm:$0xff] %v9089_v5  ;;  %12766 = vst [vmem:[#allocation23_spill] sm:$0xff] %v9107_v50 }
  0x23   :  { %681 = vmatpush1.bf16.msra.mxu0 %v7313_v34  ;;  %734 = vmatpush1.bf16.msra.mxu1 %v7314_v35  ;;  %v8798_v34 = vld [vmem:[%s12569_s0 + $0x10] sm:$0xff]  ;;  %v8805_v35 = vld [vmem:[%s12569_s0 + $0x18] sm:$0xff] }
  0x24   :  { %682 = vmatprep.subr.bf16.mxu0 %v7315_v36  ;;  %735 = vmatprep.subr.bf16.mxu1 %v7317_v37  ;;  %v61_v36 = vunpack.c.0.s8 %v60_v28  ;;  %v8807_v37 = vshrl.u32 %v62_v29, 7  ;;  %v8988_v28 = vld [vmem:[%s12568_s2 + $0x14c] ss:$16 sps:$4 sm:$0xff]   ;;  %v8993_v29 = vld [vmem:[%s12568_s2 + $0x140] ss:$16 sps:$4 sm:$0xff]  }
  0x26   :  { %12747 = vst [vmem:[#allocation4_spill] sm:$0xff] %v8807_v37 }
  0x27   :  { %683 = vmatpush1.bf16.msra.mxu0 %v7319_v38  ;;  %736 = vmatpush1.bf16.msra.mxu1 %v7320_v39  ;;  %v8811_v38 = vcombine.high %v8798_v34, %v8805_v35  ;;  %v12581_v39 = vunpack.c.h.bf16 %v8632_v46 }
  0x28   :  { %684 = vmatprep.subr.bf16.mxu0 %v7321_v40  ;;  %737 = vmatprep.subr.bf16.mxu1 %v7323_v41  ;;  %v12580_v40 = vunpack.c.h.bf16 %v8637_v47  ;;  %v8818_v41 = vld [vmem:[%s12568_s2 + $0xa0] ss:$16 sps:$4 sm:$0xff]  }
  0x29   :  { %12748 = vst [vmem:[#allocation5_spill] sm:$0xff] %v8811_v38 }
  0x2b   :  { %685 = vmatpush1.bf16.msra.mxu0 %v7325_v42  ;;  %738 = vmatpush1.bf16.msra.mxu1 %v7326_v43  ;;  %v8823_v42 = vld [vmem:[%s12568_s2 + $0xa8] ss:$16 sps:$4 sm:$0xff]   ;;  %v8827_v43 = vcombine.low %v8798_v34, %v8805_v35 }
  0x2c   :  { %686 = vmatprep.subr.bf16.mxu0 %v7327_v44  ;;  %739 = vmatprep.subr.bf16.mxu1 %v7329_v45  ;;  %v12585_v44 = vunpack.c.h.bf16 %v8798_v34  ;;  %v8835_v45 = vld [vmem:[%s12568_s2 + $0xc4] ss:$16 sps:$4 sm:$0xff]  }
  0x2d   :  { %12749 = vst [vmem:[#allocation6_spill] sm:$0xff] %v8827_v43 }
  0x2f   :  { %687 = vmatpush1.bf16.msra.mxu0 %v7331_v48  ;;  %740 = vmatpush1.bf16.msra.mxu1 %v7332_v49  ;;  %v8842_v48 = vld [vmem:[%s12568_s2 + $0xcc] ss:$16 sps:$4 sm:$0xff]   ;;  %v8845_v49 = vsub.s32 %v61_v36, %v8807_v37  ;;  %v9000_v36 = vld [vmem:[%s12568_s2 + $0x148] ss:$16 sps:$4 sm:$0xff]  }
  0x30   :  { %688 = vmatprep.subr.bf16.mxu0 %v7333_v51  ;;  %741 = vmatprep.subr.bf16.mxu1 %v7335_v52  ;;  %v12584_v51 = vunpack.c.h.bf16 %v8805_v35  ;;  %v12583_v52 = vunpack.c.l.bf16 %v8798_v34 }
  0x31   :  { %12750 = vst [vmem:[#allocation7_spill] sm:$0xff] %v8845_v49 }
  0x33   :  { %689 = vmatpush1.bf16.msra.mxu0 %v7337_v53  ;;  %742 = vmatpush1.bf16.msra.mxu1 %v7338_v54  ;;  %v157_v53 = vrot.slane %v12585_v44, 1  ;;  %v51_v54 = vld [vmem:[%s12570_s1 + $0x2] sm:$0x3]  ;;  %v9080_v44 = vld [vmem:[%s12568_s2 + $0x1a8] ss:$16 sps:$4 sm:$0xff]  }
  0x34   :  { %690 = vmatprep.subr.bf16.mxu0 %v7339_v55  ;;  %743 = vmatprep.subr.bf16.mxu1 %v7341_v56  ;;  %v8857_v55 = vsub.s32 1, %v8807_v37  ;;  %v124_v56 = vrot.slane %v12581_v39, 7  ;;  %v9060_v39 = vld [vmem:[%s12568_s2 + $0x1a4] ss:$16 sps:$4 sm:$0xff]   ;;  %12763 = vst [vmem:[#allocation20_spill] sm:$0xff] %v9080_v44 }
  0x35   :  { %12760 = vst [vmem:[#allocation17_spill] sm:$0xff] %v9060_v39 }
  0x36   :  { %12751 = vst [vmem:[#allocation8_spill] sm:$0xff] %v8857_v55 }
  0x37   :  { %691 = vmatpush1.bf16.msra.mxu0 %v7343_v57  ;;  %744 = vmatpush1.bf16.msra.mxu1 %v7344_v58  ;;  %v127_v57 = vrot.slane %v12580_v40, 7  ;;  %v12582_v58 = vunpack.c.l.bf16 %v8805_v35  ;;  %v9053_v40 = vsub.s32 0, %v8807_v37 }
  0x38   :  { %692 = vmatprep.subr.bf16.mxu0 %v7345_v59  ;;  %745 = vmatprep.subr.bf16.mxu1 %v7347_v60  ;;  %v8867_v59 = vld [vmem:[%s12568_s2 + $0xc0] ss:$16 sps:$4 sm:$0xff]   ;;  %v55_v60 = vunpack.c.l.bf16 %v51_v54  ;;  %v9012_v54 = vld [vmem:[%s12568_s2 + $0x16c] ss:$16 sps:$4 sm:$0xff]  }
  0x39   :  { %12753 = vst [vmem:[#allocation10_spill] sm:$0xff] %v9012_v54 }
  0x3b   :  { %693 = vmatpush1.bf16.msra.mxu0 %v7349_v61  ;;  %746 = vmatpush1.bf16.msra.mxu1 %v7350_v62  ;;  %v8873_v61 = vrot.slane %v12584_v51, 1  ;;  %v154_v62 = vrot.slane %v12583_v52, 1  ;;  %v9073_v51 = vld [vmem:[%s12568_s2 + $0x1a0] ss:$16 sps:$4 sm:$0xff]  }
  0x3c   :  { %694 = vmatprep.subr.bf16.mxu0 %v7351_v63  ;;  %747 = vmatprep.subr.bf16.mxu1 %v7353_v0  ;;  %v8882_v63 = vld [vmem:[%s12568_s2 + $0xc8] ss:$16 sps:$4 sm:$0xff]   ;;  %v8886_v0 = vrot.slane %v12582_v58, 1  ;;  %v9065_v58 = vld [vmem:[%s12568_s2 + $0x1ac] ss:$16 sps:$4 sm:$0xff]   ;;  %12762 = vst [vmem:[#allocation19_spill] sm:$0xff] %v9073_v51 }
  0x3d   :  { %12761 = vst [vmem:[#allocation18_spill] sm:$0xff] %v9065_v58 }
  0x3e   :  { %v8909_v8 = vsel %vm147_vm0, %v154_v62, %v8886_v0  ;;  %v9036_v62 = vld [vmem:[%s12568_s2 + $0x18c] ss:$16 sps:$4 sm:$0xff]  }
  0x3f   :  { %695 = vmatpush1.bf16.msra.mxu0 %v7355_v1  ;;  %748 = vmatpush1.bf16.msra.mxu1 %v7356_v2  ;;  %v8893_v1 = vld [vmem:[%s12568_s2 + $0xe4] ss:$16 sps:$4 sm:$0xff]   ;;  %v8898_v2 = vld [vmem:[%s12568_s2 + $0xec] ss:$16 sps:$4 sm:$0xff]   ;;  %12757 = vst [vmem:[#allocation14_spill] sm:$0xff] %v9036_v62 }
  0x40   :  { %1090 = vmatprep.subr.bf16.mxu0 %v7360_v3  ;;  %1143 = vmatprep.subr.bf16.mxu1 %v7363_v4  ;;  %v8901_v3 = vrot.slane %v55_v60, %v8845_v49  ;;  %v8905_v4 = vsel %vm147_vm0, %v157_v53, %v8873_v61  ;;  %v9007_v53 = vld [vmem:[%s12568_s2 + $0x164] ss:$16 sps:$4 sm:$0xff]  }
  0x41   :  { %12752 = vst [vmem:[#allocation9_spill] sm:$0xff] %v9007_v53  ;;  %v9031_v60 = vld [vmem:[%s12568_s2 + $0x184] ss:$16 sps:$4 sm:$0xff]  }
  0x42   :  { %697 = vmatmul.mubr.bf16.vlgmr.msra.gmra.mrb[0].mxu0 %v8709_v7  ;;  %750 = vmatmul.mubr.bf16.vlgmr.msra.gmra.mrb[0].mxu1 %v8709_v7  ;;  %12756 = vst [vmem:[#allocation13_spill] sm:$0xff] %v9031_v60  ;;  %v97_v37 = vrot.slane %v8901_v3, %v9053_v40 }
  0x43   :  { %1091 = vmatpush1.bf16.msra.mxu0 %v7358_v10  ;;  %1144 = vmatpush1.bf16.msra.mxu1 %v7361_v11  ;;  %v8914_v10 = vld [vmem:[%s12568_s2 + $0xe0] ss:$16 sps:$4 sm:$0xff]   ;;  %v8918_v11 = vrot.slane %v8901_v3, %v8857_v55 }
  0x44   :  { %1092 = vmatprep.subr.bf16.mxu0 %v7367_v12  ;;  %1145 = vmatprep.subr.bf16.mxu1 %v7370_v13  ;;  %v128_v12 = vsel %vm122_vm1, %v124_v56, %v127_v57  ;;  %v8926_v13 = vld [vmem:[%s12568_s2 + $0xe8] ss:$16 sps:$4 sm:$0xff]  }
  0x45   :  { %706 = vmatprep.mubr.bf16.mxu0 %v8811_v38  ;;  %759 = vmatprep.mubr.bf16.mxu1 %v8811_v38  ;;  %v9024_v57 = vld [vmem:[%s12568_s2 + $0x168] ss:$16 sps:$4 sm:$0xff]   ;;  %v9099_v38 = vld [vmem:[%s12568_s2 + $0x1c0] ss:$16 sps:$4 sm:$0xff]  }
  0x46   :  { %12755 = vst [vmem:[#allocation12_spill] sm:$0xff] %v9024_v57 }
  0x47   :  { %1093 = vmatpush1.bf16.msra.mxu0 %v7365_v15  ;;  %1146 = vmatpush1.bf16.msra.mxu1 %v7368_v16  ;;  %v8933_v15 = vld [vmem:[%s12568_s2 + $0x104] ss:$16 sps:$4 sm:$0xff]   ;;  %v8938_v16 = vld [vmem:[%s12568_s2 + $0x10c] ss:$16 sps:$4 sm:$0xff]  }
  0x48   :  { %1094 = vmatprep.subr.bf16.mxu0 %v7373_v17  ;;  %1147 = vmatprep.subr.bf16.mxu1 %v7376_v18  ;;  %v144_v17 = vsel %vm122_vm1, %v8918_v11, %v124_v56  ;;  %v9017_v56 = vld [vmem:[%s12568_s2 + $0x160] ss:$16 sps:$4 sm:$0xff]  }
  0x49   :  { %v193_v18 = vpack.c.bf16 %v128_v12, %v144_v17  ;;  %12754 = vst [vmem:[#allocation11_spill] sm:$0xff] %v9017_v56  ;;  %v75_v12 = vcombine.high %v8901_v3, %v8901_v3  ;;  %v9043_v17 = vld [vmem:[%s12568_s2 + $0x180] ss:$16 sps:$4 sm:$0xff]   ;;  %v9125_v3 = vld [vmem:[%s12568_s2 + $0x1ec] ss:$16 sps:$4 sm:$0xff]  }
  0x4a   :  { %707 = vmatmul.mubr.bf16.gmra.mrb[4].mxu0 %v8827_v43  ;;  %760 = vmatmul.mubr.bf16.gmra.mrb[4].mxu1 %v8827_v43  ;;  %12758 = vst [vmem:[#allocation15_spill] sm:$0xff] %v9043_v17  ;;  %v9094_v43 = vld [vmem:[%s12568_s2 + $0x1cc] ss:$16 sps:$4 sm:$0xff]   ;;  %12770 = vst [vmem:[#allocation25_spill] sm:$0xff] %v9125_v3 }
  0x4b   :  { %1095 = vmatpush1.bf16.msra.mxu0 %v7371_v19  ;;  %1148 = vmatpush1.bf16.msra.mxu1 %v7374_v20  ;;  %v8945_v19 = vld [vmem:[%s12568_s2 + $0x100] ss:$16 sps:$4 sm:$0xff]   ;;  %v8952_v20 = vld [vmem:[%s12568_s2 + $0x108] ss:$16 sps:$4 sm:$0xff]   ;;  %v9068_v52 = vrot.slane %v75_v12, %v9053_v40  ;;  %12765 = vst [vmem:[#allocation22_spill] sm:$0xff] %v9094_v43  ;;  %v109_v7 = vrot.slane %v75_v12, %v8857_v55 }
  0x4c   :  { %1096 = vmatprep.subr.bf16.mxu0 %v7379_v21  ;;  %1149 = vmatprep.subr.bf16.mxu1 %v7382_v22  ;;  %v8959_v21 = vld [vmem:[%s12568_s2 + $0x124] ss:$16 sps:$4 sm:$0xff]   ;;  %v8964_v22 = vld [vmem:[%s12568_s2 + $0x12c] ss:$16 sps:$4 sm:$0xff]  }
  0x4d   :  { %1122 = vmatprep.mubr.bf16.mxu0 %v193_v18  ;;  %1175 = vmatprep.mubr.bf16.mxu1 %v193_v18  ;;  %v9050_v18 = vld [vmem:[%s12568_s2 + $0x188] ss:$16 sps:$4 sm:$0xff]   ;;  %v1824_v6 = vpack.c.bf16 %v9068_v52, %v9068_v52  ;;  %v9120_v12 = vld [vmem:[%s12568_s2 + $0x1e4] ss:$16 sps:$4 sm:$0xff]  }
  0x4e   :  { %12759 = vst [vmem:[#allocation16_spill] sm:$0xff] %v9050_v18  ;;  %12769 = vst [vmem:[#allocation24_spill] sm:$0xff] %v9120_v12 }
  0x4f   :  { %1097 = vmatpush1.bf16.msra.mxu0 %v7377_v23  ;;  %1150 = vmatpush1.bf16.msra.mxu1 %v7380_v24  ;;  %v8969_v23 = vld [vmem:[%s12568_s2 + $0x120] ss:$16 sps:$4 sm:$0xff]   ;;  %v8976_v24 = vld [vmem:[%s12568_s2 + $0x128] ss:$16 sps:$4 sm:$0xff]  }
  0x50   :  { %1098 = vmatprep.subr.bf16.mxu0 %v8768_v25  ;;  %1151 = vmatprep.subr.bf16.mxu1 %v8773_v26 }
  0x53   :  { %1099 = vmatpush1.bf16.msra.mxu0 %v8778_v30  ;;  %1152 = vmatpush1.bf16.msra.mxu1 %v8783_v31 }
  0x54   :  { %1100 = vmatprep.subr.bf16.mxu0 %v8788_v32  ;;  %1153 = vmatprep.subr.bf16.mxu1 %v8793_v33 }
  0x57   :  { %1101 = vmatpush1.bf16.msra.mxu0 %v8818_v41  ;;  %1154 = vmatpush1.bf16.msra.mxu1 %v8823_v42 }
  0x58   :  { %1102 = vmatprep.subr.bf16.mxu0 %v8835_v45  ;;  %1155 = vmatprep.subr.bf16.mxu1 %v8842_v48 }
  0x5b   :  { %1103 = vmatpush1.bf16.msra.mxu0 %v8867_v59  ;;  %1156 = vmatpush1.bf16.msra.mxu1 %v8882_v63 }
  0x5c   :  { %1104 = vmatprep.subr.bf16.mxu0 %v8893_v1  ;;  %1157 = vmatprep.subr.bf16.mxu1 %v8898_v2 }
  0x5f   :  { %1105 = vmatpush1.bf16.msra.mxu0 %v8914_v10  ;;  %1158 = vmatpush1.bf16.msra.mxu1 %v8926_v13 }
  0x60   :  { %1106 = vmatprep.subr.bf16.mxu0 %v8933_v15  ;;  %1159 = vmatprep.subr.bf16.mxu1 %v8938_v16 }
  0x63   :  { %1107 = vmatpush1.bf16.msra.mxu0 %v8945_v19  ;;  %1160 = vmatpush1.bf16.msra.mxu1 %v8952_v20 }
  0x64   :  { %1108 = vmatprep.subr.bf16.mxu0 %v8959_v21  ;;  %1161 = vmatprep.subr.bf16.mxu1 %v8964_v22 }
  0x67   :  { %1109 = vmatpush1.bf16.msra.mxu0 %v8969_v23  ;;  %1162 = vmatpush1.bf16.msra.mxu1 %v8976_v24 }
  0x68   :  { %1110 = vmatprep.subr.bf16.mxu0 %v8983_v27  ;;  %1163 = vmatprep.subr.bf16.mxu1 %v8988_v28 }
  0x6b   :  { %1111 = vmatpush1.bf16.msra.mxu0 %v8993_v29  ;;  %1164 = vmatpush1.bf16.msra.mxu1 %v9000_v36 }
  0x6c   :  { %1112 = vmatprep.subr.bf16.mxu0 %v9007_v53  ;;  %1165 = vmatprep.subr.bf16.mxu1 %v9012_v54  ;;  %v1822_v53 = vpack.c.bf16 %v97_v37, %v97_v37 }
  0x6f   :  { %1113 = vmatpush1.bf16.msra.mxu0 %v9017_v56  ;;  %1166 = vmatpush1.bf16.msra.mxu1 %v9024_v57  ;;  %v9143_v57 = vld [vmem:[%s12568_s2 + $0x1e8] ss:$16 sps:$4 sm:$0xff]  }
  0x70   :  { %1114 = vmatprep.subr.bf16.mxu0 %v9031_v60  ;;  %1167 = vmatprep.subr.bf16.mxu1 %v9036_v62  ;;  %v1832_v62 = vunpack.c.l.b16 %v1824_v6  ;;  %v12771_v6 = vunpack.c.h.bf16 %v8798_v34 }
  0x72   :  { %v1834_v54 = vrot.slane %v1832_v62, 7 }
  0x73   :  { %1115 = vmatpush1.bf16.msra.mxu0 %v9043_v17  ;;  %1168 = vmatpush1.bf16.msra.mxu1 %v9050_v18  ;;  %v12768_v18 = vunpack.c.l.bf16 %v8637_v47 }
  0x74   :  { %1116 = vmatprep.subr.bf16.mxu0 %v9060_v39  ;;  %1169 = vmatprep.subr.bf16.mxu1 %v9065_v58  ;;  %v12767_v58 = vunpack.c.l.bf16 %v8632_v46 }
  0x75   :  { %v125_v17 = vrot.slane %v12768_v18, 7  ;;  %v130_v18 = vrot.slane %v12771_v6, 7 }
  0x76   :  { %v123_v39 = vrot.slane %v12767_v58, 7  ;;  %v9130_v58 = vld [vmem:[%s12568_s2 + $0x1e0] ss:$16 sps:$4 sm:$0xff]  }
  0x77   :  { %1117 = vmatpush1.bf16.msra.mxu0 %v9073_v51  ;;  %1170 = vmatpush1.bf16.msra.mxu1 %v9080_v44  ;;  %v1825_v44 = vpack.c.bf16 %v109_v7, %v109_v7  ;;  %v1823_v51 = vpack.c.bf16 %v8918_v11, %v8918_v11 }
  0x78   :  { %1118 = vmatprep.subr.bf16.mxu0 %v9089_v5  ;;  %1171 = vmatprep.subr.bf16.mxu1 %v9094_v43  ;;  %v12772_v43 = vunpack.c.h.bf16 %v8805_v35  ;;  %v126_v56 = vsel %vm122_vm1, %v123_v39, %v125_v17  ;;  %v143_v6 = vsel %vm122_vm1, %v97_v37, %v123_v39  ;;  %v1830_v39 = vunpack.c.l.b16 %v1822_v53  ;;  %v9162_v37 = vld [vmem:[%s12568_s2 + $0x400] ss:$16 sps:$4 sm:$0xff]  }
  0x79   :  { %v1833_v60 = vunpack.c.l.b16 %v1825_v44  ;;  %v9157_v44 = vld [vmem:[%s12568_s2 + $0x40c] ss:$16 sps:$4 sm:$0xff]   ;;  %v1831_v11 = vunpack.c.l.b16 %v1823_v51  ;;  %v192_v62 = vpack.c.bf16 %v126_v56, %v143_v6  ;;  %v9174_v51 = vld [vmem:[%s12568_s2 + $0x408] ss:$16 sps:$4 sm:$0xff]   ;;  %v12773_v53 = vunpack.c.l.bf16 %v8798_v34 }
  0x7a   :  { %v133_v5 = vrot.slane %v12772_v43, 7  ;;  %v9152_v43 = vld [vmem:[%s12568_s2 + $0x404] ss:$16 sps:$4 sm:$0xff]   ;;  %v12774_v56 = vunpack.c.l.bf16 %v8805_v35  ;;  %v9193_v34 = vld [vmem:[%s12568_s2 + $0x42c] ss:$16 sps:$4 sm:$0xff]  }
  0x7b   :  { %1119 = vmatpush1.bf16.msra.mxu0 %v9099_v38  ;;  %1172 = vmatpush1.bf16.msra.mxu1 %v9107_v50  ;;  %v1837_v17 = vrot.slane %v1833_v60, 7  ;;  %v129_v60 = vrot.slane %v12773_v53, 7  ;;  %v52_v35 = vld [vmem:[%s12570_s1 + $0x4] sm:$0x3] }
  0x7c   :  { %1120 = vmatprep.subr.bf16.mxu0 %v9120_v12  ;;  %1173 = vmatprep.subr.bf16.mxu1 %v9125_v3  ;;  %v134_v3 = vsel %vm122_vm1, %v130_v18, %v133_v5  ;;  %v146_v12 = vsel %vm122_vm1, %v109_v7, %v130_v18  ;;  %v131_v5 = vrot.slane %v12774_v56, 7  ;;  %v9181_v7 = vsel %vm1835_vm2, %v1834_v54, %v1830_v39  ;;  %v9188_v18 = vld [vmem:[%s12568_s2 + $0x424] ss:$16 sps:$4 sm:$0xff]   ;;  %v9207_v56 = vld [vmem:[%s12568_s2 + $0x420] ss:$16 sps:$4 sm:$0xff]  }
  0x7d   :  { %v9167_v50 = vsel %vm1835_vm2, %v1837_v17, %v1831_v11  ;;  %v195_v54 = vpack.c.bf16 %v134_v3, %v146_v12  ;;  %v56_v6 = vunpack.c.l.bf16 %v52_v35  ;;  %v12775_v11 = vunpack.c.h.bf16 %v8632_v46  ;;  %v9212_v12 = vld [vmem:[%s12568_s2 + $0x428] ss:$16 sps:$4 sm:$0xff]   ;;  %v9228_v35 = vld [vmem:[%s12568_s2 + $0x44c] ss:$16 sps:$4 sm:$0xff]  }
  0x7e   :  { %v12776_v39 = vunpack.c.h.bf16 %v8637_v47  ;;  %12777 = vst [vmem:[#allocation26_spill] sm:$0xff] %v9212_v12  ;;  %v132_v46 = vsel %vm122_vm1, %v129_v60, %v131_v5  ;;  %v145_v47 = vsel %vm122_vm1, %v9068_v52, %v129_v60  ;;  %12779 = vst [vmem:[#allocation28_spill] sm:$0xff] %v9228_v35 }
  0x7f   :  { %1121 = vmatpush1.bf16.msra.mxu0 %v9130_v58  ;;  %1174 = vmatpush1.bf16.msra.mxu1 %v9143_v57  ;;  %v151_v17 = vrot.slane %v12775_v11, 1  ;;  %v83_v3 = vrot.slane %v56_v6, %v8845_v49  ;;  %v194_v6 = vpack.c.bf16 %v132_v46, %v145_v47  ;;  %v9262_v47 = vld [vmem:[%s12568_s2 + $0x464] ss:$16 sps:$4 sm:$0xff]  }
  0x80   :  { %1584 = vmatprep.subr.bf16.mxu0 %v9152_v43  ;;  %1637 = vmatprep.subr.bf16.mxu1 %v9157_v44  ;;  %v152_v53 = vrot.slane %v12776_v39, 1  ;;  %v9242_v39 = vld [vmem:[%s12568_s2 + $0x440] ss:$16 sps:$4 sm:$0xff]  }
  0x81   :  { %v9231_v52 = vrot.slane %v83_v3, %v8857_v55  ;;  %v9234_v60 = vrot.slane %v83_v3, %v9053_v40  ;;  %v84_v5 = vcombine.high %v83_v3, %v83_v3 }
  0x82   :  { %1123 = vmatmul.mubr.bf16.vlgmr.msra.gmra.mrb[0].mxu0 %v192_v62  ;;  %1176 = vmatmul.mubr.bf16.vlgmr.msra.gmra.mrb[0].mxu1 %v192_v62  ;;  %v9223_v62 = vld [vmem:[%s12568_s2 + $0x444] ss:$16 sps:$4 sm:$0xff]   ;;  %v153_v11 = vsel %vm147_vm0, %v151_v17, %v152_v53 }
  0x83   :  { %1585 = vmatpush1.bf16.msra.mxu0 %v9162_v37  ;;  %1638 = vmatpush1.bf16.msra.mxu1 %v9174_v51  ;;  %12778 = vst [vmem:[#allocation27_spill] sm:$0xff] %v9223_v62  ;;  %12780 = vst [vmem:[#allocation29_spill] sm:$0xff] %v9231_v52  ;;  %v189_v3 = vsel %vm147_vm0, %v152_v53, %v9231_v52  ;;  %v188_v17 = vsel %vm147_vm0, %v8715_v9, %v9234_v60  ;;  %v9267_v53 = vld [vmem:[%s12568_s2 + $0x46c] ss:$16 sps:$4 sm:$0xff]  }
  0x84   :  { %1586 = vmatprep.subr.bf16.mxu0 %v9188_v18  ;;  %1639 = vmatprep.subr.bf16.mxu1 %v9193_v34  ;;  %12781 = vst [vmem:[#allocation30_spill] sm:$0xff] %v9234_v60  ;;  %v9255_v46 = vrot.slane %v84_v5, %v8857_v55  ;;  %v9270_v52 = vpack.c.bf16 %v188_v17, %v8731_v14  ;;  %v9289_v14 = vld [vmem:[%s12568_s2 + $0x460] ss:$16 sps:$4 sm:$0xff]   ;;  %v9357_v17 = vld [vmem:[%s12568_s2 + $0x4cc] ss:$16 sps:$4 sm:$0xff]  }
  0x85   :  { %1132 = vmatprep.mubr.bf16.mxu0 %v195_v54  ;;  %1185 = vmatprep.mubr.bf16.mxu1 %v195_v54  ;;  %v9247_v54 = vld [vmem:[%s12568_s2 + $0x448] ss:$16 sps:$4 sm:$0xff]   ;;  %v9273_v9 = vrot.slane %v84_v5, %v9053_v40  ;;  %v1197_v60 = vpack.c.bf16 %v189_v3, %v153_v11  ;;  %v9333_v5 = vld [vmem:[%s12568_s2 + $0x4ac] ss:$16 sps:$4 sm:$0xff]   ;;  %v9352_v3 = vld [vmem:[%s12568_s2 + $0x4c4] ss:$16 sps:$4 sm:$0xff]  }
  0x86   :  { %12782 = vst [vmem:[#allocation31_spill] sm:$0xff] %v9255_v46  ;;  %v9345_v11 = vld [vmem:[%s12568_s2 + $0x4a8] ss:$16 sps:$4 sm:$0xff]   ;;  %12786 = vst [vmem:[#allocation35_spill] sm:$0xff] %v9352_v3 }
  0x87   :  { %1587 = vmatpush1.bf16.msra.mxu0 %v9207_v56  ;;  %1640 = vmatpush1.bf16.msra.mxu1 %v9212_v12  ;;  %12783 = vst [vmem:[#allocation32_spill] sm:$0xff] %v9273_v9  ;;  %v190_v12 = vsel %vm147_vm0, %v8886_v0, %v9273_v9  ;;  %v9304_v0 = vld [vmem:[%s12568_s2 + $0x484] ss:$16 sps:$4 sm:$0xff]   ;;  %12785 = vst [vmem:[#allocation34_spill] sm:$0xff] %v9345_v11  ;;  %v9364_v9 = vld [vmem:[%s12568_s2 + $0x4c0] ss:$16 sps:$4 sm:$0xff]  }
  0x88   :  { %1588 = vmatprep.subr.bf16.mxu0 %v9223_v62  ;;  %1641 = vmatprep.subr.bf16.mxu1 %v9228_v35  ;;  %v191_v35 = vsel %vm147_vm0, %v8873_v61, %v9255_v46  ;;  %v9294_v61 = vld [vmem:[%s12568_s2 + $0x468] ss:$16 sps:$4 sm:$0xff]   ;;  %12787 = vst [vmem:[#allocation36_spill] sm:$0xff] %v9357_v17  ;;  %12788 = vst [vmem:[#allocation37_spill] sm:$0xff] %v9364_v9 }
  0x89   :  { %v9279_v62 = vpack.c.bf16 %v191_v35, %v8905_v4  ;;  %v9297_v4 = vpack.c.bf16 %v190_v12, %v8909_v8  ;;  %v9309_v35 = vld [vmem:[%s12568_s2 + $0x48c] ss:$16 sps:$4 sm:$0xff]   ;;  %v9316_v8 = vld [vmem:[%s12568_s2 + $0x480] ss:$16 sps:$4 sm:$0xff]   ;;  %v9321_v12 = vld [vmem:[%s12568_s2 + $0x488] ss:$16 sps:$4 sm:$0xff]  }
  0x8a   :  { %1133 = vmatmul.mubr.bf16.gmra.mrb[4].mxu0 %v194_v6  ;;  %1186 = vmatmul.mubr.bf16.gmra.mrb[4].mxu1 %v194_v6  ;;  %v9340_v6 = vld [vmem:[%s12568_s2 + $0x4a0] ss:$16 sps:$4 sm:$0xff]   ;;  %v9369_v46 = vld [vmem:[%s12568_s2 + $0x4c8] ss:$16 sps:$4 sm:$0xff]  }
  0x8b   :  { %1589 = vmatpush1.bf16.msra.mxu0 %v9242_v39  ;;  %1642 = vmatpush1.bf16.msra.mxu1 %v9247_v54  ;;  %12784 = vst [vmem:[#allocation33_spill] sm:$0xff] %v9340_v6  ;;  %12789 = vst [vmem:[#allocation38_spill] sm:$0xff] %v9369_v46 }
  0x8c   :  { %1590 = vmatprep.subr.bf16.mxu0 %v9262_v47  ;;  %1643 = vmatprep.subr.bf16.mxu1 %v9267_v53 }
  0x8d   :  { %1616 = vmatprep.mubr.bf16.mxu0 %v1197_v60  ;;  %1669 = vmatprep.mubr.bf16.mxu1 %v1197_v60  ;;  %v9328_v60 = vld [vmem:[%s12568_s2 + $0x4a4] ss:$16 sps:$4 sm:$0xff]  }
  0x8f   :  { %1591 = vmatpush1.bf16.msra.mxu0 %v9289_v14  ;;  %1644 = vmatpush1.bf16.msra.mxu1 %v9294_v61 }
  0x90   :  { %1592 = vmatprep.subr.bf16.mxu0 %v9304_v0  ;;  %1645 = vmatprep.subr.bf16.mxu1 %v9309_v35 }
  0x93   :  { %1593 = vmatpush1.bf16.msra.mxu0 %v9316_v8  ;;  %1646 = vmatpush1.bf16.msra.mxu1 %v9321_v12 }
  0x94   :  { %1594 = vmatprep.subr.bf16.mxu0 %v9328_v60  ;;  %1647 = vmatprep.subr.bf16.mxu1 %v9333_v5 }
  0x97   :  { %1595 = vmatpush1.bf16.msra.mxu0 %v9340_v6  ;;  %1648 = vmatpush1.bf16.msra.mxu1 %v9345_v11  ;;  %v9376_v6 = vld [vmem:[%s12568_s2 + $0x4e4] ss:$16 sps:$4 sm:$0xff]   ;;  %v9381_v11 = vld [vmem:[%s12568_s2 + $0x4ec] ss:$16 sps:$4 sm:$0xff]  }
  0x98   :  { %1596 = vmatprep.subr.bf16.mxu0 %v9352_v3  ;;  %1649 = vmatprep.subr.bf16.mxu1 %v9357_v17  ;;  %12790 = vst [vmem:[#allocation39_spill] sm:$0xff] %v9376_v6  ;;  %12791 = vst [vmem:[#allocation40_spill] sm:$0xff] %v9381_v11  ;;  %v9388_v3 = vld [vmem:[%s12568_s2 + $0x4e0] ss:$16 sps:$4 sm:$0xff]   ;;  %v9393_v17 = vld [vmem:[%s12568_s2 + $0x4e8] ss:$16 sps:$4 sm:$0xff]  }
  0x99   :  { %12792 = vst [vmem:[#allocation41_spill] sm:$0xff] %v9388_v3  ;;  %12793 = vst [vmem:[#allocation42_spill] sm:$0xff] %v9393_v17 }
  0x9b   :  { %1597 = vmatpush1.bf16.msra.mxu0 %v9364_v9  ;;  %1650 = vmatpush1.bf16.msra.mxu1 %v9369_v46  ;;  %v9400_v9 = vld [vmem:[%s12568_s2 + $0x504] ss:$16 sps:$4 sm:$0xff]   ;;  %v9405_v46 = vld [vmem:[%s12568_s2 + $0x50c] ss:$16 sps:$4 sm:$0xff]  }
  0x9c   :  { %1598 = vmatprep.subr.bf16.mxu0 %v9376_v6  ;;  %1651 = vmatprep.subr.bf16.mxu1 %v9381_v11  ;;  %12794 = vst [vmem:[#allocation43_spill] sm:$0xff] %v9400_v9  ;;  %12795 = vst [vmem:[#allocation44_spill] sm:$0xff] %v9405_v46  ;;  %v9412_v6 = vld [vmem:[%s12568_s2 + $0x500] ss:$16 sps:$4 sm:$0xff]   ;;  %v9417_v11 = vld [vmem:[%s12568_s2 + $0x508] ss:$16 sps:$4 sm:$0xff]  }
  0x9d   :  { %12796 = vst [vmem:[#allocation45_spill] sm:$0xff] %v9412_v6  ;;  %12797 = vst [vmem:[#allocation46_spill] sm:$0xff] %v9417_v11 }
  0x9f   :  { %1599 = vmatpush1.bf16.msra.mxu0 %v9388_v3  ;;  %1652 = vmatpush1.bf16.msra.mxu1 %v9393_v17  ;;  %v9424_v3 = vld [vmem:[%s12568_s2 + $0x524] ss:$16 sps:$4 sm:$0xff]   ;;  %v9429_v17 = vld [vmem:[%s12568_s2 + $0x52c] ss:$16 sps:$4 sm:$0xff]  }
  0xa0   :  { %1600 = vmatprep.subr.bf16.mxu0 %v9400_v9  ;;  %1653 = vmatprep.subr.bf16.mxu1 %v9405_v46  ;;  %12798 = vst [vmem:[#allocation47_spill] sm:$0xff] %v9424_v3  ;;  %12799 = vst [vmem:[#allocation48_spill] sm:$0xff] %v9429_v17  ;;  %v9436_v9 = vld [vmem:[%s12568_s2 + $0x520] ss:$16 sps:$4 sm:$0xff]   ;;  %v9441_v46 = vld [vmem:[%s12568_s2 + $0x528] ss:$16 sps:$4 sm:$0xff]  }
  0xa1   :  { %12800 = vst [vmem:[#allocation49_spill] sm:$0xff] %v9436_v9  ;;  %12801 = vst [vmem:[#allocation50_spill] sm:$0xff] %v9441_v46 }
  0xa3   :  { %1601 = vmatpush1.bf16.msra.mxu0 %v9412_v6  ;;  %1654 = vmatpush1.bf16.msra.mxu1 %v9417_v11  ;;  %v9448_v6 = vld [vmem:[%s12568_s2 + $0x544] ss:$16 sps:$4 sm:$0xff]   ;;  %v9453_v11 = vld [vmem:[%s12568_s2 + $0x54c] ss:$16 sps:$4 sm:$0xff]  }
  0xa4   :  { %1602 = vmatprep.subr.bf16.mxu0 %v9424_v3  ;;  %1655 = vmatprep.subr.bf16.mxu1 %v9429_v17  ;;  %12802 = vst [vmem:[#allocation51_spill] sm:$0xff] %v9448_v6  ;;  %12803 = vst [vmem:[#allocation52_spill] sm:$0xff] %v9453_v11  ;;  %v9460_v3 = vld [vmem:[%s12568_s2 + $0x540] ss:$16 sps:$4 sm:$0xff]   ;;  %v9465_v17 = vld [vmem:[%s12568_s2 + $0x548] ss:$16 sps:$4 sm:$0xff]  }
  0xa5   :  { %12804 = vst [vmem:[#allocation53_spill] sm:$0xff] %v9460_v3  ;;  %12805 = vst [vmem:[#allocation54_spill] sm:$0xff] %v9465_v17 }
  0xa7   :  { %1603 = vmatpush1.bf16.msra.mxu0 %v9436_v9  ;;  %1656 = vmatpush1.bf16.msra.mxu1 %v9441_v46  ;;  %v9472_v9 = vld [vmem:[%s12568_s2 + $0x564] ss:$16 sps:$4 sm:$0xff]   ;;  %v9477_v46 = vld [vmem:[%s12568_s2 + $0x56c] ss:$16 sps:$4 sm:$0xff]  }
  0xa8   :  { %1604 = vmatprep.subr.bf16.mxu0 %v9448_v6  ;;  %1657 = vmatprep.subr.bf16.mxu1 %v9453_v11  ;;  %12806 = vst [vmem:[#allocation55_spill] sm:$0xff] %v9472_v9  ;;  %12807 = vst [vmem:[#allocation56_spill] sm:$0xff] %v9477_v46  ;;  %v9484_v6 = vld [vmem:[%s12568_s2 + $0x560] ss:$16 sps:$4 sm:$0xff]   ;;  %v9489_v11 = vld [vmem:[%s12568_s2 + $0x568] ss:$16 sps:$4 sm:$0xff]  }
  0xa9   :  { %12808 = vst [vmem:[#allocation57_spill] sm:$0xff] %v9484_v6  ;;  %12809 = vst [vmem:[#allocation58_spill] sm:$0xff] %v9489_v11 }
  0xab   :  { %1605 = vmatpush1.bf16.msra.mxu0 %v9460_v3  ;;  %1658 = vmatpush1.bf16.msra.mxu1 %v9465_v17  ;;  %v9496_v3 = vld [vmem:[%s12568_s2 + $0x584] ss:$16 sps:$4 sm:$0xff]   ;;  %v9501_v17 = vld [vmem:[%s12568_s2 + $0x58c] ss:$16 sps:$4 sm:$0xff]  }
  0xac   :  { %1606 = vmatprep.subr.bf16.mxu0 %v9472_v9  ;;  %1659 = vmatprep.subr.bf16.mxu1 %v9477_v46  ;;  %12810 = vst [vmem:[#allocation59_spill] sm:$0xff] %v9496_v3  ;;  %12811 = vst [vmem:[#allocation60_spill] sm:$0xff] %v9501_v17  ;;  %v9508_v9 = vld [vmem:[%s12568_s2 + $0x580] ss:$16 sps:$4 sm:$0xff]   ;;  %v9513_v46 = vld [vmem:[%s12568_s2 + $0x588] ss:$16 sps:$4 sm:$0xff]  }
  0xad   :  { %12812 = vst [vmem:[#allocation61_spill] sm:$0xff] %v9508_v9  ;;  %12813 = vst [vmem:[#allocation62_spill] sm:$0xff] %v9513_v46 }
  0xaf   :  { %1607 = vmatpush1.bf16.msra.mxu0 %v9484_v6  ;;  %1660 = vmatpush1.bf16.msra.mxu1 %v9489_v11  ;;  %v9520_v6 = vld [vmem:[%s12568_s2 + $0x5a4] ss:$16 sps:$4 sm:$0xff]   ;;  %v9525_v11 = vld [vmem:[%s12568_s2 + $0x5ac] ss:$16 sps:$4 sm:$0xff]  }
  0xb0   :  { %1608 = vmatprep.subr.bf16.mxu0 %v9496_v3  ;;  %1661 = vmatprep.subr.bf16.mxu1 %v9501_v17  ;;  %12814 = vst [vmem:[#allocation63_spill] sm:$0xff] %v9520_v6  ;;  %12815 = vst [vmem:[#allocation64_spill] sm:$0xff] %v9525_v11  ;;  %v9532_v3 = vld [vmem:[%s12568_s2 + $0x5a0] ss:$16 sps:$4 sm:$0xff]   ;;  %v9537_v17 = vld [vmem:[%s12568_s2 + $0x5a8] ss:$16 sps:$4 sm:$0xff]  }
  0xb1   :  { %12816 = vst [vmem:[#allocation65_spill] sm:$0xff] %v9532_v3  ;;  %12817 = vst [vmem:[#allocation66_spill] sm:$0xff] %v9537_v17 }
  0xb3   :  { %1609 = vmatpush1.bf16.msra.mxu0 %v9508_v9  ;;  %1662 = vmatpush1.bf16.msra.mxu1 %v9513_v46  ;;  %v9544_v9 = vld [vmem:[%s12568_s2 + $0x5c4] ss:$16 sps:$4 sm:$0xff]   ;;  %v9549_v46 = vld [vmem:[%s12568_s2 + $0x5cc] ss:$16 sps:$4 sm:$0xff]  }
  0xb4   :  { %1610 = vmatprep.subr.bf16.mxu0 %v9520_v6  ;;  %1663 = vmatprep.subr.bf16.mxu1 %v9525_v11  ;;  %12818 = vst [vmem:[#allocation67_spill] sm:$0xff] %v9544_v9  ;;  %12819 = vst [vmem:[#allocation68_spill] sm:$0xff] %v9549_v46  ;;  %v9556_v6 = vld [vmem:[%s12568_s2 + $0x5c0] ss:$16 sps:$4 sm:$0xff]   ;;  %v9561_v11 = vld [vmem:[%s12568_s2 + $0x5c8] ss:$16 sps:$4 sm:$0xff]  }
  0xb5   :  { %12820 = vst [vmem:[#allocation69_spill] sm:$0xff] %v9556_v6  ;;  %12821 = vst [vmem:[#allocation70_spill] sm:$0xff] %v9561_v11 }
  0xb7   :  { %1611 = vmatpush1.bf16.msra.mxu0 %v9532_v3  ;;  %1664 = vmatpush1.bf16.msra.mxu1 %v9537_v17  ;;  %v9568_v3 = vld [vmem:[%s12568_s2 + $0x5e4] ss:$16 sps:$4 sm:$0xff]   ;;  %v9573_v17 = vld [vmem:[%s12568_s2 + $0x5ec] ss:$16 sps:$4 sm:$0xff]  }
  0xb8   :  { %1612 = vmatprep.subr.bf16.mxu0 %v9544_v9  ;;  %1665 = vmatprep.subr.bf16.mxu1 %v9549_v46  ;;  %v9580_v9 = vld [vmem:[%s12568_s2 + $0x5e0] ss:$16 sps:$4 sm:$0xff]   ;;  %v9585_v46 = vld [vmem:[%s12568_s2 + $0x5e8] ss:$16 sps:$4 sm:$0xff]  }
  0xb9   :  { %12822 = vst [vmem:[#allocation71_spill] sm:$0xff] %v9585_v46 }
  0xbb   :  { %1613 = vmatpush1.bf16.msra.mxu0 %v9556_v6  ;;  %1666 = vmatpush1.bf16.msra.mxu1 %v9561_v11  ;;  %v9594_v11 = vld [vmem:[%s12568_s2 + $0x204] ss:$16 sps:$4 sm:$0xff]   ;;  %v9600_v6 = vld [vmem:[%s12568_s2 + $0x20c] ss:$16 sps:$4 sm:$0xff]  }
  0xbc   :  { %1614 = vmatprep.subr.bf16.mxu0 %v9568_v3  ;;  %1667 = vmatprep.subr.bf16.mxu1 %v9573_v17  ;;  %12823 = vst [vmem:[#allocation72_spill] sm:$0xff] %v9594_v11  ;;  %12824 = vst [vmem:[#allocation73_spill] sm:$0xff] %v9600_v6 }
  0xbf   :  { %1615 = vmatpush1.bf16.msra.mxu0 %v9580_v9  ;;  %1668 = vmatpush1.bf16.msra.mxu1 %v9585_v46  ;;  %v9608_v46 = vld [vmem:[%s12568_s2 + $0x200] ss:$16 sps:$4 sm:$0xff]  }
  0xc0   :  { %1843 = vmatprep.subr.bf16.mxu0 %v9594_v11  ;;  %1884 = vmatprep.subr.bf16.mxu1 %v9600_v6  ;;  %12825 = vst [vmem:[#allocation74_spill] sm:$0xff] %v9608_v46  ;;  %v9614_v11 = vld [vmem:[%s12568_s2 + $0x208] ss:$16 sps:$4 sm:$0xff]   ;;  %v9620_v6 = vld [vmem:[%s12568_s2 + $0x224] ss:$16 sps:$4 sm:$0xff]  }
  0xc1   :  { %12826 = vst [vmem:[#allocation75_spill] sm:$0xff] %v9614_v11  ;;  %12827 = vst [vmem:[#allocation76_spill] sm:$0xff] %v9620_v6 }
  0xc2   :  { %1617 = vmatmul.mubr.bf16.vlgmr.msra.gmra.mrb[0].mxu0 %v9270_v52  ;;  %1670 = vmatmul.mubr.bf16.vlgmr.msra.gmra.mrb[0].mxu1 %v9270_v52  ;;  %v9626_v52 = vld [vmem:[%s12568_s2 + $0x22c] ss:$16 sps:$4 sm:$0xff]  }
  0xc3   :  { %1844 = vmatpush1.bf16.msra.mxu0 %v9608_v46  ;;  %1885 = vmatpush1.bf16.msra.mxu1 %v9614_v11  ;;  %12828 = vst [vmem:[#allocation77_spill] sm:$0xff] %v9626_v52  ;;  %v9634_v11 = vld [vmem:[%s12568_s2 + $0x220] ss:$16 sps:$4 sm:$0xff]  }
  0xc4   :  { %1845 = vmatprep.subr.bf16.mxu0 %v9620_v6  ;;  %1886 = vmatprep.subr.bf16.mxu1 %v9626_v52  ;;  %12829 = vst [vmem:[#allocation78_spill] sm:$0xff] %v9634_v11  ;;  %v9640_v6 = vld [vmem:[%s12568_s2 + $0x228] ss:$16 sps:$4 sm:$0xff]   ;;  %v9646_v52 = vld [vmem:[%s12568_s2 + $0x244] ss:$16 sps:$4 sm:$0xff]  }
  0xc5   :  { %1626 = vmatprep.mubr.bf16.mxu0 %v9279_v62  ;;  %1679 = vmatprep.mubr.bf16.mxu1 %v9279_v62  ;;  %12830 = vst [vmem:[#allocation79_spill] sm:$0xff] %v9640_v6  ;;  %12831 = vst [vmem:[#allocation80_spill] sm:$0xff] %v9646_v52  ;;  %v9652_v62 = vld [vmem:[%s12568_s2 + $0x24c] ss:$16 sps:$4 sm:$0xff]  }
  0xc6   :  { %12832 = vst [vmem:[#allocation81_spill] sm:$0xff] %v9652_v62 }
  0xc7   :  { %1846 = vmatpush1.bf16.msra.mxu0 %v9634_v11  ;;  %1887 = vmatpush1.bf16.msra.mxu1 %v9640_v6  ;;  %v1840_v11 = vpack.c.b16 %v9167_v50, %v9167_v50  ;;  %v9662_v6 = vld [vmem:[%s12568_s2 + $0x240] ss:$16 sps:$4 sm:$0xff]   ;;  %v9674_v50 = vld [vmem:[%s12568_s2 + $0x264] ss:$16 sps:$4 sm:$0xff]  }
  0xc8   :  { %1847 = vmatprep.subr.bf16.mxu0 %v9646_v52  ;;  %1888 = vmatprep.subr.bf16.mxu1 %v9652_v62  ;;  %12833 = vst [vmem:[#allocation82_spill] sm:$0xff] %v9662_v6  ;;  %v9668_v52 = vld [vmem:[%s12568_s2 + $0x248] ss:$16 sps:$4 sm:$0xff]   ;;  %12835 = vst [vmem:[#allocation84_spill] sm:$0xff] %v9674_v50 }
  0xc9   :  { %12834 = vst [vmem:[#allocation83_spill] sm:$0xff] %v9668_v52  ;;  %v9815_v62 = vld [vmem:[%s12568_s2 + $0x308] ss:$16 sps:$4 sm:$0xff]  }
  0xca   :  { %1627 = vmatmul.mubr.bf16.gmra.mrb[4].mxu0 %v9297_v4  ;;  %1680 = vmatmul.mubr.bf16.gmra.mrb[4].mxu1 %v9297_v4  ;;  %v9680_v4 = vld [vmem:[%s12568_s2 + $0x26c] ss:$16 sps:$4 sm:$0xff]   ;;  %12858 = vst [vmem:[#allocation107_spill] sm:$0xff] %v9815_v62 }
  0xcb   :  { %1848 = vmatpush1.bf16.msra.mxu0 %v9662_v6  ;;  %1889 = vmatpush1.bf16.msra.mxu1 %v9668_v52  ;;  %12836 = vst [vmem:[#allocation85_spill] sm:$0xff] %v9680_v4  ;;  %v9686_v52 = vld [vmem:[%s12568_s2 + $0x260] ss:$16 sps:$4 sm:$0xff]  }
  0xcc   :  { %1849 = vmatprep.subr.bf16.mxu0 %v9674_v50  ;;  %1890 = vmatprep.subr.bf16.mxu1 %v9680_v4  ;;  %12837 = vst [vmem:[#allocation86_spill] sm:$0xff] %v9686_v52  ;;  %v9692_v50 = vld [vmem:[%s12568_s2 + $0x268] ss:$16 sps:$4 sm:$0xff]   ;;  %v9698_v4 = vld [vmem:[%s12568_s2 + $0x284] ss:$16 sps:$4 sm:$0xff]  }
  0xcd   :  { %1875 = vmatprep.mubr.bf16.mxu0 %v1840_v11  ;;  %1916 = vmatprep.mubr.bf16.mxu1 %v1840_v11  ;;  %12838 = vst [vmem:[#allocation87_spill] sm:$0xff] %v9692_v50  ;;  %12839 = vst [vmem:[#allocation88_spill] sm:$0xff] %v9698_v4  ;;  %v9704_v11 = vld [vmem:[%s12568_s2 + $0x28c] ss:$16 sps:$4 sm:$0xff]  }
  0xce   :  { %12840 = vst [vmem:[#allocation89_spill] sm:$0xff] %v9704_v11 }
  0xcf   :  { %1850 = vmatpush1.bf16.msra.mxu0 %v9686_v52  ;;  %1891 = vmatpush1.bf16.msra.mxu1 %v9692_v50  ;;  %v9710_v52 = vld [vmem:[%s12568_s2 + $0x280] ss:$16 sps:$4 sm:$0xff]   ;;  %v9716_v50 = vld [vmem:[%s12568_s2 + $0x288] ss:$16 sps:$4 sm:$0xff]  }
  0xd0   :  { %1851 = vmatprep.subr.bf16.mxu0 %v9698_v4  ;;  %1892 = vmatprep.subr.bf16.mxu1 %v9704_v11  ;;  %12841 = vst [vmem:[#allocation90_spill] sm:$0xff] %v9710_v52  ;;  %12842 = vst [vmem:[#allocation91_spill] sm:$0xff] %v9716_v50  ;;  %v9722_v4 = vld [vmem:[%s12568_s2 + $0x2a4] ss:$16 sps:$4 sm:$0xff]   ;;  %v9728_v11 = vld [vmem:[%s12568_s2 + $0x2ac] ss:$16 sps:$4 sm:$0xff]  }
  0xd1   :  { %12843 = vst [vmem:[#allocation92_spill] sm:$0xff] %v9722_v4  ;;  %12844 = vst [vmem:[#allocation93_spill] sm:$0xff] %v9728_v11 }
  0xd3   :  { %1852 = vmatpush1.bf16.msra.mxu0 %v9710_v52  ;;  %1893 = vmatpush1.bf16.msra.mxu1 %v9716_v50  ;;  %v9734_v52 = vld [vmem:[%s12568_s2 + $0x2a0] ss:$16 sps:$4 sm:$0xff]   ;;  %v9740_v50 = vld [vmem:[%s12568_s2 + $0x2a8] ss:$16 sps:$4 sm:$0xff]  }
  0xd4   :  { %1853 = vmatprep.subr.bf16.mxu0 %v9722_v4  ;;  %1894 = vmatprep.subr.bf16.mxu1 %v9728_v11  ;;  %12845 = vst [vmem:[#allocation94_spill] sm:$0xff] %v9734_v52  ;;  %12846 = vst [vmem:[#allocation95_spill] sm:$0xff] %v9740_v50  ;;  %v9746_v4 = vld [vmem:[%s12568_s2 + $0x2c4] ss:$16 sps:$4 sm:$0xff]   ;;  %v9752_v11 = vld [vmem:[%s12568_s2 + $0x2cc] ss:$16 sps:$4 sm:$0xff]  }
  0xd5   :  { %12847 = vst [vmem:[#allocation96_spill] sm:$0xff] %v9746_v4  ;;  %12848 = vst [vmem:[#allocation97_spill] sm:$0xff] %v9752_v11 }
  0xd7   :  { %1854 = vmatpush1.bf16.msra.mxu0 %v9734_v52  ;;  %1895 = vmatpush1.bf16.msra.mxu1 %v9740_v50  ;;  %v9758_v52 = vld [vmem:[%s12568_s2 + $0x2c0] ss:$16 sps:$4 sm:$0xff]   ;;  %v9764_v50 = vld [vmem:[%s12568_s2 + $0x2c8] ss:$16 sps:$4 sm:$0xff]  }
  0xd8   :  { %1855 = vmatprep.subr.bf16.mxu0 %v9746_v4  ;;  %1896 = vmatprep.subr.bf16.mxu1 %v9752_v11  ;;  %12849 = vst [vmem:[#allocation98_spill] sm:$0xff] %v9758_v52  ;;  %12850 = vst [vmem:[#allocation99_spill] sm:$0xff] %v9764_v50  ;;  %v9770_v4 = vld [vmem:[%s12568_s2 + $0x2e4] ss:$16 sps:$4 sm:$0xff]   ;;  %v9776_v11 = vld [vmem:[%s12568_s2 + $0x2ec] ss:$16 sps:$4 sm:$0xff]  }
  0xd9   :  { %12851 = vst [vmem:[#allocation100_spill] sm:$0xff] %v9770_v4  ;;  %12852 = vst [vmem:[#allocation101_spill] sm:$0xff] %v9776_v11 }
  0xdb   :  { %1856 = vmatpush1.bf16.msra.mxu0 %v9758_v52  ;;  %1897 = vmatpush1.bf16.msra.mxu1 %v9764_v50  ;;  %v9782_v52 = vld [vmem:[%s12568_s2 + $0x2e0] ss:$16 sps:$4 sm:$0xff]   ;;  %v9788_v50 = vld [vmem:[%s12568_s2 + $0x2e8] ss:$16 sps:$4 sm:$0xff]  }
  0xdc   :  { %1857 = vmatprep.subr.bf16.mxu0 %v9770_v4  ;;  %1898 = vmatprep.subr.bf16.mxu1 %v9776_v11  ;;  %12853 = vst [vmem:[#allocation102_spill] sm:$0xff] %v9782_v52  ;;  %12854 = vst [vmem:[#allocation103_spill] sm:$0xff] %v9788_v50  ;;  %v50_v4 = vld [vmem:[%s12570_s1] sm:$0x3]  ;;  %v9797_v11 = vld [vmem:[%s12568_s2 + $0x304] ss:$16 sps:$4 sm:$0xff]  }
  0xdd   :  { %12855 = vst [vmem:[#allocation104_spill] sm:$0xff] %v9797_v11  ;;  %v54_v6 = vunpack.c.l.bf16 %v50_v4  ;;  %v9827_v4 = vld [vmem:[%s12568_s2 + $0x32c] ss:$16 sps:$4 sm:$0xff]  }
  0xde   :  { %12860 = vst [vmem:[#allocation109_spill] sm:$0xff] %v9827_v4 }
  0xdf   :  { %1858 = vmatpush1.bf16.msra.mxu0 %v9782_v52  ;;  %1899 = vmatpush1.bf16.msra.mxu1 %v9788_v50  ;;  %v9803_v52 = vld [vmem:[%s12568_s2 + $0x30c] ss:$16 sps:$4 sm:$0xff]   ;;  %v9809_v50 = vld [vmem:[%s12568_s2 + $0x300] ss:$16 sps:$4 sm:$0xff]  }
  0xe0   :  { %1859 = vmatprep.subr.bf16.mxu0 %v9797_v11  ;;  %12856 = vst [vmem:[#allocation105_spill] sm:$0xff] %v9803_v52  ;;  %1900 = vmatprep.subr.bf16.mxu1 %v9803_v52  ;;  %12857 = vst [vmem:[#allocation106_spill] sm:$0xff] %v9809_v50  ;;  %v9821_v11 = vld [vmem:[%s12568_s2 + $0x324] ss:$16 sps:$4 sm:$0xff]   ;;  %v9908_v52 = vld [vmem:[%s12568_s2 + $0x38c] ss:$16 sps:$4 sm:$0xff]  }
  0xe1   :  { %12859 = vst [vmem:[#allocation108_spill] sm:$0xff] %v9821_v11  ;;  %12872 = vst [vmem:[#allocation121_spill] sm:$0xff] %v9908_v52 }
  0xe3   :  { %1860 = vmatpush1.bf16.msra.mxu0 %v9809_v50  ;;  %1901 = vmatpush1.bf16.msra.mxu1 %v9815_v62  ;;  %v9831_v50 = vrot.slane %v54_v6, %v8845_v49  ;;  %v9836_v62 = vld [vmem:[%s12568_s2 + $0x320] ss:$16 sps:$4 sm:$0xff]   ;;  %v9854_v6 = vld [vmem:[%s12568_s2 + $0x34c] ss:$16 sps:$4 sm:$0xff]  }
  0xe4   :  { %1861 = vmatprep.subr.bf16.mxu0 %v9821_v11  ;;  %1902 = vmatprep.subr.bf16.mxu1 %v9827_v4  ;;  %12861 = vst [vmem:[#allocation110_spill] sm:$0xff] %v9836_v62  ;;  %v9842_v11 = vld [vmem:[%s12568_s2 + $0x328] ss:$16 sps:$4 sm:$0xff]   ;;  %v9848_v4 = vld [vmem:[%s12568_s2 + $0x344] ss:$16 sps:$4 sm:$0xff]   ;;  %12864 = vst [vmem:[#allocation113_spill] sm:$0xff] %v9854_v6 }
  0xe5   :  { %12862 = vst [vmem:[#allocation111_spill] sm:$0xff] %v9842_v11  ;;  %12863 = vst [vmem:[#allocation112_spill] sm:$0xff] %v9848_v4  ;;  %v9859_v49 = vcombine.high %v9831_v50, %v9831_v50 }
  0xe7   :  { %1862 = vmatpush1.bf16.msra.mxu0 %v9836_v62  ;;  %1903 = vmatpush1.bf16.msra.mxu1 %v9842_v11  ;;  %v9864_v11 = vld [vmem:[%s12568_s2 + $0x340] ss:$16 sps:$4 sm:$0xff]   ;;  %v9882_v62 = vld [vmem:[%s12568_s2 + $0x36c] ss:$16 sps:$4 sm:$0xff]  }
  0xe8   :  { %1863 = vmatprep.subr.bf16.mxu0 %v9848_v4  ;;  %1904 = vmatprep.subr.bf16.mxu1 %v9854_v6  ;;  %12865 = vst [vmem:[#allocation114_spill] sm:$0xff] %v9864_v11  ;;  %v9870_v4 = vld [vmem:[%s12568_s2 + $0x348] ss:$16 sps:$4 sm:$0xff]   ;;  %v9876_v6 = vld [vmem:[%s12568_s2 + $0x364] ss:$16 sps:$4 sm:$0xff]   ;;  %12868 = vst [vmem:[#allocation117_spill] sm:$0xff] %v9882_v62 }
  0xe9   :  { %12866 = vst [vmem:[#allocation115_spill] sm:$0xff] %v9870_v4  ;;  %12867 = vst [vmem:[#allocation116_spill] sm:$0xff] %v9876_v6 }
  0xeb   :  { %1864 = vmatpush1.bf16.msra.mxu0 %v9864_v11  ;;  %1905 = vmatpush1.bf16.msra.mxu1 %v9870_v4  ;;  %v1813_v11 = vrot.slane %v9859_v49, %v8857_v55  ;;  %v9890_v4 = vld [vmem:[%s12568_s2 + $0x360] ss:$16 sps:$4 sm:$0xff]  }
  0xec   :  { %1865 = vmatprep.subr.bf16.mxu0 %v9876_v6  ;;  %1906 = vmatprep.subr.bf16.mxu1 %v9882_v62  ;;  %12869 = vst [vmem:[#allocation118_spill] sm:$0xff] %v9890_v4  ;;  %v9896_v6 = vld [vmem:[%s12568_s2 + $0x368] ss:$16 sps:$4 sm:$0xff]   ;;  %v9902_v62 = vld [vmem:[%s12568_s2 + $0x384] ss:$16 sps:$4 sm:$0xff]  }
  0xed   :  { %12870 = vst [vmem:[#allocation119_spill] sm:$0xff] %v9896_v6  ;;  %12871 = vst [vmem:[#allocation120_spill] sm:$0xff] %v9902_v62  ;;  %v1821_v46 = vpack.c.bf16 %v1813_v11, %v1813_v11  ;;  %v9934_v11 = vld [vmem:[%s12568_s2 + $0x3ac] ss:$16 sps:$4 sm:$0xff]  }
  0xee   :  { %12876 = vst [vmem:[#allocation125_spill] sm:$0xff] %v9934_v11 }
  0xef   :  { %1866 = vmatpush1.bf16.msra.mxu0 %v9890_v4  ;;  %1907 = vmatpush1.bf16.msra.mxu1 %v9896_v6  ;;  %v1805_v4 = vrot.slane %v9831_v50, %v8857_v55  ;;  %v9916_v6 = vld [vmem:[%s12568_s2 + $0x380] ss:$16 sps:$4 sm:$0xff]   ;;  %v1932_v55 = vunpack.c.l.b16 %v1821_v46  ;;  %v9958_v46 = vld [vmem:[%s12568_s2 + $0x3cc] ss:$16 sps:$4 sm:$0xff]  }
  0xf0   :  { %1867 = vmatprep.subr.bf16.mxu0 %v9902_v62  ;;  %1908 = vmatprep.subr.bf16.mxu1 %v9908_v52  ;;  %12873 = vst [vmem:[#allocation122_spill] sm:$0xff] %v9916_v6  ;;  %v9922_v62 = vld [vmem:[%s12568_s2 + $0x388] ss:$16 sps:$4 sm:$0xff]   ;;  %v9928_v52 = vld [vmem:[%s12568_s2 + $0x3a4] ss:$16 sps:$4 sm:$0xff]   ;;  %12880 = vst [vmem:[#allocation129_spill] sm:$0xff] %v9958_v46 }
  0xf1   :  { %12874 = vst [vmem:[#allocation123_spill] sm:$0xff] %v9922_v62  ;;  %12875 = vst [vmem:[#allocation124_spill] sm:$0xff] %v9928_v52 }
  0xf3   :  { %1868 = vmatpush1.bf16.msra.mxu0 %v9916_v6  ;;  %1909 = vmatpush1.bf16.msra.mxu1 %v9922_v62  ;;  %v1819_v6 = vpack.c.bf16 %v1805_v4, %v1805_v4  ;;  %v9940_v62 = vld [vmem:[%s12568_s2 + $0x3a0] ss:$16 sps:$4 sm:$0xff]  }
  0xf4   :  { %1869 = vmatprep.subr.bf16.mxu0 %v9928_v52  ;;  %1910 = vmatprep.subr.bf16.mxu1 %v9934_v11  ;;  %12877 = vst [vmem:[#allocation126_spill] sm:$0xff] %v9940_v62  ;;  %v9946_v52 = vld [vmem:[%s12568_s2 + $0x3a8] ss:$16 sps:$4 sm:$0xff]   ;;  %v9952_v11 = vld [vmem:[%s12568_s2 + $0x3c4] ss:$16 sps:$4 sm:$0xff]  }
  0xf5   :  { %12878 = vst [vmem:[#allocation127_spill] sm:$0xff] %v9946_v52  ;;  %12879 = vst [vmem:[#allocation128_spill] sm:$0xff] %v9952_v11  ;;  %v1930_v4 = vunpack.c.l.b16 %v1819_v6  ;;  %v1839_v6 = vpack.c.b16 %v9181_v7, %v9181_v7  ;;  %v10003_v7 = vld [vmem:[%s12568_s2 + $0x4] ss:$16 sps:$4 sm:$0xff]  }
  0xf6   :  { %12885 = vst [vmem:[#allocation134_spill] sm:$0xff] %v10003_v7 }
  0xf7   :  { %1870 = vmatpush1.bf16.msra.mxu0 %v9940_v62  ;;  %1911 = vmatpush1.bf16.msra.mxu1 %v9946_v52  ;;  %v1935_v62 = vrot.slane %v1932_v55, 7  ;;  %v9964_v52 = vld [vmem:[%s12568_s2 + $0x3c0] ss:$16 sps:$4 sm:$0xff]   ;;  %v9982_v55 = vld [vmem:[%s12568_s2 + $0x3ec] ss:$16 sps:$4 sm:$0xff]  }
  0xf8   :  { %1871 = vmatprep.subr.bf16.mxu0 %v9952_v11  ;;  %1912 = vmatprep.subr.bf16.mxu1 %v9958_v46  ;;  %12881 = vst [vmem:[#allocation130_spill] sm:$0xff] %v9964_v52  ;;  %v9970_v11 = vld [vmem:[%s12568_s2 + $0x3c8] ss:$16 sps:$4 sm:$0xff]   ;;  %v9976_v46 = vld [vmem:[%s12568_s2 + $0x3e4] ss:$16 sps:$4 sm:$0xff]  }
  0xf9   :  { %12882 = vst [vmem:[#allocation131_spill] sm:$0xff] %v9970_v11  ;;  %12883 = vst [vmem:[#allocation132_spill] sm:$0xff] %v9976_v46 }
  0xfb   :  { %1872 = vmatpush1.bf16.msra.mxu0 %v9964_v52  ;;  %1913 = vmatpush1.bf16.msra.mxu1 %v9970_v11  ;;  %v1936_v52 = vsel %vm1835_vm2, %v1935_v62, %v1930_v4  ;;  %v9991_v11 = vld [vmem:[%s12568_s2 + $0x3e0] ss:$16 sps:$4 sm:$0xff]   ;;  %v10009_v62 = vld [vmem:[%s12568_s2 + $0xc] ss:$16 sps:$4 sm:$0xff]  }
  0xfc   :  { %1873 = vmatprep.subr.bf16.mxu0 %v9976_v46  ;;  %1914 = vmatprep.subr.bf16.mxu1 %v9982_v55  ;;  %v9997_v46 = vld [vmem:[%s12568_s2 + $0x3e8] ss:$16 sps:$4 sm:$0xff]   ;;  %v1938_v4 = vpack.c.b16 %v1936_v52, %v1936_v52  ;;  %v10027_v52 = vld [vmem:[%s12568_s2 + $0x24] ss:$16 sps:$4 sm:$0xff]  }
  0xfd   :  { %12884 = vst [vmem:[#allocation133_spill] sm:$0xff] %v9997_v46  ;;  %12887 = vst [vmem:[#allocation136_spill] sm:$0xff] %v10027_v52 }
  0xff   :  { %1874 = vmatpush1.bf16.msra.mxu0 %v9991_v11  ;;  %1915 = vmatpush1.bf16.msra.mxu1 %v9997_v46  ;;  %v10015_v46 = vld [vmem:[%s12568_s2] ss:$16 sps:$4 sm:$0xff]  }
 0x100   :  { %1941 = vmatprep.subr.bf16.mxu0 %v10003_v7  ;;  %1982 = vmatprep.subr.bf16.mxu1 %v10009_v62  ;;  %v10021_v7 = vld [vmem:[%s12568_s2 + $0x8] ss:$16 sps:$4 sm:$0xff]  }
 0x101   :  { %12886 = vst [vmem:[#allocation135_spill] sm:$0xff] %v10021_v7 }
 0x102   :  { %1876 = vmatmul.mubr.bf16.vlgmr.msra.gmra.mrb[8].mxu0 %v1839_v6  ;;  %1917 = vmatmul.mubr.bf16.vlgmr.msra.gmra.mrb[8].mxu1 %v1839_v6  ;;  %v10033_v6 = vld [vmem:[%s12568_s2 + $0x2c] ss:$16 sps:$4 sm:$0xff]  }
 0x103   :  { %1942 = vmatpush1.bf16.msra.mxu0 %v10015_v46  ;;  %1983 = vmatpush1.bf16.msra.mxu1 %v10021_v7  ;;  %12888 = vst [vmem:[#allocation137_spill] sm:$0xff] %v10033_v6  ;;  %v10039_v7 = vld [vmem:[%s12568_s2 + $0x20] ss:$16 sps:$4 sm:$0xff]  }
 0x104   :  { %1943 = vmatprep.subr.bf16.mxu0 %v10027_v52  ;;  %1984 = vmatprep.subr.bf16.mxu1 %v10033_v6  ;;  %12889 = vst [vmem:[#allocation138_spill] sm:$0xff] %v10039_v7  ;;  %v10045_v52 = vld [vmem:[%s12568_s2 + $0x28] ss:$16 sps:$4 sm:$0xff]   ;;  %v10051_v6 = vld [vmem:[%s12568_s2 + $0x44] ss:$16 sps:$4 sm:$0xff]  }
 0x105   :  { %1973 = vmatprep.mubr.bf16.mxu0 %v1938_v4  ;;  %2014 = vmatprep.mubr.bf16.mxu1 %v1938_v4  ;;  %12890 = vst [vmem:[#allocation139_spill] sm:$0xff] %v10045_v52  ;;  %12891 = vst [vmem:[#allocation140_spill] sm:$0xff] %v10051_v6  ;;  %v10057_v4 = vld [vmem:[%s12568_s2 + $0x4c] ss:$16 sps:$4 sm:$0xff]  }
 0x106   :  { %12892 = vst [vmem:[#allocation141_spill] sm:$0xff] %v10057_v4 }
 0x107   :  { %1944 = vmatpush1.bf16.msra.mxu0 %v10039_v7  ;;  %1985 = vmatpush1.bf16.msra.mxu1 %v10045_v52  ;;  %v10063_v7 = vld [vmem:[%s12568_s2 + $0x40] ss:$16 sps:$4 sm:$0xff]   ;;  %v10069_v52 = vld [vmem:[%s12568_s2 + $0x48] ss:$16 sps:$4 sm:$0xff]  }
 0x108   :  { %1945 = vmatprep.subr.bf16.mxu0 %v10051_v6  ;;  %1986 = vmatprep.subr.bf16.mxu1 %v10057_v4  ;;  %12893 = vst [vmem:[#allocation142_spill] sm:$0xff] %v10063_v7  ;;  %12894 = vst [vmem:[#allocation143_spill] sm:$0xff] %v10069_v52  ;;  %v10075_v6 = vld [vmem:[%s12568_s2 + $0x64] ss:$16 sps:$4 sm:$0xff]   ;;  %v10081_v4 = vld [vmem:[%s12568_s2 + $0x6c] ss:$16 sps:$4 sm:$0xff]  }
 0x10b   :  { %1946 = vmatpush1.bf16.msra.mxu0 %v10063_v7  ;;  %1987 = vmatpush1.bf16.msra.mxu1 %v10069_v52  ;;  %v10087_v7 = vld [vmem:[%s12568_s2 + $0x60] ss:$16 sps:$4 sm:$0xff]   ;;  %v10093_v52 = vld [vmem:[%s12568_s2 + $0x68] ss:$16 sps:$4 sm:$0xff]  }
 0x10c   :  { %1947 = vmatprep.subr.bf16.mxu0 %v10075_v6  ;;  %1988 = vmatprep.subr.bf16.mxu1 %v10081_v4 }
 0x10f   :  { %1948 = vmatpush1.bf16.msra.mxu0 %v10087_v7  ;;  %1989 = vmatpush1.bf16.msra.mxu1 %v10093_v52 }
 0x110   :  { %1949 = vmatprep.subr.bf16.mxu0 %v8768_v25  ;;  %1990 = vmatprep.subr.bf16.mxu1 %v8773_v26  ;;  %v1809_v25 = vrot.slane %v9859_v49, %v9053_v40  ;;  %v12895_v26 = vld [vmem:[#allocation9_spill] sm:$0xff] }
 0x113   :  { %1950 = vmatpush1.bf16.msra.mxu0 %v8778_v30  ;;  %1991 = vmatpush1.bf16.msra.mxu1 %v8783_v31  ;;  %v12896_v30 = vld [vmem:[#allocation10_spill] sm:$0xff]  ;;  %v12897_v31 = vld [vmem:[#allocation11_spill] sm:$0xff] }
 0x114   :  { %1951 = vmatprep.subr.bf16.mxu0 %v8788_v32  ;;  %1992 = vmatprep.subr.bf16.mxu1 %v8793_v33  ;;  %v12898_v32 = vld [vmem:[#allocation12_spill] sm:$0xff]  ;;  %v1801_v33 = vrot.slane %v9831_v50, %v9053_v40 }
 0x117   :  { %1952 = vmatpush1.bf16.msra.mxu0 %v8818_v41  ;;  %1993 = vmatpush1.bf16.msra.mxu1 %v8823_v42  ;;  %v1820_v41 = vpack.c.bf16 %v1809_v25, %v1809_v25  ;;  %v12899_v42 = vld [vmem:[#allocation13_spill] sm:$0xff]  ;;  %v12910_v25 = vld [vmem:[#allocation24_spill] sm:$0xff] }
 0x118   :  { %1953 = vmatprep.subr.bf16.mxu0 %v8835_v45  ;;  %1994 = vmatprep.subr.bf16.mxu1 %v8842_v48  ;;  %v12900_v45 = vld [vmem:[#allocation14_spill] sm:$0xff]  ;;  %v10137_v48 = vld [vmem:[%s12569_s0 + $0x10] sm:$0xff] }
 0x119   :  { %v6678_v49 = vcombine.high %v10137_v48, %v10137_v48 }
 0x11b   :  { %1954 = vmatpush1.bf16.msra.mxu0 %v8867_v59  ;;  %1995 = vmatpush1.bf16.msra.mxu1 %v8882_v63  ;;  %v12901_v59 = vld [vmem:[#allocation15_spill] sm:$0xff]  ;;  %v12902_v63 = vld [vmem:[#allocation16_spill] sm:$0xff] }
 0x11c   :  { %1955 = vmatprep.subr.bf16.mxu0 %v8893_v1  ;;  %1996 = vmatprep.subr.bf16.mxu1 %v8898_v2  ;;  %v1818_v1 = vpack.c.bf16 %v1801_v33, %v1801_v33  ;;  %v1931_v2 = vunpack.c.l.b16 %v1820_v41  ;;  %v12934_v33 = vld [vmem:[#allocation52_spill] sm:$0xff]  ;;  %v12935_v41 = vld [vmem:[#allocation53_spill] sm:$0xff] }
 0x11f   :  { %1956 = vmatpush1.bf16.msra.mxu0 %v8914_v10  ;;  %1997 = vmatpush1.bf16.msra.mxu1 %v8926_v13  ;;  %v12903_v10 = vld [vmem:[#allocation17_spill] sm:$0xff]  ;;  %v12904_v13 = vld [vmem:[#allocation18_spill] sm:$0xff] }
 0x120   :  { %1957 = vmatprep.subr.bf16.mxu0 %v8933_v15  ;;  %1998 = vmatprep.subr.bf16.mxu1 %v8938_v16  ;;  %v10148_v15 = vld [vmem:[%s12569_s0] sm:$0xff] }
 0x121   :  { %v6676_v16 = vcombine.high %v10148_v15, %v10148_v15 }
 0x123   :  { %1958 = vmatpush1.bf16.msra.mxu0 %v8945_v19  ;;  %1999 = vmatpush1.bf16.msra.mxu1 %v8952_v20  ;;  %v2034_v19 = vunpack.c.l.b16 %v6678_v49  ;;  %v12905_v20 = vld [vmem:[#allocation19_spill] sm:$0xff]  ;;  %v12938_v49 = vld [vmem:[#allocation56_spill] sm:$0xff] }
 0x124   :  { %1959 = vmatprep.subr.bf16.mxu0 %v8959_v21  ;;  %2000 = vmatprep.subr.bf16.mxu1 %v8964_v22  ;;  %v12906_v21 = vld [vmem:[#allocation20_spill] sm:$0xff]  ;;  %v1929_v22 = vunpack.c.l.b16 %v1818_v1  ;;  %v6677_v1 = vcombine.low %v10137_v48, %v10137_v48  ;;  %v12948_v48 = vld [vmem:[#allocation29_spill] sm:$0xff] }
 0x127   :  { %1960 = vmatpush1.bf16.msra.mxu0 %v8969_v23  ;;  %2001 = vmatpush1.bf16.msra.mxu1 %v8976_v24  ;;  %v1933_v23 = vrot.slane %v1931_v2, 7  ;;  %v12907_v24 = vld [vmem:[#allocation21_spill] sm:$0xff]  ;;  %v12941_v2 = vld [vmem:[#allocation59_spill] sm:$0xff] }
 0x128   :  { %1961 = vmatprep.subr.bf16.mxu0 %v8983_v27  ;;  %2002 = vmatprep.subr.bf16.mxu1 %v8988_v28  ;;  %v12908_v27 = vld [vmem:[#allocation22_spill] sm:$0xff]  ;;  %v2032_v28 = vunpack.c.l.b16 %v6676_v16 }
 0x129   :  { %v1934_v50 = vsel %vm1835_vm2, %v1933_v23, %v1929_v22  ;;  %v2033_v22 = vunpack.c.l.b16 %v6677_v1  ;;  %v12946_v23 = vld [vmem:[#allocation63_spill] sm:$0xff] }
 0x12b   :  { %1962 = vmatpush1.bf16.msra.mxu0 %v8993_v29  ;;  %2003 = vmatpush1.bf16.msra.mxu1 %v9000_v36  ;;  %v2037_v29 = vrot.slane %v2034_v19, 7  ;;  %v12909_v36 = vld [vmem:[#allocation23_spill] sm:$0xff]  ;;  %v12944_v19 = vld [vmem:[#allocation61_spill] sm:$0xff] }
 0x12c   :  { %1963 = vmatprep.subr.bf16.mxu0 %v12895_v26  ;;  %2004 = vmatprep.subr.bf16.mxu1 %v12896_v30  ;;  %v12911_v26 = vld [vmem:[#allocation25_spill] sm:$0xff]  ;;  %v1937_v30 = vpack.c.b16 %v1934_v50, %v1934_v50 }
 0x12f   :  { %1964 = vmatpush1.bf16.msra.mxu0 %v12897_v31  ;;  %2005 = vmatpush1.bf16.msra.mxu1 %v12898_v32  ;;  %v2038_v31 = vsel %vm1835_vm2, %v2037_v29, %v2032_v28  ;;  %v12933_v32 = vld [vmem:[#allocation51_spill] sm:$0xff]  ;;  %v12949_v29 = vld [vmem:[#allocation65_spill] sm:$0xff] }
 0x130   :  { %1965 = vmatprep.subr.bf16.mxu0 %v12899_v42  ;;  %2006 = vmatprep.subr.bf16.mxu1 %v12900_v45  ;;  %v12936_v42 = vld [vmem:[#allocation54_spill] sm:$0xff]  ;;  %v12937_v45 = vld [vmem:[#allocation55_spill] sm:$0xff] }
 0x133   :  { %1966 = vmatpush1.bf16.msra.mxu0 %v12901_v59  ;;  %2007 = vmatpush1.bf16.msra.mxu1 %v12902_v63  ;;  %v12939_v59 = vld [vmem:[#allocation57_spill] sm:$0xff]  ;;  %v12940_v63 = vld [vmem:[#allocation58_spill] sm:$0xff] }
 0x134   :  { %1967 = vmatprep.subr.bf16.mxu0 %v12903_v10  ;;  %2008 = vmatprep.subr.bf16.mxu1 %v12904_v13  ;;  %v12942_v10 = vld [vmem:[#allocation60_spill] sm:$0xff]  ;;  %v12943_v13 = vld [vmem:[#allocation31_spill] sm:$0xff] }
 0x135   :  { %v2192_v16 = vpack.c.bf16 %v12943_v13, %v12943_v13  ;;  %v12979_v13 = vld [vmem:[#allocation91_spill] sm:$0xff] }
 0x137   :  { %1968 = vmatpush1.bf16.msra.mxu0 %v12905_v20  ;;  %2009 = vmatpush1.bf16.msra.mxu1 %v12906_v21  ;;  %v12945_v20 = vld [vmem:[#allocation62_spill] sm:$0xff]  ;;  %v6675_v21 = vcombine.low %v10148_v15, %v10148_v15  ;;  %v2200_v28 = vunpack.c.l.b16 %v2192_v16 }
 0x138   :  { %1969 = vmatprep.subr.bf16.mxu0 %v12907_v24  ;;  %2010 = vmatprep.subr.bf16.mxu1 %v12908_v27  ;;  %v12947_v24 = vld [vmem:[#allocation64_spill] sm:$0xff]  ;;  %v2190_v27 = vpack.c.bf16 %v12948_v48, %v12948_v48 }
 0x139   :  { %v2031_v50 = vunpack.c.l.b16 %v6675_v21  ;;  %v12981_v48 = vld [vmem:[#allocation92_spill] sm:$0xff] }
 0x13a   :  { %v2198_v15 = vunpack.c.l.b16 %v2190_v27  ;;  %v12982_v27 = vld [vmem:[#allocation93_spill] sm:$0xff] }
 0x13b   :  { %1970 = vmatpush1.bf16.msra.mxu0 %v9099_v38  ;;  %2011 = vmatpush1.bf16.msra.mxu1 %v12909_v36  ;;  %v2040_v38 = vpack.c.b16 %v2038_v31, %v2038_v31  ;;  %v12950_v36 = vld [vmem:[#allocation66_spill] sm:$0xff]  ;;  %v2203_v31 = vrot.slane %v2200_v28, 7 }
 0x13c   :  { %1971 = vmatprep.subr.bf16.mxu0 %v12910_v25  ;;  %2012 = vmatprep.subr.bf16.mxu1 %v12911_v26  ;;  %v2035_v25 = vrot.slane %v2033_v22, 7  ;;  %v12951_v26 = vld [vmem:[#allocation67_spill] sm:$0xff] }
 0x13f   :  { %1972 = vmatpush1.bf16.msra.mxu0 %v9130_v58  ;;  %2013 = vmatpush1.bf16.msra.mxu1 %v9143_v57  ;;  %v12912_v57 = vld [vmem:[#allocation26_spill] sm:$0xff]  ;;  %v12913_v58 = vld [vmem:[#allocation27_spill] sm:$0xff] }
 0x140   :  { %2043 = vmatprep.subr.bf16.mxu0 %v9152_v43  ;;  %2084 = vmatprep.subr.bf16.mxu1 %v9157_v44  ;;  %v12914_v43 = vld [vmem:[#allocation28_spill] sm:$0xff]  ;;  %v12915_v44 = vld [vmem:[#allocation33_spill] sm:$0xff] }
 0x142   :  { %1974 = vmatmul.mubr.bf16.vlgmr.msra.gmra.mrb[12].mxu0 %v1937_v30  ;;  %2015 = vmatmul.mubr.bf16.vlgmr.msra.gmra.mrb[12].mxu1 %v1937_v30  ;;  %v12952_v30 = vld [vmem:[#allocation68_spill] sm:$0xff] }
 0x143   :  { %2044 = vmatpush1.bf16.msra.mxu0 %v9162_v37  ;;  %2085 = vmatpush1.bf16.msra.mxu1 %v9174_v51  ;;  %v12916_v37 = vld [vmem:[#allocation34_spill] sm:$0xff]  ;;  %v12917_v51 = vld [vmem:[#allocation35_spill] sm:$0xff] }
 0x144   :  { %2045 = vmatprep.subr.bf16.mxu0 %v9188_v18  ;;  %2086 = vmatprep.subr.bf16.mxu1 %v9193_v34  ;;  %v12918_v18 = vld [vmem:[#allocation36_spill] sm:$0xff]  ;;  %v12919_v34 = vld [vmem:[#allocation37_spill] sm:$0xff] }
 0x145   :  { %2075 = vmatprep.mubr.bf16.mxu0 %v2040_v38  ;;  %2116 = vmatprep.mubr.bf16.mxu1 %v2040_v38  ;;  %v12953_v38 = vld [vmem:[#allocation69_spill] sm:$0xff] }
 0x147   :  { %2046 = vmatpush1.bf16.msra.mxu0 %v9207_v56  ;;  %2087 = vmatpush1.bf16.msra.mxu1 %v12912_v57  ;;  %v12920_v56 = vld [vmem:[#allocation38_spill] sm:$0xff] }
 0x148   :  { %2047 = vmatprep.subr.bf16.mxu0 %v12913_v58  ;;  %2088 = vmatprep.subr.bf16.mxu1 %v12914_v43  ;;  %v12954_v57 = vld [vmem:[#allocation70_spill] sm:$0xff]  ;;  %v2036_v58 = vsel %vm1835_vm2, %v2035_v25, %v2031_v50 }
 0x149   :  { %v2039_v43 = vpack.c.b16 %v2036_v58, %v2036_v58  ;;  %v12983_v58 = vld [vmem:[#allocation30_spill] sm:$0xff] }
 0x14b   :  { %2048 = vmatpush1.bf16.msra.mxu0 %v9242_v39  ;;  %2089 = vmatpush1.bf16.msra.mxu1 %v9247_v54  ;;  %v12921_v39 = vld [vmem:[#allocation39_spill] sm:$0xff]  ;;  %v12922_v54 = vld [vmem:[#allocation40_spill] sm:$0xff] }
 0x14c   :  { %2049 = vmatprep.subr.bf16.mxu0 %v9262_v47  ;;  %2090 = vmatprep.subr.bf16.mxu1 %v9267_v53  ;;  %v12923_v47 = vld [vmem:[#allocation41_spill] sm:$0xff]  ;;  %v12924_v53 = vld [vmem:[#allocation42_spill] sm:$0xff] }
 0x14f   :  { %2050 = vmatpush1.bf16.msra.mxu0 %v9289_v14  ;;  %2091 = vmatpush1.bf16.msra.mxu1 %v9294_v61  ;;  %v12925_v14 = vld [vmem:[#allocation43_spill] sm:$0xff]  ;;  %v12926_v61 = vld [vmem:[#allocation44_spill] sm:$0xff] }
 0x150   :  { %2051 = vmatprep.subr.bf16.mxu0 %v9304_v0  ;;  %2092 = vmatprep.subr.bf16.mxu1 %v9309_v35  ;;  %v12927_v0 = vld [vmem:[#allocation45_spill] sm:$0xff]  ;;  %v12928_v35 = vld [vmem:[#allocation46_spill] sm:$0xff] }
 0x153   :  { %2052 = vmatpush1.bf16.msra.mxu0 %v9316_v8  ;;  %2093 = vmatpush1.bf16.msra.mxu1 %v9321_v12  ;;  %v12929_v8 = vld [vmem:[#allocation47_spill] sm:$0xff]  ;;  %v12930_v12 = vld [vmem:[#allocation48_spill] sm:$0xff] }
 0x154   :  { %2053 = vmatprep.subr.bf16.mxu0 %v9328_v60  ;;  %2094 = vmatprep.subr.bf16.mxu1 %v9333_v5  ;;  %v12931_v60 = vld [vmem:[#allocation49_spill] sm:$0xff]  ;;  %v12932_v5 = vld [vmem:[#allocation50_spill] sm:$0xff] }
 0x157   :  { %2054 = vmatpush1.bf16.msra.mxu0 %v12915_v44  ;;  %2095 = vmatpush1.bf16.msra.mxu1 %v12916_v37  ;;  %v2204_v44 = vsel %vm1835_vm2, %v2203_v31, %v2198_v15  ;;  %v12955_v37 = vld [vmem:[#allocation71_spill] sm:$0xff] }
 0x158   :  { %2055 = vmatprep.subr.bf16.mxu0 %v12917_v51  ;;  %2096 = vmatprep.subr.bf16.mxu1 %v12918_v18  ;;  %v12956_v51 = vld [vmem:[#allocation72_spill] sm:$0xff]  ;;  %v12957_v18 = vld [vmem:[#allocation73_spill] sm:$0xff] }
 0x15b   :  { %2056 = vmatpush1.bf16.msra.mxu0 %v12919_v34  ;;  %2097 = vmatpush1.bf16.msra.mxu1 %v12920_v56  ;;  %v2206_v34 = vpack.c.b16 %v2204_v44, %v2204_v44  ;;  %v12958_v56 = vld [vmem:[#allocation74_spill] sm:$0xff]  ;;  %v10319_v44 = vld [vmem:[%s12569_s0 + $0x8] sm:$0xff] }
 0x15c   :  { %2057 = vmatprep.subr.bf16.mxu0 %v12921_v39  ;;  %2098 = vmatprep.subr.bf16.mxu1 %v12922_v54  ;;  %v12959_v39 = vld [vmem:[#allocation75_spill] sm:$0xff] }
 0x15d   :  { %v12963_v54 = vld [vmem:[#allocation79_spill] sm:$0xff] }
 0x15f   :  { %2058 = vmatpush1.bf16.msra.mxu0 %v12923_v47  ;;  %2099 = vmatpush1.bf16.msra.mxu1 %v12924_v53  ;;  %v12964_v47 = vld [vmem:[#allocation80_spill] sm:$0xff]  ;;  %v12965_v53 = vld [vmem:[#allocation81_spill] sm:$0xff] }
 0x160   :  { %2059 = vmatprep.subr.bf16.mxu0 %v12925_v14  ;;  %2100 = vmatprep.subr.bf16.mxu1 %v12926_v61  ;;  %v12966_v14 = vld [vmem:[#allocation82_spill] sm:$0xff]  ;;  %v12967_v61 = vld [vmem:[#allocation83_spill] sm:$0xff] }
 0x163   :  { %2060 = vmatpush1.bf16.msra.mxu0 %v12927_v0  ;;  %2101 = vmatpush1.bf16.msra.mxu1 %v12928_v35  ;;  %v12968_v0 = vld [vmem:[#allocation84_spill] sm:$0xff]  ;;  %v12969_v35 = vld [vmem:[#allocation85_spill] sm:$0xff] }
 0x164   :  { %2061 = vmatprep.subr.bf16.mxu0 %v12929_v8  ;;  %2102 = vmatprep.subr.bf16.mxu1 %v12930_v12  ;;  %v12970_v8 = vld [vmem:[#allocation4_spill] sm:$0xff] }
 0x165   :  { %v10253_v12 = vsub.s32 2, %v12970_v8 }
 0x167   :  { %2062 = vmatpush1.bf16.msra.mxu0 %v12931_v60  ;;  %2103 = vmatpush1.bf16.msra.mxu1 %v12932_v5  ;;  %12971 = vst [vmem:[#allocation9_spill] sm:$0xff] %v10253_v12  ;;  %v12972_v60 = vld [vmem:[#allocation32_spill] sm:$0xff] }
 0x168   :  { %2063 = vmatprep.subr.bf16.mxu0 %v12933_v32  ;;  %2104 = vmatprep.subr.bf16.mxu1 %v12934_v33  ;;  %v2191_v5 = vpack.c.bf16 %v12972_v60, %v12972_v60  ;;  %v12973_v32 = vld [vmem:[#allocation86_spill] sm:$0xff]  ;;  %v12974_v33 = vld [vmem:[#allocation87_spill] sm:$0xff] }
 0x16b   :  { %2064 = vmatpush1.bf16.msra.mxu0 %v12935_v41  ;;  %2105 = vmatpush1.bf16.msra.mxu1 %v12936_v42  ;;  %v1706_v41 = vld [vmem:[%s12571_s3] sm:$0xf]  ;;  %v10263_v42 = vsub.s32 3, %v12970_v8  ;;  %v12986_v8 = vld [vmem:[#allocation96_spill] sm:$0xff] }
 0x16c   :  { %2065 = vmatprep.subr.bf16.mxu0 %v12937_v45  ;;  %2106 = vmatprep.subr.bf16.mxu1 %v12938_v49  ;;  %v12976_v45 = vld [vmem:[#allocation88_spill] sm:$0xff]  ;;  %v12977_v49 = vld [vmem:[#allocation89_spill] sm:$0xff]  ;;  %v10274_v1 = vrot.slane %v1706_v41, %v10253_v12 }
 0x16d   :  { %12975 = vst [vmem:[#allocation10_spill] sm:$0xff] %v10263_v42  ;;  %v10287_v21 = vrot.slane %v1706_v41, %v10263_v42 }
 0x16f   :  { %2066 = vmatpush1.bf16.msra.mxu0 %v12939_v59  ;;  %2107 = vmatpush1.bf16.msra.mxu1 %v12940_v63  ;;  %v1744_v59 = vld [vmem:[%s12572_s4] sm:$0xf]  ;;  %v10271_v63 = vrot.slane %v1706_v41, %v9053_v40 }
 0x170   :  { %2067 = vmatprep.subr.bf16.mxu0 %v12941_v2  ;;  %2108 = vmatprep.subr.bf16.mxu1 %v12942_v10  ;;  %v10276_v2 = vunpack.c.l.b16 %v2191_v5  ;;  %v12978_v10 = vld [vmem:[#allocation90_spill] sm:$0xff]  ;;  %v10281_v16 = vrot.slane %v1744_v59, %v9053_v40  ;;  %v10290_v22 = vrot.slane %v1744_v59, %v10253_v12 }
 0x173   :  { %2068 = vmatpush1.bf16.msra.mxu0 %v12944_v19  ;;  %2109 = vmatpush1.bf16.msra.mxu1 %v12945_v20  ;;  %v12980_v19 = vld [vmem:[#allocation8_spill] sm:$0xff] }
 0x174   :  { %2069 = vmatprep.subr.bf16.mxu0 %v12946_v23  ;;  %2110 = vmatprep.subr.bf16.mxu1 %v12947_v24  ;;  %v10284_v20 = vrot.slane %v1706_v41, %v12980_v19  ;;  %v10293_v23 = vrot.slane %v1744_v59, %v12980_v19  ;;  %v10296_v24 = vrot.slane %v1744_v59, %v10263_v42  ;;  %v12987_v41 = vld [vmem:[#allocation97_spill] sm:$0xff] }
 0x177   :  { %2070 = vmatpush1.bf16.msra.mxu0 %v12949_v29  ;;  %2111 = vmatpush1.bf16.msra.mxu1 %v12950_v36  ;;  %v8430_v29 = vmov 0.0  }
 0x178   :  { %2071 = vmatprep.subr.bf16.mxu0 %v12951_v26  ;;  %2112 = vmatprep.subr.bf16.mxu1 %v12952_v30  ;;  %v10301_v36 = vrot.slane %v8430_v29, %v9053_v40  ;;  %v10304_v25 = vrot.slane %v8430_v29, %v10253_v12  ;;  %v10307_v26 = vrot.slane %v8430_v29, %v12980_v19  ;;  %v13013_v12 = vld [vmem:[#allocation118_spill] sm:$0xff] }
 0x179   :  { %v10310_v30 = vrot.slane %v8430_v29, %v10263_v42  ;;  %v12989_v29 = vld [vmem:[#allocation99_spill] sm:$0xff] }
 0x17b   :  { %2072 = vmatpush1.bf16.msra.mxu0 %v12953_v38  ;;  %2113 = vmatpush1.bf16.msra.mxu1 %v12954_v57 }
 0x17c   :  { %2073 = vmatprep.subr.bf16.mxu0 %v9568_v3  ;;  %2114 = vmatprep.subr.bf16.mxu1 %v9573_v17  ;;  %v12960_v3 = vld [vmem:[#allocation76_spill] sm:$0xff]  ;;  %v12961_v17 = vld [vmem:[#allocation77_spill] sm:$0xff] }
 0x17f   :  { %2074 = vmatpush1.bf16.msra.mxu0 %v9580_v9  ;;  %2115 = vmatpush1.bf16.msra.mxu1 %v12955_v37  ;;  %v12962_v9 = vld [vmem:[#allocation78_spill] sm:$0xff]  ;;  %v6680_v37 = vcombine.high %v10319_v44, %v10319_v44 }
 0x180   :  { %2209 = vmatprep.subr.bf16.mxu0 %v12956_v51  ;;  %2250 = vmatprep.subr.bf16.mxu1 %v12957_v18 }
 0x182   :  { %2076 = vmatmul.mubr.bf16.vlgmr.msra.gmra.mrb[16].mxu0 %v2039_v43  ;;  %2117 = vmatmul.mubr.bf16.vlgmr.msra.gmra.mrb[16].mxu1 %v2039_v43  ;;  %v2189_v43 = vpack.c.bf16 %v12983_v58, %v12983_v58  ;;  %v10359_v58 = vunpack.c.l.b16 %v6680_v37 }
 0x183   :  { %2210 = vmatpush1.bf16.msra.mxu0 %v12958_v56  ;;  %2251 = vmatpush1.bf16.msra.mxu1 %v12959_v39  ;;  %v12984_v39 = vld [vmem:[#allocation94_spill] sm:$0xff] }
 0x184   :  { %2211 = vmatprep.subr.bf16.mxu0 %v12960_v3  ;;  %2252 = vmatprep.subr.bf16.mxu1 %v12961_v17  ;;  %v12985_v3 = vld [vmem:[#allocation95_spill] sm:$0xff]  ;;  %v12994_v17 = vld [vmem:[#allocation104_spill] sm:$0xff] }
 0x185   :  { %2241 = vmatprep.mubr.bf16.mxu0 %v2206_v34  ;;  %2282 = vmatprep.mubr.bf16.mxu1 %v2206_v34 }
 0x187   :  { %2212 = vmatpush1.bf16.msra.mxu0 %v12962_v9  ;;  %2253 = vmatpush1.bf16.msra.mxu1 %v12963_v54  ;;  %v10331_v9 = vld [vmem:[%s12569_s0 + $0x18] sm:$0xff] }
 0x188   :  { %2213 = vmatprep.subr.bf16.mxu0 %v12964_v47  ;;  %2254 = vmatprep.subr.bf16.mxu1 %v12965_v53  ;;  %v6682_v54 = vcombine.high %v10331_v9, %v10331_v9 }
 0x18b   :  { %2214 = vmatpush1.bf16.msra.mxu0 %v12966_v14  ;;  %2255 = vmatpush1.bf16.msra.mxu1 %v12967_v61 }
 0x18c   :  { %2215 = vmatprep.subr.bf16.mxu0 %v12968_v0  ;;  %2256 = vmatprep.subr.bf16.mxu1 %v12969_v35 }
 0x18f   :  { %2216 = vmatpush1.bf16.msra.mxu0 %v12973_v32  ;;  %2257 = vmatpush1.bf16.msra.mxu1 %v12974_v33 }
 0x190   :  { %2217 = vmatprep.subr.bf16.mxu0 %v12976_v45  ;;  %2258 = vmatprep.subr.bf16.mxu1 %v12977_v49 }
 0x193   :  { %2218 = vmatpush1.bf16.msra.mxu0 %v12978_v10  ;;  %2259 = vmatpush1.bf16.msra.mxu1 %v12979_v13 }
 0x194   :  { %2219 = vmatprep.subr.bf16.mxu0 %v12981_v48  ;;  %2260 = vmatprep.subr.bf16.mxu1 %v12982_v27 }
 0x195   :  { %v1618_v28 = vpop.f32.mrb[0].mxu0  ;;  %v1671_v50 = vpop.f32.mrb[0].mxu1 }
 0x196   :  { %v1728_v15 = vmul.f32 %v10271_v63, %v1618_v28  ;;  %v1730_v31 = vmul.f32 %v10274_v1, %v1671_v50  ;;  %v1620_v38 = vpop.f32.mrb[1].mxu0  ;;  %v1673_v57 = vpop.f32.mrb[1].mxu1  ;;  %v12988_v28 = vld [vmem:[#allocation98_spill] sm:$0xff]  ;;  %v10354_v50 = vunpack.c.l.b16 %v2189_v43 }
 0x197   :  { %v1729_v51 = vmul.f32 %v10284_v20, %v1620_v38  ;;  %v1731_v18 = vmul.f32 %v10287_v21, %v1673_v57  ;;  %v1622_v34 = vpop.f32.mrb[2].mxu0  ;;  %v1675_v56 = vpop.f32.mrb[2].mxu1  ;;  %2220 = vmatpush1.bf16.msra.mxu0 %v12984_v39  ;;  %2261 = vmatpush1.bf16.msra.mxu1 %v12985_v3  ;;  %v12990_v38 = vld [vmem:[#allocation100_spill] sm:$0xff]  ;;  %v12991_v57 = vld [vmem:[#allocation101_spill] sm:$0xff] }
 0x198   :  { %v1766_v47 = vadd.f32 %v10281_v16, %v1728_v15  ;;  %v1768_v53 = vadd.f32 %v10290_v22, %v1730_v31  ;;  %v1732_v14 = vmul.f32 %v10271_v63, %v1622_v34  ;;  %v1734_v61 = vmul.f32 %v10274_v1, %v1675_v56  ;;  %v1624_v0 = vpop.f32.mrb[3].mxu0  ;;  %v1677_v35 = vpop.f32.mrb[3].mxu1  ;;  %2221 = vmatprep.subr.bf16.mxu0 %v12986_v8  ;;  %v13000_v39 = vld [vmem:[#allocation109_spill] sm:$0xff] }
 0x199   :  { %v1767_v60 = vadd.f32 %v10293_v23, %v1729_v51  ;;  %v1769_v5 = vadd.f32 %v10296_v24, %v1731_v18  ;;  %v1733_v32 = vmul.f32 %v10284_v20, %v1624_v0  ;;  %v1735_v33 = vmul.f32 %v10287_v21, %v1677_v35  ;;  %2262 = vmatprep.subr.bf16.mxu1 %v12987_v41  ;;  %v12993_v41 = vld [vmem:[#allocation103_spill] sm:$0xff] }
 0x19a   :  { %v1782_v45 = vmax.f32 %v1766_v47, 0.0  ;;  %v1784_v49 = vmax.f32 %v1768_v53, 0.0  ;;  %v1770_v59 = vadd.f32 %v10281_v16, %v1732_v14  ;;  %v1772_v10 = vadd.f32 %v10290_v22, %v1734_v61 }
 0x19b   :  { %v10347_v13 = vmax.f32 %v1767_v60, 0.0  ;;  %v10349_v48 = vmax.f32 %v1769_v5, 0.0  ;;  %v1771_v27 = vadd.f32 %v10293_v23, %v1733_v32  ;;  %2222 = vmatpush1.bf16.msra.mxu0 %v12988_v28  ;;  %2263 = vmatpush1.bf16.msra.mxu1 %v12989_v29  ;;  %v1773_v31 = vadd.f32 %v10296_v24, %v1735_v33  ;;  %v12992_v33 = vld [vmem:[#allocation102_spill] sm:$0xff] }
 0x19c   :  { %v3195_v15 = vrot.slane %v1784_v49, 7  ;;  %2223 = vmatprep.subr.bf16.mxu0 %v12990_v38  ;;  %2264 = vmatprep.subr.bf16.mxu1 %v12991_v57  ;;  %v10361_v51 = vunpack.c.l.b16 %v6682_v54  ;;  %v3193_v18 = vrot.slane %v1782_v45, 7  ;;  %v3241_v34 = vrot.slane %v1782_v45, 1 }
 0x19d   :  { %v3247_v56 = vrot.slane %v1784_v49, 1  ;;  %v1628_v3 = vpop.f32.mrb[4].mxu0  ;;  %v1681_v47 = vpop.f32.mrb[4].mxu1  ;;  %v1786_v14 = vmax.f32 %v1770_v59, 0.0  ;;  %v1788_v61 = vmax.f32 %v1772_v10, 0.0  ;;  %v10370_v35 = vmax.f32 %v1771_v27, 0.0 }
 0x19e   :  { %v10366_v43 = vsel %vm122_vm1, %v10304_v25, %v3195_v15  ;;  %v1630_v0 = vpop.f32.mrb[5].mxu0  ;;  %v1683_v37 = vpop.f32.mrb[5].mxu1  ;;  %v1736_v8 = vmul.f32 %v10271_v63, %v1628_v3  ;;  %v1738_v60 = vmul.f32 %v10274_v1, %v1681_v47  ;;  %v12995_v27 = vld [vmem:[#allocation105_spill] sm:$0xff]  ;;  %v10382_v3 = vsel %vm122_vm1, %v10301_v36, %v3193_v18  ;;  %v12999_v47 = vld [vmem:[#allocation108_spill] sm:$0xff] }
 0x19f   :  { %v1632_v5 = vpop.f32.mrb[6].mxu0  ;;  %v1685_v32 = vpop.f32.mrb[6].mxu1  ;;  %2224 = vmatpush1.bf16.msra.mxu0 %v12992_v33  ;;  %2265 = vmatpush1.bf16.msra.mxu1 %v12993_v41  ;;  %v3197_v28 = vrot.slane %v1786_v14, 7  ;;  %v3242_v29 = vrot.slane %v1786_v14, 1  ;;  %v10376_v59 = vpack.c.bf16 %v1786_v14, %v1782_v45  ;;  %v3201_v10 = vrot.slane %v1788_v61, 7 }
 0x1a0   :  { %v1634_v38 = vpop.f32.mrb[7].mxu0  ;;  %v1687_v57 = vpop.f32.mrb[7].mxu1  ;;  %2225 = vmatprep.subr.bf16.mxu0 %v12994_v17  ;;  %2266 = vmatprep.subr.bf16.mxu1 %v12995_v27  ;;  %v3248_v33 = vrot.slane %v1788_v61, 1  ;;  %v10385_v53 = vpack.c.bf16 %v1788_v61, %v1784_v49  ;;  %v10408_v61 = vmax.f32 %v1773_v31, 0.0  ;;  %v1742_v54 = vmul.f32 %v10274_v1, %v1685_v32 }
 0x1a1   :  { %v10388_v41 = vsel %vm122_vm1, %v3193_v18, %v3197_v28  ;;  %v10391_v45 = vsel %vm147_vm0, %v3241_v34, %v3242_v29  ;;  %v10395_v17 = vsel %vm147_vm0, %v3242_v29, %v10301_v36  ;;  %v10398_v14 = vsel %vm122_vm1, %v3195_v15, %v3201_v10  ;;  %v12997_v34 = vld [vmem:[#allocation106_spill] sm:$0xff]  ;;  %v12998_v28 = vld [vmem:[#allocation107_spill] sm:$0xff] }
 0x1a2   :  { %12996 = vst [vmem:[#allocation11_spill] sm:$0xff] %v10385_v53  ;;  %v10401_v27 = vsel %vm147_vm0, %v3247_v56, %v3248_v33  ;;  %v10405_v49 = vsel %vm147_vm0, %v3248_v33, %v10304_v25  ;;  %v3199_v18 = vrot.slane %v10370_v35, 7  ;;  %v1774_v29 = vadd.f32 %v10281_v16, %v1736_v8 }
 0x1a3   :  { %2226 = vmatpush1.bf16.msra.mxu0 %v12997_v34  ;;  %2267 = vmatpush1.bf16.msra.mxu1 %v12998_v28  ;;  %v1776_v15 = vadd.f32 %v10290_v22, %v1738_v60  ;;  %v1737_v10 = vmul.f32 %v10284_v20, %v1630_v0  ;;  %v1739_v56 = vmul.f32 %v10287_v21, %v1683_v37  ;;  %v13014_v53 = vrot.slane %v10347_v13, 7 }
 0x1a4   :  { %2227 = vmatprep.subr.bf16.mxu0 %v12999_v47  ;;  %v1740_v33 = vmul.f32 %v10271_v63, %v1632_v5  ;;  %v1741_v31 = vmul.f32 %v10284_v20, %v1634_v38  ;;  %v1743_v34 = vmul.f32 %v10287_v21, %v1687_v57  ;;  %2268 = vmatprep.subr.bf16.mxu1 %v13000_v39  ;;  %v10422_v28 = vmax.f32 %v1774_v29, 0.0  ;;  %v13001_v5 = vld [vmem:[#allocation110_spill] sm:$0xff]  ;;  %v13002_v57 = vld [vmem:[#allocation111_spill] sm:$0xff]  ;;  %v13003_v47 = vld [vmem:[#allocation112_spill] sm:$0xff] }
 0x1a5   :  { %v10424_v8 = vmax.f32 %v1776_v15, 0.0  ;;  %v1775_v0 = vadd.f32 %v10293_v23, %v1737_v10  ;;  %v1777_v37 = vadd.f32 %v10296_v24, %v1739_v56  ;;  %v1780_v63 = vadd.f32 %v10290_v22, %v1742_v54  ;;  %v13004_v54 = vld [vmem:[#allocation113_spill] sm:$0xff] }
 0x1a6   :  { %v1778_v60 = vadd.f32 %v10281_v16, %v1740_v33  ;;  %v1779_v1 = vadd.f32 %v10293_v23, %v1741_v31  ;;  %v1781_v20 = vadd.f32 %v10296_v24, %v1743_v34  ;;  %v3203_v39 = vrot.slane %v10408_v61, 7 }
 0x1a7   :  { %2228 = vmatpush1.bf16.msra.mxu0 %v13001_v5  ;;  %v3205_v38 = vrot.slane %v10422_v28, 7  ;;  %2269 = vmatpush1.bf16.msra.mxu1 %v13002_v57  ;;  %v10439_v16 = vmax.f32 %v1775_v0, 0.0  ;;  %v10441_v22 = vmax.f32 %v1777_v37, 0.0  ;;  %v10445_v24 = vmax.f32 %v1780_v63, 0.0  ;;  %v13006_v37 = vld [vmem:[#allocation114_spill] sm:$0xff]  ;;  %v13007_v5 = vld [vmem:[#allocation115_spill] sm:$0xff] }
 0x1a8   :  { %2229 = vmatprep.subr.bf16.mxu0 %v13003_v47  ;;  %v10443_v23 = vmax.f32 %v1778_v60, 0.0  ;;  %2270 = vmatprep.subr.bf16.mxu1 %v13004_v54  ;;  %v1795_v29 = vmax.f32 %v1779_v1, 0.0  ;;  %v10448_v15 = vmax.f32 %v1781_v20, 0.0  ;;  %v10452_v10 = vpack.c.bf16 %v10370_v35, %v10347_v13  ;;  %v13008_v57 = vld [vmem:[#allocation116_spill] sm:$0xff] }
 0x1a9   :  { %v10456_v56 = vpack.c.bf16 %v10408_v61, %v10349_v48  ;;  %v3253_v33 = vrot.slane %v10422_v28, 1  ;;  %v3207_v31 = vrot.slane %v10424_v8, 7  ;;  %v3206_v0 = vrot.slane %v10439_v16, 7 }
 0x1aa   :  { %v3256_v60 = vrot.slane %v10439_v16, 1  ;;  %v3208_v63 = vrot.slane %v10441_v22, 7  ;;  %v3209_v1 = vrot.slane %v10443_v23, 7  ;;  %v3254_v20 = vrot.slane %v10443_v23, 1 }
 0x1ab   :  { %13005 = vst [vmem:[#allocation12_spill] sm:$0xff] %v10456_v56  ;;  %2230 = vmatpush1.bf16.msra.mxu0 %v13006_v37  ;;  %2271 = vmatpush1.bf16.msra.mxu1 %v13007_v5  ;;  %v3213_v47 = vrot.slane %v10445_v24, 7  ;;  %v3260_v54 = vrot.slane %v10445_v24, 1  ;;  %v3211_v34 = vrot.slane %v1795_v29, 7  ;;  %v3215_v32 = vrot.slane %v10448_v15, 7  ;;  %v13009_v37 = vld [vmem:[#allocation117_spill] sm:$0xff] }
 0x1ac   :  { %2231 = vmatprep.subr.bf16.mxu0 %v13008_v57  ;;  %2272 = vmatprep.subr.bf16.mxu1 %v13009_v37  ;;  %v10474_v21 = vpack.c.bf16 %v1795_v29, %v10439_v16  ;;  %v10478_v42 = vpack.c.bf16 %v10443_v23, %v10422_v28  ;;  %v10482_v5 = vpack.c.bf16 %v10448_v15, %v10441_v22  ;;  %v3257_v56 = vrot.slane %v1795_v29, 1 }
 0x1ad   :  { %v10486_v57 = vpack.c.bf16 %v10445_v24, %v10424_v8  ;;  %v3200_v37 = vsel %vm122_vm1, %v13014_v53, %v3199_v18  ;;  %v13015_v16 = vmov %v13014_v53  ;;  %v10498_v23 = vpack.c.bf16 %v10388_v41, %v10382_v3  ;;  %v13016_v24 = vld [vmem:[#allocation119_spill] sm:$0xff] }
 0x1ae   :  { %13010 = vst [vmem:[#allocation13_spill] sm:$0xff] %v10478_v42  ;;  %13011 = vst [vmem:[#allocation14_spill] sm:$0xff] %v10482_v5  ;;  %v3234_v28 = vsel %vm122_vm1, %v10307_v26, %v13015_v16  ;;  %v3212_v5 = vsel %vm122_vm1, %v3206_v0, %v3211_v34  ;;  %v3238_v53 = vsel %vm122_vm1, %v10307_v26, %v3206_v0  ;;  %v13018_v42 = vld [vmem:[#allocation121_spill] sm:$0xff]  ;;  %v13019_v41 = vrot.slane %v10349_v48, 7 }
 0x1af   :  { %13012 = vst [vmem:[#allocation15_spill] sm:$0xff] %v10486_v57  ;;  %2232 = vmatpush1.bf16.msra.mxu0 %v13013_v12  ;;  %2273 = vmatpush1.bf16.msra.mxu1 %v13016_v24  ;;  %v13017_v57 = vld [vmem:[#allocation120_spill] sm:$0xff]  ;;  %v10503_v12 = vpack.c.bf16 %v3200_v37, %v3234_v28  ;;  %v3210_v18 = vsel %vm122_vm1, %v3205_v38, %v3209_v1  ;;  %v13022_v24 = vrot.slane %v10370_v35, 1 }
 0x1b0   :  { %2233 = vmatprep.subr.bf16.mxu0 %v13017_v57  ;;  %2274 = vmatprep.subr.bf16.mxu1 %v13018_v42  ;;  %v10509_v16 = vpack.c.bf16 %v3212_v5, %v3238_v53  ;;  %v3237_v3 = vsel %vm122_vm1, %v10301_v36, %v3205_v38  ;;  %v3204_v29 = vsel %vm122_vm1, %v13019_v41, %v3203_v39  ;;  %v13021_v38 = vld [vmem:[#allocation122_spill] sm:$0xff]  ;;  %v13023_v53 = vrot.slane %v10347_v13, 1 }
 0x1b1   :  { %v13020_v34 = vmov %v13019_v41  ;;  %v10520_v37 = vpack.c.bf16 %v3210_v18, %v3237_v3  ;;  %v10526_v42 = vpack.c.bf16 %v10398_v14, %v10366_v43  ;;  %v3216_v1 = vsel %vm122_vm1, %v3208_v63, %v3215_v32  ;;  %v13024_v14 = vld [vmem:[#allocation123_spill] sm:$0xff]  ;;  %v13025_v32 = vld [vmem:[#allocation124_spill] sm:$0xff]  ;;  %v13027_v41 = vld [vmem:[#allocation125_spill] sm:$0xff] }
 0x1b2   :  { %v3236_v57 = vsel %vm122_vm1, %v10310_v30, %v13020_v34  ;;  %v3240_v39 = vsel %vm122_vm1, %v10310_v30, %v3208_v63  ;;  %v3214_v5 = vsel %vm122_vm1, %v3207_v31, %v3213_v47  ;;  %v3239_v28 = vsel %vm122_vm1, %v10304_v25, %v3207_v31 }
 0x1b3   :  { %v10522_v0 = vpack.c.bf16 %v3204_v29, %v3236_v57  ;;  %2234 = vmatpush1.bf16.msra.mxu0 %v13021_v38  ;;  %v3246_v18 = vsel %vm147_vm0, %v13023_v53, %v13022_v24  ;;  %v3263_v43 = vrot.slane %v10448_v15, 1  ;;  %2275 = vmatpush1.bf16.msra.mxu1 %v13024_v14  ;;  %v10543_v3 = vpack.c.bf16 %v3216_v1, %v3240_v39  ;;  %v13028_v39 = vld [vmem:[#allocation126_spill] sm:$0xff] }
 0x1b4   :  { %2235 = vmatprep.subr.bf16.mxu0 %v13025_v32  ;;  %v10545_v63 = vpack.c.bf16 %v3214_v5, %v3239_v28  ;;  %v13026_v47 = vmov %v13022_v24  ;;  %2276 = vmatprep.subr.bf16.mxu1 %v13027_v41  ;;  %v10556_v15 = vpack.c.bf16 %v10395_v17, %v10391_v45  ;;  %v3258_v29 = vsel %vm147_vm0, %v3256_v60, %v3257_v56  ;;  %v13043_v41 = vld [vmem:[#allocation136_spill] sm:$0xff] }
 0x1b5   :  { %v3324_v31 = vsel %vm147_vm0, %v13026_v47, %v10307_v26  ;;  %v3328_v34 = vsel %vm147_vm0, %v3257_v56, %v10307_v26  ;;  %v3262_v57 = vrot.slane %v10441_v22, 1  ;;  %v3255_v35 = vsel %vm147_vm0, %v3253_v33, %v3254_v20  ;;  %v13033_v33 = vld [vmem:[#allocation128_spill] sm:$0xff]  ;;  %v13036_v47 = vld [vmem:[#allocation130_spill] sm:$0xff] }
 0x1b6   :  { %v10552_v13 = vpack.c.bf16 %v3324_v31, %v3246_v18  ;;  %v10562_v1 = vpack.c.bf16 %v3328_v34, %v3258_v29  ;;  %v3327_v38 = vsel %vm147_vm0, %v3254_v20, %v10301_v36  ;;  %v13029_v45 = vrot.slane %v10408_v61, 1  ;;  %v13032_v36 = vld [vmem:[#allocation127_spill] sm:$0xff]  ;;  %v13039_v31 = vld [vmem:[#allocation132_spill] sm:$0xff] }
 0x1b7   :  { %2236 = vmatpush1.bf16.msra.mxu0 %v13028_v39  ;;  %v10568_v5 = vpack.c.bf16 %v3327_v38, %v3255_v35  ;;  %v13030_v17 = vrot.slane %v10349_v48, 1  ;;  %v10581_v56 = vpack.c.bf16 %v10405_v49, %v10401_v27  ;;  %2277 = vmatpush1.bf16.msra.mxu1 %v13032_v36  ;;  %v3264_v28 = vsel %vm147_vm0, %v3262_v57, %v3263_v43  ;;  %v13034_v48 = vld [vmem:[#allocation129_spill] sm:$0xff]  ;;  %v13046_v29 = vld [vmem:[#allocation139_spill] sm:$0xff]  ;;  %v13047_v34 = vld [vmem:[#allocation140_spill] sm:$0xff] }
 0x1b8   :  { %v13031_v26 = vmov %v13029_v45  ;;  %2237 = vmatprep.subr.bf16.mxu0 %v13033_v33  ;;  %2278 = vmatprep.subr.bf16.mxu1 %v13034_v48  ;;  %v3330_v24 = vsel %vm147_vm0, %v3263_v43, %v10310_v30  ;;  %v13035_v61 = vrot.slane %v10424_v8, 1  ;;  %v3329_v27 = vsel %vm147_vm0, %v3260_v54, %v10304_v25  ;;  %v13038_v43 = vld [vmem:[#allocation131_spill] sm:$0xff]  ;;  %v13049_v57 = vld [vmem:[#allocation142_spill] sm:$0xff] }
 0x1b9   :  { %v3252_v60 = vsel %vm147_vm0, %v13030_v17, %v13029_v45  ;;  %v3326_v22 = vsel %vm147_vm0, %v13031_v26, %v10310_v30  ;;  %v2302_v49 = vrot.slane %v10359_v58, 7  ;;  %v2303_v18 = vrot.slane %v10361_v51, 6  ;;  %v13040_v51 = vld [vmem:[#allocation133_spill] sm:$0xff]  ;;  %v13050_v35 = vld [vmem:[#allocation143_spill] sm:$0xff]  ;;  %v8323_v36 = vld [vmem:[%s12568_s2 + $0xa0] ss:$16 sps:$4 sm:$0xff]  }
 0x1ba   :  { %v10585_v20 = vpack.c.bf16 %v3326_v22, %v3252_v60  ;;  %v3261_v53 = vsel %vm147_vm0, %v13035_v61, %v3260_v54  ;;  %v10598_v14 = vpack.c.bf16 %v3330_v24, %v3264_v28  ;;  %v13037_v30 = vrot.slane %v10276_v2, 7  ;;  %v13041_v54 = vld [vmem:[#allocation134_spill] sm:$0xff]  ;;  %v8318_v38 = vld [vmem:[%s12568_s2 + $0x8c] ss:$16 sps:$4 sm:$0xff]   ;;  %v8324_v33 = vld [vmem:[%s12568_s2 + $0xa8] ss:$16 sps:$4 sm:$0xff]  }
 0x1bb   :  { %v10600_v32 = vpack.c.bf16 %v3329_v27, %v3261_v53  ;;  %2238 = vmatpush1.bf16.msra.mxu0 %v13036_v47  ;;  %2279 = vmatpush1.bf16.msra.mxu1 %v13038_v43  ;;  %v2304_v58 = vsel %vm1835_vm2, %v2303_v18, %v2302_v49  ;;  %v8322_v45 = vld [vmem:[%s12568_s2 + $0xac] ss:$16 sps:$4 sm:$0xff]   ;;  %v8325_v24 = vld [vmem:[%s12568_s2 + $0xc4] ss:$16 sps:$4 sm:$0xff]   ;;  %v8327_v53 = vld [vmem:[%s12568_s2 + $0xc0] ss:$16 sps:$4 sm:$0xff]  }
 0x1bc   :  { %v2202_v8 = vsel %vm1835_vm2, %v13037_v30, %v10354_v50  ;;  %2239 = vmatprep.subr.bf16.mxu0 %v13039_v31  ;;  %2280 = vmatprep.subr.bf16.mxu1 %v9982_v55  ;;  %v2306_v2 = vpack.c.b16 %v2304_v58, %v2304_v58  ;;  %v13042_v50 = vld [vmem:[#allocation135_spill] sm:$0xff]  ;;  %v13044_v55 = vld [vmem:[#allocation137_spill] sm:$0xff]  ;;  %v8329_v49 = vld [vmem:[%s12568_s2 + $0xe4] ss:$16 sps:$4 sm:$0xff]  }
 0x1bd   :  { %v2205_v25 = vpack.c.b16 %v2202_v8, %v2202_v8  ;;  %v8326_v61 = vld [vmem:[%s12568_s2 + $0xcc] ss:$16 sps:$4 sm:$0xff]   ;;  %v8328_v27 = vld [vmem:[%s12568_s2 + $0xc8] ss:$16 sps:$4 sm:$0xff]   ;;  %v53_v47 = vld [vmem:[%s12570_s1 + $0x6] sm:$0x3] }
 0x1be   :  { %v8330_v18 = vld [vmem:[%s12568_s2 + $0xec] ss:$16 sps:$4 sm:$0xff]   ;;  %v8331_v30 = vld [vmem:[%s12568_s2 + $0xe0] ss:$16 sps:$4 sm:$0xff]   ;;  %v8332_v8 = vld [vmem:[%s12568_s2 + $0xe8] ss:$16 sps:$4 sm:$0xff]  }
 0x1bf   :  { %2240 = vmatpush1.bf16.msra.mxu0 %v9991_v11  ;;  %2281 = vmatpush1.bf16.msra.mxu1 %v13040_v51  ;;  %v13045_v11 = vld [vmem:[#allocation138_spill] sm:$0xff]  ;;  %v8334_v31 = vld [vmem:[%s12568_s2 + $0x10c] ss:$16 sps:$4 sm:$0xff]   ;;  %v8336_v51 = vld [vmem:[%s12568_s2 + $0x108] ss:$16 sps:$4 sm:$0xff]  }
 0x1c0   :  { %2309 = vmatprep.subr.bf16.mxu0 %v13041_v54  ;;  %2350 = vmatprep.subr.bf16.mxu1 %v10009_v62  ;;  %v13048_v62 = vld [vmem:[#allocation141_spill] sm:$0xff]  ;;  %v8333_v43 = vld [vmem:[%s12568_s2 + $0x104] ss:$16 sps:$4 sm:$0xff]   ;;  %v8335_v58 = vld [vmem:[%s12568_s2 + $0x100] ss:$16 sps:$4 sm:$0xff]  }
 0x1c1   :  { %v8337_v54 = vld [vmem:[%s12568_s2 + $0x124] ss:$16 sps:$4 sm:$0xff]  }
 0x1c2   :  { %2242 = vmatmul.mubr.bf16.vlgmr.msra.gmra.mrb[20].mxu0 %v2205_v25  ;;  %2283 = vmatmul.mubr.bf16.vlgmr.msra.gmra.mrb[20].mxu1 %v2205_v25  ;;  %v57_v25 = vunpack.c.l.bf16 %v53_v47  ;;  %v8358_v47 = vld [vmem:[%s12568_s2 + $0x1cc] ss:$16 sps:$4 sm:$0xff]  }
 0x1c3   :  { %2310 = vmatpush1.bf16.msra.mxu0 %v10015_v46  ;;  %2351 = vmatpush1.bf16.msra.mxu1 %v13042_v50  ;;  %v8317_v46 = vld [vmem:[%s12568_s2 + $0x84] ss:$16 sps:$4 sm:$0xff]   ;;  %v13051_v50 = vld [vmem:[#allocation7_spill] sm:$0xff] }
 0x1c4   :  { %2311 = vmatprep.subr.bf16.mxu0 %v13043_v41  ;;  %2352 = vmatprep.subr.bf16.mxu1 %v13044_v55  ;;  %v10699_v41 = vrot.slane %v57_v25, %v13051_v50  ;;  %v8339_v55 = vld [vmem:[%s12568_s2 + $0x120] ss:$16 sps:$4 sm:$0xff]   ;;  %v8360_v25 = vld [vmem:[%s12568_s2 + $0x1c8] ss:$16 sps:$4 sm:$0xff]  }
 0x1c5   :  { %2341 = vmatprep.mubr.bf16.mxu0 %v2306_v2  ;;  %2382 = vmatprep.mubr.bf16.mxu1 %v2306_v2  ;;  %v8338_v2 = vld [vmem:[%s12568_s2 + $0x12c] ss:$16 sps:$4 sm:$0xff]   ;;  %v8363_v50 = vld [vmem:[%s12568_s2 + $0x1e0] ss:$16 sps:$4 sm:$0xff]  }
 0x1c7   :  { %2312 = vmatpush1.bf16.msra.mxu0 %v13045_v11  ;;  %2353 = vmatpush1.bf16.msra.mxu1 %v13046_v29  ;;  %v8340_v11 = vld [vmem:[%s12568_s2 + $0x128] ss:$16 sps:$4 sm:$0xff]   ;;  %v8341_v29 = vld [vmem:[%s12568_s2 + $0x144] ss:$16 sps:$4 sm:$0xff]  }
 0x1c8   :  { %2313 = vmatprep.subr.bf16.mxu0 %v13047_v34  ;;  %2354 = vmatprep.subr.bf16.mxu1 %v13048_v62  ;;  %v8342_v34 = vld [vmem:[%s12568_s2 + $0x14c] ss:$16 sps:$4 sm:$0xff]   ;;  %v10715_v62 = vcombine.high %v10699_v41, %v10699_v41 }
 0x1cb   :  { %2314 = vmatpush1.bf16.msra.mxu0 %v13049_v57  ;;  %2355 = vmatpush1.bf16.msra.mxu1 %v13050_v35  ;;  %v8343_v57 = vld [vmem:[%s12568_s2 + $0x140] ss:$16 sps:$4 sm:$0xff]   ;;  %v8344_v35 = vld [vmem:[%s12568_s2 + $0x148] ss:$16 sps:$4 sm:$0xff]  }
 0x1cc   :  { %2315 = vmatprep.subr.bf16.mxu0 %v10075_v6  ;;  %2356 = vmatprep.subr.bf16.mxu1 %v10081_v4  ;;  %v8319_v6 = vld [vmem:[%s12568_s2 + $0x80] ss:$16 sps:$4 sm:$0xff]  }
 0x1cf   :  { %2316 = vmatpush1.bf16.msra.mxu0 %v10087_v7  ;;  %2357 = vmatpush1.bf16.msra.mxu1 %v10093_v52  ;;  %v8320_v7 = vld [vmem:[%s12568_s2 + $0x88] ss:$16 sps:$4 sm:$0xff]   ;;  %v8321_v52 = vld [vmem:[%s12568_s2 + $0xa4] ss:$16 sps:$4 sm:$0xff]  }
 0x1d0   :  { %2317 = vmatprep.subr.bf16.mxu0 %v8317_v46  ;;  %2358 = vmatprep.subr.bf16.mxu1 %v8318_v38  ;;  %v8345_v46 = vld [vmem:[%s12568_s2 + $0x164] ss:$16 sps:$4 sm:$0xff]   ;;  %v8346_v38 = vld [vmem:[%s12568_s2 + $0x16c] ss:$16 sps:$4 sm:$0xff]  }
 0x1d3   :  { %2318 = vmatpush1.bf16.msra.mxu0 %v8319_v6  ;;  %2359 = vmatpush1.bf16.msra.mxu1 %v8320_v7  ;;  %v2406_v6 = vrot.slane %v10715_v62, %v12980_v19  ;;  %v8347_v7 = vld [vmem:[%s12568_s2 + $0x160] ss:$16 sps:$4 sm:$0xff]  }
 0x1d4   :  { %2319 = vmatprep.subr.bf16.mxu0 %v8321_v52  ;;  %2360 = vmatprep.subr.bf16.mxu1 %v8322_v45  ;;  %v6679_v52 = vcombine.low %v10319_v44, %v10319_v44  ;;  %v8349_v45 = vld [vmem:[%s12568_s2 + $0x184] ss:$16 sps:$4 sm:$0xff]   ;;  %v2398_v44 = vrot.slane %v10699_v41, %v12980_v19 }
 0x1d5   :  { %v1877_v4 = vpop.f32.mrb[8].mxu0  ;;  %v1918_v39 = vpop.f32.mrb[8].mxu1 }
 0x1d6   :  { %v1879_v17 = vpop.f32.mrb[9].mxu0  ;;  %v1920_v60 = vpop.f32.mrb[9].mxu1  ;;  %v6681_v4 = vcombine.low %v10331_v9, %v10331_v9  ;;  %v8348_v39 = vld [vmem:[%s12568_s2 + $0x168] ss:$16 sps:$4 sm:$0xff]   ;;  %v8351_v9 = vld [vmem:[%s12568_s2 + $0x180] ss:$16 sps:$4 sm:$0xff]  }
 0x1d7   :  { %v1881_v26 = vpop.f32.mrb[10].mxu0  ;;  %v1922_v22 = vpop.f32.mrb[10].mxu1  ;;  %2320 = vmatpush1.bf16.msra.mxu0 %v8323_v36  ;;  %2361 = vmatpush1.bf16.msra.mxu1 %v8324_v33  ;;  %v8350_v17 = vld [vmem:[%s12568_s2 + $0x18c] ss:$16 sps:$4 sm:$0xff]   ;;  %v2414_v60 = vpack.c.bf16 %v2406_v6, %v2406_v6  ;;  %v8352_v36 = vld [vmem:[%s12568_s2 + $0x188] ss:$16 sps:$4 sm:$0xff]  }
 0x1d8   :  { %v1882_v28 = vpop.f32.mrb[11].mxu0  ;;  %v1923_v48 = vpop.f32.mrb[11].mxu1  ;;  %2321 = vmatprep.subr.bf16.mxu0 %v8325_v24  ;;  %2362 = vmatprep.subr.bf16.mxu1 %v8326_v61  ;;  %v2295_v26 = vunpack.c.l.b16 %v6679_v52  ;;  %v2297_v22 = vunpack.c.l.b16 %v6681_v4  ;;  %v8353_v33 = vld [vmem:[%s12568_s2 + $0x1a4] ss:$16 sps:$4 sm:$0xff]   ;;  %v8355_v61 = vld [vmem:[%s12568_s2 + $0x1a0] ss:$16 sps:$4 sm:$0xff]  }
 0x1d9   :  { %v8354_v28 = vld [vmem:[%s12568_s2 + $0x1ac] ss:$16 sps:$4 sm:$0xff]   ;;  %v2412_v48 = vpack.c.bf16 %v2398_v44, %v2398_v44  ;;  %v2422_v24 = vunpack.c.l.b16 %v2414_v60  ;;  %v8371_v6 = vld [vmem:[%s12568_s2 + $0x420] ss:$16 sps:$4 sm:$0xff]   ;;  %v8373_v52 = vld [vmem:[%s12568_s2 + $0x444] ss:$16 sps:$4 sm:$0xff]  }
 0x1da   :  { %v8374_v4 = vld [vmem:[%s12568_s2 + $0x44c] ss:$16 sps:$4 sm:$0xff]   ;;  %v8379_v60 = vld [vmem:[%s12568_s2 + $0x460] ss:$16 sps:$4 sm:$0xff]  }
 0x1db   :  { %2322 = vmatpush1.bf16.msra.mxu0 %v8327_v53  ;;  %2363 = vmatpush1.bf16.msra.mxu1 %v8328_v27  ;;  %v2299_v53 = vrot.slane %v2295_v26, 7  ;;  %v2300_v27 = vrot.slane %v2297_v22, 6  ;;  %v8378_v44 = vld [vmem:[%s12568_s2 + $0x46c] ss:$16 sps:$4 sm:$0xff]   ;;  %v8381_v26 = vld [vmem:[%s12568_s2 + $0x484] ss:$16 sps:$4 sm:$0xff]  }
 0x1dc   :  { %2323 = vmatprep.subr.bf16.mxu0 %v8329_v49  ;;  %2364 = vmatprep.subr.bf16.mxu1 %v8330_v18  ;;  %v8356_v49 = vld [vmem:[%s12568_s2 + $0x1a8] ss:$16 sps:$4 sm:$0xff]   ;;  %v8357_v18 = vld [vmem:[%s12568_s2 + $0x1c4] ss:$16 sps:$4 sm:$0xff]   ;;  %v8382_v22 = vld [vmem:[%s12568_s2 + $0x48c] ss:$16 sps:$4 sm:$0xff]  }
 0x1df   :  { %2324 = vmatpush1.bf16.msra.mxu0 %v8331_v30  ;;  %2365 = vmatpush1.bf16.msra.mxu1 %v8332_v8  ;;  %v2420_v30 = vunpack.c.l.b16 %v2412_v48  ;;  %v2425_v8 = vrot.slane %v2422_v24, 7 }
 0x1e0   :  { %2325 = vmatprep.subr.bf16.mxu0 %v8333_v43  ;;  %2366 = vmatprep.subr.bf16.mxu1 %v8334_v31  ;;  %v8359_v43 = vld [vmem:[%s12568_s2 + $0x1c0] ss:$16 sps:$4 sm:$0xff]   ;;  %v2301_v31 = vsel %vm1835_vm2, %v2300_v27, %v2299_v53 }
 0x1e3   :  { %2326 = vmatpush1.bf16.msra.mxu0 %v8335_v58  ;;  %2367 = vmatpush1.bf16.msra.mxu1 %v8336_v51  ;;  %v8361_v58 = vld [vmem:[%s12568_s2 + $0x1e4] ss:$16 sps:$4 sm:$0xff]   ;;  %v8362_v51 = vld [vmem:[%s12568_s2 + $0x1ec] ss:$16 sps:$4 sm:$0xff]  }
 0x1e4   :  { %2327 = vmatprep.subr.bf16.mxu0 %v8337_v54  ;;  %2368 = vmatprep.subr.bf16.mxu1 %v8338_v2  ;;  %v2305_v54 = vpack.c.b16 %v2301_v31, %v2301_v31  ;;  %v2426_v2 = vsel %vm1835_vm2, %v2425_v8, %v2420_v30  ;;  %v8388_v30 = vld [vmem:[%s12568_s2 + $0x4a8] ss:$16 sps:$4 sm:$0xff]   ;;  %v8389_v31 = vld [vmem:[%s12568_s2 + $0x4c4] ss:$16 sps:$4 sm:$0xff]  }
 0x1e7   :  { %2328 = vmatpush1.bf16.msra.mxu0 %v8339_v55  ;;  %2369 = vmatpush1.bf16.msra.mxu1 %v8340_v11  ;;  %v8364_v55 = vld [vmem:[%s12568_s2 + $0x1e8] ss:$16 sps:$4 sm:$0xff]   ;;  %v8365_v11 = vld [vmem:[%s12568_s2 + $0x404] ss:$16 sps:$4 sm:$0xff]  }
 0x1e8   :  { %2329 = vmatprep.subr.bf16.mxu0 %v8341_v29  ;;  %2370 = vmatprep.subr.bf16.mxu1 %v8342_v34  ;;  %v8366_v29 = vld [vmem:[%s12568_s2 + $0x40c] ss:$16 sps:$4 sm:$0xff]   ;;  %v2428_v34 = vpack.c.b16 %v2426_v2, %v2426_v2 }
 0x1e9   :  { %v8394_v2 = vld [vmem:[%s12568_s2 + $0x4ec] ss:$16 sps:$4 sm:$0xff]  }
 0x1eb   :  { %2330 = vmatpush1.bf16.msra.mxu0 %v8343_v57  ;;  %2371 = vmatpush1.bf16.msra.mxu1 %v8344_v35  ;;  %v8367_v57 = vld [vmem:[%s12568_s2 + $0x400] ss:$16 sps:$4 sm:$0xff]   ;;  %v8368_v35 = vld [vmem:[%s12568_s2 + $0x408] ss:$16 sps:$4 sm:$0xff]  }
 0x1ec   :  { %2331 = vmatprep.subr.bf16.mxu0 %v8345_v46  ;;  %2372 = vmatprep.subr.bf16.mxu1 %v8346_v38  ;;  %v8369_v46 = vld [vmem:[%s12568_s2 + $0x424] ss:$16 sps:$4 sm:$0xff]   ;;  %v8370_v38 = vld [vmem:[%s12568_s2 + $0x42c] ss:$16 sps:$4 sm:$0xff]  }
 0x1ef   :  { %2332 = vmatpush1.bf16.msra.mxu0 %v8347_v7  ;;  %2373 = vmatpush1.bf16.msra.mxu1 %v8348_v39  ;;  %v8372_v7 = vld [vmem:[%s12568_s2 + $0x428] ss:$16 sps:$4 sm:$0xff]   ;;  %v8375_v39 = vld [vmem:[%s12568_s2 + $0x440] ss:$16 sps:$4 sm:$0xff]  }
 0x1f0   :  { %2333 = vmatprep.subr.bf16.mxu0 %v8349_v45  ;;  %2374 = vmatprep.subr.bf16.mxu1 %v8350_v17  ;;  %v8376_v45 = vld [vmem:[%s12568_s2 + $0x448] ss:$16 sps:$4 sm:$0xff]   ;;  %v8377_v17 = vld [vmem:[%s12568_s2 + $0x464] ss:$16 sps:$4 sm:$0xff]  }
 0x1f3   :  { %2334 = vmatpush1.bf16.msra.mxu0 %v8351_v9  ;;  %2375 = vmatpush1.bf16.msra.mxu1 %v8352_v36  ;;  %v8380_v9 = vld [vmem:[%s12568_s2 + $0x468] ss:$16 sps:$4 sm:$0xff]   ;;  %v8383_v36 = vld [vmem:[%s12568_s2 + $0x480] ss:$16 sps:$4 sm:$0xff]  }
 0x1f4   :  { %2335 = vmatprep.subr.bf16.mxu0 %v8353_v33  ;;  %2376 = vmatprep.subr.bf16.mxu1 %v8354_v28  ;;  %v8384_v33 = vld [vmem:[%s12568_s2 + $0x488] ss:$16 sps:$4 sm:$0xff]   ;;  %v8385_v28 = vld [vmem:[%s12568_s2 + $0x4a4] ss:$16 sps:$4 sm:$0xff]  }
 0x1f7   :  { %2336 = vmatpush1.bf16.msra.mxu0 %v8355_v61  ;;  %2377 = vmatpush1.bf16.msra.mxu1 %v8356_v49  ;;  %v8386_v61 = vld [vmem:[%s12568_s2 + $0x4ac] ss:$16 sps:$4 sm:$0xff]  }
 0x1f8   :  { %2337 = vmatprep.subr.bf16.mxu0 %v8357_v18  ;;  %2378 = vmatprep.subr.bf16.mxu1 %v8358_v47  ;;  %v8387_v47 = vld [vmem:[%s12568_s2 + $0x4a0] ss:$16 sps:$4 sm:$0xff]  }
 0x1fb   :  { %2338 = vmatpush1.bf16.msra.mxu0 %v8359_v43  ;;  %2379 = vmatpush1.bf16.msra.mxu1 %v8360_v25  ;;  %v8390_v25 = vld [vmem:[%s12568_s2 + $0x4cc] ss:$16 sps:$4 sm:$0xff]  }
 0x1fc   :  { %2339 = vmatprep.subr.bf16.mxu0 %v8361_v58  ;;  %2380 = vmatprep.subr.bf16.mxu1 %v8362_v51  ;;  %v8391_v58 = vld [vmem:[%s12568_s2 + $0x4c0] ss:$16 sps:$4 sm:$0xff]   ;;  %v8392_v51 = vld [vmem:[%s12568_s2 + $0x4c8] ss:$16 sps:$4 sm:$0xff]  }
 0x1ff   :  { %2340 = vmatpush1.bf16.msra.mxu0 %v8363_v50  ;;  %2381 = vmatpush1.bf16.msra.mxu1 %v8364_v55  ;;  %v8395_v50 = vld [vmem:[%s12568_s2 + $0x4e0] ss:$16 sps:$4 sm:$0xff]   ;;  %v8396_v55 = vld [vmem:[%s12568_s2 + $0x4e8] ss:$16 sps:$4 sm:$0xff]  }
 0x200   :  { %2431 = vmatprep.subr.bf16.mxu0 %v8365_v11  ;;  %2472 = vmatprep.subr.bf16.mxu1 %v8366_v29  ;;  %v8397_v11 = vld [vmem:[%s12568_s2 + $0x504] ss:$16 sps:$4 sm:$0xff]   ;;  %v8398_v29 = vld [vmem:[%s12568_s2 + $0x50c] ss:$16 sps:$4 sm:$0xff]  }
 0x202   :  { %2342 = vmatmul.mubr.bf16.vlgmr.msra.gmra.mrb[24].mxu0 %v2305_v54  ;;  %2383 = vmatmul.mubr.bf16.vlgmr.msra.gmra.mrb[24].mxu1 %v2305_v54  ;;  %v8393_v54 = vld [vmem:[%s12568_s2 + $0x4e4] ss:$16 sps:$4 sm:$0xff]  }
 0x203   :  { %2432 = vmatpush1.bf16.msra.mxu0 %v8367_v57  ;;  %2473 = vmatpush1.bf16.msra.mxu1 %v8368_v35  ;;  %v8400_v57 = vld [vmem:[%s12568_s2 + $0x508] ss:$16 sps:$4 sm:$0xff]   ;;  %v8401_v35 = vld [vmem:[%s12568_s2 + $0x524] ss:$16 sps:$4 sm:$0xff]  }
 0x204   :  { %2433 = vmatprep.subr.bf16.mxu0 %v8369_v46  ;;  %2474 = vmatprep.subr.bf16.mxu1 %v8370_v38  ;;  %v8402_v46 = vld [vmem:[%s12568_s2 + $0x52c] ss:$16 sps:$4 sm:$0xff]   ;;  %v8403_v38 = vld [vmem:[%s12568_s2 + $0x520] ss:$16 sps:$4 sm:$0xff]  }
 0x205   :  { %2463 = vmatprep.mubr.bf16.mxu0 %v2428_v34  ;;  %2504 = vmatprep.mubr.bf16.mxu1 %v2428_v34  ;;  %v8399_v34 = vld [vmem:[%s12568_s2 + $0x500] ss:$16 sps:$4 sm:$0xff]  }
 0x207   :  { %2434 = vmatpush1.bf16.msra.mxu0 %v8371_v6  ;;  %2475 = vmatpush1.bf16.msra.mxu1 %v8372_v7  ;;  %v8404_v6 = vld [vmem:[%s12568_s2 + $0x528] ss:$16 sps:$4 sm:$0xff]   ;;  %v8405_v7 = vld [vmem:[%s12568_s2 + $0x544] ss:$16 sps:$4 sm:$0xff]  }
 0x208   :  { %2435 = vmatprep.subr.bf16.mxu0 %v8373_v52  ;;  %2476 = vmatprep.subr.bf16.mxu1 %v8374_v4  ;;  %v8406_v52 = vld [vmem:[%s12568_s2 + $0x54c] ss:$16 sps:$4 sm:$0xff]   ;;  %v8407_v4 = vld [vmem:[%s12568_s2 + $0x540] ss:$16 sps:$4 sm:$0xff]  }
 0x20b   :  { %2436 = vmatpush1.bf16.msra.mxu0 %v8375_v39  ;;  %2477 = vmatpush1.bf16.msra.mxu1 %v8376_v45  ;;  %v2402_v39 = vrot.slane %v10715_v62, %v9053_v40  ;;  %v8408_v45 = vld [vmem:[%s12568_s2 + $0x548] ss:$16 sps:$4 sm:$0xff]   ;;  %v2394_v62 = vrot.slane %v10699_v41, %v9053_v40  ;;  %v8415_v41 = vld [vmem:[%s12568_s2 + $0x580] ss:$16 sps:$4 sm:$0xff]  }
 0x20c   :  { %2437 = vmatprep.subr.bf16.mxu0 %v8377_v17  ;;  %2478 = vmatprep.subr.bf16.mxu1 %v8378_v44  ;;  %v8409_v17 = vld [vmem:[%s12568_s2 + $0x564] ss:$16 sps:$4 sm:$0xff]   ;;  %v8410_v44 = vld [vmem:[%s12568_s2 + $0x56c] ss:$16 sps:$4 sm:$0xff]  }
 0x20f   :  { %2438 = vmatpush1.bf16.msra.mxu0 %v8379_v60  ;;  %2479 = vmatpush1.bf16.msra.mxu1 %v8380_v9  ;;  %v8411_v60 = vld [vmem:[%s12568_s2 + $0x560] ss:$16 sps:$4 sm:$0xff]   ;;  %v2413_v9 = vpack.c.bf16 %v2402_v39, %v2402_v39  ;;  %v7581_v39 = vld [vmem:[%s12573_s8 + $0x64] ss:$16 sps:$4 sm:$0xff]  }
 0x210   :  { %2439 = vmatprep.subr.bf16.mxu0 %v8381_v26  ;;  %2480 = vmatprep.subr.bf16.mxu1 %v8382_v22  ;;  %v8412_v26 = vld [vmem:[%s12568_s2 + $0x568] ss:$16 sps:$4 sm:$0xff]   ;;  %v8413_v22 = vld [vmem:[%s12568_s2 + $0x584] ss:$16 sps:$4 sm:$0xff]  }
 0x213   :  { %2440 = vmatpush1.bf16.msra.mxu0 %v8383_v36  ;;  %2481 = vmatpush1.bf16.msra.mxu1 %v8384_v33  ;;  %v8414_v36 = vld [vmem:[%s12568_s2 + $0x58c] ss:$16 sps:$4 sm:$0xff]   ;;  %v2411_v33 = vpack.c.bf16 %v2394_v62, %v2394_v62  ;;  %v7585_v62 = vld [vmem:[%s12573_s8 + $0x80] ss:$16 sps:$4 sm:$0xff]  }
 0x214   :  { %2441 = vmatprep.subr.bf16.mxu0 %v8385_v28  ;;  %2482 = vmatprep.subr.bf16.mxu1 %v8386_v61  ;;  %v2421_v28 = vunpack.c.l.b16 %v2413_v9  ;;  %v8418_v61 = vld [vmem:[%s12568_s2 + $0x5ac] ss:$16 sps:$4 sm:$0xff]  }
 0x215   :  { %v1975_v48 = vpop.f32.mrb[12].mxu0  ;;  %v2016_v24 = vpop.f32.mrb[12].mxu1  ;;  %v7590_v9 = vld [vmem:[%s12573_s8 + $0x8c] ss:$16 sps:$4 sm:$0xff]  }
 0x216   :  { %v1977_v53 = vpop.f32.mrb[13].mxu0  ;;  %v2018_v27 = vpop.f32.mrb[13].mxu1  ;;  %v8416_v48 = vld [vmem:[%s12568_s2 + $0x588] ss:$16 sps:$4 sm:$0xff]   ;;  %v8417_v24 = vld [vmem:[%s12568_s2 + $0x5a4] ss:$16 sps:$4 sm:$0xff]  }
 0x217   :  { %v1979_v49 = vpop.f32.mrb[14].mxu0  ;;  %v2020_v18 = vpop.f32.mrb[14].mxu1  ;;  %2442 = vmatpush1.bf16.msra.mxu0 %v8387_v47  ;;  %2483 = vmatpush1.bf16.msra.mxu1 %v8388_v30  ;;  %v8419_v53 = vld [vmem:[%s12568_s2 + $0x5a0] ss:$16 sps:$4 sm:$0xff]   ;;  %v2419_v27 = vunpack.c.l.b16 %v2411_v33  ;;  %v8421_v47 = vld [vmem:[%s12568_s2 + $0x5c4] ss:$16 sps:$4 sm:$0xff]  }
 0x218   :  { %v1980_v8 = vpop.f32.mrb[15].mxu0  ;;  %v2021_v43 = vpop.f32.mrb[15].mxu1  ;;  %2443 = vmatprep.subr.bf16.mxu0 %v8389_v31  ;;  %2484 = vmatprep.subr.bf16.mxu1 %v8390_v25  ;;  %v2423_v49 = vrot.slane %v2421_v28, 7  ;;  %v8420_v18 = vld [vmem:[%s12568_s2 + $0x5a8] ss:$16 sps:$4 sm:$0xff]  }
 0x219   :  { %v8422_v30 = vld [vmem:[%s12568_s2 + $0x5cc] ss:$16 sps:$4 sm:$0xff]   ;;  %v8423_v8 = vld [vmem:[%s12568_s2 + $0x5c0] ss:$16 sps:$4 sm:$0xff]   ;;  %v8424_v31 = vld [vmem:[%s12568_s2 + $0x5c8] ss:$16 sps:$4 sm:$0xff]  }
 0x21a   :  { %v2424_v43 = vsel %vm1835_vm2, %v2423_v49, %v2419_v27  ;;  %v8425_v25 = vld [vmem:[%s12568_s2 + $0x5e4] ss:$16 sps:$4 sm:$0xff]   ;;  %v7594_v33 = vld [vmem:[%s12573_s8 + $0xa8] ss:$16 sps:$4 sm:$0xff]  }
 0x21b   :  { %2444 = vmatpush1.bf16.msra.mxu0 %v8391_v58  ;;  %2485 = vmatpush1.bf16.msra.mxu1 %v8392_v51  ;;  %v7563_v58 = vld [vmem:[%s12573_s8 + $0x4] ss:$16 sps:$4 sm:$0xff]   ;;  %v8426_v51 = vld [vmem:[%s12568_s2 + $0x5ec] ss:$16 sps:$4 sm:$0xff]  }
 0x21c   :  { %2445 = vmatprep.subr.bf16.mxu0 %v8393_v54  ;;  %2486 = vmatprep.subr.bf16.mxu1 %v8394_v2  ;;  %v7561_v54 = vld [vmem:[%s12573_s8] ss:$16 sps:$4 sm:$0xff]   ;;  %v7566_v2 = vld [vmem:[%s12573_s8 + $0xc] ss:$16 sps:$4 sm:$0xff]   ;;  %v7599_v28 = vld [vmem:[%s12573_s8 + $0xc4] ss:$16 sps:$4 sm:$0xff]  }
 0x21f   :  { %2446 = vmatpush1.bf16.msra.mxu0 %v8395_v50  ;;  %2487 = vmatpush1.bf16.msra.mxu1 %v8396_v55  ;;  %v2427_v50 = vpack.c.b16 %v2424_v43, %v2424_v43  ;;  %v7564_v55 = vld [vmem:[%s12573_s8 + $0x8] ss:$16 sps:$4 sm:$0xff]  }
 0x220   :  { %2447 = vmatprep.subr.bf16.mxu0 %v8397_v11  ;;  %2488 = vmatprep.subr.bf16.mxu1 %v8398_v29  ;;  %v7569_v11 = vld [vmem:[%s12573_s8 + $0x24] ss:$16 sps:$4 sm:$0xff]   ;;  %v8427_v29 = vld [vmem:[%s12568_s2 + $0x5e0] ss:$16 sps:$4 sm:$0xff]   ;;  %v7600_v43 = vld [vmem:[%s12573_s8 + $0xc8] ss:$16 sps:$4 sm:$0xff]  }
 0x223   :  { %2448 = vmatpush1.bf16.msra.mxu0 %v8399_v34  ;;  %2489 = vmatpush1.bf16.msra.mxu1 %v8400_v57  ;;  %v7572_v34 = vld [vmem:[%s12573_s8 + $0x2c] ss:$16 sps:$4 sm:$0xff]   ;;  %v8428_v57 = vld [vmem:[%s12568_s2 + $0x5e8] ss:$16 sps:$4 sm:$0xff]  }
 0x224   :  { %2449 = vmatprep.subr.bf16.mxu0 %v8401_v35  ;;  %2490 = vmatprep.subr.bf16.mxu1 %v8402_v46  ;;  %v7567_v35 = vld [vmem:[%s12573_s8 + $0x20] ss:$16 sps:$4 sm:$0xff]   ;;  %v7570_v46 = vld [vmem:[%s12573_s8 + $0x28] ss:$16 sps:$4 sm:$0xff]  }
 0x227   :  { %2450 = vmatpush1.bf16.msra.mxu0 %v8403_v38  ;;  %2491 = vmatpush1.bf16.msra.mxu1 %v8404_v6  ;;  %v7575_v38 = vld [vmem:[%s12573_s8 + $0x44] ss:$16 sps:$4 sm:$0xff]   ;;  %v7573_v6 = vld [vmem:[%s12573_s8 + $0x40] ss:$16 sps:$4 sm:$0xff]  }
 0x228   :  { %2451 = vmatprep.subr.bf16.mxu0 %v8405_v7  ;;  %2492 = vmatprep.subr.bf16.mxu1 %v8406_v52  ;;  %v7578_v7 = vld [vmem:[%s12573_s8 + $0x4c] ss:$16 sps:$4 sm:$0xff]   ;;  %v13052_v52 = vld [vmem:[#allocation2_spill] sm:$0xff] }
 0x22b   :  { %2452 = vmatpush1.bf16.msra.mxu0 %v8407_v4  ;;  %2493 = vmatpush1.bf16.msra.mxu1 %v8408_v45  ;;  %v7576_v4 = vld [vmem:[%s12573_s8 + $0x48] ss:$16 sps:$4 sm:$0xff]   ;;  %v7584_v45 = vld [vmem:[%s12573_s8 + $0x6c] ss:$16 sps:$4 sm:$0xff]  }
 0x22c   :  { %2453 = vmatprep.subr.bf16.mxu0 %v8409_v17  ;;  %2494 = vmatprep.subr.bf16.mxu1 %v8410_v44  ;;  %v7579_v17 = vld [vmem:[%s12573_s8 + $0x60] ss:$16 sps:$4 sm:$0xff]   ;;  %v7582_v44 = vld [vmem:[%s12573_s8 + $0x68] ss:$16 sps:$4 sm:$0xff]  }
 0x22f   :  { %2454 = vmatpush1.bf16.msra.mxu0 %v8411_v60  ;;  %2495 = vmatpush1.bf16.msra.mxu1 %v8412_v26  ;;  %v7587_v60 = vld [vmem:[%s12573_s8 + $0x84] ss:$16 sps:$4 sm:$0xff]   ;;  %v7588_v26 = vld [vmem:[%s12573_s8 + $0x88] ss:$16 sps:$4 sm:$0xff]  }
 0x230   :  { %2455 = vmatprep.subr.bf16.mxu0 %v8413_v22  ;;  %2496 = vmatprep.subr.bf16.mxu1 %v8414_v36  ;;  %v7593_v22 = vld [vmem:[%s12573_s8 + $0xa4] ss:$16 sps:$4 sm:$0xff]   ;;  %v7591_v36 = vld [vmem:[%s12573_s8 + $0xa0] ss:$16 sps:$4 sm:$0xff]  }
 0x233   :  { %2456 = vmatpush1.bf16.msra.mxu0 %v8415_v41  ;;  %2497 = vmatpush1.bf16.msra.mxu1 %v8416_v48  ;;  %v7596_v41 = vld [vmem:[%s12573_s8 + $0xac] ss:$16 sps:$4 sm:$0xff]  }
 0x234   :  { %2457 = vmatprep.subr.bf16.mxu0 %v8417_v24  ;;  %2498 = vmatprep.subr.bf16.mxu1 %v8418_v61  ;;  %v7602_v48 = vld [vmem:[%s12573_s8 + $0xcc] ss:$16 sps:$4 sm:$0xff]  }
 0x237   :  { %2458 = vmatpush1.bf16.msra.mxu0 %v8419_v53  ;;  %2499 = vmatpush1.bf16.msra.mxu1 %v8420_v18 }
 0x238   :  { %2459 = vmatprep.subr.bf16.mxu0 %v8421_v47  ;;  %2500 = vmatprep.subr.bf16.mxu1 %v8422_v30  ;;  %v7597_v47 = vld [vmem:[%s12573_s8 + $0xc0] ss:$16 sps:$4 sm:$0xff]  }
 0x23b   :  { %2460 = vmatpush1.bf16.msra.mxu0 %v8423_v8  ;;  %2501 = vmatpush1.bf16.msra.mxu1 %v8424_v31  ;;  %v7605_v31 = vld [vmem:[%s12573_s8 + $0xe4] ss:$16 sps:$4 sm:$0xff]  }
 0x23c   :  { %2461 = vmatprep.subr.bf16.mxu0 %v8425_v25  ;;  %2502 = vmatprep.subr.bf16.mxu1 %v8426_v51  ;;  %v7603_v25 = vld [vmem:[%s12573_s8 + $0xe0] ss:$16 sps:$4 sm:$0xff]   ;;  %v7606_v51 = vld [vmem:[%s12573_s8 + $0xe8] ss:$16 sps:$4 sm:$0xff]  }
 0x23f   :  { %2462 = vmatpush1.bf16.msra.mxu0 %v8427_v29  ;;  %2503 = vmatpush1.bf16.msra.mxu1 %v8428_v57  ;;  %v7615_v29 = vld [vmem:[%s12573_s8 + $0x120] ss:$16 sps:$4 sm:$0xff]   ;;  %v7618_v57 = vld [vmem:[%s12573_s8 + $0x128] ss:$16 sps:$4 sm:$0xff]  }
 0x240   :  { %2953 = vmatprep.subr.bf16.mxu0 %v7563_v58  ;;  %3006 = vmatprep.subr.bf16.mxu1 %v7566_v2  ;;  %v7608_v58 = vld [vmem:[%s12573_s8 + $0xec] ss:$16 sps:$4 sm:$0xff]   ;;  %v7609_v2 = vld [vmem:[%s12573_s8 + $0x100] ss:$16 sps:$4 sm:$0xff]  }
 0x242   :  { %2464 = vmatmul.mubr.bf16.vlgmr.msra.gmra.mrb[28].mxu0 %v2427_v50  ;;  %2505 = vmatmul.mubr.bf16.vlgmr.msra.gmra.mrb[28].mxu1 %v2427_v50  ;;  %v7614_v50 = vld [vmem:[%s12573_s8 + $0x10c] ss:$16 sps:$4 sm:$0xff]  }
 0x243   :  { %2954 = vmatpush1.bf16.msra.mxu0 %v7561_v54  ;;  %3007 = vmatpush1.bf16.msra.mxu1 %v7564_v55  ;;  %v7611_v54 = vld [vmem:[%s12573_s8 + $0x104] ss:$16 sps:$4 sm:$0xff]   ;;  %v7612_v55 = vld [vmem:[%s12573_s8 + $0x108] ss:$16 sps:$4 sm:$0xff]  }
 0x244   :  { %2955 = vmatprep.subr.bf16.mxu0 %v7569_v11  ;;  %3008 = vmatprep.subr.bf16.mxu1 %v7572_v34  ;;  %v7617_v11 = vld [vmem:[%s12573_s8 + $0x124] ss:$16 sps:$4 sm:$0xff]   ;;  %v7620_v34 = vld [vmem:[%s12573_s8 + $0x12c] ss:$16 sps:$4 sm:$0xff]  }
 0x245   :  { %2985 = vmatprep.mubr.bf16.mxu0 %v13052_v52  ;;  %3038 = vmatprep.mubr.bf16.mxu1 %v13052_v52  ;;  %v7627_v52 = vld [vmem:[%s12573_s8 + $0x160] ss:$16 sps:$4 sm:$0xff]  }
 0x247   :  { %2956 = vmatpush1.bf16.msra.mxu0 %v7567_v35  ;;  %3009 = vmatpush1.bf16.msra.mxu1 %v7570_v46  ;;  %v7623_v35 = vld [vmem:[%s12573_s8 + $0x144] ss:$16 sps:$4 sm:$0xff]   ;;  %v7621_v46 = vld [vmem:[%s12573_s8 + $0x140] ss:$16 sps:$4 sm:$0xff]  }
 0x248   :  { %2957 = vmatprep.subr.bf16.mxu0 %v7575_v38  ;;  %3010 = vmatprep.subr.bf16.mxu1 %v7578_v7  ;;  %v7626_v38 = vld [vmem:[%s12573_s8 + $0x14c] ss:$16 sps:$4 sm:$0xff]   ;;  %v7629_v7 = vld [vmem:[%s12573_s8 + $0x164] ss:$16 sps:$4 sm:$0xff]  }
 0x24b   :  { %2958 = vmatpush1.bf16.msra.mxu0 %v7573_v6  ;;  %3011 = vmatpush1.bf16.msra.mxu1 %v7576_v4  ;;  %v7624_v6 = vld [vmem:[%s12573_s8 + $0x148] ss:$16 sps:$4 sm:$0xff]   ;;  %v7632_v4 = vld [vmem:[%s12573_s8 + $0x16c] ss:$16 sps:$4 sm:$0xff]  }
 0x24c   :  { %2959 = vmatprep.subr.bf16.mxu0 %v7581_v39  ;;  %3012 = vmatprep.subr.bf16.mxu1 %v7584_v45  ;;  %v7630_v39 = vld [vmem:[%s12573_s8 + $0x168] ss:$16 sps:$4 sm:$0xff]   ;;  %v7635_v45 = vld [vmem:[%s12573_s8 + $0x184] ss:$16 sps:$4 sm:$0xff]  }
 0x24f   :  { %2960 = vmatpush1.bf16.msra.mxu0 %v7579_v17  ;;  %3013 = vmatpush1.bf16.msra.mxu1 %v7582_v44  ;;  %v7633_v17 = vld [vmem:[%s12573_s8 + $0x180] ss:$16 sps:$4 sm:$0xff]   ;;  %v7638_v44 = vld [vmem:[%s12573_s8 + $0x18c] ss:$16 sps:$4 sm:$0xff]  }
 0x250   :  { %2961 = vmatprep.subr.bf16.mxu0 %v7587_v60  ;;  %3014 = vmatprep.subr.bf16.mxu1 %v7590_v9  ;;  %v7636_v60 = vld [vmem:[%s12573_s8 + $0x188] ss:$16 sps:$4 sm:$0xff]   ;;  %v7639_v9 = vld [vmem:[%s12573_s8 + $0x1a0] ss:$16 sps:$4 sm:$0xff]  }
 0x253   :  { %2962 = vmatpush1.bf16.msra.mxu0 %v7585_v62  ;;  %3015 = vmatpush1.bf16.msra.mxu1 %v7588_v26  ;;  %v7641_v62 = vld [vmem:[%s12573_s8 + $0x1a4] ss:$16 sps:$4 sm:$0xff]   ;;  %v7644_v26 = vld [vmem:[%s12573_s8 + $0x1ac] ss:$16 sps:$4 sm:$0xff]  }
 0x254   :  { %2963 = vmatprep.subr.bf16.mxu0 %v7593_v22  ;;  %3016 = vmatprep.subr.bf16.mxu1 %v7596_v41  ;;  %v7642_v22 = vld [vmem:[%s12573_s8 + $0x1a8] ss:$16 sps:$4 sm:$0xff]   ;;  %v7645_v41 = vld [vmem:[%s12573_s8 + $0x1c0] ss:$16 sps:$4 sm:$0xff]  }
 0x255   :  { %v2077_v24 = vpop.f32.mrb[16].mxu0  ;;  %v2118_v61 = vpop.f32.mrb[16].mxu1 }
 0x256   :  { %v2079_v53 = vpop.f32.mrb[17].mxu0  ;;  %v2120_v27 = vpop.f32.mrb[17].mxu1  ;;  %v7651_v24 = vld [vmem:[%s12573_s8 + $0x1e0] ss:$16 sps:$4 sm:$0xff]   ;;  %v7656_v61 = vld [vmem:[%s12573_s8 + $0x1ec] ss:$16 sps:$4 sm:$0xff]  }
 0x257   :  { %v2081_v49 = vpop.f32.mrb[18].mxu0  ;;  %v2122_v18 = vpop.f32.mrb[18].mxu1  ;;  %2964 = vmatpush1.bf16.msra.mxu0 %v7591_v36  ;;  %3017 = vmatpush1.bf16.msra.mxu1 %v7594_v33  ;;  %v7647_v36 = vld [vmem:[%s12573_s8 + $0x1c4] ss:$16 sps:$4 sm:$0xff]   ;;  %v7650_v33 = vld [vmem:[%s12573_s8 + $0x1cc] ss:$16 sps:$4 sm:$0xff]  }
 0x258   :  { %v2082_v30 = vpop.f32.mrb[19].mxu0  ;;  %v2123_v8 = vpop.f32.mrb[19].mxu1  ;;  %2965 = vmatprep.subr.bf16.mxu0 %v7599_v28  ;;  %3018 = vmatprep.subr.bf16.mxu1 %v7602_v48  ;;  %v7648_v28 = vld [vmem:[%s12573_s8 + $0x1c8] ss:$16 sps:$4 sm:$0xff]   ;;  %v7653_v48 = vld [vmem:[%s12573_s8 + $0x1e4] ss:$16 sps:$4 sm:$0xff]  }
 0x259   :  { %v7654_v53 = vld [vmem:[%s12573_s8 + $0x1e8] ss:$16 sps:$4 sm:$0xff]   ;;  %v7659_v27 = vld [vmem:[%s12574_s5 + $0x404] ss:$16 sps:$4 sm:$0xff]   ;;  %v7657_v49 = vld [vmem:[%s12574_s5 + $0x400] ss:$16 sps:$4 sm:$0xff]  }
 0x25a   :  { %v7662_v18 = vld [vmem:[%s12574_s5 + $0x40c] ss:$16 sps:$4 sm:$0xff]   ;;  %v7665_v30 = vld [vmem:[%s12574_s5 + $0x424] ss:$16 sps:$4 sm:$0xff]  }
 0x25b   :  { %2966 = vmatpush1.bf16.msra.mxu0 %v7597_v47  ;;  %3019 = vmatpush1.bf16.msra.mxu1 %v7600_v43  ;;  %v7660_v47 = vld [vmem:[%s12574_s5 + $0x408] ss:$16 sps:$4 sm:$0xff]   ;;  %v7668_v8 = vld [vmem:[%s12574_s5 + $0x42c] ss:$16 sps:$4 sm:$0xff]   ;;  %v7663_v43 = vld [vmem:[%s12574_s5 + $0x420] ss:$16 sps:$4 sm:$0xff]  }
 0x25c   :  { %2967 = vmatprep.subr.bf16.mxu0 %v7605_v31  ;;  %3020 = vmatprep.subr.bf16.mxu1 %v7608_v58  ;;  %v13053_v31 = vld [vmem:[#allocation3_spill] sm:$0xff]  ;;  %v7671_v58 = vld [vmem:[%s12574_s5 + $0x444] ss:$16 sps:$4 sm:$0xff]  }
 0x25f   :  { %2968 = vmatpush1.bf16.msra.mxu0 %v7603_v25  ;;  %3021 = vmatpush1.bf16.msra.mxu1 %v7606_v51  ;;  %v7666_v25 = vld [vmem:[%s12574_s5 + $0x428] ss:$16 sps:$4 sm:$0xff]  }
 0x260   :  { %2969 = vmatprep.subr.bf16.mxu0 %v7611_v54  ;;  %3022 = vmatprep.subr.bf16.mxu1 %v7614_v50  ;;  %v13054_v51 = vld [vmem:[#allocation5_spill] sm:$0xff] }
 0x261   :  { %v7674_v54 = vld [vmem:[%s12574_s5 + $0x44c] ss:$16 sps:$4 sm:$0xff]   ;;  %v7672_v50 = vld [vmem:[%s12574_s5 + $0x448] ss:$16 sps:$4 sm:$0xff]  }
 0x263   :  { %2970 = vmatpush1.bf16.msra.mxu0 %v7609_v2  ;;  %3023 = vmatpush1.bf16.msra.mxu1 %v7612_v55  ;;  %v7669_v2 = vld [vmem:[%s12574_s5 + $0x440] ss:$16 sps:$4 sm:$0xff]   ;;  %v7677_v55 = vld [vmem:[%s12574_s5 + $0x464] ss:$16 sps:$4 sm:$0xff]  }
 0x264   :  { %2971 = vmatprep.subr.bf16.mxu0 %v7617_v11  ;;  %3024 = vmatprep.subr.bf16.mxu1 %v7620_v34  ;;  %v7680_v11 = vld [vmem:[%s12574_s5 + $0x46c] ss:$16 sps:$4 sm:$0xff]   ;;  %v13055_v34 = vld [vmem:[#allocation6_spill] sm:$0xff] }
 0x267   :  { %2972 = vmatpush1.bf16.msra.mxu0 %v7615_v29  ;;  %3025 = vmatpush1.bf16.msra.mxu1 %v7618_v57  ;;  %v7675_v29 = vld [vmem:[%s12574_s5 + $0x460] ss:$16 sps:$4 sm:$0xff]   ;;  %v7678_v57 = vld [vmem:[%s12574_s5 + $0x468] ss:$16 sps:$4 sm:$0xff]  }
 0x268   :  { %2973 = vmatprep.subr.bf16.mxu0 %v7623_v35  ;;  %3026 = vmatprep.subr.bf16.mxu1 %v7626_v38  ;;  %v7683_v35 = vld [vmem:[%s12574_s5 + $0x484] ss:$16 sps:$4 sm:$0xff]   ;;  %v7681_v38 = vld [vmem:[%s12574_s5 + $0x480] ss:$16 sps:$4 sm:$0xff]  }
 0x26b   :  { %2974 = vmatpush1.bf16.msra.mxu0 %v7621_v46  ;;  %3027 = vmatpush1.bf16.msra.mxu1 %v7624_v6  ;;  %v7686_v46 = vld [vmem:[%s12574_s5 + $0x48c] ss:$16 sps:$4 sm:$0xff]   ;;  %v7684_v6 = vld [vmem:[%s12574_s5 + $0x488] ss:$16 sps:$4 sm:$0xff]  }
 0x26c   :  { %2975 = vmatprep.subr.bf16.mxu0 %v7629_v7  ;;  %3028 = vmatprep.subr.bf16.mxu1 %v7632_v4  ;;  %v7689_v7 = vld [vmem:[%s12574_s5 + $0x4a4] ss:$16 sps:$4 sm:$0xff]   ;;  %v7690_v4 = vld [vmem:[%s12574_s5 + $0x4a8] ss:$16 sps:$4 sm:$0xff]  }
 0x26f   :  { %2976 = vmatpush1.bf16.msra.mxu0 %v7627_v52  ;;  %3029 = vmatpush1.bf16.msra.mxu1 %v7630_v39  ;;  %v7687_v52 = vld [vmem:[%s12574_s5 + $0x4a0] ss:$16 sps:$4 sm:$0xff]   ;;  %v7695_v39 = vld [vmem:[%s12574_s5 + $0x4c4] ss:$16 sps:$4 sm:$0xff]  }
 0x270   :  { %2977 = vmatprep.subr.bf16.mxu0 %v7635_v45  ;;  %3030 = vmatprep.subr.bf16.mxu1 %v7638_v44  ;;  %v7698_v45 = vld [vmem:[%s12574_s5 + $0x4cc] ss:$16 sps:$4 sm:$0xff]  }
 0x273   :  { %2978 = vmatpush1.bf16.msra.mxu0 %v7633_v17  ;;  %3031 = vmatpush1.bf16.msra.mxu1 %v7636_v60 }
 0x274   :  { %2979 = vmatprep.subr.bf16.mxu0 %v7641_v62  ;;  %3032 = vmatprep.subr.bf16.mxu1 %v7644_v26  ;;  %v7693_v26 = vld [vmem:[%s12574_s5 + $0x4c0] ss:$16 sps:$4 sm:$0xff]  }
 0x277   :  { %2980 = vmatpush1.bf16.msra.mxu0 %v7639_v9  ;;  %3033 = vmatpush1.bf16.msra.mxu1 %v7642_v22  ;;  %v7696_v22 = vld [vmem:[%s12574_s5 + $0x4c8] ss:$16 sps:$4 sm:$0xff]  }
 0x278   :  { %2981 = vmatprep.subr.bf16.mxu0 %v7647_v36  ;;  %3034 = vmatprep.subr.bf16.mxu1 %v7650_v33  ;;  %v7701_v33 = vld [vmem:[%s12574_s5 + $0x4e4] ss:$16 sps:$4 sm:$0xff]  }
 0x27b   :  { %2982 = vmatpush1.bf16.msra.mxu0 %v7645_v41  ;;  %3035 = vmatpush1.bf16.msra.mxu1 %v7648_v28  ;;  %v7704_v28 = vld [vmem:[%s12574_s5 + $0x4ec] ss:$16 sps:$4 sm:$0xff]  }
 0x27c   :  { %2983 = vmatprep.subr.bf16.mxu0 %v7653_v48  ;;  %3036 = vmatprep.subr.bf16.mxu1 %v7656_v61  ;;  %v7702_v61 = vld [vmem:[%s12574_s5 + $0x4e8] ss:$16 sps:$4 sm:$0xff]  }
 0x27f   :  { %2984 = vmatpush1.bf16.msra.mxu0 %v7651_v24  ;;  %3037 = vmatpush1.bf16.msra.mxu1 %v7654_v53  ;;  %v7699_v24 = vld [vmem:[%s12574_s5 + $0x4e0] ss:$16 sps:$4 sm:$0xff]   ;;  %v7707_v53 = vld [vmem:[%s12574_s5 + $0x504] ss:$16 sps:$4 sm:$0xff]  }
 0x280   :  { %4243 = vmatprep.subr.bf16.mxu0 %v7659_v27  ;;  %4349 = vmatprep.subr.bf16.mxu1 %v7662_v18  ;;  %v7710_v27 = vld [vmem:[%s12574_s5 + $0x50c] ss:$16 sps:$4 sm:$0xff]   ;;  %v7708_v18 = vld [vmem:[%s12574_s5 + $0x508] ss:$16 sps:$4 sm:$0xff]  }
 0x282   :  { %2986 = vmatmul.mubr.bf16.vlgmr.msra.gmra.mrb[32].mxu0 %v13053_v31  ;;  %3039 = vmatmul.mubr.bf16.vlgmr.msra.gmra.mrb[32].mxu1 %v13053_v31  ;;  %v7719_v31 = vld [vmem:[%s12574_s5 + $0x544] ss:$16 sps:$4 sm:$0xff]  }
 0x283   :  { %4244 = vmatpush1.bf16.msra.mxu0 %v7657_v49  ;;  %4350 = vmatpush1.bf16.msra.mxu1 %v7660_v47  ;;  %v7705_v49 = vld [vmem:[%s12574_s5 + $0x500] ss:$16 sps:$4 sm:$0xff]   ;;  %v7713_v47 = vld [vmem:[%s12574_s5 + $0x524] ss:$16 sps:$4 sm:$0xff]  }
 0x284   :  { %4245 = vmatprep.subr.bf16.mxu0 %v7665_v30  ;;  %4351 = vmatprep.subr.bf16.mxu1 %v7668_v8  ;;  %v7716_v30 = vld [vmem:[%s12574_s5 + $0x52c] ss:$16 sps:$4 sm:$0xff]   ;;  %v7711_v8 = vld [vmem:[%s12574_s5 + $0x520] ss:$16 sps:$4 sm:$0xff]  }
 0x285   :  { %2995 = vmatprep.mubr.bf16.mxu0 %v13054_v51  ;;  %3048 = vmatprep.mubr.bf16.mxu1 %v13054_v51  ;;  %v7720_v51 = vld [vmem:[%s12574_s5 + $0x548] ss:$16 sps:$4 sm:$0xff]  }
 0x287   :  { %4246 = vmatpush1.bf16.msra.mxu0 %v7663_v43  ;;  %4352 = vmatpush1.bf16.msra.mxu1 %v7666_v25  ;;  %v7714_v43 = vld [vmem:[%s12574_s5 + $0x528] ss:$16 sps:$4 sm:$0xff]   ;;  %v7722_v25 = vld [vmem:[%s12574_s5 + $0x54c] ss:$16 sps:$4 sm:$0xff]  }
 0x288   :  { %4247 = vmatprep.subr.bf16.mxu0 %v7671_v58  ;;  %4353 = vmatprep.subr.bf16.mxu1 %v7674_v54  ;;  %v7717_v58 = vld [vmem:[%s12574_s5 + $0x540] ss:$16 sps:$4 sm:$0xff]   ;;  %v7725_v54 = vld [vmem:[%s12574_s5 + $0x564] ss:$16 sps:$4 sm:$0xff]  }
 0x28a   :  { %2996 = vmatmul.mubr.bf16.gmra.mrb[36].mxu0 %v13055_v34  ;;  %3049 = vmatmul.mubr.bf16.gmra.mrb[36].mxu1 %v13055_v34  ;;  %v7729_v34 = vld [vmem:[%s12574_s5 + $0x580] ss:$16 sps:$4 sm:$0xff]  }
 0x28b   :  { %4248 = vmatpush1.bf16.msra.mxu0 %v7669_v2  ;;  %4275 = vmatprep.mubr.bf16.mxu0 %v10452_v10  ;;  %v7728_v2 = vld [vmem:[%s12574_s5 + $0x56c] ss:$16 sps:$4 sm:$0xff]  }
 0x28c   :  { %4354 = vmatpush1.bf16.msra.mxu1 %v7672_v50  ;;  %4381 = vmatprep.mubr.bf16.mxu1 %v10452_v10  ;;  %v7692_v10 = vld [vmem:[%s12574_s5 + $0x4ac] ss:$16 sps:$4 sm:$0xff]   ;;  %v7723_v50 = vld [vmem:[%s12574_s5 + $0x560] ss:$16 sps:$4 sm:$0xff]  }
 0x28d   :  { %4249 = vmatprep.subr.bf16.mxu0 %v7677_v55  ;;  %4355 = vmatprep.subr.bf16.mxu1 %v7680_v11  ;;  %v7726_v55 = vld [vmem:[%s12574_s5 + $0x568] ss:$16 sps:$4 sm:$0xff]   ;;  %v7731_v11 = vld [vmem:[%s12574_s5 + $0x584] ss:$16 sps:$4 sm:$0xff]  }
 0x28f   :  { %4250 = vmatpush1.bf16.msra.mxu0 %v7675_v29  ;;  %v7734_v29 = vld [vmem:[%s12574_s5 + $0x58c] ss:$16 sps:$4 sm:$0xff]  }
 0x290   :  { %4356 = vmatpush1.bf16.msra.mxu1 %v7678_v57  ;;  %4251 = vmatprep.subr.bf16.mxu0 %v7683_v35  ;;  %v7732_v57 = vld [vmem:[%s12574_s5 + $0x588] ss:$16 sps:$4 sm:$0xff]   ;;  %v7737_v35 = vld [vmem:[%s12574_s5 + $0x5a4] ss:$16 sps:$4 sm:$0xff]  }
 0x291   :  { %4357 = vmatprep.subr.bf16.mxu1 %v7686_v46  ;;  %v7740_v46 = vld [vmem:[%s12574_s5 + $0x5ac] ss:$16 sps:$4 sm:$0xff]  }
 0x293   :  { %4252 = vmatpush1.bf16.msra.mxu0 %v7681_v38  ;;  %v7735_v38 = vld [vmem:[%s12574_s5 + $0x5a0] ss:$16 sps:$4 sm:$0xff]  }
 0x294   :  { %4358 = vmatpush1.bf16.msra.mxu1 %v7684_v6  ;;  %4253 = vmatprep.subr.bf16.mxu0 %v7689_v7  ;;  %v7738_v6 = vld [vmem:[%s12574_s5 + $0x5a8] ss:$16 sps:$4 sm:$0xff]   ;;  %v7743_v7 = vld [vmem:[%s12574_s5 + $0x5c4] ss:$16 sps:$4 sm:$0xff]  }
 0x295   :  { %v2243_v17 = vpop.f32.mrb[20].mxu0  ;;  %4359 = vmatprep.subr.bf16.mxu1 %v7692_v10  ;;  %v2284_v44 = vpop.f32.mrb[20].mxu1  ;;  %v7746_v10 = vld [vmem:[%s12574_s5 + $0x5cc] ss:$16 sps:$4 sm:$0xff]  }
 0x296   :  { %v2245_v60 = vpop.f32.mrb[21].mxu0  ;;  %v2286_v62 = vpop.f32.mrb[21].mxu1  ;;  %v7747_v17 = vld [vmem:[%s12574_s5 + $0x5e0] ss:$16 sps:$4 sm:$0xff]   ;;  %v7750_v44 = vld [vmem:[%s12574_s5 + $0x5e8] ss:$16 sps:$4 sm:$0xff]  }
 0x297   :  { %v2247_v9 = vpop.f32.mrb[22].mxu0  ;;  %4254 = vmatpush1.bf16.msra.mxu0 %v7687_v52  ;;  %v2288_v36 = vpop.f32.mrb[22].mxu1  ;;  %v7741_v52 = vld [vmem:[%s12574_s5 + $0x5c0] ss:$16 sps:$4 sm:$0xff]   ;;  %v7755_v60 = vld [vmem:[%s12574_s5 + $0x604] ss:$16 sps:$4 sm:$0xff]  }
 0x298   :  { %4360 = vmatpush1.bf16.msra.mxu1 %v7690_v4  ;;  %v2248_v41 = vpop.f32.mrb[23].mxu0  ;;  %4255 = vmatprep.subr.bf16.mxu0 %v7695_v39  ;;  %v2289_v48 = vpop.f32.mrb[23].mxu1  ;;  %v7744_v4 = vld [vmem:[%s12574_s5 + $0x5c8] ss:$16 sps:$4 sm:$0xff]   ;;  %v7749_v39 = vld [vmem:[%s12574_s5 + $0x5e4] ss:$16 sps:$4 sm:$0xff]  }
 0x299   :  { %4361 = vmatprep.subr.bf16.mxu1 %v7698_v45  ;;  %v7752_v45 = vld [vmem:[%s12574_s5 + $0x5ec] ss:$16 sps:$4 sm:$0xff]   ;;  %v7753_v9 = vld [vmem:[%s12574_s5 + $0x600] ss:$16 sps:$4 sm:$0xff]   ;;  %v7768_v48 = vld [vmem:[%s12574_s5 + $0x648] ss:$16 sps:$4 sm:$0xff]  }
 0x29a   :  { %v7758_v62 = vld [vmem:[%s12574_s5 + $0x60c] ss:$16 sps:$4 sm:$0xff]   ;;  %v7759_v41 = vld [vmem:[%s12574_s5 + $0x620] ss:$16 sps:$4 sm:$0xff]  }
 0x29b   :  { %4256 = vmatpush1.bf16.msra.mxu0 %v7693_v26  ;;  %v7756_v26 = vld [vmem:[%s12574_s5 + $0x608] ss:$16 sps:$4 sm:$0xff]   ;;  %v7764_v36 = vld [vmem:[%s12574_s5 + $0x62c] ss:$16 sps:$4 sm:$0xff]  }
 0x29c   :  { %4362 = vmatpush1.bf16.msra.mxu1 %v7696_v22  ;;  %4257 = vmatprep.subr.bf16.mxu0 %v7701_v33  ;;  %v7761_v22 = vld [vmem:[%s12574_s5 + $0x624] ss:$16 sps:$4 sm:$0xff]   ;;  %v7762_v33 = vld [vmem:[%s12574_s5 + $0x628] ss:$16 sps:$4 sm:$0xff]  }
 0x29d   :  { %4363 = vmatprep.subr.bf16.mxu1 %v7704_v28  ;;  %v7767_v28 = vld [vmem:[%s12574_s5 + $0x644] ss:$16 sps:$4 sm:$0xff]  }
 0x29f   :  { %4258 = vmatpush1.bf16.msra.mxu0 %v7699_v24  ;;  %v7773_v24 = vld [vmem:[%s12574_s5 + $0x664] ss:$16 sps:$4 sm:$0xff]  }
 0x2a0   :  { %4364 = vmatpush1.bf16.msra.mxu1 %v7702_v61  ;;  %4259 = vmatprep.subr.bf16.mxu0 %v7707_v53  ;;  %v13056_v61 = vld [vmem:[#allocation13_spill] sm:$0xff] }
 0x2a1   :  { %4365 = vmatprep.subr.bf16.mxu1 %v7710_v27  ;;  %v7776_v53 = vld [vmem:[%s12574_s5 + $0x66c] ss:$16 sps:$4 sm:$0xff]   ;;  %v13057_v27 = vld [vmem:[#allocation12_spill] sm:$0xff] }
 0x2a3   :  { %4260 = vmatpush1.bf16.msra.mxu0 %v7705_v49  ;;  %v7771_v49 = vld [vmem:[%s12574_s5 + $0x660] ss:$16 sps:$4 sm:$0xff]  }
 0x2a4   :  { %4366 = vmatpush1.bf16.msra.mxu1 %v7708_v18  ;;  %4261 = vmatprep.subr.bf16.mxu0 %v7713_v47  ;;  %v7774_v18 = vld [vmem:[%s12574_s5 + $0x668] ss:$16 sps:$4 sm:$0xff]   ;;  %v7779_v47 = vld [vmem:[%s12574_s5 + $0x684] ss:$16 sps:$4 sm:$0xff]  }
 0x2a5   :  { %4367 = vmatprep.subr.bf16.mxu1 %v7716_v30  ;;  %v7782_v30 = vld [vmem:[%s12574_s5 + $0x68c] ss:$16 sps:$4 sm:$0xff]  }
 0x2a7   :  { %4262 = vmatpush1.bf16.msra.mxu0 %v7711_v8  ;;  %v7777_v8 = vld [vmem:[%s12574_s5 + $0x680] ss:$16 sps:$4 sm:$0xff]  }
 0x2a8   :  { %4368 = vmatpush1.bf16.msra.mxu1 %v7714_v43  ;;  %4263 = vmatprep.subr.bf16.mxu0 %v7719_v31  ;;  %v7780_v43 = vld [vmem:[%s12574_s5 + $0x688] ss:$16 sps:$4 sm:$0xff]   ;;  %v7785_v31 = vld [vmem:[%s12574_s5 + $0x6a4] ss:$16 sps:$4 sm:$0xff]  }
 0x2a9   :  { %4369 = vmatprep.subr.bf16.mxu1 %v7722_v25  ;;  %v7788_v25 = vld [vmem:[%s12574_s5 + $0x6ac] ss:$16 sps:$4 sm:$0xff]  }
 0x2ab   :  { %4264 = vmatpush1.bf16.msra.mxu0 %v7717_v58  ;;  %v7783_v58 = vld [vmem:[%s12574_s5 + $0x6a0] ss:$16 sps:$4 sm:$0xff]  }
 0x2ac   :  { %4370 = vmatpush1.bf16.msra.mxu1 %v7720_v51  ;;  %4265 = vmatprep.subr.bf16.mxu0 %v7725_v54  ;;  %v7786_v54 = vld [vmem:[%s12574_s5 + $0x6a8] ss:$16 sps:$4 sm:$0xff]  }
 0x2ad   :  { %4371 = vmatprep.subr.bf16.mxu1 %v7728_v2  ;;  %v7791_v2 = vld [vmem:[%s12574_s5 + $0x6c4] ss:$16 sps:$4 sm:$0xff]  }
 0x2af   :  { %4266 = vmatpush1.bf16.msra.mxu0 %v7723_v50 }
 0x2b0   :  { %4372 = vmatpush1.bf16.msra.mxu1 %v7726_v55  ;;  %4267 = vmatprep.subr.bf16.mxu0 %v7731_v11  ;;  %v7794_v11 = vld [vmem:[%s12574_s5 + $0x6cc] ss:$16 sps:$4 sm:$0xff]  }
 0x2b1   :  { %4373 = vmatprep.subr.bf16.mxu1 %v7734_v29 }
 0x2b3   :  { %4268 = vmatpush1.bf16.msra.mxu0 %v7729_v34 }
 0x2b4   :  { %4374 = vmatpush1.bf16.msra.mxu1 %v7732_v57  ;;  %4269 = vmatprep.subr.bf16.mxu0 %v7737_v35 }
 0x2b5   :  { %4375 = vmatprep.subr.bf16.mxu1 %v7740_v46  ;;  %v7789_v46 = vld [vmem:[%s12574_s5 + $0x6c0] ss:$16 sps:$4 sm:$0xff]  }
 0x2b7   :  { %4270 = vmatpush1.bf16.msra.mxu0 %v7735_v38 }
 0x2b8   :  { %4376 = vmatpush1.bf16.msra.mxu1 %v7738_v6  ;;  %4271 = vmatprep.subr.bf16.mxu0 %v7743_v7  ;;  %v7792_v6 = vld [vmem:[%s12574_s5 + $0x6c8] ss:$16 sps:$4 sm:$0xff]   ;;  %v7797_v7 = vld [vmem:[%s12574_s5 + $0x6e4] ss:$16 sps:$4 sm:$0xff]  }
 0x2b9   :  { %4377 = vmatprep.subr.bf16.mxu1 %v7746_v10  ;;  %v7800_v10 = vld [vmem:[%s12574_s5 + $0x6ec] ss:$16 sps:$4 sm:$0xff]  }
 0x2bb   :  { %4272 = vmatpush1.bf16.msra.mxu0 %v7741_v52  ;;  %v7795_v52 = vld [vmem:[%s12574_s5 + $0x6e0] ss:$16 sps:$4 sm:$0xff]  }
 0x2bc   :  { %4378 = vmatpush1.bf16.msra.mxu1 %v7744_v4  ;;  %4273 = vmatprep.subr.bf16.mxu0 %v7749_v39  ;;  %v7798_v4 = vld [vmem:[%s12574_s5 + $0x6e8] ss:$16 sps:$4 sm:$0xff]   ;;  %v7803_v39 = vld [vmem:[%s12574_s5 + $0x704] ss:$16 sps:$4 sm:$0xff]  }
 0x2bd   :  { %4379 = vmatprep.subr.bf16.mxu1 %v7752_v45  ;;  %v7806_v45 = vld [vmem:[%s12574_s5 + $0x70c] ss:$16 sps:$4 sm:$0xff]  }
 0x2bf   :  { %4274 = vmatpush1.bf16.msra.mxu0 %v7747_v17  ;;  %v7801_v17 = vld [vmem:[%s12574_s5 + $0x700] ss:$16 sps:$4 sm:$0xff]  }
 0x2c0   :  { %4380 = vmatpush1.bf16.msra.mxu1 %v7750_v44  ;;  %4296 = vmatprep.subr.bf16.mxu0 %v7755_v60  ;;  %v7804_v44 = vld [vmem:[%s12574_s5 + $0x708] ss:$16 sps:$4 sm:$0xff]   ;;  %v7809_v60 = vld [vmem:[%s12574_s5 + $0x724] ss:$16 sps:$4 sm:$0xff]  }
 0x2c1   :  { %4402 = vmatprep.subr.bf16.mxu1 %v7758_v62  ;;  %v7812_v62 = vld [vmem:[%s12574_s5 + $0x72c] ss:$16 sps:$4 sm:$0xff]  }
 0x2c2   :  { %4276 = vmatmul.mubr.bf16.vlgmr.msra.gmra.mrb[40].mxu0 %v10376_v59 }
 0x2c3   :  { %4382 = vmatmul.mubr.bf16.vlgmr.msra.gmra.mrb[40].mxu1 %v10376_v59  ;;  %4285 = vmatprep.mubr.bf16.mxu0 %v10474_v21  ;;  %v7770_v59 = vld [vmem:[%s12574_s5 + $0x64c] ss:$16 sps:$4 sm:$0xff]  }
 0x2c4   :  { %4297 = vmatpush1.bf16.msra.mxu0 %v7753_v9  ;;  %4391 = vmatprep.mubr.bf16.mxu1 %v10474_v21  ;;  %v7765_v21 = vld [vmem:[%s12574_s5 + $0x640] ss:$16 sps:$4 sm:$0xff]  }
 0x2c5   :  { %4403 = vmatpush1.bf16.msra.mxu1 %v7756_v26  ;;  %4298 = vmatprep.subr.bf16.mxu0 %v7761_v22  ;;  %v7807_v9 = vld [vmem:[%s12574_s5 + $0x720] ss:$16 sps:$4 sm:$0xff]   ;;  %v7810_v26 = vld [vmem:[%s12574_s5 + $0x728] ss:$16 sps:$4 sm:$0xff]   ;;  %v7815_v22 = vld [vmem:[%s12574_s5 + $0x744] ss:$16 sps:$4 sm:$0xff]  }
 0x2c6   :  { %4404 = vmatprep.subr.bf16.mxu1 %v7764_v36  ;;  %v7818_v36 = vld [vmem:[%s12574_s5 + $0x74c] ss:$16 sps:$4 sm:$0xff]  }
 0x2c8   :  { %4299 = vmatpush1.bf16.msra.mxu0 %v7759_v41  ;;  %v7813_v41 = vld [vmem:[%s12574_s5 + $0x740] ss:$16 sps:$4 sm:$0xff]  }
 0x2c9   :  { %4405 = vmatpush1.bf16.msra.mxu1 %v7762_v33  ;;  %4300 = vmatprep.subr.bf16.mxu0 %v7767_v28  ;;  %v7816_v33 = vld [vmem:[%s12574_s5 + $0x748] ss:$16 sps:$4 sm:$0xff]   ;;  %v7821_v28 = vld [vmem:[%s12574_s5 + $0x764] ss:$16 sps:$4 sm:$0xff]  }
 0x2ca   :  { %4286 = vmatmul.mubr.bf16.gmra.mrb[44].mxu0 %v13056_v61  ;;  %4406 = vmatprep.subr.bf16.mxu1 %v7770_v59  ;;  %v7824_v59 = vld [vmem:[%s12574_s5 + $0x76c] ss:$16 sps:$4 sm:$0xff]  }
 0x2cb   :  { %4392 = vmatmul.mubr.bf16.gmra.mrb[44].mxu1 %v13056_v61  ;;  %4328 = vmatprep.mubr.bf16.mxu0 %v13057_v27  ;;  %v7830_v61 = vld [vmem:[%s12574_s5 + $0x78c] ss:$16 sps:$4 sm:$0xff]  }
 0x2cc   :  { %4301 = vmatpush1.bf16.msra.mxu0 %v7765_v21  ;;  %4434 = vmatprep.mubr.bf16.mxu1 %v13057_v27  ;;  %v7819_v21 = vld [vmem:[%s12574_s5 + $0x760] ss:$16 sps:$4 sm:$0xff]   ;;  %v7828_v27 = vld [vmem:[%s12574_s5 + $0x788] ss:$16 sps:$4 sm:$0xff]  }
 0x2cd   :  { %4407 = vmatpush1.bf16.msra.mxu1 %v7768_v48  ;;  %4302 = vmatprep.subr.bf16.mxu0 %v7773_v24  ;;  %v7822_v48 = vld [vmem:[%s12574_s5 + $0x768] ss:$16 sps:$4 sm:$0xff]   ;;  %v7827_v24 = vld [vmem:[%s12574_s5 + $0x784] ss:$16 sps:$4 sm:$0xff]  }
 0x2ce   :  { %4408 = vmatprep.subr.bf16.mxu1 %v7776_v53  ;;  %v7825_v53 = vld [vmem:[%s12574_s5 + $0x780] ss:$16 sps:$4 sm:$0xff]  }
 0x2d0   :  { %4303 = vmatpush1.bf16.msra.mxu0 %v7771_v49  ;;  %v7833_v49 = vld [vmem:[%s12574_s5 + $0x7a4] ss:$16 sps:$4 sm:$0xff]  }
 0x2d1   :  { %4409 = vmatpush1.bf16.msra.mxu1 %v7774_v18  ;;  %4304 = vmatprep.subr.bf16.mxu0 %v7779_v47  ;;  %v7836_v18 = vld [vmem:[%s12574_s5 + $0x7ac] ss:$16 sps:$4 sm:$0xff]   ;;  %v7831_v47 = vld [vmem:[%s12574_s5 + $0x7a0] ss:$16 sps:$4 sm:$0xff]  }
 0x2d2   :  { %4410 = vmatprep.subr.bf16.mxu1 %v7782_v30  ;;  %v7834_v30 = vld [vmem:[%s12574_s5 + $0x7a8] ss:$16 sps:$4 sm:$0xff]  }
 0x2d4   :  { %4305 = vmatpush1.bf16.msra.mxu0 %v7777_v8  ;;  %v7839_v8 = vld [vmem:[%s12574_s5 + $0x7c4] ss:$16 sps:$4 sm:$0xff]  }
 0x2d5   :  { %4411 = vmatpush1.bf16.msra.mxu1 %v7780_v43  ;;  %v2343_v51 = vpop.f32.mrb[24].mxu0  ;;  %4306 = vmatprep.subr.bf16.mxu0 %v7785_v31  ;;  %v2384_v50 = vpop.f32.mrb[24].mxu1  ;;  %v7842_v43 = vld [vmem:[%s12574_s5 + $0x7cc] ss:$16 sps:$4 sm:$0xff]   ;;  %v7837_v31 = vld [vmem:[%s12574_s5 + $0x7c0] ss:$16 sps:$4 sm:$0xff]  }
 0x2d6   :  { %v2345_v55 = vpop.f32.mrb[25].mxu0  ;;  %4412 = vmatprep.subr.bf16.mxu1 %v7788_v25  ;;  %v2386_v29 = vpop.f32.mrb[25].mxu1  ;;  %v7840_v25 = vld [vmem:[%s12574_s5 + $0x7c8] ss:$16 sps:$4 sm:$0xff]   ;;  %v7848_v51 = vld [vmem:[%s12574_s5 + $0x7ec] ss:$16 sps:$4 sm:$0xff]  }
 0x2d7   :  { %v2347_v34 = vpop.f32.mrb[26].mxu0  ;;  %v2388_v57 = vpop.f32.mrb[26].mxu1  ;;  %v7851_v50 = vld [vmem:[%s12574_s5 + $0x4] ss:$16 sps:$4 sm:$0xff]   ;;  %v7854_v55 = vld [vmem:[%s12574_s5 + $0xc] ss:$16 sps:$4 sm:$0xff]  }
 0x2d8   :  { %4307 = vmatpush1.bf16.msra.mxu0 %v7783_v58  ;;  %v2348_v35 = vpop.f32.mrb[27].mxu0  ;;  %v2389_v38 = vpop.f32.mrb[27].mxu1  ;;  %v7845_v58 = vld [vmem:[%s12574_s5 + $0x7e4] ss:$16 sps:$4 sm:$0xff]   ;;  %v7852_v29 = vld [vmem:[%s12574_s5 + $0x8] ss:$16 sps:$4 sm:$0xff]  }
 0x2d9   :  { %4413 = vmatpush1.bf16.msra.mxu1 %v7786_v54  ;;  %4308 = vmatprep.subr.bf16.mxu0 %v7791_v2  ;;  %v7843_v54 = vld [vmem:[%s12574_s5 + $0x7e0] ss:$16 sps:$4 sm:$0xff]   ;;  %v7846_v2 = vld [vmem:[%s12574_s5 + $0x7e8] ss:$16 sps:$4 sm:$0xff]   ;;  %v7857_v34 = vld [vmem:[%s12574_s5 + $0x24] ss:$16 sps:$4 sm:$0xff]  }
 0x2da   :  { %4414 = vmatprep.subr.bf16.mxu1 %v7794_v11  ;;  %v7849_v11 = vld [vmem:[%s12574_s5] ss:$16 sps:$4 sm:$0xff]   ;;  %v13058_v57 = vld [vmem:[#allocation11_spill] sm:$0xff] }
 0x2db   :  { %v7860_v35 = vld [vmem:[%s12574_s5 + $0x2c] ss:$16 sps:$4 sm:$0xff]   ;;  %v7855_v38 = vld [vmem:[%s12574_s5 + $0x20] ss:$16 sps:$4 sm:$0xff]  }
 0x2dc   :  { %4309 = vmatpush1.bf16.msra.mxu0 %v7789_v46  ;;  %v13059_v46 = vld [vmem:[#allocation14_spill] sm:$0xff] }
 0x2dd   :  { %4415 = vmatpush1.bf16.msra.mxu1 %v7792_v6  ;;  %4310 = vmatprep.subr.bf16.mxu0 %v7797_v7  ;;  %v7858_v6 = vld [vmem:[%s12574_s5 + $0x28] ss:$16 sps:$4 sm:$0xff]   ;;  %v7863_v7 = vld [vmem:[%s12574_s5 + $0x44] ss:$16 sps:$4 sm:$0xff]  }
 0x2de   :  { %4416 = vmatprep.subr.bf16.mxu1 %v7800_v10  ;;  %v7866_v10 = vld [vmem:[%s12574_s5 + $0x4c] ss:$16 sps:$4 sm:$0xff]  }
 0x2e0   :  { %4311 = vmatpush1.bf16.msra.mxu0 %v7795_v52  ;;  %v7861_v52 = vld [vmem:[%s12574_s5 + $0x40] ss:$16 sps:$4 sm:$0xff]  }
 0x2e1   :  { %4417 = vmatpush1.bf16.msra.mxu1 %v7798_v4  ;;  %4312 = vmatprep.subr.bf16.mxu0 %v7803_v39  ;;  %v7864_v4 = vld [vmem:[%s12574_s5 + $0x48] ss:$16 sps:$4 sm:$0xff]   ;;  %v7869_v39 = vld [vmem:[%s12574_s5 + $0x64] ss:$16 sps:$4 sm:$0xff]  }
 0x2e2   :  { %4418 = vmatprep.subr.bf16.mxu1 %v7806_v45  ;;  %v13060_v45 = vld [vmem:[#allocation15_spill] sm:$0xff] }
 0x2e4   :  { %4313 = vmatpush1.bf16.msra.mxu0 %v7801_v17  ;;  %v7872_v17 = vld [vmem:[%s12574_s5 + $0x6c] ss:$16 sps:$4 sm:$0xff]  }
 0x2e5   :  { %4419 = vmatpush1.bf16.msra.mxu1 %v7804_v44  ;;  %4314 = vmatprep.subr.bf16.mxu0 %v7809_v60  ;;  %v7867_v44 = vld [vmem:[%s12574_s5 + $0x60] ss:$16 sps:$4 sm:$0xff]   ;;  %v7870_v60 = vld [vmem:[%s12574_s5 + $0x68] ss:$16 sps:$4 sm:$0xff]  }
 0x2e6   :  { %4420 = vmatprep.subr.bf16.mxu1 %v7812_v62  ;;  %v7875_v62 = vld [vmem:[%s12574_s5 + $0x84] ss:$16 sps:$4 sm:$0xff]  }
 0x2e8   :  { %4315 = vmatpush1.bf16.msra.mxu0 %v7807_v9  ;;  %v7878_v9 = vld [vmem:[%s12574_s5 + $0x8c] ss:$16 sps:$4 sm:$0xff]  }
 0x2e9   :  { %4421 = vmatpush1.bf16.msra.mxu1 %v7810_v26  ;;  %4316 = vmatprep.subr.bf16.mxu0 %v7815_v22  ;;  %v7876_v26 = vld [vmem:[%s12574_s5 + $0x88] ss:$16 sps:$4 sm:$0xff]   ;;  %v7881_v22 = vld [vmem:[%s12574_s5 + $0xa4] ss:$16 sps:$4 sm:$0xff]  }
 0x2ea   :  { %4422 = vmatprep.subr.bf16.mxu1 %v7818_v36  ;;  %v7884_v36 = vld [vmem:[%s12574_s5 + $0xac] ss:$16 sps:$4 sm:$0xff]  }
 0x2ec   :  { %4317 = vmatpush1.bf16.msra.mxu0 %v7813_v41 }
 0x2ed   :  { %4423 = vmatpush1.bf16.msra.mxu1 %v7816_v33  ;;  %4318 = vmatprep.subr.bf16.mxu0 %v7821_v28  ;;  %v7879_v33 = vld [vmem:[%s12574_s5 + $0xa0] ss:$16 sps:$4 sm:$0xff]  }
 0x2ee   :  { %4424 = vmatprep.subr.bf16.mxu1 %v7824_v59 }
 0x2f0   :  { %4319 = vmatpush1.bf16.msra.mxu0 %v7819_v21  ;;  %v7882_v21 = vld [vmem:[%s12574_s5 + $0xa8] ss:$16 sps:$4 sm:$0xff]  }
 0x2f1   :  { %4425 = vmatpush1.bf16.msra.mxu1 %v7822_v48  ;;  %4320 = vmatprep.subr.bf16.mxu0 %v7827_v24  ;;  %v7887_v48 = vld [vmem:[%s12574_s5 + $0xc4] ss:$16 sps:$4 sm:$0xff]  }
 0x2f2   :  { %4426 = vmatprep.subr.bf16.mxu1 %v7830_v61 }
 0x2f4   :  { %4321 = vmatpush1.bf16.msra.mxu0 %v7825_v53  ;;  %v7890_v53 = vld [vmem:[%s12574_s5 + $0xcc] ss:$16 sps:$4 sm:$0xff]  }
 0x2f5   :  { %4427 = vmatpush1.bf16.msra.mxu1 %v7828_v27  ;;  %4322 = vmatprep.subr.bf16.mxu0 %v7833_v49 }
 0x2f6   :  { %4428 = vmatprep.subr.bf16.mxu1 %v7836_v18 }
 0x2f8   :  { %4323 = vmatpush1.bf16.msra.mxu0 %v7831_v47  ;;  %v7885_v47 = vld [vmem:[%s12574_s5 + $0xc0] ss:$16 sps:$4 sm:$0xff]  }
 0x2f9   :  { %4429 = vmatpush1.bf16.msra.mxu1 %v7834_v30  ;;  %4324 = vmatprep.subr.bf16.mxu0 %v7839_v8  ;;  %v7888_v30 = vld [vmem:[%s12574_s5 + $0xc8] ss:$16 sps:$4 sm:$0xff]   ;;  %v7893_v8 = vld [vmem:[%s12574_s5 + $0xe4] ss:$16 sps:$4 sm:$0xff]  }
 0x2fa   :  { %4430 = vmatprep.subr.bf16.mxu1 %v7842_v43  ;;  %v7896_v43 = vld [vmem:[%s12574_s5 + $0xec] ss:$16 sps:$4 sm:$0xff]  }
 0x2fc   :  { %4325 = vmatpush1.bf16.msra.mxu0 %v7837_v31  ;;  %v7891_v31 = vld [vmem:[%s12574_s5 + $0xe0] ss:$16 sps:$4 sm:$0xff]  }
 0x2fd   :  { %4431 = vmatpush1.bf16.msra.mxu1 %v7840_v25  ;;  %4326 = vmatprep.subr.bf16.mxu0 %v7845_v58  ;;  %v7894_v25 = vld [vmem:[%s12574_s5 + $0xe8] ss:$16 sps:$4 sm:$0xff]   ;;  %v7899_v58 = vld [vmem:[%s12574_s5 + $0x104] ss:$16 sps:$4 sm:$0xff]  }
 0x2fe   :  { %4432 = vmatprep.subr.bf16.mxu1 %v7848_v51  ;;  %v7902_v51 = vld [vmem:[%s12574_s5 + $0x10c] ss:$16 sps:$4 sm:$0xff]  }
 0x300   :  { %4327 = vmatpush1.bf16.msra.mxu0 %v7843_v54  ;;  %v7897_v54 = vld [vmem:[%s12574_s5 + $0x100] ss:$16 sps:$4 sm:$0xff]  }
 0x301   :  { %4433 = vmatpush1.bf16.msra.mxu1 %v7846_v2  ;;  %5095 = vmatprep.subr.bf16.mxu0 %v7851_v50  ;;  %v7900_v2 = vld [vmem:[%s12574_s5 + $0x108] ss:$16 sps:$4 sm:$0xff]   ;;  %v7905_v50 = vld [vmem:[%s12574_s5 + $0x124] ss:$16 sps:$4 sm:$0xff]  }
 0x302   :  { %5201 = vmatprep.subr.bf16.mxu1 %v7854_v55  ;;  %v7908_v55 = vld [vmem:[%s12574_s5 + $0x12c] ss:$16 sps:$4 sm:$0xff]  }
 0x303   :  { %4329 = vmatmul.mubr.bf16.vlgmr.msra.gmra.mrb[40].mxu0 %v13058_v57 }
 0x304   :  { %4435 = vmatmul.mubr.bf16.vlgmr.msra.gmra.mrb[40].mxu1 %v13058_v57  ;;  %4338 = vmatprep.mubr.bf16.mxu0 %v13059_v46  ;;  %v7914_v57 = vld [vmem:[%s12574_s5 + $0x14c] ss:$16 sps:$4 sm:$0xff]  }
 0x305   :  { %4444 = vmatprep.mubr.bf16.mxu1 %v13059_v46  ;;  %5096 = vmatpush1.bf16.msra.mxu0 %v7849_v11  ;;  %v7903_v11 = vld [vmem:[%s12574_s5 + $0x120] ss:$16 sps:$4 sm:$0xff]   ;;  %v7912_v46 = vld [vmem:[%s12574_s5 + $0x148] ss:$16 sps:$4 sm:$0xff]  }
 0x306   :  { %5202 = vmatpush1.bf16.msra.mxu1 %v7852_v29  ;;  %5097 = vmatprep.subr.bf16.mxu0 %v7857_v34  ;;  %v7906_v29 = vld [vmem:[%s12574_s5 + $0x128] ss:$16 sps:$4 sm:$0xff]   ;;  %v7911_v34 = vld [vmem:[%s12574_s5 + $0x144] ss:$16 sps:$4 sm:$0xff]  }
 0x307   :  { %5203 = vmatprep.subr.bf16.mxu1 %v7860_v35  ;;  %v7909_v35 = vld [vmem:[%s12574_s5 + $0x140] ss:$16 sps:$4 sm:$0xff]  }
 0x309   :  { %5098 = vmatpush1.bf16.msra.mxu0 %v7855_v38  ;;  %v7917_v38 = vld [vmem:[%s12574_s5 + $0x164] ss:$16 sps:$4 sm:$0xff]  }
 0x30a   :  { %5204 = vmatpush1.bf16.msra.mxu1 %v7858_v6  ;;  %5099 = vmatprep.subr.bf16.mxu0 %v7863_v7  ;;  %v7920_v6 = vld [vmem:[%s12574_s5 + $0x16c] ss:$16 sps:$4 sm:$0xff]   ;;  %v7915_v7 = vld [vmem:[%s12574_s5 + $0x160] ss:$16 sps:$4 sm:$0xff]  }
 0x30b   :  { %4339 = vmatmul.mubr.bf16.gmra.mrb[44].mxu0 %v13060_v45  ;;  %5205 = vmatprep.subr.bf16.mxu1 %v7866_v10  ;;  %v7918_v10 = vld [vmem:[%s12574_s5 + $0x168] ss:$16 sps:$4 sm:$0xff]  }
 0x30c   :  { %4445 = vmatmul.mubr.bf16.gmra.mrb[44].mxu1 %v13060_v45  ;;  %5127 = vmatprep.mubr.bf16.mxu0 %v10503_v12  ;;  %v7924_v45 = vld [vmem:[%s12574_s5 + $0x188] ss:$16 sps:$4 sm:$0xff]  }
 0x30d   :  { %5100 = vmatpush1.bf16.msra.mxu0 %v7861_v52  ;;  %5233 = vmatprep.mubr.bf16.mxu1 %v10503_v12  ;;  %v7873_v12 = vld [vmem:[%s12574_s5 + $0x80] ss:$16 sps:$4 sm:$0xff]   ;;  %v7923_v52 = vld [vmem:[%s12574_s5 + $0x184] ss:$16 sps:$4 sm:$0xff]  }
 0x30e   :  { %5206 = vmatpush1.bf16.msra.mxu1 %v7864_v4  ;;  %5101 = vmatprep.subr.bf16.mxu0 %v7869_v39  ;;  %v7926_v4 = vld [vmem:[%s12574_s5 + $0x18c] ss:$16 sps:$4 sm:$0xff]   ;;  %v7921_v39 = vld [vmem:[%s12574_s5 + $0x180] ss:$16 sps:$4 sm:$0xff]  }
 0x30f   :  { %5207 = vmatprep.subr.bf16.mxu1 %v7872_v17  ;;  %v7929_v17 = vld [vmem:[%s12574_s5 + $0x1a4] ss:$16 sps:$4 sm:$0xff]  }
 0x311   :  { %5102 = vmatpush1.bf16.msra.mxu0 %v7867_v44  ;;  %v7932_v44 = vld [vmem:[%s12574_s5 + $0x1ac] ss:$16 sps:$4 sm:$0xff]  }
 0x312   :  { %5208 = vmatpush1.bf16.msra.mxu1 %v7870_v60  ;;  %5103 = vmatprep.subr.bf16.mxu0 %v7875_v62  ;;  %v7927_v60 = vld [vmem:[%s12574_s5 + $0x1a0] ss:$16 sps:$4 sm:$0xff]   ;;  %v7930_v62 = vld [vmem:[%s12574_s5 + $0x1a8] ss:$16 sps:$4 sm:$0xff]  }
 0x313   :  { %5209 = vmatprep.subr.bf16.mxu1 %v7878_v9  ;;  %v7935_v9 = vld [vmem:[%s12574_s5 + $0x1c4] ss:$16 sps:$4 sm:$0xff]  }
 0x315   :  { %5104 = vmatpush1.bf16.msra.mxu0 %v7873_v12  ;;  %v2465_v41 = vpop.f32.mrb[28].mxu0  ;;  %v2506_v28 = vpop.f32.mrb[28].mxu1  ;;  %v7938_v12 = vld [vmem:[%s12574_s5 + $0x1cc] ss:$16 sps:$4 sm:$0xff]  }
 0x316   :  { %5210 = vmatpush1.bf16.msra.mxu1 %v7876_v26  ;;  %v2467_v59 = vpop.f32.mrb[29].mxu0  ;;  %5105 = vmatprep.subr.bf16.mxu0 %v7881_v22  ;;  %v2508_v24 = vpop.f32.mrb[29].mxu1  ;;  %v7933_v26 = vld [vmem:[%s12574_s5 + $0x1c0] ss:$16 sps:$4 sm:$0xff]   ;;  %v7936_v22 = vld [vmem:[%s12574_s5 + $0x1c8] ss:$16 sps:$4 sm:$0xff]  }
 0x317   :  { %5211 = vmatprep.subr.bf16.mxu1 %v7884_v36  ;;  %v2469_v61 = vpop.f32.mrb[30].mxu0  ;;  %v2510_v27 = vpop.f32.mrb[30].mxu1  ;;  %v7941_v36 = vld [vmem:[%s12574_s5 + $0x1e4] ss:$16 sps:$4 sm:$0xff]   ;;  %v7944_v41 = vld [vmem:[%s12574_s5 + $0x1ec] ss:$16 sps:$4 sm:$0xff]  }
 0x318   :  { %v2470_v49 = vpop.f32.mrb[31].mxu0  ;;  %v2511_v18 = vpop.f32.mrb[31].mxu1  ;;  %v7942_v28 = vld [vmem:[%s12574_s5 + $0x1e8] ss:$16 sps:$4 sm:$0xff]   ;;  %v7947_v59 = vld [vmem:[%s12574_s5 + $0x204] ss:$16 sps:$4 sm:$0xff]  }
 0x319   :  { %5106 = vmatpush1.bf16.msra.mxu0 %v7879_v33  ;;  %v7939_v33 = vld [vmem:[%s12574_s5 + $0x1e0] ss:$16 sps:$4 sm:$0xff]   ;;  %v7948_v24 = vld [vmem:[%s12574_s5 + $0x208] ss:$16 sps:$4 sm:$0xff]   ;;  %v7953_v61 = vld [vmem:[%s12574_s5 + $0x224] ss:$16 sps:$4 sm:$0xff]  }
 0x31a   :  { %5212 = vmatpush1.bf16.msra.mxu1 %v7882_v21  ;;  %5107 = vmatprep.subr.bf16.mxu0 %v7887_v48  ;;  %v7950_v21 = vld [vmem:[%s12574_s5 + $0x20c] ss:$16 sps:$4 sm:$0xff]   ;;  %v7945_v48 = vld [vmem:[%s12574_s5 + $0x200] ss:$16 sps:$4 sm:$0xff]   ;;  %v7954_v49 = vld [vmem:[%s12574_s5 + $0x228] ss:$16 sps:$4 sm:$0xff]  }
 0x31b   :  { %5213 = vmatprep.subr.bf16.mxu1 %v7890_v53  ;;  %v7956_v53 = vld [vmem:[%s12574_s5 + $0x22c] ss:$16 sps:$4 sm:$0xff]   ;;  %v7951_v27 = vld [vmem:[%s12574_s5 + $0x220] ss:$16 sps:$4 sm:$0xff]   ;;  %v7959_v18 = vld [vmem:[%s12574_s5 + $0x244] ss:$16 sps:$4 sm:$0xff]  }
 0x31d   :  { %5108 = vmatpush1.bf16.msra.mxu0 %v7885_v47  ;;  %v7960_v47 = vld [vmem:[%s12574_s5 + $0x248] ss:$16 sps:$4 sm:$0xff]  }
 0x31e   :  { %5214 = vmatpush1.bf16.msra.mxu1 %v7888_v30  ;;  %5109 = vmatprep.subr.bf16.mxu0 %v7893_v8  ;;  %v7965_v30 = vld [vmem:[%s12574_s5 + $0x264] ss:$16 sps:$4 sm:$0xff]   ;;  %v7968_v8 = vld [vmem:[%s12574_s5 + $0x26c] ss:$16 sps:$4 sm:$0xff]  }
 0x31f   :  { %5215 = vmatprep.subr.bf16.mxu1 %v7896_v43  ;;  %v7963_v43 = vld [vmem:[%s12574_s5 + $0x260] ss:$16 sps:$4 sm:$0xff]  }
 0x321   :  { %5110 = vmatpush1.bf16.msra.mxu0 %v7891_v31  ;;  %v7966_v31 = vld [vmem:[%s12574_s5 + $0x268] ss:$16 sps:$4 sm:$0xff]  }
 0x322   :  { %5216 = vmatpush1.bf16.msra.mxu1 %v7894_v25  ;;  %5111 = vmatprep.subr.bf16.mxu0 %v7899_v58  ;;  %v7971_v25 = vld [vmem:[%s12574_s5 + $0x284] ss:$16 sps:$4 sm:$0xff]   ;;  %v7972_v58 = vld [vmem:[%s12574_s5 + $0x288] ss:$16 sps:$4 sm:$0xff]  }
 0x323   :  { %5217 = vmatprep.subr.bf16.mxu1 %v7902_v51  ;;  %v7977_v51 = vld [vmem:[%s12574_s5 + $0x2a4] ss:$16 sps:$4 sm:$0xff]  }
 0x325   :  { %5112 = vmatpush1.bf16.msra.mxu0 %v7897_v54  ;;  %v7980_v54 = vld [vmem:[%s12574_s5 + $0x2ac] ss:$16 sps:$4 sm:$0xff]  }
 0x326   :  { %5218 = vmatpush1.bf16.msra.mxu1 %v7900_v2  ;;  %5113 = vmatprep.subr.bf16.mxu0 %v7905_v50 }
 0x327   :  { %5219 = vmatprep.subr.bf16.mxu1 %v7908_v55 }
 0x329   :  { %5114 = vmatpush1.bf16.msra.mxu0 %v7903_v11  ;;  %v7975_v11 = vld [vmem:[%s12574_s5 + $0x2a0] ss:$16 sps:$4 sm:$0xff]  }
 0x32a   :  { %5220 = vmatpush1.bf16.msra.mxu1 %v7906_v29  ;;  %5115 = vmatprep.subr.bf16.mxu0 %v7911_v34  ;;  %v7978_v34 = vld [vmem:[%s12574_s5 + $0x2a8] ss:$16 sps:$4 sm:$0xff]  }
 0x32b   :  { %5221 = vmatprep.subr.bf16.mxu1 %v7914_v57 }
 0x32d   :  { %5116 = vmatpush1.bf16.msra.mxu0 %v7909_v35  ;;  %v7983_v35 = vld [vmem:[%s12574_s5 + $0x2c4] ss:$16 sps:$4 sm:$0xff]  }
 0x32e   :  { %5222 = vmatpush1.bf16.msra.mxu1 %v7912_v46  ;;  %5117 = vmatprep.subr.bf16.mxu0 %v7917_v38 }
 0x32f   :  { %5223 = vmatprep.subr.bf16.mxu1 %v7920_v6  ;;  %v7986_v6 = vld [vmem:[%s12574_s5 + $0x2cc] ss:$16 sps:$4 sm:$0xff]  }
 0x331   :  { %5118 = vmatpush1.bf16.msra.mxu0 %v7915_v7 }
 0x332   :  { %5224 = vmatpush1.bf16.msra.mxu1 %v7918_v10  ;;  %5119 = vmatprep.subr.bf16.mxu0 %v7923_v52  ;;  %v7981_v10 = vld [vmem:[%s12574_s5 + $0x2c0] ss:$16 sps:$4 sm:$0xff]   ;;  %v7984_v52 = vld [vmem:[%s12574_s5 + $0x2c8] ss:$16 sps:$4 sm:$0xff]  }
 0x333   :  { %5225 = vmatprep.subr.bf16.mxu1 %v7926_v4  ;;  %v7989_v4 = vld [vmem:[%s12574_s5 + $0x2e4] ss:$16 sps:$4 sm:$0xff]  }
 0x335   :  { %5120 = vmatpush1.bf16.msra.mxu0 %v7921_v39  ;;  %v7992_v39 = vld [vmem:[%s12574_s5 + $0x2ec] ss:$16 sps:$4 sm:$0xff]  }
 0x336   :  { %5226 = vmatpush1.bf16.msra.mxu1 %v7924_v45  ;;  %5121 = vmatprep.subr.bf16.mxu0 %v7929_v17  ;;  %v7987_v17 = vld [vmem:[%s12574_s5 + $0x2e0] ss:$16 sps:$4 sm:$0xff]  }
 0x337   :  { %5227 = vmatprep.subr.bf16.mxu1 %v7932_v44 }
 0x339   :  { %5122 = vmatpush1.bf16.msra.mxu0 %v7927_v60 }
 0x33a   :  { %5228 = vmatpush1.bf16.msra.mxu1 %v7930_v62  ;;  %5123 = vmatprep.subr.bf16.mxu0 %v7935_v9  ;;  %v7990_v62 = vld [vmem:[%s12574_s5 + $0x2e8] ss:$16 sps:$4 sm:$0xff]   ;;  %v7995_v9 = vld [vmem:[%s12574_s5 + $0x304] ss:$16 sps:$4 sm:$0xff]  }
 0x33b   :  { %5229 = vmatprep.subr.bf16.mxu1 %v7938_v12 }
 0x33d   :  { %5124 = vmatpush1.bf16.msra.mxu0 %v7933_v26 }
 0x33e   :  { %5230 = vmatpush1.bf16.msra.mxu1 %v7936_v22  ;;  %5125 = vmatprep.subr.bf16.mxu0 %v7941_v36  ;;  %v7998_v22 = vld [vmem:[%s12574_s5 + $0x30c] ss:$16 sps:$4 sm:$0xff]  }
 0x33f   :  { %5231 = vmatprep.subr.bf16.mxu1 %v7944_v41 }
 0x341   :  { %5126 = vmatpush1.bf16.msra.mxu0 %v7939_v33 }
 0x342   :  { %5232 = vmatpush1.bf16.msra.mxu1 %v7942_v28  ;;  %5148 = vmatprep.subr.bf16.mxu0 %v7947_v59  ;;  %v7993_v28 = vld [vmem:[%s12574_s5 + $0x300] ss:$16 sps:$4 sm:$0xff]   ;;  %v7996_v59 = vld [vmem:[%s12574_s5 + $0x308] ss:$16 sps:$4 sm:$0xff]  }
 0x343   :  { %5254 = vmatprep.subr.bf16.mxu1 %v7950_v21  ;;  %v8001_v21 = vld [vmem:[%s12574_s5 + $0x324] ss:$16 sps:$4 sm:$0xff]  }
 0x344   :  { %5128 = vmatmul.mubr.bf16.vlgmr.msra.gmra.mrb[40].mxu0 %v10498_v23 }
 0x345   :  { %5234 = vmatmul.mubr.bf16.vlgmr.msra.gmra.mrb[40].mxu1 %v10498_v23  ;;  %5137 = vmatprep.mubr.bf16.mxu0 %v10509_v16  ;;  %v7962_v23 = vld [vmem:[%s12574_s5 + $0x24c] ss:$16 sps:$4 sm:$0xff]  }
 0x346   :  { %5149 = vmatpush1.bf16.msra.mxu0 %v7945_v48  ;;  %5243 = vmatprep.mubr.bf16.mxu1 %v10509_v16  ;;  %v7957_v16 = vld [vmem:[%s12574_s5 + $0x240] ss:$16 sps:$4 sm:$0xff]   ;;  %v8004_v48 = vld [vmem:[%s12574_s5 + $0x32c] ss:$16 sps:$4 sm:$0xff]  }
 0x347   :  { %5255 = vmatpush1.bf16.msra.mxu1 %v7948_v24  ;;  %5150 = vmatprep.subr.bf16.mxu0 %v7953_v61  ;;  %v7999_v24 = vld [vmem:[%s12574_s5 + $0x320] ss:$16 sps:$4 sm:$0xff]   ;;  %v8002_v61 = vld [vmem:[%s12574_s5 + $0x328] ss:$16 sps:$4 sm:$0xff]  }
 0x348   :  { %5256 = vmatprep.subr.bf16.mxu1 %v7956_v53  ;;  %v8007_v53 = vld [vmem:[%s12574_s5 + $0x344] ss:$16 sps:$4 sm:$0xff]  }
 0x34a   :  { %5151 = vmatpush1.bf16.msra.mxu0 %v7951_v27  ;;  %v8010_v27 = vld [vmem:[%s12574_s5 + $0x34c] ss:$16 sps:$4 sm:$0xff]  }
 0x34b   :  { %5257 = vmatpush1.bf16.msra.mxu1 %v7954_v49  ;;  %5152 = vmatprep.subr.bf16.mxu0 %v7959_v18  ;;  %v8005_v49 = vld [vmem:[%s12574_s5 + $0x340] ss:$16 sps:$4 sm:$0xff]   ;;  %v8008_v18 = vld [vmem:[%s12574_s5 + $0x348] ss:$16 sps:$4 sm:$0xff]  }
 0x34c   :  { %5138 = vmatmul.mubr.bf16.gmra.mrb[44].mxu0 %v10520_v37  ;;  %5258 = vmatprep.subr.bf16.mxu1 %v7962_v23  ;;  %v8013_v23 = vld [vmem:[%s12574_s5 + $0x364] ss:$16 sps:$4 sm:$0xff]  }
 0x34d   :  { %5244 = vmatmul.mubr.bf16.gmra.mrb[44].mxu1 %v10520_v37  ;;  %5180 = vmatprep.mubr.bf16.mxu0 %v10522_v0  ;;  %v7974_v37 = vld [vmem:[%s12574_s5 + $0x28c] ss:$16 sps:$4 sm:$0xff]  }
 0x34e   :  { %5153 = vmatpush1.bf16.msra.mxu0 %v7957_v16  ;;  %5286 = vmatprep.mubr.bf16.mxu1 %v10522_v0  ;;  %v7969_v0 = vld [vmem:[%s12574_s5 + $0x280] ss:$16 sps:$4 sm:$0xff]   ;;  %v8016_v16 = vld [vmem:[%s12574_s5 + $0x36c] ss:$16 sps:$4 sm:$0xff]  }
 0x34f   :  { %5259 = vmatpush1.bf16.msra.mxu1 %v7960_v47  ;;  %5154 = vmatprep.subr.bf16.mxu0 %v7965_v30  ;;  %v8011_v47 = vld [vmem:[%s12574_s5 + $0x360] ss:$16 sps:$4 sm:$0xff]   ;;  %v8014_v30 = vld [vmem:[%s12574_s5 + $0x368] ss:$16 sps:$4 sm:$0xff]  }
 0x350   :  { %5260 = vmatprep.subr.bf16.mxu1 %v7968_v8  ;;  %v8019_v8 = vld [vmem:[%s12574_s5 + $0x384] ss:$16 sps:$4 sm:$0xff]  }
 0x352   :  { %5155 = vmatpush1.bf16.msra.mxu0 %v7963_v43  ;;  %v8022_v43 = vld [vmem:[%s12574_s5 + $0x38c] ss:$16 sps:$4 sm:$0xff]  }
 0x353   :  { %5261 = vmatpush1.bf16.msra.mxu1 %v7966_v31  ;;  %5156 = vmatprep.subr.bf16.mxu0 %v7971_v25  ;;  %v8017_v31 = vld [vmem:[%s12574_s5 + $0x380] ss:$16 sps:$4 sm:$0xff]   ;;  %v8020_v25 = vld [vmem:[%s12574_s5 + $0x388] ss:$16 sps:$4 sm:$0xff]  }
 0x354   :  { %5262 = vmatprep.subr.bf16.mxu1 %v7974_v37  ;;  %v8025_v37 = vld [vmem:[%s12574_s5 + $0x3a4] ss:$16 sps:$4 sm:$0xff]  }
 0x355   :  { %v11858_v2 = vpop.f32.mrb[32].mxu0  ;;  %v11860_v50 = vpop.f32.mrb[32].mxu1 }
 0x356   :  { %5157 = vmatpush1.bf16.msra.mxu0 %v7969_v0  ;;  %v11862_v55 = vpop.f32.mrb[33].mxu0  ;;  %v11867_v29 = vpop.f32.mrb[33].mxu1  ;;  %v8028_v0 = vld [vmem:[%s12574_s5 + $0x3ac] ss:$16 sps:$4 sm:$0xff]  }
 0x357   :  { %5263 = vmatpush1.bf16.msra.mxu1 %v7972_v58  ;;  %5158 = vmatprep.subr.bf16.mxu0 %v7977_v51  ;;  %v11872_v57 = vpop.f32.mrb[34].mxu0  ;;  %v11877_v46 = vpop.f32.mrb[34].mxu1  ;;  %v8023_v58 = vld [vmem:[%s12574_s5 + $0x3a0] ss:$16 sps:$4 sm:$0xff]   ;;  %v8026_v51 = vld [vmem:[%s12574_s5 + $0x3a8] ss:$16 sps:$4 sm:$0xff]  }
 0x358   :  { %5264 = vmatprep.subr.bf16.mxu1 %v7980_v54  ;;  %v11879_v38 = vpop.f32.mrb[35].mxu0  ;;  %v11884_v7 = vpop.f32.mrb[35].mxu1  ;;  %v8031_v54 = vld [vmem:[%s12574_s5 + $0x3c4] ss:$16 sps:$4 sm:$0xff]  }
 0x35a   :  { %5159 = vmatpush1.bf16.msra.mxu0 %v7975_v11  ;;  %v8034_v11 = vld [vmem:[%s12574_s5 + $0x3cc] ss:$16 sps:$4 sm:$0xff]  }
 0x35b   :  { %5265 = vmatpush1.bf16.msra.mxu1 %v7978_v34  ;;  %5160 = vmatprep.subr.bf16.mxu0 %v7983_v35  ;;  %v8029_v34 = vld [vmem:[%s12574_s5 + $0x3c0] ss:$16 sps:$4 sm:$0xff]   ;;  %v8032_v35 = vld [vmem:[%s12574_s5 + $0x3c8] ss:$16 sps:$4 sm:$0xff]  }
 0x35c   :  { %5266 = vmatprep.subr.bf16.mxu1 %v7986_v6  ;;  %v8037_v6 = vld [vmem:[%s12574_s5 + $0x3e4] ss:$16 sps:$4 sm:$0xff]  }
 0x35d   :  { %v11898_v45 = vpop.f32.mrb[36].mxu0  ;;  %v11903_v44 = vpop.f32.mrb[36].mxu1 }
 0x35e   :  { %5161 = vmatpush1.bf16.msra.mxu0 %v7981_v10  ;;  %v11905_v60 = vpop.f32.mrb[37].mxu0  ;;  %v11913_v12 = vpop.f32.mrb[37].mxu1  ;;  %v8040_v10 = vld [vmem:[%s12574_s5 + $0x3ec] ss:$16 sps:$4 sm:$0xff]  }
 0x35f   :  { %5267 = vmatpush1.bf16.msra.mxu1 %v7984_v52  ;;  %5162 = vmatprep.subr.bf16.mxu0 %v7989_v4  ;;  %v11915_v26 = vpop.f32.mrb[38].mxu0  ;;  %v11920_v36 = vpop.f32.mrb[38].mxu1  ;;  %v8035_v52 = vld [vmem:[%s12574_s5 + $0x3e0] ss:$16 sps:$4 sm:$0xff]   ;;  %v8038_v4 = vld [vmem:[%s12574_s5 + $0x3e8] ss:$16 sps:$4 sm:$0xff]  }
 0x360   :  { %5268 = vmatprep.subr.bf16.mxu1 %v7992_v39  ;;  %v11922_v41 = vpop.f32.mrb[39].mxu0  ;;  %v11924_v33 = vpop.f32.mrb[39].mxu1  ;;  %v8043_v39 = vld [vmem:[%s12574_s5 + $0x804] ss:$16 sps:$4 sm:$0xff]  }
 0x362   :  { %5163 = vmatpush1.bf16.msra.mxu0 %v7987_v17  ;;  %v8046_v17 = vld [vmem:[%s12574_s5 + $0x80c] ss:$16 sps:$4 sm:$0xff]  }
 0x363   :  { %5269 = vmatpush1.bf16.msra.mxu1 %v7990_v62  ;;  %5164 = vmatprep.subr.bf16.mxu0 %v7995_v9  ;;  %v8041_v62 = vld [vmem:[%s12574_s5 + $0x800] ss:$16 sps:$4 sm:$0xff]   ;;  %v8044_v9 = vld [vmem:[%s12574_s5 + $0x808] ss:$16 sps:$4 sm:$0xff]  }
 0x364   :  { %5270 = vmatprep.subr.bf16.mxu1 %v7998_v22  ;;  %v8049_v22 = vld [vmem:[%s12574_s5 + $0x824] ss:$16 sps:$4 sm:$0xff]  }
 0x366   :  { %5165 = vmatpush1.bf16.msra.mxu0 %v7993_v28  ;;  %v8052_v28 = vld [vmem:[%s12574_s5 + $0x82c] ss:$16 sps:$4 sm:$0xff]  }
 0x367   :  { %5271 = vmatpush1.bf16.msra.mxu1 %v7996_v59  ;;  %5166 = vmatprep.subr.bf16.mxu0 %v8001_v21  ;;  %v8047_v59 = vld [vmem:[%s12574_s5 + $0x820] ss:$16 sps:$4 sm:$0xff]   ;;  %v8050_v21 = vld [vmem:[%s12574_s5 + $0x828] ss:$16 sps:$4 sm:$0xff]  }
 0x368   :  { %5272 = vmatprep.subr.bf16.mxu1 %v8004_v48  ;;  %v8055_v48 = vld [vmem:[%s12574_s5 + $0x844] ss:$16 sps:$4 sm:$0xff]  }
 0x36a   :  { %5167 = vmatpush1.bf16.msra.mxu0 %v7999_v24  ;;  %v8056_v24 = vld [vmem:[%s12574_s5 + $0x848] ss:$16 sps:$4 sm:$0xff]  }
 0x36b   :  { %5273 = vmatpush1.bf16.msra.mxu1 %v8002_v61  ;;  %5168 = vmatprep.subr.bf16.mxu0 %v8007_v53  ;;  %v8061_v61 = vld [vmem:[%s12574_s5 + $0x864] ss:$16 sps:$4 sm:$0xff]   ;;  %v8064_v53 = vld [vmem:[%s12574_s5 + $0x86c] ss:$16 sps:$4 sm:$0xff]  }
 0x36c   :  { %5274 = vmatprep.subr.bf16.mxu1 %v8010_v27  ;;  %v8059_v27 = vld [vmem:[%s12574_s5 + $0x860] ss:$16 sps:$4 sm:$0xff]  }
 0x36e   :  { %5169 = vmatpush1.bf16.msra.mxu0 %v8005_v49  ;;  %v8062_v49 = vld [vmem:[%s12574_s5 + $0x868] ss:$16 sps:$4 sm:$0xff]  }
 0x36f   :  { %5275 = vmatpush1.bf16.msra.mxu1 %v8008_v18  ;;  %5170 = vmatprep.subr.bf16.mxu0 %v8013_v23  ;;  %v8067_v18 = vld [vmem:[%s12574_s5 + $0x884] ss:$16 sps:$4 sm:$0xff]   ;;  %v8068_v23 = vld [vmem:[%s12574_s5 + $0x888] ss:$16 sps:$4 sm:$0xff]  }
 0x370   :  { %5276 = vmatprep.subr.bf16.mxu1 %v8016_v16  ;;  %v8073_v16 = vld [vmem:[%s12574_s5 + $0x8a4] ss:$16 sps:$4 sm:$0xff]  }
 0x372   :  { %5171 = vmatpush1.bf16.msra.mxu0 %v8011_v47  ;;  %v8076_v47 = vld [vmem:[%s12574_s5 + $0x8ac] ss:$16 sps:$4 sm:$0xff]  }
 0x373   :  { %5277 = vmatpush1.bf16.msra.mxu1 %v8014_v30  ;;  %5172 = vmatprep.subr.bf16.mxu0 %v8019_v8  ;;  %v8071_v30 = vld [vmem:[%s12574_s5 + $0x8a0] ss:$16 sps:$4 sm:$0xff]   ;;  %v8074_v8 = vld [vmem:[%s12574_s5 + $0x8a8] ss:$16 sps:$4 sm:$0xff]  }
 0x374   :  { %5278 = vmatprep.subr.bf16.mxu1 %v8022_v43  ;;  %v8079_v43 = vld [vmem:[%s12574_s5 + $0x8c4] ss:$16 sps:$4 sm:$0xff]  }
 0x376   :  { %5173 = vmatpush1.bf16.msra.mxu0 %v8017_v31  ;;  %v8082_v31 = vld [vmem:[%s12574_s5 + $0x8cc] ss:$16 sps:$4 sm:$0xff]  }
 0x377   :  { %5279 = vmatpush1.bf16.msra.mxu1 %v8020_v25  ;;  %5174 = vmatprep.subr.bf16.mxu0 %v8025_v37  ;;  %v8077_v25 = vld [vmem:[%s12574_s5 + $0x8c0] ss:$16 sps:$4 sm:$0xff]   ;;  %v8080_v37 = vld [vmem:[%s12574_s5 + $0x8c8] ss:$16 sps:$4 sm:$0xff]  }
 0x378   :  { %5280 = vmatprep.subr.bf16.mxu1 %v8028_v0  ;;  %v8085_v0 = vld [vmem:[%s12574_s5 + $0x8e4] ss:$16 sps:$4 sm:$0xff]  }
 0x37a   :  { %5175 = vmatpush1.bf16.msra.mxu0 %v8023_v58  ;;  %v8088_v58 = vld [vmem:[%s12574_s5 + $0x8ec] ss:$16 sps:$4 sm:$0xff]  }
 0x37b   :  { %5281 = vmatpush1.bf16.msra.mxu1 %v8026_v51  ;;  %5176 = vmatprep.subr.bf16.mxu0 %v8031_v54  ;;  %v8083_v51 = vld [vmem:[%s12574_s5 + $0x8e0] ss:$16 sps:$4 sm:$0xff]   ;;  %v8086_v54 = vld [vmem:[%s12574_s5 + $0x8e8] ss:$16 sps:$4 sm:$0xff]  }
 0x37c   :  { %5282 = vmatprep.subr.bf16.mxu1 %v8034_v11  ;;  %v8091_v11 = vld [vmem:[%s12574_s5 + $0x904] ss:$16 sps:$4 sm:$0xff]  }
 0x37e   :  { %5177 = vmatpush1.bf16.msra.mxu0 %v8029_v34  ;;  %v8094_v34 = vld [vmem:[%s12574_s5 + $0x90c] ss:$16 sps:$4 sm:$0xff]  }
 0x37f   :  { %5283 = vmatpush1.bf16.msra.mxu1 %v8032_v35  ;;  %5178 = vmatprep.subr.bf16.mxu0 %v8037_v6  ;;  %v8089_v35 = vld [vmem:[%s12574_s5 + $0x900] ss:$16 sps:$4 sm:$0xff]   ;;  %v8092_v6 = vld [vmem:[%s12574_s5 + $0x908] ss:$16 sps:$4 sm:$0xff]  }
 0x380   :  { %5284 = vmatprep.subr.bf16.mxu1 %v8040_v10  ;;  %v8097_v10 = vld [vmem:[%s12574_s5 + $0x924] ss:$16 sps:$4 sm:$0xff]  }
 0x382   :  { %5179 = vmatpush1.bf16.msra.mxu0 %v8035_v52  ;;  %v8100_v52 = vld [vmem:[%s12574_s5 + $0x92c] ss:$16 sps:$4 sm:$0xff]  }
 0x383   :  { %5285 = vmatpush1.bf16.msra.mxu1 %v8038_v4  ;;  %6083 = vmatprep.subr.bf16.mxu0 %v8043_v39  ;;  %v8095_v4 = vld [vmem:[%s12574_s5 + $0x920] ss:$16 sps:$4 sm:$0xff]   ;;  %v8098_v39 = vld [vmem:[%s12574_s5 + $0x928] ss:$16 sps:$4 sm:$0xff]  }
 0x384   :  { %6189 = vmatprep.subr.bf16.mxu1 %v8046_v17  ;;  %v8103_v17 = vld [vmem:[%s12574_s5 + $0x944] ss:$16 sps:$4 sm:$0xff]  }
 0x385   :  { %5181 = vmatmul.mubr.bf16.vlgmr.msra.gmra.mrb[40].mxu0 %v10526_v42 }
 0x386   :  { %5287 = vmatmul.mubr.bf16.vlgmr.msra.gmra.mrb[40].mxu1 %v10526_v42  ;;  %5190 = vmatprep.mubr.bf16.mxu0 %v10543_v3  ;;  %v8058_v42 = vld [vmem:[%s12574_s5 + $0x84c] ss:$16 sps:$4 sm:$0xff]  }
 0x387   :  { %5296 = vmatprep.mubr.bf16.mxu1 %v10543_v3  ;;  %6084 = vmatpush1.bf16.msra.mxu0 %v8041_v62  ;;  %v8053_v3 = vld [vmem:[%s12574_s5 + $0x840] ss:$16 sps:$4 sm:$0xff]   ;;  %v8106_v62 = vld [vmem:[%s12574_s5 + $0x94c] ss:$16 sps:$4 sm:$0xff]  }
 0x388   :  { %6190 = vmatpush1.bf16.msra.mxu1 %v8044_v9  ;;  %6085 = vmatprep.subr.bf16.mxu0 %v8049_v22  ;;  %v8101_v9 = vld [vmem:[%s12574_s5 + $0x940] ss:$16 sps:$4 sm:$0xff]   ;;  %v8104_v22 = vld [vmem:[%s12574_s5 + $0x948] ss:$16 sps:$4 sm:$0xff]  }
 0x389   :  { %6191 = vmatprep.subr.bf16.mxu1 %v8052_v28  ;;  %v8109_v28 = vld [vmem:[%s12574_s5 + $0x964] ss:$16 sps:$4 sm:$0xff]  }
 0x38b   :  { %6086 = vmatpush1.bf16.msra.mxu0 %v8047_v59  ;;  %v8112_v59 = vld [vmem:[%s12574_s5 + $0x96c] ss:$16 sps:$4 sm:$0xff]  }
 0x38c   :  { %6192 = vmatpush1.bf16.msra.mxu1 %v8050_v21  ;;  %6087 = vmatprep.subr.bf16.mxu0 %v8055_v48  ;;  %v8107_v21 = vld [vmem:[%s12574_s5 + $0x960] ss:$16 sps:$4 sm:$0xff]   ;;  %v8110_v48 = vld [vmem:[%s12574_s5 + $0x968] ss:$16 sps:$4 sm:$0xff]  }
 0x38d   :  { %5191 = vmatmul.mubr.bf16.gmra.mrb[44].mxu0 %v10545_v63  ;;  %6193 = vmatprep.subr.bf16.mxu1 %v8058_v42  ;;  %v8115_v42 = vld [vmem:[%s12574_s5 + $0x984] ss:$16 sps:$4 sm:$0xff]  }
 0x38e   :  { %5297 = vmatmul.mubr.bf16.gmra.mrb[44].mxu1 %v10545_v63  ;;  %6115 = vmatprep.mubr.bf16.mxu0 %v10552_v13  ;;  %v8070_v63 = vld [vmem:[%s12574_s5 + $0x88c] ss:$16 sps:$4 sm:$0xff]  }
 0x38f   :  { %6088 = vmatpush1.bf16.msra.mxu0 %v8053_v3  ;;  %6221 = vmatprep.mubr.bf16.mxu1 %v10552_v13  ;;  %v8065_v13 = vld [vmem:[%s12574_s5 + $0x880] ss:$16 sps:$4 sm:$0xff]   ;;  %v8118_v3 = vld [vmem:[%s12574_s5 + $0x98c] ss:$16 sps:$4 sm:$0xff]  }
 0x390   :  { %6194 = vmatpush1.bf16.msra.mxu1 %v8056_v24  ;;  %6089 = vmatprep.subr.bf16.mxu0 %v8061_v61  ;;  %v8113_v24 = vld [vmem:[%s12574_s5 + $0x980] ss:$16 sps:$4 sm:$0xff]   ;;  %v8116_v61 = vld [vmem:[%s12574_s5 + $0x988] ss:$16 sps:$4 sm:$0xff]  }
 0x391   :  { %6195 = vmatprep.subr.bf16.mxu1 %v8064_v53  ;;  %v8121_v53 = vld [vmem:[%s12574_s5 + $0x9a4] ss:$16 sps:$4 sm:$0xff]  }
 0x393   :  { %6090 = vmatpush1.bf16.msra.mxu0 %v8059_v27  ;;  %v8124_v27 = vld [vmem:[%s12574_s5 + $0x9ac] ss:$16 sps:$4 sm:$0xff]  }
 0x394   :  { %6196 = vmatpush1.bf16.msra.mxu1 %v8062_v49  ;;  %6091 = vmatprep.subr.bf16.mxu0 %v8067_v18  ;;  %v8119_v49 = vld [vmem:[%s12574_s5 + $0x9a0] ss:$16 sps:$4 sm:$0xff]   ;;  %v8122_v18 = vld [vmem:[%s12574_s5 + $0x9a8] ss:$16 sps:$4 sm:$0xff]  }
 0x395   :  { %6197 = vmatprep.subr.bf16.mxu1 %v8070_v63  ;;  %v8127_v63 = vld [vmem:[%s12574_s5 + $0x9c4] ss:$16 sps:$4 sm:$0xff]  }
 0x397   :  { %6092 = vmatpush1.bf16.msra.mxu0 %v8065_v13  ;;  %v8130_v13 = vld [vmem:[%s12574_s5 + $0x9cc] ss:$16 sps:$4 sm:$0xff]  }
 0x398   :  { %6198 = vmatpush1.bf16.msra.mxu1 %v8068_v23  ;;  %6093 = vmatprep.subr.bf16.mxu0 %v8073_v16  ;;  %v8125_v23 = vld [vmem:[%s12574_s5 + $0x9c0] ss:$16 sps:$4 sm:$0xff]   ;;  %v8128_v16 = vld [vmem:[%s12574_s5 + $0x9c8] ss:$16 sps:$4 sm:$0xff]  }
 0x399   :  { %6199 = vmatprep.subr.bf16.mxu1 %v8076_v47  ;;  %v8133_v47 = vld [vmem:[%s12574_s5 + $0x9e4] ss:$16 sps:$4 sm:$0xff]  }
 0x39b   :  { %6094 = vmatpush1.bf16.msra.mxu0 %v8071_v30  ;;  %v8136_v30 = vld [vmem:[%s12574_s5 + $0x9ec] ss:$16 sps:$4 sm:$0xff]  }
 0x39c   :  { %6200 = vmatpush1.bf16.msra.mxu1 %v8074_v8  ;;  %6095 = vmatprep.subr.bf16.mxu0 %v8079_v43  ;;  %v8131_v8 = vld [vmem:[%s12574_s5 + $0x9e0] ss:$16 sps:$4 sm:$0xff]   ;;  %v8134_v43 = vld [vmem:[%s12574_s5 + $0x9e8] ss:$16 sps:$4 sm:$0xff]  }
 0x39d   :  { %6201 = vmatprep.subr.bf16.mxu1 %v8082_v31  ;;  %v8139_v31 = vld [vmem:[%s12574_s5 + $0xa04] ss:$16 sps:$4 sm:$0xff]  }
 0x39f   :  { %6096 = vmatpush1.bf16.msra.mxu0 %v8077_v25  ;;  %v8142_v25 = vld [vmem:[%s12574_s5 + $0xa0c] ss:$16 sps:$4 sm:$0xff]  }
 0x3a0   :  { %6202 = vmatpush1.bf16.msra.mxu1 %v8080_v37  ;;  %6097 = vmatprep.subr.bf16.mxu0 %v8085_v0  ;;  %v8137_v37 = vld [vmem:[%s12574_s5 + $0xa00] ss:$16 sps:$4 sm:$0xff]   ;;  %v8140_v0 = vld [vmem:[%s12574_s5 + $0xa08] ss:$16 sps:$4 sm:$0xff]  }
 0x3a1   :  { %6203 = vmatprep.subr.bf16.mxu1 %v8088_v58  ;;  %v8145_v58 = vld [vmem:[%s12574_s5 + $0xa24] ss:$16 sps:$4 sm:$0xff]  }
 0x3a3   :  { %6098 = vmatpush1.bf16.msra.mxu0 %v8083_v51  ;;  %v8148_v51 = vld [vmem:[%s12574_s5 + $0xa2c] ss:$16 sps:$4 sm:$0xff]  }
 0x3a4   :  { %6204 = vmatpush1.bf16.msra.mxu1 %v8086_v54  ;;  %6099 = vmatprep.subr.bf16.mxu0 %v8091_v11  ;;  %v8143_v54 = vld [vmem:[%s12574_s5 + $0xa20] ss:$16 sps:$4 sm:$0xff]   ;;  %v8146_v11 = vld [vmem:[%s12574_s5 + $0xa28] ss:$16 sps:$4 sm:$0xff]  }
 0x3a5   :  { %6205 = vmatprep.subr.bf16.mxu1 %v8094_v34  ;;  %v8151_v34 = vld [vmem:[%s12574_s5 + $0xa44] ss:$16 sps:$4 sm:$0xff]  }
 0x3a7   :  { %6100 = vmatpush1.bf16.msra.mxu0 %v8089_v35  ;;  %v8152_v35 = vld [vmem:[%s12574_s5 + $0xa48] ss:$16 sps:$4 sm:$0xff]  }
 0x3a8   :  { %6206 = vmatpush1.bf16.msra.mxu1 %v8092_v6  ;;  %6101 = vmatprep.subr.bf16.mxu0 %v8097_v10  ;;  %v8157_v6 = vld [vmem:[%s12574_s5 + $0xa64] ss:$16 sps:$4 sm:$0xff]   ;;  %v8160_v10 = vld [vmem:[%s12574_s5 + $0xa6c] ss:$16 sps:$4 sm:$0xff]  }
 0x3a9   :  { %6207 = vmatprep.subr.bf16.mxu1 %v8100_v52  ;;  %v8155_v52 = vld [vmem:[%s12574_s5 + $0xa60] ss:$16 sps:$4 sm:$0xff]  }
 0x3ab   :  { %6102 = vmatpush1.bf16.msra.mxu0 %v8095_v4  ;;  %v8158_v4 = vld [vmem:[%s12574_s5 + $0xa68] ss:$16 sps:$4 sm:$0xff]  }
 0x3ac   :  { %6208 = vmatpush1.bf16.msra.mxu1 %v8098_v39  ;;  %6103 = vmatprep.subr.bf16.mxu0 %v8103_v17  ;;  %v8163_v39 = vld [vmem:[%s12574_s5 + $0xa84] ss:$16 sps:$4 sm:$0xff]   ;;  %v8164_v17 = vld [vmem:[%s12574_s5 + $0xa88] ss:$16 sps:$4 sm:$0xff]  }
 0x3ad   :  { %6209 = vmatprep.subr.bf16.mxu1 %v8106_v62  ;;  %v8169_v62 = vld [vmem:[%s12574_s5 + $0xaa4] ss:$16 sps:$4 sm:$0xff]  }
 0x3af   :  { %6104 = vmatpush1.bf16.msra.mxu0 %v8101_v9  ;;  %v8172_v9 = vld [vmem:[%s12574_s5 + $0xaac] ss:$16 sps:$4 sm:$0xff]  }
 0x3b0   :  { %6210 = vmatpush1.bf16.msra.mxu1 %v8104_v22  ;;  %6105 = vmatprep.subr.bf16.mxu0 %v8109_v28  ;;  %v8167_v22 = vld [vmem:[%s12574_s5 + $0xaa0] ss:$16 sps:$4 sm:$0xff]   ;;  %v8170_v28 = vld [vmem:[%s12574_s5 + $0xaa8] ss:$16 sps:$4 sm:$0xff]  }
 0x3b1   :  { %6211 = vmatprep.subr.bf16.mxu1 %v8112_v59  ;;  %v8175_v59 = vld [vmem:[%s12574_s5 + $0xac4] ss:$16 sps:$4 sm:$0xff]  }
 0x3b3   :  { %6106 = vmatpush1.bf16.msra.mxu0 %v8107_v21  ;;  %v8178_v21 = vld [vmem:[%s12574_s5 + $0xacc] ss:$16 sps:$4 sm:$0xff]  }
 0x3b4   :  { %6212 = vmatpush1.bf16.msra.mxu1 %v8110_v48  ;;  %6107 = vmatprep.subr.bf16.mxu0 %v8115_v42  ;;  %v8173_v48 = vld [vmem:[%s12574_s5 + $0xac0] ss:$16 sps:$4 sm:$0xff]   ;;  %v8176_v42 = vld [vmem:[%s12574_s5 + $0xac8] ss:$16 sps:$4 sm:$0xff]  }
 0x3b5   :  { %6213 = vmatprep.subr.bf16.mxu1 %v8118_v3  ;;  %v8181_v3 = vld [vmem:[%s12574_s5 + $0xae4] ss:$16 sps:$4 sm:$0xff]  }
 0x3b7   :  { %6108 = vmatpush1.bf16.msra.mxu0 %v8113_v24  ;;  %v8184_v24 = vld [vmem:[%s12574_s5 + $0xaec] ss:$16 sps:$4 sm:$0xff]  }
 0x3b8   :  { %6214 = vmatpush1.bf16.msra.mxu1 %v8116_v61  ;;  %6109 = vmatprep.subr.bf16.mxu0 %v8121_v53  ;;  %v8179_v61 = vld [vmem:[%s12574_s5 + $0xae0] ss:$16 sps:$4 sm:$0xff]   ;;  %v8182_v53 = vld [vmem:[%s12574_s5 + $0xae8] ss:$16 sps:$4 sm:$0xff]  }
 0x3b9   :  { %6215 = vmatprep.subr.bf16.mxu1 %v8124_v27  ;;  %v8187_v27 = vld [vmem:[%s12574_s5 + $0xb04] ss:$16 sps:$4 sm:$0xff]  }
 0x3bb   :  { %6110 = vmatpush1.bf16.msra.mxu0 %v8119_v49  ;;  %v8190_v49 = vld [vmem:[%s12574_s5 + $0xb0c] ss:$16 sps:$4 sm:$0xff]  }
 0x3bc   :  { %6216 = vmatpush1.bf16.msra.mxu1 %v8122_v18  ;;  %6111 = vmatprep.subr.bf16.mxu0 %v8127_v63  ;;  %v8185_v18 = vld [vmem:[%s12574_s5 + $0xb00] ss:$16 sps:$4 sm:$0xff]   ;;  %v8188_v63 = vld [vmem:[%s12574_s5 + $0xb08] ss:$16 sps:$4 sm:$0xff]  }
 0x3bd   :  { %6217 = vmatprep.subr.bf16.mxu1 %v8130_v13  ;;  %v8193_v13 = vld [vmem:[%s12574_s5 + $0xb24] ss:$16 sps:$4 sm:$0xff]  }
 0x3bf   :  { %6112 = vmatpush1.bf16.msra.mxu0 %v8125_v23  ;;  %v8196_v23 = vld [vmem:[%s12574_s5 + $0xb2c] ss:$16 sps:$4 sm:$0xff]  }
 0x3c0   :  { %6218 = vmatpush1.bf16.msra.mxu1 %v8128_v16  ;;  %6113 = vmatprep.subr.bf16.mxu0 %v8133_v47  ;;  %v8191_v16 = vld [vmem:[%s12574_s5 + $0xb20] ss:$16 sps:$4 sm:$0xff]   ;;  %v8194_v47 = vld [vmem:[%s12574_s5 + $0xb28] ss:$16 sps:$4 sm:$0xff]  }
 0x3c1   :  { %6219 = vmatprep.subr.bf16.mxu1 %v8136_v30  ;;  %v8199_v30 = vld [vmem:[%s12574_s5 + $0xb44] ss:$16 sps:$4 sm:$0xff]  }
 0x3c3   :  { %6114 = vmatpush1.bf16.msra.mxu0 %v8131_v8  ;;  %v8202_v8 = vld [vmem:[%s12574_s5 + $0xb4c] ss:$16 sps:$4 sm:$0xff]  }
 0x3c4   :  { %6220 = vmatpush1.bf16.msra.mxu1 %v8134_v43  ;;  %6136 = vmatprep.subr.bf16.mxu0 %v8139_v31  ;;  %v8197_v43 = vld [vmem:[%s12574_s5 + $0xb40] ss:$16 sps:$4 sm:$0xff]   ;;  %v8200_v31 = vld [vmem:[%s12574_s5 + $0xb48] ss:$16 sps:$4 sm:$0xff]  }
 0x3c5   :  { %6242 = vmatprep.subr.bf16.mxu1 %v8142_v25  ;;  %v8205_v25 = vld [vmem:[%s12574_s5 + $0xb64] ss:$16 sps:$4 sm:$0xff]  }
 0x3c6   :  { %6116 = vmatmul.mubr.bf16.vlgmr.msra.gmra.mrb[40].mxu0 %v10556_v15 }
 0x3c7   :  { %6222 = vmatmul.mubr.bf16.vlgmr.msra.gmra.mrb[40].mxu1 %v10556_v15  ;;  %6125 = vmatprep.mubr.bf16.mxu0 %v10562_v1  ;;  %v8154_v15 = vld [vmem:[%s12574_s5 + $0xa4c] ss:$16 sps:$4 sm:$0xff]  }
 0x3c8   :  { %6137 = vmatpush1.bf16.msra.mxu0 %v8137_v37  ;;  %6231 = vmatprep.mubr.bf16.mxu1 %v10562_v1  ;;  %v8149_v1 = vld [vmem:[%s12574_s5 + $0xa40] ss:$16 sps:$4 sm:$0xff]   ;;  %v8208_v37 = vld [vmem:[%s12574_s5 + $0xb6c] ss:$16 sps:$4 sm:$0xff]  }
 0x3c9   :  { %6243 = vmatpush1.bf16.msra.mxu1 %v8140_v0  ;;  %6138 = vmatprep.subr.bf16.mxu0 %v8145_v58  ;;  %v8203_v0 = vld [vmem:[%s12574_s5 + $0xb60] ss:$16 sps:$4 sm:$0xff]   ;;  %v8206_v58 = vld [vmem:[%s12574_s5 + $0xb68] ss:$16 sps:$4 sm:$0xff]  }
 0x3ca   :  { %6244 = vmatprep.subr.bf16.mxu1 %v8148_v51  ;;  %v8211_v51 = vld [vmem:[%s12574_s5 + $0xb84] ss:$16 sps:$4 sm:$0xff]  }
 0x3cc   :  { %6139 = vmatpush1.bf16.msra.mxu0 %v8143_v54  ;;  %v8214_v54 = vld [vmem:[%s12574_s5 + $0xb8c] ss:$16 sps:$4 sm:$0xff]  }
 0x3cd   :  { %6245 = vmatpush1.bf16.msra.mxu1 %v8146_v11  ;;  %6140 = vmatprep.subr.bf16.mxu0 %v8151_v34  ;;  %v8209_v11 = vld [vmem:[%s12574_s5 + $0xb80] ss:$16 sps:$4 sm:$0xff]   ;;  %v8212_v34 = vld [vmem:[%s12574_s5 + $0xb88] ss:$16 sps:$4 sm:$0xff]  }
 0x3ce   :  { %6126 = vmatmul.mubr.bf16.gmra.mrb[44].mxu0 %v10568_v5  ;;  %6246 = vmatprep.subr.bf16.mxu1 %v8154_v15  ;;  %v8217_v15 = vld [vmem:[%s12574_s5 + $0xba4] ss:$16 sps:$4 sm:$0xff]  }
 0x3cf   :  { %6232 = vmatmul.mubr.bf16.gmra.mrb[44].mxu1 %v10568_v5  ;;  %6168 = vmatprep.mubr.bf16.mxu0 %v10585_v20  ;;  %v8166_v5 = vld [vmem:[%s12574_s5 + $0xa8c] ss:$16 sps:$4 sm:$0xff]  }
 0x3d0   :  { %6141 = vmatpush1.bf16.msra.mxu0 %v8149_v1  ;;  %6274 = vmatprep.mubr.bf16.mxu1 %v10585_v20  ;;  %v8161_v20 = vld [vmem:[%s12574_s5 + $0xa80] ss:$16 sps:$4 sm:$0xff]   ;;  %v8220_v1 = vld [vmem:[%s12574_s5 + $0xbac] ss:$16 sps:$4 sm:$0xff]  }
 0x3d1   :  { %6247 = vmatpush1.bf16.msra.mxu1 %v8152_v35  ;;  %6142 = vmatprep.subr.bf16.mxu0 %v8157_v6  ;;  %v8215_v35 = vld [vmem:[%s12574_s5 + $0xba0] ss:$16 sps:$4 sm:$0xff]   ;;  %v8218_v6 = vld [vmem:[%s12574_s5 + $0xba8] ss:$16 sps:$4 sm:$0xff]  }
 0x3d2   :  { %6248 = vmatprep.subr.bf16.mxu1 %v8160_v10  ;;  %v8223_v10 = vld [vmem:[%s12574_s5 + $0xbc4] ss:$16 sps:$4 sm:$0xff]  }
 0x3d4   :  { %6143 = vmatpush1.bf16.msra.mxu0 %v8155_v52  ;;  %v8226_v52 = vld [vmem:[%s12574_s5 + $0xbcc] ss:$16 sps:$4 sm:$0xff]  }
 0x3d5   :  { %6249 = vmatpush1.bf16.msra.mxu1 %v8158_v4  ;;  %6144 = vmatprep.subr.bf16.mxu0 %v8163_v39  ;;  %v8221_v4 = vld [vmem:[%s12574_s5 + $0xbc0] ss:$16 sps:$4 sm:$0xff]   ;;  %v8224_v39 = vld [vmem:[%s12574_s5 + $0xbc8] ss:$16 sps:$4 sm:$0xff]  }
 0x3d6   :  { %6250 = vmatprep.subr.bf16.mxu1 %v8166_v5  ;;  %v8229_v5 = vld [vmem:[%s12574_s5 + $0xbe4] ss:$16 sps:$4 sm:$0xff]  }
 0x3d8   :  { %6145 = vmatpush1.bf16.msra.mxu0 %v8161_v20  ;;  %v8232_v20 = vld [vmem:[%s12574_s5 + $0xbec] ss:$16 sps:$4 sm:$0xff]  }
 0x3d9   :  { %6251 = vmatpush1.bf16.msra.mxu1 %v8164_v17  ;;  %6146 = vmatprep.subr.bf16.mxu0 %v8169_v62  ;;  %v8227_v17 = vld [vmem:[%s12574_s5 + $0xbe0] ss:$16 sps:$4 sm:$0xff]   ;;  %v8230_v62 = vld [vmem:[%s12574_s5 + $0xbe8] ss:$16 sps:$4 sm:$0xff]  }
 0x3da   :  { %6252 = vmatprep.subr.bf16.mxu1 %v8172_v9  ;;  %v3059_v9 = vld [vmem:[%s12575_s9] sm:$0xf] }
 0x3dc   :  { %6147 = vmatpush1.bf16.msra.mxu0 %v8167_v22  ;;  %v3064_v22 = vrot.slane %v3059_v9, %v9053_v40 }
 0x3dd   :  { %6253 = vmatpush1.bf16.msra.mxu1 %v8170_v28  ;;  %6148 = vmatprep.subr.bf16.mxu0 %v8175_v59  ;;  %v3097_v28 = vld [vmem:[%s12576_s10] sm:$0xf]  ;;  %v13061_v59 = vld [vmem:[#allocation9_spill] sm:$0xff] }
 0x3de   :  { %6254 = vmatprep.subr.bf16.mxu1 %v8178_v21  ;;  %v3068_v21 = vrot.slane %v3059_v9, %v12980_v19 }
 0x3e0   :  { %6149 = vmatpush1.bf16.msra.mxu0 %v8173_v48  ;;  %v13062_v48 = vld [vmem:[#allocation10_spill] sm:$0xff] }
 0x3e1   :  { %6255 = vmatpush1.bf16.msra.mxu1 %v8176_v42  ;;  %6150 = vmatprep.subr.bf16.mxu0 %v8181_v3  ;;  %v3081_v42 = vmul.f32 %v3064_v22, %v11858_v2  ;;  %v3110_v3 = vrot.slane %v3097_v28, %v13061_v59  ;;  %v3086_v2 = vmul.f32 %v3068_v21, %v11879_v38  ;;  %v6349_v38 = vld [vmem:[%s12578_s7] sm:$0xf] }
 0x3e2   :  { %6256 = vmatprep.subr.bf16.mxu1 %v8184_v24  ;;  %v3106_v24 = vrot.slane %v3097_v28, %v12980_v19 }
 0x3e4   :  { %6151 = vmatpush1.bf16.msra.mxu0 %v8179_v61 }
 0x3e5   :  { %6257 = vmatpush1.bf16.msra.mxu1 %v8182_v53  ;;  %6152 = vmatprep.subr.bf16.mxu0 %v8187_v27  ;;  %v3082_v53 = vmul.f32 %v3068_v21, %v11862_v55 }
 0x3e6   :  { %6258 = vmatprep.subr.bf16.mxu1 %v8190_v49  ;;  %v12440_v49 = vrot.slane %v3097_v28, %v13062_v48 }
 0x3e7   :  { %v3120_v55 = vadd.f32 %v3106_v24, %v3082_v53 }
 0x3e8   :  { %6153 = vmatpush1.bf16.msra.mxu0 %v8185_v18  ;;  %v3085_v18 = vmul.f32 %v3064_v22, %v11872_v57 }
 0x3e9   :  { %6259 = vmatpush1.bf16.msra.mxu1 %v8188_v63  ;;  %6154 = vmatprep.subr.bf16.mxu0 %v8193_v13 }
 0x3ea   :  { %6260 = vmatprep.subr.bf16.mxu1 %v8196_v23 }
 0x3ec   :  { %6155 = vmatpush1.bf16.msra.mxu0 %v8191_v16 }
 0x3ed   :  { %6261 = vmatpush1.bf16.msra.mxu1 %v8194_v47  ;;  %6156 = vmatprep.subr.bf16.mxu0 %v8199_v30  ;;  %v3089_v47 = vmul.f32 %v3064_v22, %v11898_v45 }
 0x3ee   :  { %6262 = vmatprep.subr.bf16.mxu1 %v8202_v8 }
 0x3f0   :  { %6157 = vmatpush1.bf16.msra.mxu0 %v8197_v43 }
 0x3f1   :  { %6263 = vmatpush1.bf16.msra.mxu1 %v8200_v31  ;;  %6158 = vmatprep.subr.bf16.mxu0 %v8205_v25  ;;  %v3093_v31 = vmul.f32 %v3064_v22, %v11915_v26 }
 0x3f2   :  { %6264 = vmatprep.subr.bf16.mxu1 %v8208_v37 }
 0x3f4   :  { %6159 = vmatpush1.bf16.msra.mxu0 %v8203_v0 }
 0x3f5   :  { %6265 = vmatpush1.bf16.msra.mxu1 %v8206_v58  ;;  %6160 = vmatprep.subr.bf16.mxu0 %v8211_v51  ;;  %v3094_v58 = vmul.f32 %v3068_v21, %v11922_v41 }
 0x3f6   :  { %6266 = vmatprep.subr.bf16.mxu1 %v8214_v54 }
 0x3f8   :  { %6161 = vmatpush1.bf16.msra.mxu0 %v8209_v11  ;;  %v12483_v11 = vrot.slane %v6349_v38, %v13061_v59 }
 0x3f9   :  { %6267 = vmatpush1.bf16.msra.mxu1 %v8212_v34  ;;  %6162 = vmatprep.subr.bf16.mxu0 %v8217_v15  ;;  %v12486_v34 = vrot.slane %v6349_v38, %v12980_v19 }
 0x3fa   :  { %6268 = vmatprep.subr.bf16.mxu1 %v8220_v1 }
 0x3fc   :  { %6163 = vmatpush1.bf16.msra.mxu0 %v8215_v35 }
 0x3fd   :  { %6269 = vmatpush1.bf16.msra.mxu1 %v8218_v6  ;;  %6164 = vmatprep.subr.bf16.mxu0 %v8223_v10  ;;  %v12495_v6 = vrot.slane %v6349_v38, %v13062_v48 }
 0x3fe   :  { %6270 = vmatprep.subr.bf16.mxu1 %v8226_v52 }
 0x400   :  { %6165 = vmatpush1.bf16.msra.mxu0 %v8221_v4 }
 0x401   :  { %6271 = vmatpush1.bf16.msra.mxu1 %v8224_v39  ;;  %6166 = vmatprep.subr.bf16.mxu0 %v8229_v5 }
 0x402   :  { %6272 = vmatprep.subr.bf16.mxu1 %v8232_v20  ;;  %v12504_v20 = vadd.f32 %v3106_v24, %v3094_v58 }
 0x404   :  { %6167 = vmatpush1.bf16.msra.mxu0 %v8227_v17 }
 0x405   :  { %6273 = vmatpush1.bf16.msra.mxu1 %v8230_v62 }
 0x407   :  { %6169 = vmatmul.mubr.bf16.vlgmr.msra.gmra.mrb[40].mxu0 %v10581_v56 }
 0x408   :  { %6275 = vmatmul.mubr.bf16.vlgmr.msra.gmra.mrb[40].mxu1 %v10581_v56  ;;  %6178 = vmatprep.mubr.bf16.mxu0 %v10598_v14  ;;  %v3072_v56 = vrot.slane %v3059_v9, %v13061_v59 }
 0x409   :  { %6284 = vmatprep.mubr.bf16.mxu1 %v10598_v14  ;;  %v3076_v14 = vrot.slane %v3059_v9, %v13062_v48 }
 0x40a   :  { %v3083_v61 = vmul.f32 %v3072_v56, %v11860_v50  ;;  %v3087_v63 = vmul.f32 %v3072_v56, %v11877_v46  ;;  %v6311_v50 = vld [vmem:[%s12577_s6] sm:$0xf]  ;;  %v3091_v57 = vmul.f32 %v3072_v56, %v11903_v44  ;;  %v3090_v46 = vmul.f32 %v3068_v21, %v11905_v60 }
 0x40b   :  { %v3084_v27 = vmul.f32 %v3076_v14, %v11867_v29  ;;  %v3088_v23 = vmul.f32 %v3076_v14, %v11884_v7  ;;  %v3124_v7 = vadd.f32 %v3106_v24, %v3086_v2  ;;  %v3092_v43 = vmul.f32 %v3076_v14, %v11913_v12 }
 0x40c   :  { %v3121_v16 = vadd.f32 %v3110_v3, %v3083_v61  ;;  %v3125_v8 = vadd.f32 %v3110_v3, %v3087_v63  ;;  %v12459_v25 = vrot.slane %v6311_v50, %v9053_v40  ;;  %v3095_v37 = vmul.f32 %v3072_v56, %v11920_v36 }
 0x40d   :  { %v3122_v29 = vadd.f32 %v12440_v49, %v3084_v27  ;;  %v3126_v45 = vadd.f32 %v12440_v49, %v3088_v23  ;;  %v12464_v44 = vrot.slane %v6311_v50, %v13061_v59  ;;  %v12467_v60 = vrot.slane %v6311_v50, %v12980_v19 }
 0x40e   :  { %v12473_v12 = vrot.slane %v6349_v38, %v9053_v40  ;;  %v12476_v26 = vrot.slane %v6311_v50, %v13062_v48  ;;  %v12478_v51 = vadd.f32 %v3110_v3, %v3091_v57  ;;  %v12480_v54 = vadd.f32 %v3106_v24, %v3090_v46 }
 0x40f   :  { %6179 = vmatmul.mubr.bf16.gmra.mrb[44].mxu0 %v10600_v32  ;;  %v12489_v15 = vadd.f32 %v12440_v49, %v3092_v43  ;;  %v12497_v10 = vadd.f32 %v3110_v3, %v3095_v37  ;;  %v12500_v52 = vmul.f32 %v3076_v14, %v11924_v33 }
 0x410   :  { %6285 = vmatmul.mubr.bf16.gmra.mrb[44].mxu1 %v10600_v32  ;;  %v3102_v32 = vrot.slane %v3097_v28, %v9053_v40 }
 0x412   :  { %v3119_v13 = vadd.f32 %v3102_v32, %v3081_v42  ;;  %v3123_v30 = vadd.f32 %v3102_v32, %v3085_v18  ;;  %v12469_v0 = vadd.f32 %v3102_v32, %v3089_v47  ;;  %v12491_v41 = vadd.f32 %v3102_v32, %v3093_v31 }
 0x4da   :  { %v6170_v36 = vpop.f32.mrb[40].mxu0 }
 0x4db   :  { %v6333_v40 = vmul.f32 %v12459_v25, %v6170_v36  ;;  %v6276_v1 = vpop.f32.mrb[40].mxu1  ;;  %v6172_v35 = vpop.f32.mrb[41].mxu0 }
 0x4dc   :  { %v6335_v19 = vmul.f32 %v12464_v44, %v6276_v1  ;;  %v6334_v4 = vmul.f32 %v12467_v60, %v6172_v35  ;;  %v6278_v39 = vpop.f32.mrb[41].mxu1  ;;  %v6174_v5 = vpop.f32.mrb[42].mxu0 }
 0x4dd   :  { %v6371_v17 = vadd.f32 %v12473_v12, %v6333_v40  ;;  %v6336_v62 = vmul.f32 %v12476_v26, %v6278_v39  ;;  %v6337_v9 = vmul.f32 %v12459_v25, %v6174_v5  ;;  %v6280_v22 = vpop.f32.mrb[42].mxu1  ;;  %v6176_v28 = vpop.f32.mrb[43].mxu0 }
 0x4de   :  { %v6373_v59 = vadd.f32 %v12483_v11, %v6335_v19  ;;  %v6372_v33 = vadd.f32 %v12486_v34, %v6334_v4  ;;  %v6339_v56 = vmul.f32 %v12464_v44, %v6280_v22  ;;  %v6338_v21 = vmul.f32 %v12467_v60, %v6176_v28  ;;  %v6282_v48 = vpop.f32.mrb[43].mxu1 }
 0x4df   :  { %v6387_v14 = vadd.f32 %v6371_v17, %v3119_v13  ;;  %v6374_v42 = vadd.f32 %v12495_v6, %v6336_v62  ;;  %v6375_v32 = vadd.f32 %v12473_v12, %v6337_v9  ;;  %v6340_v3 = vmul.f32 %v12476_v26, %v6282_v48 }
 0x4e0   :  { %v6389_v24 = vadd.f32 %v6373_v59, %v3121_v16  ;;  %v6388_v61 = vadd.f32 %v6372_v33, %v3120_v55  ;;  %v6377_v53 = vadd.f32 %v12483_v11, %v6339_v56  ;;  %v6376_v27 = vadd.f32 %v12486_v34, %v6338_v21 }
 0x4e1   :  { %v6403_v18 = vmax.f32 %v6387_v14, 0.0  ;;  %v6390_v63 = vadd.f32 %v6374_v42, %v3122_v29  ;;  %v6391_v2 = vadd.f32 %v6375_v32, %v3123_v30  ;;  %v6378_v23 = vadd.f32 %v12495_v6, %v6340_v3 }
 0x4e2   :  { %v6405_v50 = vmax.f32 %v6389_v24, 0.0  ;;  %v6404_v47 = vmax.f32 %v6388_v61, 0.0  ;;  %v6393_v13 = vadd.f32 %v6377_v53, %v3125_v8  ;;  %v6392_v57 = vadd.f32 %v6376_v27, %v3124_v7  ;;  %v6180_v46 = vpop.f32.mrb[44].mxu0 }
 0x4e3   :  { %v6406_v38 = vmax.f32 %v6390_v63, 0.0  ;;  %v6407_v43 = vmax.f32 %v6391_v2, 0.0  ;;  %v6394_v31 = vadd.f32 %v6378_v23, %v3126_v45  ;;  %v6341_v16 = vmul.f32 %v12459_v25, %v6180_v46  ;;  %v6286_v55 = vpop.f32.mrb[44].mxu1  ;;  %v6182_v37 = vpop.f32.mrb[45].mxu0 }
 0x4e4   :  { %v7139_v58 = vpack.c.bf16 %v6404_v47, %v6403_v18  ;;  %v6409_v36 = vmax.f32 %v6393_v13, 0.0  ;;  %v6408_v40 = vmax.f32 %v6392_v57, 0.0  ;;  %v6343_v29 = vmul.f32 %v12464_v44, %v6286_v55  ;;  %v6288_v30 = vpop.f32.mrb[45].mxu1  ;;  %v6184_v1 = vpop.f32.mrb[46].mxu0 }
 0x4e5   :  { %v7140_v35 = vpack.c.bf16 %v6406_v38, %v6405_v50  ;;  %v6410_v19 = vmax.f32 %v6394_v31, 0.0  ;;  %v6379_v8 = vadd.f32 %v12473_v12, %v6341_v16  ;;  %v6342_v7 = vmul.f32 %v12467_v60, %v6182_v37  ;;  %v6290_v4 = vpop.f32.mrb[46].mxu1  ;;  %v6186_v39 = vpop.f32.mrb[47].mxu0 }
 0x4e6   :  { %6467 = vst [vmem:[%s12579_s11] sm:$0xff] %v7139_v58  ;;  %v7141_v45 = vpack.c.bf16 %v6408_v40, %v6407_v43  ;;  %v6381_v5 = vadd.f32 %v12483_v11, %v6343_v29  ;;  %v6344_v17 = vmul.f32 %v12476_v26, %v6288_v30  ;;  %v6345_v62 = vmul.f32 %v12459_v25, %v6184_v1  ;;  %v6292_v9 = vpop.f32.mrb[47].mxu1 }
 0x4e7   :  { %6468 = vst [vmem:[%s12579_s11 + $0x8] sm:$0xff] %v7140_v35  ;;  %v7142_v22 = vpack.c.bf16 %v6410_v19, %v6409_v36  ;;  %v6395_v28 = vadd.f32 %v6379_v8, %v12469_v0  ;;  %v6380_v59 = vadd.f32 %v12486_v34, %v6342_v7  ;;  %v6347_v33 = vmul.f32 %v12464_v44, %v6290_v4 }
 0x4e8   :  { %6469 = vst [vmem:[%s12579_s11 + $0x10] sm:$0xff] %v7141_v45  ;;  %v6397_v56 = vadd.f32 %v6381_v5, %v12478_v51  ;;  %v6382_v25 = vadd.f32 %v12495_v6, %v6344_v17  ;;  %v6383_v21 = vadd.f32 %v12473_v12, %v6345_v62  ;;  %v6346_v48 = vmul.f32 %v12467_v60, %v6186_v39 }
 0x4e9   :  { %6470 = vst [vmem:[%s12579_s11 + $0x18] sm:$0xff] %v7142_v22  ;;  %v6411_v0 = vmax.f32 %v6395_v28, 0.0  ;;  %v6396_v14 = vadd.f32 %v6380_v59, %v12480_v54  ;;  %v6385_v44 = vadd.f32 %v12483_v11, %v6347_v33  ;;  %v6348_v42 = vmul.f32 %v12476_v26, %v6292_v9 }
 0x4ea   :  { %v6413_v32 = vmax.f32 %v6397_v56, 0.0  ;;  %v6398_v51 = vadd.f32 %v6382_v25, %v12489_v15  ;;  %v6399_v3 = vadd.f32 %v6383_v21, %v12491_v41  ;;  %v6384_v12 = vadd.f32 %v12486_v34, %v6346_v48 }
 0x4eb   :  { %v3134_v60 = vadd.f32 %v12440_v49, %v12500_v52  ;;  %v6412_v24 = vmax.f32 %v6396_v14, 0.0  ;;  %v6401_v61 = vadd.f32 %v6385_v44, %v12497_v10  ;;  %v6386_v53 = vadd.f32 %v12495_v6, %v6348_v42 }
 0x4ec   :  { %v6414_v54 = vmax.f32 %v6398_v51, 0.0  ;;  %v6415_v27 = vmax.f32 %v6399_v3, 0.0  ;;  %v6400_v11 = vadd.f32 %v6384_v12, %v12504_v20 }
 0x4ed   :  { %v7143_v26 = vpack.c.bf16 %v6412_v24, %v6411_v0  ;;  %v6417_v18 = vmax.f32 %v6401_v61, 0.0  ;;  %v6402_v63 = vadd.f32 %v6386_v53, %v3134_v60 }
 0x4ee   :  { %v7144_v15 = vpack.c.bf16 %v6414_v54, %v6413_v32  ;;  %v6416_v2 = vmax.f32 %v6400_v11, 0.0 }
 0x4ef   :  { %6471 = vst [vmem:[%s12579_s11 + $0x20] sm:$0xff] %v7143_v26  ;;  %v6418_v34 = vmax.f32 %v6402_v63, 0.0 }
 0x4f0   :  { %6472 = vst [vmem:[%s12579_s11 + $0x28] sm:$0xff] %v7144_v15  ;;  %v7145_v49 = vpack.c.bf16 %v6416_v2, %v6415_v27 }
 0x4f1   :  { %v7146_v41 = vpack.c.bf16 %v6418_v34, %v6417_v18 }
 0x4f2   :  { %6473 = vst [vmem:[%s12579_s11 + $0x30] sm:$0xff] %v7145_v49 }
 0x4f3   :  { %6474 = vst [vmem:[%s12579_s11 + $0x38] sm:$0xff] %v7146_v41 }

</bundles_post_ra>
